<compile_context>
chip_gen: v6e
topology: v6e:2x2x1
jax: 0.10.0
libtpu: 0.0.40
codegen_flags: <defaults>
</compile_context>

<pallas_src>
import functools

import jax
import jax.numpy as jnp
from jax.experimental import pallas as pl
from jax.experimental.pallas import tpu as pltpu

SELU_ALPHA = 1.6732632423543772
SELU_SCALE = 1.0507009873554805

_FEAT_IN = 89          # 42 + 42 + 5 input features
_LANES = 128           # padded hidden width


def _opti_estimator_kernel(
    x_ref,                      # [TB, 89]   input dtype (f32)
    wA_ref, bA_ref,             # [89, 128] cd, [1, 128] f32   (fc0_1 | fc0_2 fused)
    wBC_ref, b1_ref,            # [217, 128] cd, [1, 128] f32  (fc1 over [g | x])
    w2_ref, b2_ref,             # [128, 128] cd, [1, 128] f32
    w3_ref, b3_ref,
    w4_ref, b4_ref,
    w5_ref, b5_ref,
    w6_ref, b6_ref,
    o_ref,                      # [TB, 128] compute dtype; cols 0:output_size = logits
    *, act_dtype,
):
    dot = functools.partial(jnp.dot, preferred_element_type=jnp.float32)
    cd = wA_ref.dtype           # matmul-operand dtype (f32 or bf16)

    def act(pre_f32):
        # SELU. exp(a)-1 (not expm1) to stay on ops with guaranteed Mosaic
        # lowering; the overflowing exp in the discarded positive branch is
        # selected away by the where.  Runs in bf16 on v6e/v7x, f32 elsewhere.
        a = pre_f32.astype(act_dtype)
        a = SELU_SCALE * jnp.where(a > 0, a, SELU_ALPHA * (jnp.exp(a) - 1.0))
        return a.astype(cd)

    x = x_ref[...].astype(cd)                                   # [TB, 89]

    # fc0_1 | fc0_2 fused: g = [selu(x0@W01 + b01) | selu(x1@W02 + b02)]
    g = act(dot(x, wA_ref[...]) + bA_ref[...])                  # [TB, 128]

    # fc1(concat(h0, h1, x2)) as a single K=217 pass over [g | x].
    # Concat is lane-aligned (operands start at lane offsets 0 and 128).
    gx = jnp.concatenate([g, x], axis=-1)                       # [TB, 217]
    h = act(dot(gx, wBC_ref[...]) + b1_ref[...])

    h = act(dot(h, w2_ref[...]) + b2_ref[...])
    h = act(dot(h, w3_ref[...]) + b3_ref[...])
    h = act(dot(h, w4_ref[...]) + b4_ref[...])
    h = act(dot(h, w5_ref[...]) + b5_ref[...])

    # fc6: logits only; sigmoid is applied post-slice in the wrapper.
    logits = dot(h, w6_ref[...]) + b6_ref[...]                  # [TB, 128] f32
    o_ref[...] = logits.astype(o_ref.dtype)


def init_params(key, output_size):
    """Deterministic synthetic parameters with PyTorch Linear shapes [out, in] / [out]."""
    dims = [
        ("fc0_1", 42, 64), ("fc0_2", 42, 64), ("fc1", 133, 64), ("fc2", 64, 64),
        ("fc3", 64, 64), ("fc4", 64, 32), ("fc5", 32, 8), ("fc6", 8, output_size),
    ]
    params = {}
    for name, fan_in, fan_out in dims:
        key, kw, kb = jax.random.split(key, 3)
        bound = 1.0 / jnp.sqrt(fan_in)
        params[name] = {
            "w": jax.random.uniform(kw, (fan_out, fan_in), jnp.float32, -bound, bound),
            "b": jax.random.uniform(kb, (fan_out,), jnp.float32, -bound, bound),
        }
    return params


def prepare_params(params, output_size, compute_dtype=jnp.bfloat16):
    """One-time layout work: transpose, zero-pad to lane-dense tiles, fuse fc0/fc1."""
    assert output_size <= _LANES

    def embed(shape, *placements):
        out = jnp.zeros(shape, jnp.float32)
        for (r, c), a in placements:
            a = jnp.asarray(a, jnp.float32)
            out = out.at[r:r + a.shape[0], c:c + a.shape[1]].set(a)
        return out

    def wt(name):       # [in, out]
        return params[name]["w"].T

    def bias(name):     # [1, out]
        return params[name]["b"][None, :]

    w1t = wt("fc1")                                                    # [133, 64]

    # Fused fc0: x[TB,89] @ wA -> [h0_pre(64) | h1_pre(64)]; rows 84:89 (x2) zero.
    wA = embed((_FEAT_IN, _LANES), ((0, 0), wt("fc0_1")), ((42, 64), wt("fc0_2")))
    bA = embed((1, _LANES), ((0, 0), bias("fc0_1")), ((0, 64), bias("fc0_2")))
    # Fused fc1 over [g(128) | x(89)]: rows 0:128 act on g, rows 212:217 on x2.
    wBC = embed((_LANES + _FEAT_IN, _LANES),
                ((0, 0), w1t[:128]), ((_LANES + 84, 0), w1t[128:133]))
    b1 = embed((1, _LANES), ((0, 0), bias("fc1")))
    w2 = embed((_LANES, _LANES), ((0, 0), wt("fc2")))
    b2 = embed((1, _LANES), ((0, 0), bias("fc2")))
    w3 = embed((_LANES, _LANES), ((0, 0), wt("fc3")))
    b3 = embed((1, _LANES), ((0, 0), bias("fc3")))
    w4 = embed((_LANES, _LANES), ((0, 0), wt("fc4")))
    b4 = embed((1, _LANES), ((0, 0), bias("fc4")))
    w5 = embed((_LANES, _LANES), ((0, 0), wt("fc5")))
    b5 = embed((1, _LANES), ((0, 0), bias("fc5")))
    w6 = embed((_LANES, _LANES), ((0, 0), wt("fc6")))
    b6 = embed((1, _LANES), ((0, 0), bias("fc6")))

    cd = compute_dtype
    # Matmul operands in compute dtype; biases stay f32 (added to f32 accumulators).
    # NOTE: on the bf16 path the raw input (including the 5 x2 features feeding
    # fc1 directly) is quantized to bf16 before the MXU; validated at 5e-2 below.
    return (wA.astype(cd), bA, wBC.astype(cd), b1,
            w2.astype(cd), b2, w3.astype(cd), b3, w4.astype(cd), b4,
            w5.astype(cd), b5, w6.astype(cd), b6)


def _default_act_dtype(compute_dtype):
    """bf16 activations only where the EUP/VPU have a bf16 path (v6e / v7x)."""
    if jnp.dtype(compute_dtype) == jnp.dtype(jnp.float32):
        return jnp.float32
    try:
        kind = jax.devices()[0].device_kind.lower()
    except Exception:
        return jnp.float32
    return jnp.bfloat16 if ("v6" in kind or "v7" in kind) else jnp.float32


@functools.partial(jax.jit, static_argnames=("output_size", "tile_b", "act_dtype"))
def opti_estimator_forward(x, prepared, *, output_size, tile_b=2048, act_dtype=None):
    B, F = x.shape
    assert F == _FEAT_IN

    compute_dtype = prepared[0].dtype
    if act_dtype is None:
        act_dtype = _default_act_dtype(compute_dtype)

    # Large tile (amortizes per-grid-step overhead) but clamped so the grid has
    # at least 2 steps when the batch allows -> both v7x TensorCores are used.
    half = ((B + 1) // 2 + 7) // 8 * 8
    tb = max(8, (min(int(tile_b), half) // 8) * 8)
    n_tiles = pl.cdiv(B, tb)

    x_spec = pl.BlockSpec((tb, _FEAT_IN), lambda i: (i, 0))
    param_specs = [pl.BlockSpec(p.shape, lambda i: (0, 0)) for p in prepared]
    out_spec = pl.BlockSpec((tb, _LANES), lambda i: (i, 0))

    kernel = functools.partial(_opti_estimator_kernel, act_dtype=act_dtype)

    logits = pl.pallas_call(
        kernel,
        out_shape=jax.ShapeDtypeStruct((B, _LANES), compute_dtype),
        grid=(n_tiles,),
        in_specs=[x_spec] + param_specs,
        out_specs=out_spec,
        compiler_params=pltpu.CompilerParams(
            dimension_semantics=("parallel",)),
    )(x, *prepared)

    # Sigmoid on the sliced, live lanes only (tiny [B, output_size] op in f32).
    return jax.nn.sigmoid(logits[:, :output_size].astype(jnp.float32))


def reference_forward(x, params):
    """Pure-JAX f32 reference matching the PyTorch module (full-precision matmuls)."""
    hp = jax.lax.Precision.HIGHEST

    def lin(name, h):
        return jnp.dot(h, params[name]["w"].T, precision=hp) + params[name]["b"]

    h0 = jax.nn.selu(lin("fc0_1", x[:, :42]))
    h1 = jax.nn.selu(lin("fc0_2", x[:, 42:84]))
    h = jnp.concatenate([h0, h1, x[:, 84:]], axis=1)
    for name in ("fc1", "fc2", "fc3", "fc4", "fc5"):
        h = jax.nn.selu(lin(name, h))
    return jax.nn.sigmoid(lin("fc6", h))


if __name__ == "__main__":
    output_size = 3
    batch = 1000        # not a multiple of the tile -> exercises masked edge blocks

    key = jax.random.PRNGKey(0)
    key_p, key_x = jax.random.split(key)
    params = init_params(key_p, output_size)
    x = jax.random.normal(key_x, (batch, _FEAT_IN), dtype=jnp.float32)

    ref = reference_forward(x, params)

    # f32 compute path (f32 MXU operands + f32 activations).  Tolerance covers
    # either MXU f32 precision mode (full multi-pass vs bf16-input single pass).
    prep_f32 = prepare_params(params, output_size, compute_dtype=jnp.float32)
    out_f32 = jax.block_until_ready(
        opti_estimator_forward(x, prep_f32, output_size=output_size))
    assert out_f32.shape == (batch, output_size)
    err_f32 = float(jnp.max(jnp.abs(out_f32 - ref)))
    assert err_f32 < 5e-3, f"f32 path max abs err {err_f32}"

    # Default bf16 path: bf16 MXU operands, f32 accumulation, bf16 logits out,
    # bf16 activations on v6e/v7x (f32 elsewhere).
    prep_bf16 = prepare_params(params, output_size)
    out_bf16 = jax.block_until_ready(
        opti_estimator_forward(x, prep_bf16, output_size=output_size))
    assert out_bf16.shape == (batch, output_size)
    err_bf16 = float(jnp.max(jnp.abs(out_bf16 - ref)))
    assert err_bf16 < 5e-2, f"bf16 path max abs err {err_bf16}"

    print("KERNEL_OK")
</pallas_src>

<mosaic_0001>
module attributes {stable_mosaic.version = 11 : i64} {
  func.func @_opti_estimator_kernel(%arg0: i32, %arg1: memref<504x89xf32, #tpu.memory_space<vmem>>, %arg2: memref<89x128xf32, #tpu.memory_space<vmem>>, %arg3: memref<1x128xf32, #tpu.memory_space<vmem>>, %arg4: memref<217x128xf32, #tpu.memory_space<vmem>>, %arg5: memref<1x128xf32, #tpu.memory_space<vmem>>, %arg6: memref<128x128xf32, #tpu.memory_space<vmem>>, %arg7: memref<1x128xf32, #tpu.memory_space<vmem>>, %arg8: memref<128x128xf32, #tpu.memory_space<vmem>>, %arg9: memref<1x128xf32, #tpu.memory_space<vmem>>, %arg10: memref<128x128xf32, #tpu.memory_space<vmem>>, %arg11: memref<1x128xf32, #tpu.memory_space<vmem>>, %arg12: memref<128x128xf32, #tpu.memory_space<vmem>>, %arg13: memref<1x128xf32, #tpu.memory_space<vmem>>, %arg14: memref<128x128xf32, #tpu.memory_space<vmem>>, %arg15: memref<1x128xf32, #tpu.memory_space<vmem>>, %arg16: memref<504x128xf32, #tpu.memory_space<vmem>>) attributes {dimension_semantics = [#tpu.dimension_semantics<parallel>], iteration_bounds = array<i64: 2>, scalar_prefetch = 0 : i64, scratch_operands = 0 : i64, tpu.core_type = #tpu.core_type<tc>, window_params = [{transform_indices = @transform_0, window_bounds = array<i64: 504, 89>}, {pipeline_mode = #tpu.pipeline_mode<synchronous>, transform_indices = @transform_1, window_bounds = array<i64: 89, 128>}, {pipeline_mode = #tpu.pipeline_mode<synchronous>, transform_indices = @transform_2, window_bounds = array<i64: 1, 128>}, {pipeline_mode = #tpu.pipeline_mode<synchronous>, transform_indices = @transform_3, window_bounds = array<i64: 217, 128>}, {pipeline_mode = #tpu.pipeline_mode<synchronous>, transform_indices = @transform_4, window_bounds = array<i64: 1, 128>}, {pipeline_mode = #tpu.pipeline_mode<synchronous>, transform_indices = @transform_5, window_bounds = array<i64: 128, 128>}, {pipeline_mode = #tpu.pipeline_mode<synchronous>, transform_indices = @transform_6, window_bounds = array<i64: 1, 128>}, {pipeline_mode = #tpu.pipeline_mode<synchronous>, transform_indices = @transform_7, window_bounds = array<i64: 128, 128>}, {pipeline_mode = #tpu.pipeline_mode<synchronous>, transform_indices = @transform_8, window_bounds = array<i64: 1, 128>}, {pipeline_mode = #tpu.pipeline_mode<synchronous>, transform_indices = @transform_9, window_bounds = array<i64: 128, 128>}, {pipeline_mode = #tpu.pipeline_mode<synchronous>, transform_indices = @transform_10, window_bounds = array<i64: 1, 128>}, {pipeline_mode = #tpu.pipeline_mode<synchronous>, transform_indices = @transform_11, window_bounds = array<i64: 128, 128>}, {pipeline_mode = #tpu.pipeline_mode<synchronous>, transform_indices = @transform_12, window_bounds = array<i64: 1, 128>}, {pipeline_mode = #tpu.pipeline_mode<synchronous>, transform_indices = @transform_13, window_bounds = array<i64: 128, 128>}, {pipeline_mode = #tpu.pipeline_mode<synchronous>, transform_indices = @transform_14, window_bounds = array<i64: 1, 128>}, {transform_indices = @transform_15, window_bounds = array<i64: 504, 128>}]} {
    %c0 = arith.constant 0 : index
    %c0_0 = arith.constant 0 : index
    %0 = vector.load %arg1[%c0, %c0_0] : memref<504x89xf32, #tpu.memory_space<vmem>>, vector<504x89xf32>
    %c0_1 = arith.constant 0 : index
    %c0_2 = arith.constant 0 : index
    %1 = vector.load %arg2[%c0_1, %c0_2] : memref<89x128xf32, #tpu.memory_space<vmem>>, vector<89x128xf32>
    %cst = arith.constant dense<0.000000e+00> : vector<504x128xf32>
    %2 = tpu.matmul %0, %1, %cst {dimension_numbers = #tpu.dot_dimension_numbers<[1], [0], [0], [1], [0, 0, 1, 1], [], []>} : vector<504x89xf32>, vector<89x128xf32>, vector<504x128xf32> -> vector<504x128xf32>
    %c0_3 = arith.constant 0 : index
    %c0_4 = arith.constant 0 : index
    %3 = vector.load %arg3[%c0_3, %c0_4] : memref<1x128xf32, #tpu.memory_space<vmem>>, vector<1x128xf32>
    %4 = vector.broadcast %3 : vector<1x128xf32> to vector<504x128xf32>
    %5 = arith.addf %2, %4 : vector<504x128xf32>
    %cst_5 = arith.constant 0.000000e+00 : f32
    %6 = vector.broadcast %cst_5 : f32 to vector<504x128xf32>
    %7 = arith.cmpf ogt, %5, %6 : vector<504x128xf32>
    %8 = math.exp %5 : vector<504x128xf32>
    %cst_6 = arith.constant 1.000000e+00 : f32
    %9 = vector.broadcast %cst_6 : f32 to vector<504x128xf32>
    %10 = arith.subf %8, %9 : vector<504x128xf32>
    %cst_7 = arith.constant 1.67326319 : f32
    %11 = vector.broadcast %cst_7 : f32 to vector<504x128xf32>
    %12 = arith.mulf %11, %10 : vector<504x128xf32>
    %13 = arith.select %7, %5, %12 : vector<504x128xi1>, vector<504x128xf32>
    %cst_8 = arith.constant 1.05070102 : f32
    %14 = vector.broadcast %cst_8 : f32 to vector<504x128xf32>
    %15 = arith.mulf %14, %13 : vector<504x128xf32>
    %16 = tpu.concatenate %15, %0 in 1 : vector<504x128xf32>, vector<504x89xf32> -> vector<504x217xf32>
    %c0_9 = arith.constant 0 : index
    %c0_10 = arith.constant 0 : index
    %17 = vector.load %arg4[%c0_9, %c0_10] : memref<217x128xf32, #tpu.memory_space<vmem>>, vector<217x128xf32>
    %cst_11 = arith.constant dense<0.000000e+00> : vector<504x128xf32>
    %18 = tpu.matmul %16, %17, %cst_11 {dimension_numbers = #tpu.dot_dimension_numbers<[1], [0], [0], [1], [0, 0, 1, 1], [], []>} : vector<504x217xf32>, vector<217x128xf32>, vector<504x128xf32> -> vector<504x128xf32>
    %c0_12 = arith.constant 0 : index
    %c0_13 = arith.constant 0 : index
    %19 = vector.load %arg5[%c0_12, %c0_13] : memref<1x128xf32, #tpu.memory_space<vmem>>, vector<1x128xf32>
    %20 = vector.broadcast %19 : vector<1x128xf32> to vector<504x128xf32>
    %21 = arith.addf %18, %20 : vector<504x128xf32>
    %cst_14 = arith.constant 0.000000e+00 : f32
    %22 = vector.broadcast %cst_14 : f32 to vector<504x128xf32>
    %23 = arith.cmpf ogt, %21, %22 : vector<504x128xf32>
    %24 = math.exp %21 : vector<504x128xf32>
    %cst_15 = arith.constant 1.000000e+00 : f32
    %25 = vector.broadcast %cst_15 : f32 to vector<504x128xf32>
    %26 = arith.subf %24, %25 : vector<504x128xf32>
    %cst_16 = arith.constant 1.67326319 : f32
    %27 = vector.broadcast %cst_16 : f32 to vector<504x128xf32>
    %28 = arith.mulf %27, %26 : vector<504x128xf32>
    %29 = arith.select %23, %21, %28 : vector<504x128xi1>, vector<504x128xf32>
    %cst_17 = arith.constant 1.05070102 : f32
    %30 = vector.broadcast %cst_17 : f32 to vector<504x128xf32>
    %31 = arith.mulf %30, %29 : vector<504x128xf32>
    %c0_18 = arith.constant 0 : index
    %c0_19 = arith.constant 0 : index
    %32 = vector.load %arg6[%c0_18, %c0_19] : memref<128x128xf32, #tpu.memory_space<vmem>>, vector<128x128xf32>
    %cst_20 = arith.constant dense<0.000000e+00> : vector<504x128xf32>
    %33 = tpu.matmul %31, %32, %cst_20 {dimension_numbers = #tpu.dot_dimension_numbers<[1], [0], [0], [1], [0, 0, 1, 1], [], []>} : vector<504x128xf32>, vector<128x128xf32>, vector<504x128xf32> -> vector<504x128xf32>
    %c0_21 = arith.constant 0 : index
    %c0_22 = arith.constant 0 : index
    %34 = vector.load %arg7[%c0_21, %c0_22] : memref<1x128xf32, #tpu.memory_space<vmem>>, vector<1x128xf32>
    %35 = vector.broadcast %34 : vector<1x128xf32> to vector<504x128xf32>
    %36 = arith.addf %33, %35 : vector<504x128xf32>
    %cst_23 = arith.constant 0.000000e+00 : f32
    %37 = vector.broadcast %cst_23 : f32 to vector<504x128xf32>
    %38 = arith.cmpf ogt, %36, %37 : vector<504x128xf32>
    %39 = math.exp %36 : vector<504x128xf32>
    %cst_24 = arith.constant 1.000000e+00 : f32
    %40 = vector.broadcast %cst_24 : f32 to vector<504x128xf32>
    %41 = arith.subf %39, %40 : vector<504x128xf32>
    %cst_25 = arith.constant 1.67326319 : f32
    %42 = vector.broadcast %cst_25 : f32 to vector<504x128xf32>
    %43 = arith.mulf %42, %41 : vector<504x128xf32>
    %44 = arith.select %38, %36, %43 : vector<504x128xi1>, vector<504x128xf32>
    %cst_26 = arith.constant 1.05070102 : f32
    %45 = vector.broadcast %cst_26 : f32 to vector<504x128xf32>
    %46 = arith.mulf %45, %44 : vector<504x128xf32>
    %c0_27 = arith.constant 0 : index
    %c0_28 = arith.constant 0 : index
    %47 = vector.load %arg8[%c0_27, %c0_28] : memref<128x128xf32, #tpu.memory_space<vmem>>, vector<128x128xf32>
    %cst_29 = arith.constant dense<0.000000e+00> : vector<504x128xf32>
    %48 = tpu.matmul %46, %47, %cst_29 {dimension_numbers = #tpu.dot_dimension_numbers<[1], [0], [0], [1], [0, 0, 1, 1], [], []>} : vector<504x128xf32>, vector<128x128xf32>, vector<504x128xf32> -> vector<504x128xf32>
    %c0_30 = arith.constant 0 : index
    %c0_31 = arith.constant 0 : index
    %49 = vector.load %arg9[%c0_30, %c0_31] : memref<1x128xf32, #tpu.memory_space<vmem>>, vector<1x128xf32>
    %50 = vector.broadcast %49 : vector<1x128xf32> to vector<504x128xf32>
    %51 = arith.addf %48, %50 : vector<504x128xf32>
    %cst_32 = arith.constant 0.000000e+00 : f32
    %52 = vector.broadcast %cst_32 : f32 to vector<504x128xf32>
    %53 = arith.cmpf ogt, %51, %52 : vector<504x128xf32>
    %54 = math.exp %51 : vector<504x128xf32>
    %cst_33 = arith.constant 1.000000e+00 : f32
    %55 = vector.broadcast %cst_33 : f32 to vector<504x128xf32>
    %56 = arith.subf %54, %55 : vector<504x128xf32>
    %cst_34 = arith.constant 1.67326319 : f32
    %57 = vector.broadcast %cst_34 : f32 to vector<504x128xf32>
    %58 = arith.mulf %57, %56 : vector<504x128xf32>
    %59 = arith.select %53, %51, %58 : vector<504x128xi1>, vector<504x128xf32>
    %cst_35 = arith.constant 1.05070102 : f32
    %60 = vector.broadcast %cst_35 : f32 to vector<504x128xf32>
    %61 = arith.mulf %60, %59 : vector<504x128xf32>
    %c0_36 = arith.constant 0 : index
    %c0_37 = arith.constant 0 : index
    %62 = vector.load %arg10[%c0_36, %c0_37] : memref<128x128xf32, #tpu.memory_space<vmem>>, vector<128x128xf32>
    %cst_38 = arith.constant dense<0.000000e+00> : vector<504x128xf32>
    %63 = tpu.matmul %61, %62, %cst_38 {dimension_numbers = #tpu.dot_dimension_numbers<[1], [0], [0], [1], [0, 0, 1, 1], [], []>} : vector<504x128xf32>, vector<128x128xf32>, vector<504x128xf32> -> vector<504x128xf32>
    %c0_39 = arith.constant 0 : index
    %c0_40 = arith.constant 0 : index
    %64 = vector.load %arg11[%c0_39, %c0_40] : memref<1x128xf32, #tpu.memory_space<vmem>>, vector<1x128xf32>
    %65 = vector.broadcast %64 : vector<1x128xf32> to vector<504x128xf32>
    %66 = arith.addf %63, %65 : vector<504x128xf32>
    %cst_41 = arith.constant 0.000000e+00 : f32
    %67 = vector.broadcast %cst_41 : f32 to vector<504x128xf32>
    %68 = arith.cmpf ogt, %66, %67 : vector<504x128xf32>
    %69 = math.exp %66 : vector<504x128xf32>
    %cst_42 = arith.constant 1.000000e+00 : f32
    %70 = vector.broadcast %cst_42 : f32 to vector<504x128xf32>
    %71 = arith.subf %69, %70 : vector<504x128xf32>
    %cst_43 = arith.constant 1.67326319 : f32
    %72 = vector.broadcast %cst_43 : f32 to vector<504x128xf32>
    %73 = arith.mulf %72, %71 : vector<504x128xf32>
    %74 = arith.select %68, %66, %73 : vector<504x128xi1>, vector<504x128xf32>
    %cst_44 = arith.constant 1.05070102 : f32
    %75 = vector.broadcast %cst_44 : f32 to vector<504x128xf32>
    %76 = arith.mulf %75, %74 : vector<504x128xf32>
    %c0_45 = arith.constant 0 : index
    %c0_46 = arith.constant 0 : index
    %77 = vector.load %arg12[%c0_45, %c0_46] : memref<128x128xf32, #tpu.memory_space<vmem>>, vector<128x128xf32>
    %cst_47 = arith.constant dense<0.000000e+00> : vector<504x128xf32>
    %78 = tpu.matmul %76, %77, %cst_47 {dimension_numbers = #tpu.dot_dimension_numbers<[1], [0], [0], [1], [0, 0, 1, 1], [], []>} : vector<504x128xf32>, vector<128x128xf32>, vector<504x128xf32> -> vector<504x128xf32>
    %c0_48 = arith.constant 0 : index
    %c0_49 = arith.constant 0 : index
    %79 = vector.load %arg13[%c0_48, %c0_49] : memref<1x128xf32, #tpu.memory_space<vmem>>, vector<1x128xf32>
    %80 = vector.broadcast %79 : vector<1x128xf32> to vector<504x128xf32>
    %81 = arith.addf %78, %80 : vector<504x128xf32>
    %cst_50 = arith.constant 0.000000e+00 : f32
    %82 = vector.broadcast %cst_50 : f32 to vector<504x128xf32>
    %83 = arith.cmpf ogt, %81, %82 : vector<504x128xf32>
    %84 = math.exp %81 : vector<504x128xf32>
    %cst_51 = arith.constant 1.000000e+00 : f32
    %85 = vector.broadcast %cst_51 : f32 to vector<504x128xf32>
    %86 = arith.subf %84, %85 : vector<504x128xf32>
    %cst_52 = arith.constant 1.67326319 : f32
    %87 = vector.broadcast %cst_52 : f32 to vector<504x128xf32>
    %88 = arith.mulf %87, %86 : vector<504x128xf32>
    %89 = arith.select %83, %81, %88 : vector<504x128xi1>, vector<504x128xf32>
    %cst_53 = arith.constant 1.05070102 : f32
    %90 = vector.broadcast %cst_53 : f32 to vector<504x128xf32>
    %91 = arith.mulf %90, %89 : vector<504x128xf32>
    %c0_54 = arith.constant 0 : index
    %c0_55 = arith.constant 0 : index
    %92 = vector.load %arg14[%c0_54, %c0_55] : memref<128x128xf32, #tpu.memory_space<vmem>>, vector<128x128xf32>
    %cst_56 = arith.constant dense<0.000000e+00> : vector<504x128xf32>
    %93 = tpu.matmul %91, %92, %cst_56 {dimension_numbers = #tpu.dot_dimension_numbers<[1], [0], [0], [1], [0, 0, 1, 1], [], []>} : vector<504x128xf32>, vector<128x128xf32>, vector<504x128xf32> -> vector<504x128xf32>
    %c0_57 = arith.constant 0 : index
    %c0_58 = arith.constant 0 : index
    %94 = vector.load %arg15[%c0_57, %c0_58] : memref<1x128xf32, #tpu.memory_space<vmem>>, vector<1x128xf32>
    %95 = vector.broadcast %94 : vector<1x128xf32> to vector<504x128xf32>
    %96 = arith.addf %93, %95 : vector<504x128xf32>
    %c0_59 = arith.constant 0 : index
    %c0_60 = arith.constant 0 : index
    %97 = vector.load %arg16[%c0_59, %c0_60] : memref<504x128xf32, #tpu.memory_space<vmem>>, vector<504x128xf32>
    tpu.vector_store %arg16[%c0_59, %c0_60], %96 {strides = array<i32>} : memref<504x128xf32, #tpu.memory_space<vmem>>, vector<504x128xf32>,
    return
  }
  func.func @transform_0(%arg0: i32) -> (i32, i32) {
    %c0_i32 = arith.constant 0 : i32
    %c0_i32_0 = arith.constant 0 : i32
    return %arg0, %c0_i32 : i32, i32
  }
  func.func @transform_1(%arg0: i32) -> (i32, i32) {
    %c0_i32 = arith.constant 0 : i32
    %c0_i32_0 = arith.constant 0 : i32
    %c0_i32_1 = arith.constant 0 : i32
    return %c0_i32, %c0_i32_0 : i32, i32
  }
  func.func @transform_2(%arg0: i32) -> (i32, i32) {
    %c0_i32 = arith.constant 0 : i32
    %c0_i32_0 = arith.constant 0 : i32
    %c0_i32_1 = arith.constant 0 : i32
    return %c0_i32, %c0_i32_0 : i32, i32
  }
  func.func @transform_3(%arg0: i32) -> (i32, i32) {
    %c0_i32 = arith.constant 0 : i32
    %c0_i32_0 = arith.constant 0 : i32
    %c0_i32_1 = arith.constant 0 : i32
    return %c0_i32, %c0_i32_0 : i32, i32
  }
  func.func @transform_4(%arg0: i32) -> (i32, i32) {
    %c0_i32 = arith.constant 0 : i32
    %c0_i32_0 = arith.constant 0 : i32
    %c0_i32_1 = arith.constant 0 : i32
    return %c0_i32, %c0_i32_0 : i32, i32
  }
  func.func @transform_5(%arg0: i32) -> (i32, i32) {
    %c0_i32 = arith.constant 0 : i32
    %c0_i32_0 = arith.constant 0 : i32
    %c0_i32_1 = arith.constant 0 : i32
    return %c0_i32, %c0_i32_0 : i32, i32
  }
  func.func @transform_6(%arg0: i32) -> (i32, i32) {
    %c0_i32 = arith.constant 0 : i32
    %c0_i32_0 = arith.constant 0 : i32
    %c0_i32_1 = arith.constant 0 : i32
    return %c0_i32, %c0_i32_0 : i32, i32
  }
  func.func @transform_7(%arg0: i32) -> (i32, i32) {
    %c0_i32 = arith.constant 0 : i32
    %c0_i32_0 = arith.constant 0 : i32
    %c0_i32_1 = arith.constant 0 : i32
    return %c0_i32, %c0_i32_0 : i32, i32
  }
  func.func @transform_8(%arg0: i32) -> (i32, i32) {
    %c0_i32 = arith.constant 0 : i32
    %c0_i32_0 = arith.constant 0 : i32
    %c0_i32_1 = arith.constant 0 : i32
    return %c0_i32, %c0_i32_0 : i32, i32
  }
  func.func @transform_9(%arg0: i32) -> (i32, i32) {
    %c0_i32 = arith.constant 0 : i32
    %c0_i32_0 = arith.constant 0 : i32
    %c0_i32_1 = arith.constant 0 : i32
    return %c0_i32, %c0_i32_0 : i32, i32
  }
  func.func @transform_10(%arg0: i32) -> (i32, i32) {
    %c0_i32 = arith.constant 0 : i32
    %c0_i32_0 = arith.constant 0 : i32
    %c0_i32_1 = arith.constant 0 : i32
    return %c0_i32, %c0_i32_0 : i32, i32
  }
  func.func @transform_11(%arg0: i32) -> (i32, i32) {
    %c0_i32 = arith.constant 0 : i32
    %c0_i32_0 = arith.constant 0 : i32
    %c0_i32_1 = arith.constant 0 : i32
    return %c0_i32, %c0_i32_0 : i32, i32
  }
  func.func @transform_12(%arg0: i32) -> (i32, i32) {
    %c0_i32 = arith.constant 0 : i32
    %c0_i32_0 = arith.constant 0 : i32
    %c0_i32_1 = arith.constant 0 : i32
    return %c0_i32, %c0_i32_0 : i32, i32
  }
  func.func @transform_13(%arg0: i32) -> (i32, i32) {
    %c0_i32 = arith.constant 0 : i32
    %c0_i32_0 = arith.constant 0 : i32
    %c0_i32_1 = arith.constant 0 : i32
    return %c0_i32, %c0_i32_0 : i32, i32
  }
  func.func @transform_14(%arg0: i32) -> (i32, i32) {
    %c0_i32 = arith.constant 0 : i32
    %c0_i32_0 = arith.constant 0 : i32
    %c0_i32_1 = arith.constant 0 : i32
    return %c0_i32, %c0_i32_0 : i32, i32
  }
  func.func @transform_15(%arg0: i32) -> (i32, i32) {
    %c0_i32 = arith.constant 0 : i32
    %c0_i32_0 = arith.constant 0 : i32
    return %arg0, %c0_i32 : i32, i32
  }
}

</mosaic_0001>

<bundles_post_ra>
// kernel: opti_estimator_forward.1
= control target key start
LH: loop header
LB: loop body
LE: loop exit
PB: predicated region body
PF: predicated region fallthrough
CT: control target
= control target key end

     0   :  { %s14582_s0 = inlined_call_operand.vmem [shape: f32[1000,89], index: 0, kind: input, shape index: {}]   ;;  %s14583_s1 = inlined_call_operand.vmem [shape: f32[89,128], index: 1, kind: input, shape index: {}]   ;;  %s14584_s2 = inlined_call_operand.vmem [shape: f32[1,128], index: 2, kind: input, shape index: {}]   ;;  %s14585_s3 = inlined_call_operand.vmem [shape: f32[217,128], index: 3, kind: input, shape index: {}]   ;;  %s14586_s4 = inlined_call_operand.vmem [shape: f32[1,128], index: 4, kind: input, shape index: {}]   ;;  %s14587_s5 = inlined_call_operand.vmem [shape: f32[128,128], index: 5, kind: input, shape index: {}]   ;;  %s14588_s6 = inlined_call_operand.vmem [shape: f32[1,128], index: 6, kind: input, shape index: {}]   ;;  %s14589_s7 = inlined_call_operand.vmem [shape: f32[128,128], index: 7, kind: input, shape index: {}]   ;;  %s14590_s8 = inlined_call_operand.vmem [shape: f32[1,128], index: 8, kind: input, shape index: {}]   ;;  %s14591_s9 = inlined_call_operand.vmem [shape: f32[128,128], index: 9, kind: input, shape index: {}]   ;;  %s14592_s10 = inlined_call_operand.vmem [shape: f32[1,128], index: 10, kind: input, shape index: {}]   ;;  %s14593_s11 = inlined_call_operand.vmem [shape: f32[128,128], index: 11, kind: input, shape index: {}]   ;;  %s14594_s12 = inlined_call_operand.vmem [shape: f32[1,128], index: 12, kind: input, shape index: {}]   ;;  %s14595_s13 = inlined_call_operand.vmem [shape: f32[128,128], index: 13, kind: input, shape index: {}]   ;;  %s14596_s14 = inlined_call_operand.vmem [shape: f32[1,128], index: 14, kind: input, shape index: {}]   ;;  %s14597_s15 = inlined_call_operand.vmem [shape: f32[1000,128], index: 15, kind: output, shape index: {}]  }
   0x1   :  { %14598 = sst [smem:[#allocation3_spill]] %s14582_s0 }
   0x2   :  { %14599 = sst [smem:[#allocation4_spill]] %s14583_s1 }
   0x3   :  { %14600 = sst [smem:[#allocation5_spill]] %s14584_s2 }
   0x4   :  { %14601 = sst [smem:[#allocation6_spill]] %s14585_s3 }
   0x5   :  { %14602 = sst [smem:[#allocation7_spill]] %s14586_s4 }
   0x6   :  { %s10192_s18 = smov 0   ;;  %s10194_s19 = smov 0  }
   0x7   :  { %s10196_s20 = smov 0  }
   0x8 LB: > { %s10205_s21 = sadd.s32 4294967295, %s10076_s20   ;;  %s10207_s22 = sadd.s32 1, %s10076_s20   ;;  %s10076_s20 = sphi %s10196_s20, %s14616_s20   ;;  %s10072_s19 = sphi %s10194_s19, %s14615_s19   ;;  %s10068_s18 = sphi %s10192_s18, %s14614_s18  }
   0x9   : > { %s349_s23 = ssub.s32 %s10076_s20, %s10207_s22  ;;  %s352_s24 = sadd.s32 1, %s10072_s19 }
   0xa   : > { %p350_p0 = scmp.eq.s32.totalorder %s349_s23, 0  ;;  %p362_p1 = scmp.ne.s32.totalorder %s10072_s19, %s10068_s18 }
   0xb   : > { %p363_p2 = scmp.eq.s32.totalorder %s10205_s21, 1  ;;  %p6783_p3 = scmp.ge.s32.totalorder %s10076_s20, 1 }
   0xc   : > { %s10215_s25 = scalar_select %p350_p0, %s10072_s19, %s352_s24  }
   0xd   : > { %p10217_p4 = por %p363_p2, %p362_p1  ;;  %p446_p5 = scmp.lt.s32.totalorder %s10076_s20, 3 }
   0xf   : > { %p447_p6 = pnand %p6783_p3, %p446_p5 }
  0x10   : > { %s14604_s1 = sld [smem:[#allocation4_spill]] (!%p447_p6)  ;;  %s10238_s20 = smul.u32 (!%p447_p6), 63, %s10205_s21 }
  0x11   : > { %450 = sbr.rel (%p447_p6) target bundleno = 1884 (0x75c), region = 80  ;;  %s14605_s0 = sld [smem:[#allocation3_spill]] (!%p447_p6) }
  0x12   : > { %p502_p7 = scmp.lt.s32.totalorder (!%p447_p6), %s10238_s20, 124  ;;  %s14606_s3 = sld [smem:[#allocation6_spill]] (!%p447_p6) }
  0x13   : > { %s14607_s2 = sld [smem:[#allocation5_spill]] (!%p447_p6)  ;;  %s494_s16 = sand.u32 (!%p447_p6), 1, %s10068_s18  }
  0x14   : > { %s14608_s4 = sld [smem:[#allocation7_spill]] (!%p447_p6)  ;;  %s9123_s17 = smul.u32 (!%p447_p6), 504, %s494_s16 }
  0x16   : > { %v590_v0 = vld [vmem:[%s14604_s1 + $0x58] sm:$0x1]  ;;  %vm788_vm0 = vcmask 1040384   ;;  %v10110_v1 = vmov 0.0   ;;  %v589_v2 = vld [vmem:[%s14604_s1 + $0x50] sm:$0xff]  ;;  %vm10111_vm1 = vmmov 0  }
  0x17   : > { %7781 = vmatprep.subr.mxu0 %v10110_v1  ;;  %9099 = vmatprep.subr.mxu1 %v10110_v1  ;;  %v588_v3 = vld [vmem:[%s14604_s1 + $0x48] sm:$0xff]  ;;  %v587_v4 = vld [vmem:[%s14604_s1 + $0x40] sm:$0xff]  ;;  %v586_v5 = vld [vmem:[%s14604_s1 + $0x38] sm:$0xff]  ;;  %s503_s23 = scalar_select %p502_p7, %s10238_s20, 124  ;;  %vm598_vm2 = vcmask 728064  }
  0x18   : > { %7782 = vmatpush3.msk.msra.mxu0 %vm788_vm0, %v590_v0  ;;  %7805 = vmatprep.mubr.msk.f32.mxu0 %vm10111_vm1, %v10110_v1  ;;  %v585_v6 = vld [vmem:[%s14604_s1 + $0x30] sm:$0xff]  ;;  %v584_v7 = vld [vmem:[%s14604_s1 + $0x28] sm:$0xff]  ;;  %v583_v8 = vld [vmem:[%s14604_s1 + $0x20] sm:$0xff]  ;;  %s14164_s24 = scalar_lea.vmem [#allocation2], %s9123_s17   ;;  %s6322_s27 = ssub.s32 (%p10217_p4), 125, %s10238_s20 }
  0x19   : > { %7783 = vmatprep.subr.mxu0 %v10110_v1  ;;  %9111 = vmatpush3.msk.msra.mxu1 %vm788_vm0, %v590_v0  ;;  %v582_v9 = vld [vmem:[%s14604_s1 + $0x18] sm:$0xff]  ;;  %s6784_s30 = sshll.u32 %s503_s23, 3  ;;  %v581_v10 = vld [vmem:[%s14604_s1 + $0x10] sm:$0xff]  ;;  %v580_v11 = vld [vmem:[%s14604_s1 + $0x8] sm:$0xff]  ;;  %s7310_s28 = smul.u32 (%p10217_p4), 504, %s10205_s21 }
  0x1a   : > { %7784 = vmatpush3.msra.mxu0 %v589_v2  ;;  %9100 = vmatprep.subr.mxu1 %v10110_v1  ;;  %s10285_s29 = scalar_lea.vmem %s14605_s0, %s6784_s30  ;;  %v579_v12 = vld [vmem:[%s14604_s1] sm:$0xff]  ;;  %v1628_v15 = vld [vmem:[%s14606_s3 + $0x78] sm:$0xff]  ;;  %v1627_v17 = vld [vmem:[%s14606_s3 + $0x70] sm:$0xff]  ;;  %p6323_p8 = scmp.lt.s32.totalorder (%p10217_p4), %s6322_s27, 63 }
  0x1b   : > { %7785 = vmatprep.subr.mxu0 %v10110_v1  ;;  %9112 = vmatpush3.msra.mxu1 %v589_v2  ;;  %v10293_v13 = vld [vmem:[%s10285_s29] sm:$0xff]  ;;  %v10307_v16 = vld [vmem:[%s10285_s29 + $0x8] sm:$0xff]  ;;  %v10328_v20 = vld [vmem:[%s10285_s29 + $0x10] sm:$0xff]  ;;  %s14390_s16 = scalar_lea.vmem (%p10217_p4), %s14597_s15, %s7310_s28  }
  0x1c   : > { %7786 = vmatpush3.msra.mxu0 %v588_v3  ;;  %9101 = vmatprep.subr.mxu1 %v10110_v1  ;;  %v548_v14 = vld [vmem:[%s10285_s29 + $0x100] sm:$0xff]  ;;  %v549_v18 = vld [vmem:[%s10285_s29 + $0x108] sm:$0xff]  ;;  %v550_v22 = vld [vmem:[%s10285_s29 + $0x110] sm:$0xff] }
  0x1d   : > { %7787 = vmatprep.subr.mxu0 %v10110_v1  ;;  %9113 = vmatpush3.msra.mxu1 %v588_v3  ;;  %v1626_v19 = vld [vmem:[%s14606_s3 + $0x68] sm:$0xff]  ;;  %v1625_v21 = vld [vmem:[%s14606_s3 + $0x60] sm:$0xff]  ;;  %v1624_v23 = vld [vmem:[%s14606_s3 + $0x58] sm:$0xff] }
  0x1e   : > { %7788 = vmatpush3.msra.mxu0 %v587_v4  ;;  %9102 = vmatprep.subr.mxu1 %v10110_v1  ;;  %v10347_v24 = vld [vmem:[%s10285_s29 + $0x18] sm:$0xff]  ;;  %v1623_v25 = vld [vmem:[%s14606_s3 + $0x50] sm:$0xff]  ;;  %v1622_v27 = vld [vmem:[%s14606_s3 + $0x48] sm:$0xff] }
  0x1f   : > { %7789 = vmatprep.subr.mxu0 %v10110_v1  ;;  %9114 = vmatpush3.msra.mxu1 %v587_v4  ;;  %v551_v26 = vld [vmem:[%s10285_s29 + $0x118] sm:$0xff]  ;;  %v10366_v28 = vld [vmem:[%s10285_s29 + $0x20] sm:$0xff]  ;;  %v10385_v32 = vld [vmem:[%s10285_s29 + $0x28] sm:$0xff] }
  0x20   : > { %7790 = vmatpush3.msra.mxu0 %v586_v5  ;;  %9103 = vmatprep.subr.mxu1 %v10110_v1  ;;  %v1621_v29 = vld [vmem:[%s14606_s3 + $0x40] sm:$0xff]  ;;  %v1620_v31 = vld [vmem:[%s14606_s3 + $0x38] sm:$0xff]  ;;  %v1619_v33 = vld [vmem:[%s14606_s3 + $0x30] sm:$0xff] }
  0x21   : > { %7791 = vmatprep.subr.mxu0 %v10110_v1  ;;  %9115 = vmatpush3.msra.mxu1 %v586_v5  ;;  %v552_v30 = vld [vmem:[%s10285_s29 + $0x120] sm:$0xff]  ;;  %v553_v34 = vld [vmem:[%s10285_s29 + $0x128] sm:$0xff]  ;;  %v10404_v36 = vld [vmem:[%s10285_s29 + $0x30] sm:$0xff] }
  0x22   : > { %7792 = vmatpush3.msra.mxu0 %v585_v6  ;;  %9104 = vmatprep.subr.mxu1 %v10110_v1  ;;  %v1618_v35 = vld [vmem:[%s14606_s3 + $0x28] sm:$0xff]  ;;  %v1617_v37 = vld [vmem:[%s14606_s3 + $0x20] sm:$0xff]  ;;  %v554_v38 = vld [vmem:[%s10285_s29 + $0x130] sm:$0xff] }
  0x23   : > { %7793 = vmatprep.subr.mxu0 %v10110_v1  ;;  %9116 = vmatpush3.msra.mxu1 %v585_v6  ;;  %v1616_v39 = vld [vmem:[%s14606_s3 + $0x18] sm:$0xff]  ;;  %v1615_v41 = vld [vmem:[%s14606_s3 + $0x10] sm:$0xff]  ;;  %v1614_v43 = vld [vmem:[%s14606_s3 + $0x8] sm:$0xff] }
  0x24   : > { %7794 = vmatpush3.msra.mxu0 %v584_v7  ;;  %9105 = vmatprep.subr.mxu1 %v10110_v1  ;;  %v10423_v40 = vld [vmem:[%s10285_s29 + $0x38] sm:$0xff]  ;;  %v10442_v44 = vld [vmem:[%s10285_s29 + $0x40] sm:$0xff]  ;;  %v10461_v48 = vld [vmem:[%s10285_s29 + $0x48] sm:$0xff] }
  0x25   : > { %7795 = vmatprep.subr.mxu0 %v10110_v1  ;;  %9117 = vmatpush3.msra.mxu1 %v584_v7  ;;  %v555_v42 = vld [vmem:[%s10285_s29 + $0x138] sm:$0xff]  ;;  %v1613_v45 = vld [vmem:[%s14606_s3] sm:$0xff]  ;;  %v1639_v49 = vld [vmem:[%s14606_s3 + $0xd0] sm:$0xff] }
  0x26   : > { %7796 = vmatpush3.msra.mxu0 %v583_v8  ;;  %9106 = vmatprep.subr.mxu1 %v10110_v1  ;;  %v556_v46 = vld [vmem:[%s10285_s29 + $0x140] sm:$0xff]  ;;  %v1640_v47 = vld [vmem:[%s14606_s3 + $0xd8] sm:$0x1]  ;;  %v557_v50 = vld [vmem:[%s10285_s29 + $0x148] sm:$0xff] }
  0x27   : > { %7797 = vmatprep.subr.mxu0 %v10110_v1  ;;  %9118 = vmatpush3.msra.mxu1 %v583_v8  ;;  %v1638_v51 = vld [vmem:[%s14606_s3 + $0xc8] sm:$0xff]  ;;  %v10481_v52 = vld [vmem:[%s10285_s29 + $0x50] sm:$0xff]  ;;  %v1637_v53 = vld [vmem:[%s14606_s3 + $0xc0] sm:$0xff] }
  0x28   : > { %7798 = vmatpush3.msra.mxu0 %v582_v9  ;;  %9107 = vmatprep.subr.mxu1 %v10110_v1  ;;  %v558_v54 = vld [vmem:[%s10285_s29 + $0x150] sm:$0xff]  ;;  %v1636_v55 = vld [vmem:[%s14606_s3 + $0xb8] sm:$0xff]  ;;  %v10516_v59 = vld [vmem:[%s10285_s29 + $0x60] sm:$0xff] }
  0x29   : > { %7799 = vmatprep.subr.mxu0 %v10110_v1  ;;  %9119 = vmatpush3.msra.mxu1 %v582_v9  ;;  %v10500_v56 = vld [vmem:[%s10285_s29 + $0x58] sm:$0xff]  ;;  %v1635_v57 = vld [vmem:[%s14606_s3 + $0xb0] sm:$0xff]  ;;  %v560_v60 = vld [vmem:[%s10285_s29 + $0x160] sm:$0xff] }
  0x2a   : > { %7800 = vmatpush3.msra.mxu0 %v581_v10  ;;  %9108 = vmatprep.subr.mxu1 %v10110_v1  ;;  %v559_v58 = vld [vmem:[%s10285_s29 + $0x158] sm:$0xff]  ;;  %v10529_v61 = vld [vmem:[%s10285_s29 + $0x68] sm:$0xff]  ;;  %v10540_v63 = vld [vmem:[%s10285_s29 + $0x70] sm:$0xff] }
  0x2b   : > { %7801 = vmatprep.subr.mxu0 %v10110_v1  ;;  %9120 = vmatpush3.msra.mxu1 %v581_v10  ;;  %v561_v62 = vld [vmem:[%s10285_s29 + $0x168] sm:$0xff]  ;;  %v562_v0 = vld [vmem:[%s10285_s29 + $0x170] sm:$0xff]  ;;  %v10551_v2 = vld [vmem:[%s10285_s29 + $0x78] sm:$0xff] }
  0x2c   : > { %7802 = vmatpush3.msra.mxu0 %v580_v11  ;;  %9109 = vmatprep.subr.mxu1 %v10110_v1  ;;  %v563_v3 = vld [vmem:[%s10285_s29 + $0x178] sm:$0xff]  ;;  %v10562_v4 = vld [vmem:[%s10285_s29 + $0x80] sm:$0xff]  ;;  %v10573_v6 = vld [vmem:[%s10285_s29 + $0x88] sm:$0xff] }
  0x2d   : > { %7803 = vmatprep.subr.mxu0 %v10110_v1  ;;  %9121 = vmatpush3.msra.mxu1 %v580_v11  ;;  %v564_v5 = vld [vmem:[%s10285_s29 + $0x180] sm:$0xff]  ;;  %v565_v7 = vld [vmem:[%s10285_s29 + $0x188] sm:$0xff]  ;;  %v10584_v8 = vld [vmem:[%s10285_s29 + $0x90] sm:$0xff] }
  0x2e   : > { %7804 = vmatpush3.msra.mxu0 %v579_v12  ;;  %9110 = vmatprep.subr.mxu1 %v10110_v1  ;;  %v566_v9 = vld [vmem:[%s10285_s29 + $0x190] sm:$0xff]  ;;  %v10595_v10 = vld [vmem:[%s10285_s29 + $0x98] sm:$0xff] }
  0x2f   : > { %7806 = vmatmul.mubr.msk.f32.vlgmr.msra.gmra.mxu0 %vm598_vm2, %v10293_v13  ;;  %9122 = vmatpush3.msra.mxu1 %v579_v12  ;;  %v567_v11 = vld [vmem:[%s10285_s29 + $0x198] sm:$0xff]  ;;  %v10606_v12 = vld [vmem:[%s10285_s29 + $0xa0] sm:$0xff] }
  0x30   : > { %7808 = vmatprep.mubr.msk.f32.mxu0 %vm10111_vm1, %v10110_v1  ;;  %7901 = vmatprep.mubr.msk.f32.mxu1 %vm10111_vm1, %v10110_v1 }
  0x31   : > { %7902 = vmatmul.mubr.msk.f32.vlgmr.msra.gmra.mxu1 %vm598_vm2, %v548_v14  ;;  %1651 = vmatprep.subr.mxu1 %v10110_v1  ;;  %v1634_v14 = vld [vmem:[%s14606_s3 + $0xa8] sm:$0xff] }
  0x32   : > { %7904 = vmatprep.mubr.msk.f32.mxu1 %vm10111_vm1, %v10110_v1  ;;  %1652 = vmatpush1.msra.mxu1 %v1628_v15  ;;  %v568_v15 = vld [vmem:[%s10285_s29 + $0x1a0] sm:$0xff] }
  0x33   : > { %7809 = vmatmul.mubr.msk.f32.gmra.mxu0 %vm598_vm2, %v10307_v16  ;;  %1653 = vmatprep.subr.mxu1 %v10110_v1 }
  0x34   : > { %7811 = vmatprep.mubr.msk.f32.mxu0 %vm10111_vm1, %v10110_v1  ;;  %1654 = vmatpush1.msra.mxu1 %v1627_v17  ;;  %v1633_v17 = vld [vmem:[%s14606_s3 + $0xa0] sm:$0xff] }
  0x35   : > { %7905 = vmatmul.mubr.msk.f32.gmra.mxu1 %vm598_vm2, %v549_v18  ;;  %1655 = vmatprep.subr.mxu1 %v10110_v1  ;;  %v10624_v18 = vld [vmem:[%s10285_s29 + $0xa8] sm:$0xff] }
  0x36   : > { %7907 = vmatprep.mubr.msk.f32.mxu1 %vm10111_vm1, %v10110_v1  ;;  %1656 = vmatpush1.msra.mxu1 %v1626_v19  ;;  %v1632_v19 = vld [vmem:[%s14606_s3 + $0x98] sm:$0xff] }
  0x37   : > { %7812 = vmatmul.mubr.msk.f32.gmra.mxu0 %vm598_vm2, %v10328_v20  ;;  %1657 = vmatprep.subr.mxu1 %v10110_v1 }
  0x38   : > { %7814 = vmatprep.mubr.msk.f32.mxu0 %vm10111_vm1, %v10110_v1  ;;  %1658 = vmatpush1.msra.mxu1 %v1625_v21  ;;  %v569_v21 = vld [vmem:[%s10285_s29 + $0x1a8] sm:$0xff] }
  0x39   : > { %7908 = vmatmul.mubr.msk.f32.gmra.mxu1 %vm598_vm2, %v550_v22  ;;  %1659 = vmatprep.subr.mxu1 %v10110_v1  ;;  %v1631_v22 = vld [vmem:[%s14606_s3 + $0x90] sm:$0xff] }
  0x3a   : > { %7910 = vmatprep.mubr.msk.f32.mxu1 %vm10111_vm1, %v10110_v1  ;;  %1660 = vmatpush1.msra.mxu1 %v1624_v23  ;;  %v10643_v23 = vld [vmem:[%s10285_s29 + $0xb0] sm:$0xff] }
  0x3b   : > { %7815 = vmatmul.mubr.msk.f32.gmra.mxu0 %vm598_vm2, %v10347_v24  ;;  %1661 = vmatprep.subr.mxu1 %v10110_v1 }
  0x3c   : > { %7817 = vmatprep.mubr.msk.f32.mxu0 %vm10111_vm1, %v10110_v1  ;;  %1662 = vmatpush1.msra.mxu1 %v1623_v25  ;;  %v1630_v25 = vld [vmem:[%s14606_s3 + $0x88] sm:$0xff] }
  0x3d   : > { %7911 = vmatmul.mubr.msk.f32.gmra.mxu1 %vm598_vm2, %v551_v26  ;;  %1663 = vmatprep.subr.mxu1 %v10110_v1  ;;  %v570_v26 = vld [vmem:[%s10285_s29 + $0x1b0] sm:$0xff] }
  0x3e   : > { %7913 = vmatprep.mubr.msk.f32.mxu1 %vm10111_vm1, %v10110_v1  ;;  %1664 = vmatpush1.msra.mxu1 %v1622_v27  ;;  %v1629_v27 = vld [vmem:[%s14606_s3 + $0x80] sm:$0xff] }
  0x3f   : > { %7818 = vmatmul.mubr.msk.f32.gmra.mxu0 %vm598_vm2, %v10366_v28  ;;  %1665 = vmatprep.subr.mxu1 %v10110_v1 }
  0x40   : > { %7820 = vmatprep.mubr.msk.f32.mxu0 %vm10111_vm1, %v10110_v1  ;;  %1666 = vmatpush1.msra.mxu1 %v1621_v29  ;;  %v10662_v29 = vld [vmem:[%s10285_s29 + $0xb8] sm:$0xff] }
  0x41   : > { %7914 = vmatmul.mubr.msk.f32.gmra.mxu1 %vm598_vm2, %v552_v30  ;;  %1667 = vmatprep.subr.mxu1 %v10110_v1  ;;  %v571_v30 = vld [vmem:[%s10285_s29 + $0x1b8] sm:$0xff] }
  0x42   : > { %7916 = vmatprep.mubr.msk.f32.mxu1 %vm10111_vm1, %v10110_v1  ;;  %1668 = vmatpush1.msra.mxu1 %v1620_v31  ;;  %v10674_v31 = vld [vmem:[%s10285_s29 + $0xc0] sm:$0xff] }
  0x43   : > { %7821 = vmatmul.mubr.msk.f32.gmra.mxu0 %vm598_vm2, %v10385_v32  ;;  %1669 = vmatprep.subr.mxu1 %v10110_v1 }
  0x44   : > { %7823 = vmatprep.mubr.msk.f32.mxu0 %vm10111_vm1, %v10110_v1  ;;  %1670 = vmatpush1.msra.mxu1 %v1619_v33  ;;  %v572_v33 = vld [vmem:[%s10285_s29 + $0x1c0] sm:$0xff] }
  0x45   : > { %7917 = vmatmul.mubr.msk.f32.gmra.mxu1 %vm598_vm2, %v553_v34  ;;  %1671 = vmatprep.subr.mxu1 %v10110_v1  ;;  %v541_v34 = vld [vmem:[%s10285_s29 + $0xc8] sm:$0xff] }
  0x46   : > { %7919 = vmatprep.mubr.msk.f32.mxu1 %vm10111_vm1, %v10110_v1  ;;  %1672 = vmatpush1.msra.mxu1 %v1618_v35  ;;  %v573_v35 = vld [vmem:[%s10285_s29 + $0x1c8] sm:$0xff] }
  0x47   : > { %7824 = vmatmul.mubr.msk.f32.gmra.mxu0 %vm598_vm2, %v10404_v36  ;;  %1673 = vmatprep.subr.mxu1 %v10110_v1 }
  0x48   : > { %7826 = vmatprep.mubr.msk.f32.mxu0 %vm10111_vm1, %v10110_v1  ;;  %1674 = vmatpush1.msra.mxu1 %v1617_v37  ;;  %v542_v37 = vld [vmem:[%s10285_s29 + $0xd0] sm:$0xff] }
  0x49   : > { %7920 = vmatmul.mubr.msk.f32.gmra.mxu1 %vm598_vm2, %v554_v38  ;;  %1675 = vmatprep.subr.mxu1 %v10110_v1  ;;  %v574_v38 = vld [vmem:[%s10285_s29 + $0x1d0] sm:$0xff] }
  0x4a   : > { %7922 = vmatprep.mubr.msk.f32.mxu1 %vm10111_vm1, %v10110_v1  ;;  %1676 = vmatpush1.msra.mxu1 %v1616_v39  ;;  %v543_v39 = vld [vmem:[%s10285_s29 + $0xd8] sm:$0xff] }
  0x4b   : > { %7827 = vmatmul.mubr.msk.f32.gmra.mxu0 %vm598_vm2, %v10423_v40  ;;  %1677 = vmatprep.subr.mxu1 %v10110_v1 }
  0x4c   : > { %7829 = vmatprep.mubr.msk.f32.mxu0 %vm10111_vm1, %v10110_v1  ;;  %1678 = vmatpush1.msra.mxu1 %v1615_v41  ;;  %v575_v41 = vld [vmem:[%s10285_s29 + $0x1d8] sm:$0xff] }
  0x4d   : > { %7923 = vmatmul.mubr.msk.f32.gmra.mxu1 %vm598_vm2, %v555_v42  ;;  %1679 = vmatprep.subr.mxu1 %v10110_v1  ;;  %v544_v42 = vld [vmem:[%s10285_s29 + $0xe0] sm:$0xff] }
  0x4e   : > { %7925 = vmatprep.mubr.msk.f32.mxu1 %vm10111_vm1, %v10110_v1  ;;  %1680 = vmatpush1.msra.mxu1 %v1614_v43  ;;  %v576_v43 = vld [vmem:[%s10285_s29 + $0x1e0] sm:$0xff] }
  0x4f   : > { %7830 = vmatmul.mubr.msk.f32.gmra.mxu0 %vm598_vm2, %v10442_v44  ;;  %1681 = vmatprep.subr.mxu1 %v10110_v1 }
  0x50   : > { %7832 = vmatprep.mubr.msk.f32.mxu0 %vm10111_vm1, %v10110_v1  ;;  %1682 = vmatpush1.msra.mxu1 %v1613_v45  ;;  %v545_v45 = vld [vmem:[%s10285_s29 + $0xe8] sm:$0xff] }
  0x51   : > { %7926 = vmatmul.mubr.msk.f32.gmra.mxu1 %vm598_vm2, %v556_v46  ;;  %1691 = vmatprep.subr.mxu1 %v10110_v1  ;;  %v577_v46 = vld [vmem:[%s10285_s29 + $0x1e8] sm:$0xff] }
  0x52   : > { %7928 = vmatprep.mubr.msk.f32.mxu1 %vm10111_vm1, %v10110_v1  ;;  %6914 = vmatpush2.msk.msra.mxu1 %vm788_vm0, %v1640_v47  ;;  %v546_v47 = vld [vmem:[%s10285_s29 + $0xf0] sm:$0xff] }
  0x53   : > { %7833 = vmatmul.mubr.msk.f32.gmra.mxu0 %vm598_vm2, %v10461_v48  ;;  %1693 = vmatprep.subr.mxu1 %v10110_v1 }
  0x54   : > { %7835 = vmatprep.mubr.msk.f32.mxu0 %vm10111_vm1, %v10110_v1  ;;  %1694 = vmatpush2.msra.mxu1 %v1639_v49  ;;  %v578_v49 = vld [vmem:[%s10285_s29 + $0x1f0] sm:$0xff] }
  0x55   : > { %7929 = vmatmul.mubr.msk.f32.gmra.mxu1 %vm598_vm2, %v557_v50  ;;  %1695 = vmatprep.subr.mxu1 %v10110_v1  ;;  %v547_v50 = vld [vmem:[%s10285_s29 + $0xf8] sm:$0xff] }
  0x56   : > { %7931 = vmatprep.mubr.msk.f32.mxu1 %vm10111_vm1, %v10110_v1  ;;  %1696 = vmatpush2.msra.mxu1 %v1638_v51  ;;  %v10742_v51 = vld [vmem:[%s14607_s2] ss:$0 sm:$0xff] }
  0x57   : > { %7836 = vmatmul.mubr.msk.f32.gmra.mxu0 %vm598_vm2, %v10481_v52  ;;  %1697 = vmatprep.subr.mxu1 %v10110_v1 }
  0x58   : > { %7838 = vmatprep.mubr.msk.f32.mxu0 %vm10111_vm1, %v10110_v1  ;;  %1698 = vmatpush2.msra.mxu1 %v1637_v53 }
  0x59   : > { %7932 = vmatmul.mubr.msk.f32.gmra.mxu1 %vm598_vm2, %v558_v54  ;;  %1699 = vmatprep.subr.mxu1 %v10110_v1 }
  0x5a   : > { %7934 = vmatprep.mubr.msk.f32.mxu1 %vm10111_vm1, %v10110_v1  ;;  %1700 = vmatpush2.msra.mxu1 %v1636_v55 }
  0x5b   : > { %7839 = vmatmul.mubr.msk.f32.gmra.mxu0 %vm598_vm2, %v10500_v56  ;;  %1701 = vmatprep.subr.mxu1 %v10110_v1 }
  0x5c   : > { %7841 = vmatprep.mubr.msk.f32.mxu0 %vm10111_vm1, %v10110_v1  ;;  %1702 = vmatpush2.msra.mxu1 %v1635_v57 }
  0x5d   : > { %7935 = vmatmul.mubr.msk.f32.gmra.mxu1 %vm598_vm2, %v559_v58  ;;  %1703 = vmatprep.subr.mxu1 %v10110_v1 }
  0x5e   : > { %7937 = vmatprep.mubr.msk.f32.mxu1 %vm10111_vm1, %v10110_v1  ;;  %7994 = vmatprep.subr.mxu0 %v10110_v1 }
  0x5f   : > { %7842 = vmatmul.mubr.msk.f32.gmra.mxu0 %vm598_vm2, %v10516_v59  ;;  %1704 = vmatpush2.msra.mxu1 %v1634_v14 }
  0x60   : > { %7844 = vmatprep.mubr.msk.f32.mxu0 %vm10111_vm1, %v10110_v1  ;;  %1705 = vmatprep.subr.mxu1 %v10110_v1 }
  0x61   : > { %7938 = vmatmul.mubr.msk.f32.gmra.mxu1 %vm598_vm2, %v560_v60 }
  0x62   : > { %7940 = vmatprep.mubr.msk.f32.mxu1 %vm10111_vm1, %v10110_v1  ;;  %1706 = vmatpush2.msra.mxu1 %v1633_v17 }
  0x63   : > { %7845 = vmatmul.mubr.msk.f32.gmra.mxu0 %vm598_vm2, %v10529_v61  ;;  %1707 = vmatprep.subr.mxu1 %v10110_v1 }
  0x64   : > { %7847 = vmatprep.mubr.msk.f32.mxu0 %vm10111_vm1, %v10110_v1  ;;  %1708 = vmatpush2.msra.mxu1 %v1632_v19 }
  0x65   : > { %7941 = vmatmul.mubr.msk.f32.gmra.mxu1 %vm598_vm2, %v561_v62  ;;  %1709 = vmatprep.subr.mxu1 %v10110_v1 }
  0x66   : > { %7943 = vmatprep.mubr.msk.f32.mxu1 %vm10111_vm1, %v10110_v1  ;;  %1710 = vmatpush2.msra.mxu1 %v1631_v22  ;;  %v2487_v22 = vld [vmem:[%s14587_s5 + $0x78] sm:$0xff] }
  0x67   : > { %7848 = vmatmul.mubr.msk.f32.gmra.mxu0 %vm598_vm2, %v10540_v63  ;;  %1711 = vmatprep.subr.mxu1 %v10110_v1 }
  0x68   : > { %7850 = vmatprep.mubr.msk.f32.mxu0 %vm10111_vm1, %v10110_v1  ;;  %1712 = vmatpush2.msra.mxu1 %v1630_v25 }
  0x69   : > { %7944 = vmatmul.mubr.msk.f32.gmra.mxu1 %vm598_vm2, %v562_v0  ;;  %1713 = vmatprep.subr.mxu1 %v10110_v1 }
  0x6a   : > { %7946 = vmatprep.mubr.msk.f32.mxu1 %vm10111_vm1, %v10110_v1  ;;  %1714 = vmatpush2.msra.mxu1 %v1629_v27 }
  0x6b   : > { %7851 = vmatmul.mubr.msk.f32.gmra.mxu0 %vm598_vm2, %v10551_v2  ;;  %8215 = vmatprep.subr.mxu1 %v10110_v1 }
  0x6c   : > { %7853 = vmatprep.mubr.msk.f32.mxu0 %vm10111_vm1, %v10110_v1  ;;  %7995 = vmatpush3.msra.mxu0 %v2487_v22 }
  0x6d   : > { %7947 = vmatmul.mubr.msk.f32.gmra.mxu1 %vm598_vm2, %v563_v3  ;;  %7996 = vmatprep.subr.mxu0 %v10110_v1 }
  0x6e   : > { %7949 = vmatprep.mubr.msk.f32.mxu1 %vm10111_vm1, %v10110_v1 }
  0x6f   : > { %7854 = vmatmul.mubr.msk.f32.gmra.mxu0 %vm598_vm2, %v10562_v4 }
  0x70   : > { %7856 = vmatprep.mubr.msk.f32.mxu0 %vm10111_vm1, %v10110_v1 }
  0x71   : > { %7950 = vmatmul.mubr.msk.f32.gmra.mxu1 %vm598_vm2, %v564_v5 }
  0x72   : > { %7952 = vmatprep.mubr.msk.f32.mxu1 %vm10111_vm1, %v10110_v1 }
  0x73   : > { %7857 = vmatmul.mubr.msk.f32.gmra.mxu0 %vm598_vm2, %v10573_v6 }
  0x74   : > { %7859 = vmatprep.mubr.msk.f32.mxu0 %vm10111_vm1, %v10110_v1 }
  0x75   : > { %7953 = vmatmul.mubr.msk.f32.gmra.mxu1 %vm598_vm2, %v565_v7 }
  0x76   : > { %7955 = vmatprep.mubr.msk.f32.mxu1 %vm10111_vm1, %v10110_v1 }
  0x77   : > { %7860 = vmatmul.mubr.msk.f32.gmra.mxu0 %vm598_vm2, %v10584_v8 }
  0x78   : > { %7862 = vmatprep.mubr.msk.f32.mxu0 %vm10111_vm1, %v10110_v1 }
  0x79   : > { %7956 = vmatmul.mubr.msk.f32.gmra.mxu1 %vm598_vm2, %v566_v9 }
  0x7a   : > { %7958 = vmatprep.mubr.msk.f32.mxu1 %vm10111_vm1, %v10110_v1 }
  0x7b   : > { %7863 = vmatmul.mubr.msk.f32.gmra.mxu0 %vm598_vm2, %v10595_v10 }
  0x7c   : > { %7865 = vmatprep.mubr.msk.f32.mxu0 %vm10111_vm1, %v10110_v1 }
  0x7d   : > { %7959 = vmatmul.mubr.msk.f32.gmra.mxu1 %vm598_vm2, %v567_v11 }
  0x7e   : > { %7961 = vmatprep.mubr.msk.f32.mxu1 %vm10111_vm1, %v10110_v1 }
  0x7f   : > { %7866 = vmatmul.mubr.msk.f32.gmra.mxu0 %vm598_vm2, %v10606_v12 }
  0x80   : > { %7868 = vmatprep.mubr.msk.f32.mxu0 %vm10111_vm1, %v10110_v1 }
  0x81   : > { %7962 = vmatmul.mubr.msk.f32.gmra.mxu1 %vm598_vm2, %v568_v15 }
  0x82   : > { %7964 = vmatprep.mubr.msk.f32.mxu1 %vm10111_vm1, %v10110_v1 }
  0x83   : > { %7869 = vmatmul.mubr.msk.f32.gmra.mxu0 %vm598_vm2, %v10624_v18 }
  0x84   : > { %7871 = vmatprep.mubr.msk.f32.mxu0 %vm10111_vm1, %v10110_v1 }
  0x85   : > { %7965 = vmatmul.mubr.msk.f32.gmra.mxu1 %vm598_vm2, %v569_v21 }
  0x86   : > { %7967 = vmatprep.mubr.msk.f32.mxu1 %vm10111_vm1, %v10110_v1 }
  0x87   : > { %7872 = vmatmul.mubr.msk.f32.gmra.mxu0 %vm598_vm2, %v10643_v23 }
  0x88   : > { %7874 = vmatprep.mubr.msk.f32.mxu0 %vm10111_vm1, %v10110_v1 }
  0x89   : > { %7968 = vmatmul.mubr.msk.f32.gmra.mxu1 %vm598_vm2, %v570_v26 }
  0x8a   : > { %7970 = vmatprep.mubr.msk.f32.mxu1 %vm10111_vm1, %v10110_v1 }
  0x8b   : > { %7875 = vmatmul.mubr.msk.f32.gmra.mxu0 %vm598_vm2, %v10662_v29 }
  0x8c   : > { %7877 = vmatprep.mubr.msk.f32.mxu0 %vm10111_vm1, %v10110_v1 }
  0x8d   : > { %7971 = vmatmul.mubr.msk.f32.gmra.mxu1 %vm598_vm2, %v571_v30 }
  0x8e   : > { %7973 = vmatprep.mubr.msk.f32.mxu1 %vm10111_vm1, %v10110_v1 }
  0x8f   : > { %7878 = vmatmul.mubr.msk.f32.gmra.mxu0 %vm598_vm2, %v10674_v31 }
  0x90   : > { %7880 = vmatprep.mubr.msk.f32.mxu0 %vm10111_vm1, %v10110_v1 }
  0x91   : > { %7974 = vmatmul.mubr.msk.f32.gmra.mxu1 %vm598_vm2, %v572_v33 }
  0x92   : > { %7976 = vmatprep.mubr.msk.f32.mxu1 %vm10111_vm1, %v10110_v1 }
  0x93   : > { %7881 = vmatmul.mubr.msk.f32.gmra.mxu0 %vm598_vm2, %v541_v34 }
  0x94   : > { %7883 = vmatprep.mubr.msk.f32.mxu0 %vm10111_vm1, %v10110_v1 }
  0x95   : > { %7977 = vmatmul.mubr.msk.f32.gmra.mxu1 %vm598_vm2, %v573_v35 }
  0x96   : > { %7979 = vmatprep.mubr.msk.f32.mxu1 %vm10111_vm1, %v10110_v1 }
  0x97   : > { %7884 = vmatmul.mubr.msk.f32.gmra.mxu0 %vm598_vm2, %v542_v37 }
  0x98   : > { %7886 = vmatprep.mubr.msk.f32.mxu0 %vm10111_vm1, %v10110_v1 }
  0x99   : > { %7980 = vmatmul.mubr.msk.f32.gmra.mxu1 %vm598_vm2, %v574_v38 }
  0x9a   : > { %7982 = vmatprep.mubr.msk.f32.mxu1 %vm10111_vm1, %v10110_v1 }
  0x9b   : > { %7887 = vmatmul.mubr.msk.f32.gmra.mxu0 %vm598_vm2, %v543_v39 }
  0x9c   : > { %7889 = vmatprep.mubr.msk.f32.mxu0 %vm10111_vm1, %v10110_v1 }
  0x9d   : > { %7983 = vmatmul.mubr.msk.f32.gmra.mxu1 %vm598_vm2, %v575_v41 }
  0x9e   : > { %7985 = vmatprep.mubr.msk.f32.mxu1 %vm10111_vm1, %v10110_v1 }
  0x9f   : > { %7890 = vmatmul.mubr.msk.f32.gmra.mxu0 %vm598_vm2, %v544_v42 }
  0xa0   : > { %7892 = vmatprep.mubr.msk.f32.mxu0 %vm10111_vm1, %v10110_v1 }
  0xa1   : > { %7986 = vmatmul.mubr.msk.f32.gmra.mxu1 %vm598_vm2, %v576_v43 }
  0xa2   : > { %7988 = vmatprep.mubr.msk.f32.mxu1 %vm10111_vm1, %v10110_v1 }
  0xa3   : > { %7893 = vmatmul.mubr.msk.f32.gmra.mxu0 %vm598_vm2, %v545_v45 }
  0xa4   : > { %7895 = vmatprep.mubr.msk.f32.mxu0 %vm10111_vm1, %v10110_v1 }
  0xa5   : > { %7989 = vmatmul.mubr.msk.f32.gmra.mxu1 %vm598_vm2, %v577_v46  ;;  %v2486_v46 = vld [vmem:[%s14587_s5 + $0x70] sm:$0xff] }
  0xa6   : > { %7991 = vmatprep.mubr.msk.f32.mxu1 %vm10111_vm1, %v10110_v1  ;;  %7997 = vmatpush3.msra.mxu0 %v2486_v46 }
  0xa7   : > { %7896 = vmatmul.mubr.msk.f32.gmra.mxu0 %vm598_vm2, %v546_v47  ;;  %v2485_v47 = vld [vmem:[%s14587_s5 + $0x68] sm:$0xff]  ;;  %7998 = vmatprep.subr.mxu0 %v10110_v1 }
  0xa8   : > { %7898 = vmatprep.mubr.msk.f32.mxu0 %vm10111_vm1, %v10110_v1  ;;  %7999 = vmatpush3.msra.mxu0 %v2485_v47 }
  0xa9   : > { %7992 = vmatmul.mubr.msk.f32.gmra.mxu1 %vm598_vm2, %v578_v49  ;;  %8000 = vmatprep.subr.mxu0 %v10110_v1 }
  0xaa   : > { %6915 = vmatprep.mubr.msk.f32.mxu1 %vm598_vm2, %v10293_v13 }
  0xab   : > { %7899 = vmatmul.mubr.msk.f32.gmra.mxu0 %vm598_vm2, %v547_v50 }
  0xac   : > { %8026 = vmatprep.mubr.msk.f32.mxu0 %vm10111_vm1, %v10110_v1 }
  0xef   : > { %v858_v53 = vpop.f32.mrf.mxu0 }
  0xf0   : > { %v859_v54 = vadd.f32 %v10742_v51, %v858_v53 }
  0xf1   : > { %v7807_v55 = vpop.f32.mrf.mxu0  ;;  %v10745_v57 = vpop.f32.mrf.mxu1 }
  0xf2   : > { %v1235_v58 = vmul.f32 1.442695, %v859_v54  ;;  %vm1172_vm3 = vcmp.gt.f32.partialorder %v859_v54, 0.0 }
  0xf3   : > { %v863_v60 = vpop.f32.mrf.mxu0  ;;  %v7903_v62 = vpop.f32.mrf.mxu1 }
  0xf4   : > { %9215 = vpow2.f32 %v1235_v58  ;;  %v10748_v13 = vadd.f32 %v10742_v51, %v863_v60  ;;  %v2484_v60 = vld [vmem:[%s14587_s5 + $0x60] sm:$0xff] }
  0xf5   : > { %v7810_v0 = vpop.f32.mrf.mxu0  ;;  %v10750_v3 = vpop.f32.mrf.mxu1  ;;  %8001 = vmatpush3.msra.mxu0 %v2484_v60 }
  0xf6   : > { %v1237_v5 = vmul.f32 1.442695, %v10748_v13  ;;  %vm1173_vm4 = vcmp.gt.f32.partialorder %v10748_v13, 0.0  ;;  %8002 = vmatprep.subr.mxu0 %v10110_v1 }
  0xf7   : > { %v868_v7 = vpop.f32.mrf.mxu0  ;;  %v7906_v9 = vpop.f32.mrf.mxu1 }
  0xf8   : > { %9217 = vpow2.f32 %v1237_v5  ;;  %v10754_v11 = vadd.f32 %v10742_v51, %v868_v7 }
  0xf9   : > { %v7813_v14 = vpop.f32.mrf.mxu0  ;;  %v10756_v15 = vpop.f32.mrf.mxu1 }
  0xfa   : > { %v1239_v17 = vmul.f32 1.442695, %v10754_v11  ;;  %vm1174_vm5 = vcmp.gt.f32.partialorder %v10754_v11, 0.0 }
  0xfb   : > { %v873_v19 = vpop.f32.mrf.mxu0  ;;  %v7909_v21 = vpop.f32.mrf.mxu1 }
  0xfc   : > { %9219 = vpow2.f32 %v1239_v17  ;;  %v10763_v25 = vadd.f32 %v10742_v51, %v873_v19  ;;  %v2483_v17 = vld [vmem:[%s14587_s5 + $0x58] sm:$0xff] }
  0xfd   : > { %v7816_v26 = vpop.f32.mrf.mxu0  ;;  %v10765_v27 = vpop.f32.mrf.mxu1  ;;  %8003 = vmatpush3.msra.mxu0 %v2483_v17 }
  0xfe   : > { %v1241_v30 = vmul.f32 1.442695, %v10763_v25  ;;  %8004 = vmatprep.subr.mxu0 %v10110_v1  ;;  %vm1175_vm6 = vcmp.gt.f32.partialorder %v10763_v25, 0.0 }
  0xff   : > { %v878_v33 = vpop.f32.mrf.mxu0  ;;  %v7912_v34 = vpop.f32.mrf.mxu1 }
 0x100   : > { %9221 = vpow2.f32 %v1241_v30  ;;  %v10770_v35 = vadd.f32 %v10742_v51, %v878_v33  ;;  %v2482_v30 = vld [vmem:[%s14587_s5 + $0x50] sm:$0xff] }
 0x101   : > { %v9216_v37 = vpop.eup %9215  ;;  %v7819_v38 = vpop.f32.mrf.mxu0  ;;  %8005 = vmatpush3.msra.mxu0 %v2482_v30 }
 0x102   : > { %v10772_v39 = vpop.f32.mrf.mxu1  ;;  %v6850_v41 = vadd.f32 -1.0, %v9216_v37  ;;  %v1243_v42 = vmul.f32 1.442695, %v10770_v35  ;;  %8006 = vmatprep.subr.mxu0 %v10110_v1  ;;  %vm1176_vm7 = vcmp.gt.f32.partialorder %v10770_v35, 0.0 }
 0x103   : > { %v883_v43 = vpop.f32.mrf.mxu0 }
 0x104   : > { %v7915_v45 = vpop.f32.mrf.mxu1  ;;  %v1424_v49 = vmul.f32 1.6732632, %v6850_v41  ;;  %9223 = vpow2.f32 %v1243_v42  ;;  %v10782_v50 = vadd.f32 %v10742_v51, %v883_v43 }
 0x105   : > { %v9218_v53 = vpop.eup %9217  ;;  %v7822_v55 = vpop.f32.mrf.mxu0 }
 0x106   : > { %v10784_v58 = vpop.f32.mrf.mxu1  ;;  %v1487_v62 = vsel %vm1172_vm3, %v859_v54, %v1424_v49  ;;  %v6851_v0 = vadd.f32 -1.0, %v9218_v53  ;;  %v1245_v5 = vmul.f32 1.442695, %v10782_v50  ;;  %vm1177_vm8 = vcmp.gt.f32.partialorder %v10782_v50, 0.0 }
 0x107   : > { %v1550_v7 = vmul.f32 1.050701, %v1487_v62  ;;  %v888_v9 = vpop.f32.mrf.mxu0 }
 0x108   : > { %v7918_v14 = vpop.f32.mrf.mxu1  ;;  %9225 = vpow2.f32 %v1245_v5  ;;  %v10796_v19 = vadd.f32 %v10742_v51, %v888_v9  ;;  %v1425_v21 = vmul.f32 1.6732632, %v6851_v0 }
 0x109   : > { %v9220_v54 = vpop.eup %9219  ;;  %v7825_v22 = vpop.f32.mrf.mxu0  ;;  %1716 = vmatmul.mubr.f32.vlgmr.msra.gmra.mxu1 %v1550_v7 }
 0x10a   : > { %v10799_v26 = vpop.f32.mrf.mxu1  ;;  %v6852_v33 = vadd.f32 -1.0, %v9220_v54  ;;  %v1247_v34 = vmul.f32 1.442695, %v10796_v19  ;;  %6916 = vmatprep.mubr.msk.f32.mxu1 %vm598_vm2, %v10307_v16  ;;  %v1488_v37 = vsel %vm1173_vm4, %v10748_v13, %v1425_v21  ;;  %vm1178_vm9 = vcmp.gt.f32.partialorder %v10796_v19, 0.0 }
 0x10b   : > { %v893_v38 = vpop.f32.mrf.mxu0  ;;  %v1551_v41 = vmul.f32 1.050701, %v1488_v37 }
 0x10c   : > { %v7921_v42 = vpop.f32.mrf.mxu1  ;;  %9227 = vpow2.f32 %v1247_v34  ;;  %v10811_v43 = vadd.f32 %v10742_v51, %v893_v38  ;;  %v1426_v45 = vmul.f32 1.6732632, %v6852_v33 }
 0x10d   : > { %v9222_v46 = vpop.eup %9221  ;;  %v7828_v47 = vpop.f32.mrf.mxu0  ;;  %1721 = vmatmul.mubr.f32.gmra.mxu1 %v1551_v41 }
 0x10e   : > { %v10814_v16 = vpop.f32.mrf.mxu1  ;;  %v6853_v13 = vadd.f32 -1.0, %v9222_v46  ;;  %v1249_v49 = vmul.f32 1.442695, %v10811_v43  ;;  %6917 = vmatprep.mubr.msk.f32.mxu1 %vm598_vm2, %v10328_v20  ;;  %v1489_v53 = vsel %vm1174_vm5, %v10754_v11, %v1426_v45  ;;  %v2481_v20 = vld [vmem:[%s14587_s5 + $0x48] sm:$0xff]  ;;  %vm1179_vm10 = vcmp.gt.f32.partialorder %v10811_v43, 0.0 }
 0x10f   : > { %v898_v55 = vpop.f32.mrf.mxu0  ;;  %v1552_v60 = vmul.f32 1.050701, %v1489_v53  ;;  %8007 = vmatpush3.msra.mxu0 %v2481_v20 }
 0x110   : > { %v7924_v62 = vpop.f32.mrf.mxu1  ;;  %9229 = vpow2.f32 %v1249_v49  ;;  %v10822_v0 = vadd.f32 %v10742_v51, %v898_v55  ;;  %v1427_v5 = vmul.f32 1.6732632, %v6853_v13  ;;  %8008 = vmatprep.subr.mxu0 %v10110_v1 }
 0x111   : > { %v9224_v7 = vpop.eup %9223  ;;  %v7831_v9 = vpop.f32.mrf.mxu0  ;;  %1726 = vmatmul.mubr.f32.gmra.mxu1 %v1552_v60 }
 0x112   : > { %v10825_v14 = vpop.f32.mrf.mxu1  ;;  %v6854_v11 = vadd.f32 -1.0, %v9224_v7  ;;  %v1251_v17 = vmul.f32 1.442695, %v10822_v0  ;;  %6918 = vmatprep.mubr.msk.f32.mxu1 %vm598_vm2, %v10347_v24  ;;  %v1490_v21 = vsel %vm1175_vm6, %v10763_v25, %v1427_v5  ;;  %vm1180_vm11 = vcmp.gt.f32.partialorder %v10822_v0, 0.0 }
 0x113   : > { %v903_v54 = vpop.f32.mrf.mxu0  ;;  %v1553_v22 = vmul.f32 1.050701, %v1490_v21 }
 0x114   : > { %v7927_v30 = vpop.f32.mrf.mxu1  ;;  %9231 = vpow2.f32 %v1251_v17  ;;  %v10836_v33 = vadd.f32 %v10742_v51, %v903_v54  ;;  %v1428_v34 = vmul.f32 1.6732632, %v6854_v11 }
 0x115   : > { %v9226_v37 = vpop.eup %9225  ;;  %v7834_v38 = vpop.f32.mrf.mxu0  ;;  %1731 = vmatmul.mubr.f32.gmra.mxu1 %v1553_v22 }
 0x116   : > { %v10839_v41 = vpop.f32.mrf.mxu1  ;;  %v6855_v24 = vadd.f32 -1.0, %v9226_v37  ;;  %v1253_v25 = vmul.f32 1.442695, %v10836_v33  ;;  %6919 = vmatprep.mubr.msk.f32.mxu1 %vm598_vm2, %v10366_v28  ;;  %v1491_v42 = vsel %vm1176_vm7, %v10770_v35, %v1428_v34  ;;  %v2480_v28 = vld [vmem:[%s14587_s5 + $0x40] sm:$0xff]  ;;  %vm1181_vm12 = vcmp.gt.f32.partialorder %v10836_v33, 0.0 }
 0x117   : > { %v908_v45 = vpop.f32.mrf.mxu0  ;;  %v1554_v46 = vmul.f32 1.050701, %v1491_v42  ;;  %8009 = vmatpush3.msra.mxu0 %v2480_v28 }
 0x118   : > { %v7930_v47 = vpop.f32.mrf.mxu1  ;;  %9233 = vpow2.f32 %v1253_v25  ;;  %v10846_v13 = vadd.f32 %v10742_v51, %v908_v45  ;;  %v1429_v49 = vmul.f32 1.6732632, %v6855_v24  ;;  %8010 = vmatprep.subr.mxu0 %v10110_v1 }
 0x119   : > { %v9228_v53 = vpop.eup %9227  ;;  %v7837_v55 = vpop.f32.mrf.mxu0  ;;  %1736 = vmatmul.mubr.f32.gmra.mxu1 %v1554_v46 }
 0x11a   : > { %v10849_v60 = vpop.f32.mrf.mxu1  ;;  %v6856_v35 = vadd.f32 -1.0, %v9228_v53  ;;  %v1255_v62 = vmul.f32 1.442695, %v10846_v13  ;;  %6920 = vmatprep.mubr.msk.f32.mxu1 %vm598_vm2, %v10385_v32  ;;  %v1492_v5 = vsel %vm1177_vm8, %v10782_v50, %v1429_v49  ;;  %vm1182_vm13 = vcmp.gt.f32.partialorder %v10846_v13, 0.0 }
 0x11b   : > { %v913_v7 = vpop.f32.mrf.mxu0  ;;  %v1555_v9 = vmul.f32 1.050701, %v1492_v5 }
 0x11c   : > { %v7933_v20 = vpop.f32.mrf.mxu1  ;;  %9235 = vpow2.f32 %v1255_v62  ;;  %v10860_v11 = vadd.f32 %v10742_v51, %v913_v7  ;;  %v1430_v17 = vmul.f32 1.6732632, %v6856_v35 }
 0x11d   : > { %v9230_v21 = vpop.eup %9229  ;;  %v7840_v54 = vpop.f32.mrf.mxu0  ;;  %1741 = vmatmul.mubr.f32.gmra.mxu1 %v1555_v9 }
 0x11e   : > { %v10863_v22 = vpop.f32.mrf.mxu1  ;;  %v6857_v32 = vadd.f32 -1.0, %v9230_v21  ;;  %v1257_v50 = vmul.f32 1.442695, %v10860_v11  ;;  %6921 = vmatprep.mubr.msk.f32.mxu1 %vm598_vm2, %v10404_v36  ;;  %v1493_v30 = vsel %vm1178_vm9, %v10796_v19, %v1430_v17  ;;  %v2479_v36 = vld [vmem:[%s14587_s5 + $0x38] sm:$0xff]  ;;  %vm1183_vm14 = vcmp.gt.f32.partialorder %v10860_v11, 0.0 }
 0x11f   : > { %v918_v34 = vpop.f32.mrf.mxu0  ;;  %v1556_v37 = vmul.f32 1.050701, %v1493_v30  ;;  %8011 = vmatpush3.msra.mxu0 %v2479_v36 }
 0x120   : > { %v7936_v38 = vpop.f32.mrf.mxu1  ;;  %9237 = vpow2.f32 %v1257_v50  ;;  %v10870_v24 = vadd.f32 %v10742_v51, %v918_v34  ;;  %v1431_v25 = vmul.f32 1.6732632, %v6857_v32  ;;  %8012 = vmatprep.subr.mxu0 %v10110_v1 }
 0x121   : > { %v9232_v42 = vpop.eup %9231  ;;  %v7843_v45 = vpop.f32.mrf.mxu0  ;;  %1746 = vmatmul.mubr.f32.gmra.mxu1 %v1556_v37 }
 0x122   : > { %v10873_v46 = vpop.f32.mrf.mxu1  ;;  %v6858_v19 = vadd.f32 -1.0, %v9232_v42  ;;  %v1259_v47 = vmul.f32 1.442695, %v10870_v24  ;;  %6922 = vmatprep.mubr.msk.f32.mxu1 %vm598_vm2, %v10423_v40  ;;  %v1494_v49 = vsel %vm1179_vm10, %v10811_v43, %v1431_v25  ;;  %vm1184_vm15 = vcmp.gt.f32.partialorder %v10870_v24, 0.0 }
 0x123   : > { %v923_v53 = vpop.f32.mrf.mxu0  ;;  %v1557_v55 = vmul.f32 1.050701, %v1494_v49 }
 0x124   : > { %v7939_v28 = vpop.f32.mrf.mxu1  ;;  %9239 = vpow2.f32 %v1259_v47  ;;  %v10884_v35 = vadd.f32 %v10742_v51, %v923_v53  ;;  %v1432_v62 = vmul.f32 1.6732632, %v6858_v19 }
 0x125   : > { %v9234_v5 = vpop.eup %9233  ;;  %v7846_v7 = vpop.f32.mrf.mxu0  ;;  %1751 = vmatmul.mubr.f32.gmra.mxu1 %v1557_v55 }
 0x126   : > { %v10887_v9 = vpop.f32.mrf.mxu1  ;;  %v6859_v40 = vadd.f32 -1.0, %v9234_v5  ;;  %v1261_v43 = vmul.f32 1.442695, %v10884_v35  ;;  %6923 = vmatprep.mubr.msk.f32.mxu1 %vm598_vm2, %v10442_v44  ;;  %v1495_v20 = vsel %vm1180_vm11, %v10822_v0, %v1432_v62  ;;  %v2478_v44 = vld [vmem:[%s14587_s5 + $0x30] sm:$0xff]  ;;  %vm1185_vm0 = vcmp.gt.f32.partialorder %v10884_v35, 0.0 }
 0x127   : > { %v928_v17 = vpop.f32.mrf.mxu0  ;;  %v1558_v21 = vmul.f32 1.050701, %v1495_v20  ;;  %8013 = vmatpush3.msra.mxu0 %v2478_v44 }
 0x128   : > { %v7942_v54 = vpop.f32.mrf.mxu1  ;;  %9241 = vpow2.f32 %v1261_v43  ;;  %v10894_v32 = vadd.f32 %v10742_v51, %v928_v17  ;;  %v1433_v50 = vmul.f32 1.6732632, %v6859_v40  ;;  %8014 = vmatprep.subr.mxu0 %v10110_v1 }
 0x129   : > { %v9236_v30 = vpop.eup %9235  ;;  %v7849_v34 = vpop.f32.mrf.mxu0  ;;  %1756 = vmatmul.mubr.f32.gmra.mxu1 %v1558_v21 }
 0x12a   : > { %v10897_v37 = vpop.f32.mrf.mxu1  ;;  %v6860_v0 = vadd.f32 -1.0, %v9236_v30  ;;  %v1263_v38 = vmul.f32 1.442695, %v10894_v32  ;;  %6924 = vmatprep.mubr.msk.f32.mxu1 %vm598_vm2, %v10461_v48  ;;  %v1496_v25 = vsel %vm1181_vm12, %v10836_v33, %v1433_v50  ;;  %vm1186_vm3 = vcmp.gt.f32.partialorder %v10894_v32, 0.0 }
 0x12b   : > { %v933_v42 = vpop.f32.mrf.mxu0  ;;  %v1559_v45 = vmul.f32 1.050701, %v1496_v25 }
 0x12c   : > { %v7945_v36 = vpop.f32.mrf.mxu1  ;;  %9243 = vpow2.f32 %v1263_v38  ;;  %v10908_v19 = vadd.f32 %v10742_v51, %v933_v42  ;;  %v1434_v47 = vmul.f32 1.6732632, %v6860_v0 }
 0x12d   : > { %v9238_v49 = vpop.eup %9237  ;;  %v7852_v53 = vpop.f32.mrf.mxu0  ;;  %1761 = vmatmul.mubr.f32.gmra.mxu1 %v1559_v45 }
 0x12e   : > { %v10911_v55 = vpop.f32.mrf.mxu1  ;;  %v6861_v48 = vadd.f32 -1.0, %v9238_v49  ;;  %v1265_v33 = vmul.f32 1.442695, %v10908_v19  ;;  %6925 = vmatprep.mubr.msk.f32.mxu1 %vm598_vm2, %v10481_v52  ;;  %v1497_v28 = vsel %vm1182_vm13, %v10846_v13, %v1434_v47  ;;  %v2477_v52 = vld [vmem:[%s14587_s5 + $0x28] sm:$0xff]  ;;  %vm1187_vm4 = vcmp.gt.f32.partialorder %v10908_v19, 0.0 }
 0x12f   : > { %v938_v62 = vpop.f32.mrf.mxu0  ;;  %v1560_v5 = vmul.f32 1.050701, %v1497_v28  ;;  %8015 = vmatpush3.msra.mxu0 %v2477_v52 }
 0x130   : > { %v7948_v7 = vpop.f32.mrf.mxu1  ;;  %9245 = vpow2.f32 %v1265_v33  ;;  %v10918_v40 = vadd.f32 %v10742_v51, %v938_v62  ;;  %v1435_v43 = vmul.f32 1.6732632, %v6861_v48  ;;  %8016 = vmatprep.subr.mxu0 %v10110_v1 }
 0x131   : > { %v9240_v20 = vpop.eup %9239  ;;  %v7855_v17 = vpop.f32.mrf.mxu0  ;;  %1766 = vmatmul.mubr.f32.gmra.mxu1 %v1560_v5 }
 0x132   : > { %v10921_v21 = vpop.f32.mrf.mxu1  ;;  %v6862_v13 = vadd.f32 -1.0, %v9240_v20  ;;  %v1267_v54 = vmul.f32 1.442695, %v10918_v40  ;;  %6926 = vmatprep.mubr.msk.f32.mxu1 %vm598_vm2, %v10500_v56  ;;  %v1498_v50 = vsel %vm1183_vm14, %v10860_v11, %v1435_v43  ;;  %vm1188_vm5 = vcmp.gt.f32.partialorder %v10918_v40, 0.0 }
 0x133   : > { %v943_v30 = vpop.f32.mrf.mxu0  ;;  %v1561_v34 = vmul.f32 1.050701, %v1498_v50 }
 0x134   : > { %v7951_v44 = vpop.f32.mrf.mxu1  ;;  %9247 = vpow2.f32 %v1267_v54  ;;  %v10932_v0 = vadd.f32 %v10742_v51, %v943_v30  ;;  %v1436_v38 = vmul.f32 1.6732632, %v6862_v13 }
 0x135   : > { %v9242_v25 = vpop.eup %9241  ;;  %v7858_v42 = vpop.f32.mrf.mxu0  ;;  %1771 = vmatmul.mubr.f32.gmra.mxu1 %v1561_v34 }
 0x136   : > { %v10935_v45 = vpop.f32.mrf.mxu1  ;;  %v6863_v56 = vadd.f32 -1.0, %v9242_v25  ;;  %v1269_v11 = vmul.f32 1.442695, %v10932_v0  ;;  %6927 = vmatprep.mubr.msk.f32.mxu1 %vm598_vm2, %v10516_v59  ;;  %v1499_v36 = vsel %vm1184_vm15, %v10870_v24, %v1436_v38  ;;  %v2476_v59 = vld [vmem:[%s14587_s5 + $0x20] sm:$0xff]  ;;  %vm1189_vm6 = vcmp.gt.f32.partialorder %v10932_v0, 0.0 }
 0x137   : > { %v948_v47 = vpop.f32.mrf.mxu0  ;;  %v1562_v49 = vmul.f32 1.050701, %v1499_v36  ;;  %8017 = vmatpush3.msra.mxu0 %v2476_v59 }
 0x138   : > { %v7954_v53 = vpop.f32.mrf.mxu1  ;;  %9249 = vpow2.f32 %v1269_v11  ;;  %v10942_v48 = vadd.f32 %v10742_v51, %v948_v47  ;;  %v1437_v33 = vmul.f32 1.6732632, %v6863_v56  ;;  %8018 = vmatprep.subr.mxu0 %v10110_v1 }
 0x139   : > { %v9244_v28 = vpop.eup %9243  ;;  %v7861_v62 = vpop.f32.mrf.mxu0  ;;  %1776 = vmatmul.mubr.f32.gmra.mxu1 %v1562_v49 }
 0x13a   : > { %v10945_v5 = vpop.f32.mrf.mxu1  ;;  %v6864_v24 = vadd.f32 -1.0, %v9244_v28  ;;  %v1271_v7 = vmul.f32 1.442695, %v10942_v48  ;;  %6928 = vmatprep.mubr.msk.f32.mxu1 %vm598_vm2, %v10529_v61  ;;  %v1500_v43 = vsel %vm1185_vm0, %v10884_v35, %v1437_v33  ;;  %vm1190_vm7 = vcmp.gt.f32.partialorder %v10942_v48, 0.0 }
 0x13b   : > { %v953_v20 = vpop.f32.mrf.mxu0  ;;  %v1563_v17 = vmul.f32 1.050701, %v1500_v43 }
 0x13c   : > { %v7957_v52 = vpop.f32.mrf.mxu1  ;;  %9251 = vpow2.f32 %v1271_v7  ;;  %v10956_v13 = vadd.f32 %v10742_v51, %v953_v20  ;;  %v1438_v54 = vmul.f32 1.6732632, %v6864_v24 }
 0x13d   : > { %v9246_v50 = vpop.eup %9245  ;;  %v7864_v30 = vpop.f32.mrf.mxu0  ;;  %1781 = vmatmul.mubr.f32.gmra.mxu1 %v1563_v17 }
 0x13e   : > { %v10959_v34 = vpop.f32.mrf.mxu1  ;;  %v6865_v61 = vadd.f32 -1.0, %v9246_v50  ;;  %v1273_v35 = vmul.f32 1.442695, %v10956_v13  ;;  %6929 = vmatprep.mubr.msk.f32.mxu1 %vm598_vm2, %v10540_v63  ;;  %v1501_v44 = vsel %vm1186_vm3, %v10894_v32, %v1438_v54  ;;  %v3331_v63 = vld [vmem:[%s14589_s7 + $0x78] sm:$0xff]  ;;  %vm1191_vm8 = vcmp.gt.f32.partialorder %v10956_v13, 0.0 }
 0x13f   : > { %v958_v38 = vpop.f32.mrf.mxu0  ;;  %v1564_v25 = vmul.f32 1.050701, %v1501_v44  ;;  %v2475_v32 = vld [vmem:[%s14587_s5 + $0x18] sm:$0xff]  ;;  %8216 = vmatpush3.msra.mxu1 %v3331_v63 }
 0x140   : > { %v7960_v42 = vpop.f32.mrf.mxu1  ;;  %9253 = vpow2.f32 %v1273_v35  ;;  %v10966_v56 = vadd.f32 %v10742_v51, %v958_v38  ;;  %v1439_v11 = vmul.f32 1.6732632, %v6865_v61  ;;  %8019 = vmatpush3.msra.mxu0 %v2475_v32  ;;  %8217 = vmatprep.subr.mxu1 %v10110_v1 }
 0x141   : > { %v9248_v36 = vpop.eup %9247  ;;  %v7867_v47 = vpop.f32.mrf.mxu0  ;;  %1786 = vmatmul.mubr.f32.gmra.mxu1 %v1564_v25  ;;  %8020 = vmatprep.subr.mxu0 %v10110_v1 }
 0x142   : > { %v10969_v49 = vpop.f32.mrf.mxu1  ;;  %v6866_v53 = vadd.f32 -1.0, %v9248_v36  ;;  %v1275_v33 = vmul.f32 1.442695, %v10966_v56  ;;  %6930 = vmatprep.mubr.msk.f32.mxu1 %vm598_vm2, %v10551_v2  ;;  %v1502_v28 = vsel %vm1187_vm4, %v10908_v19, %v1439_v11  ;;  %vm1192_vm9 = vcmp.gt.f32.partialorder %v10966_v56, 0.0 }
 0x143   : > { %v963_v62 = vpop.f32.mrf.mxu0  ;;  %v1565_v59 = vmul.f32 1.050701, %v1502_v28 }
 0x144   : > { %v7963_v24 = vpop.f32.mrf.mxu1  ;;  %9255 = vpow2.f32 %v1275_v33  ;;  %v10983_v7 = vadd.f32 %v10742_v51, %v963_v62  ;;  %v1440_v43 = vmul.f32 1.6732632, %v6866_v53 }
 0x145   : > { %v9250_v20 = vpop.eup %9249  ;;  %v7870_v2 = vpop.f32.mrf.mxu0  ;;  %1791 = vmatmul.mubr.f32.gmra.mxu1 %v1565_v59 }
 0x146   : > { %v10987_v19 = vpop.f32.mrf.mxu1  ;;  %v6867_v17 = vadd.f32 -1.0, %v9250_v20  ;;  %v1277_v52 = vmul.f32 1.442695, %v10983_v7  ;;  %6931 = vmatprep.mubr.msk.f32.mxu1 %vm598_vm2, %v10562_v4  ;;  %v1503_v54 = vsel %vm1188_vm5, %v10918_v40, %v1440_v43  ;;  %vm1193_vm10 = vcmp.gt.f32.partialorder %v10983_v7, 0.0 }
 0x147   : > { %v968_v50 = vpop.f32.mrf.mxu0  ;;  %v1566_v30 = vmul.f32 1.050701, %v1503_v54 }
 0x148   : > { %v7966_v61 = vpop.f32.mrf.mxu1  ;;  %9257 = vpow2.f32 %v1277_v52  ;;  %v10994_v35 = vadd.f32 %v10742_v51, %v968_v50  ;;  %v1441_v44 = vmul.f32 1.6732632, %v6867_v17 }
 0x149   : > { %v9252_v38 = vpop.eup %9251  ;;  %v7873_v25 = vpop.f32.mrf.mxu0  ;;  %1796 = vmatmul.mubr.f32.gmra.mxu1 %v1566_v30 }
 0x14a   : > { %v10997_v42 = vpop.f32.mrf.mxu1  ;;  %v6868_v11 = vadd.f32 -1.0, %v9252_v38  ;;  %v1279_v4 = vmul.f32 1.442695, %v10994_v35  ;;  %6932 = vmatprep.mubr.msk.f32.mxu1 %vm598_vm2, %v10573_v6  ;;  %v1504_v40 = vsel %vm1189_vm6, %v10932_v0, %v1441_v44  ;;  %vm1194_vm11 = vcmp.gt.f32.partialorder %v10994_v35, 0.0 }
 0x14b   : > { %v973_v36 = vpop.f32.mrf.mxu0  ;;  %v1567_v47 = vmul.f32 1.050701, %v1504_v40 }
 0x14c   : > { %v7969_v63 = vpop.f32.mrf.mxu1  ;;  %9259 = vpow2.f32 %v1279_v4  ;;  %v11004_v32 = vadd.f32 %v10742_v51, %v973_v36  ;;  %v1442_v53 = vmul.f32 1.6732632, %v6868_v11 }
 0x14d   : > { %v9254_v33 = vpop.eup %9253  ;;  %v7876_v28 = vpop.f32.mrf.mxu0  ;;  %1801 = vmatmul.mubr.f32.gmra.mxu1 %v1567_v47 }
 0x14e   : > { %v11007_v62 = vpop.f32.mrf.mxu1  ;;  %v6869_v59 = vadd.f32 -1.0, %v9254_v33  ;;  %v1281_v6 = vmul.f32 1.442695, %v11004_v32  ;;  %6933 = vmatprep.mubr.msk.f32.mxu1 %vm598_vm2, %v10584_v8  ;;  %v1505_v0 = vsel %vm1190_vm7, %v10942_v48, %v1442_v53  ;;  %vm1195_vm12 = vcmp.gt.f32.partialorder %v11004_v32, 0.0 }
 0x14f   : > { %v978_v24 = vpop.f32.mrf.mxu0  ;;  %v1568_v43 = vmul.f32 1.050701, %v1505_v0 }
 0x150   : > { %v7972_v20 = vpop.f32.mrf.mxu1  ;;  %9261 = vpow2.f32 %v1281_v6  ;;  %v11014_v2 = vadd.f32 %v10742_v51, %v978_v24  ;;  %v1443_v17 = vmul.f32 1.6732632, %v6869_v59 }
 0x151   : > { %v9256_v52 = vpop.eup %9255  ;;  %v7879_v54 = vpop.f32.mrf.mxu0  ;;  %1806 = vmatmul.mubr.f32.gmra.mxu1 %v1568_v43 }
 0x152   : > { %v11017_v50 = vpop.f32.mrf.mxu1  ;;  %v6870_v30 = vadd.f32 -1.0, %v9256_v52  ;;  %v1283_v8 = vmul.f32 1.442695, %v11014_v2  ;;  %6934 = vmatprep.mubr.msk.f32.mxu1 %vm598_vm2, %v10595_v10  ;;  %v1506_v48 = vsel %vm1191_vm8, %v10956_v13, %v1443_v17  ;;  %vm1196_vm13 = vcmp.gt.f32.partialorder %v11014_v2, 0.0 }
 0x153   : > { %v983_v61 = vpop.f32.mrf.mxu0  ;;  %v1569_v44 = vmul.f32 1.050701, %v1506_v48 }
 0x154   : > { %v7975_v38 = vpop.f32.mrf.mxu1  ;;  %9263 = vpow2.f32 %v1283_v8  ;;  %v11024_v25 = vadd.f32 %v10742_v51, %v983_v61  ;;  %v1444_v11 = vmul.f32 1.6732632, %v6870_v30 }
 0x155   : > { %v9258_v4 = vpop.eup %9257  ;;  %v7882_v40 = vpop.f32.mrf.mxu0  ;;  %1811 = vmatmul.mubr.f32.gmra.mxu1 %v1569_v44 }
 0x156   : > { %v11027_v36 = vpop.f32.mrf.mxu1  ;;  %v6871_v47 = vadd.f32 -1.0, %v9258_v4  ;;  %v1285_v10 = vmul.f32 1.442695, %v11024_v25  ;;  %6935 = vmatprep.mubr.msk.f32.mxu1 %vm598_vm2, %v10606_v12  ;;  %v1507_v13 = vsel %vm1192_vm9, %v10966_v56, %v1444_v11  ;;  %vm1197_vm14 = vcmp.gt.f32.partialorder %v11024_v25, 0.0 }
 0x157   : > { %v988_v63 = vpop.f32.mrf.mxu0  ;;  %v1570_v53 = vmul.f32 1.050701, %v1507_v13  ;;  %v2473_v13 = vld [vmem:[%s14587_s5 + $0x8] sm:$0xff] }
 0x158   : > { %v7978_v33 = vpop.f32.mrf.mxu1  ;;  %9265 = vpow2.f32 %v1285_v10  ;;  %v11034_v28 = vadd.f32 %v10742_v51, %v988_v63  ;;  %v1445_v59 = vmul.f32 1.6732632, %v6871_v47 }
 0x159   : > { %v9260_v6 = vpop.eup %9259  ;;  %v7885_v0 = vpop.f32.mrf.mxu0  ;;  %1816 = vmatmul.mubr.f32.gmra.mxu1 %v1570_v53  ;;  %v2472_v53 = vld [vmem:[%s14587_s5] sm:$0xff] }
 0x15a   : > { %v11037_v24 = vpop.f32.mrf.mxu1  ;;  %v6872_v43 = vadd.f32 -1.0, %v9260_v6  ;;  %v1287_v12 = vmul.f32 1.442695, %v11034_v28  ;;  %6936 = vmatprep.mubr.msk.f32.mxu1 %vm598_vm2, %v10624_v18  ;;  %v1508_v56 = vsel %vm1193_vm10, %v10983_v7, %v1445_v59  ;;  %v2474_v18 = vld [vmem:[%s14587_s5 + $0x10] sm:$0xff]  ;;  %v11076_v0 = vadd.f32 %v10742_v51, %v10745_v57 }
 0x15b   : > { %v993_v20 = vpop.f32.mrf.mxu0  ;;  %v1571_v17 = vmul.f32 1.050701, %v1508_v56  ;;  %8021 = vmatpush3.msra.mxu0 %v2474_v18  ;;  %vm1198_vm15 = vcmp.gt.f32.partialorder %v11034_v28, 0.0 }
 0x15c   : > { %v7981_v52 = vpop.f32.mrf.mxu1  ;;  %9267 = vpow2.f32 %v1287_v12  ;;  %v11044_v54 = vadd.f32 %v10742_v51, %v993_v20  ;;  %v1446_v30 = vmul.f32 1.6732632, %v6872_v43  ;;  %8022 = vmatprep.subr.mxu0 %v10110_v1  ;;  %v1299_v18 = vmul.f32 1.442695, %v11076_v0 }
 0x15d   : > { %v9262_v8 = vpop.eup %9261  ;;  %v7888_v48 = vpop.f32.mrf.mxu0  ;;  %1821 = vmatmul.mubr.f32.gmra.mxu1 %v1571_v17  ;;  %8023 = vmatpush3.msra.mxu0 %v2473_v13  ;;  %vm1204_vm6 = vcmp.gt.f32.partialorder %v11076_v0, 0.0 }
 0x15e   : > { %v11047_v61 = vpop.f32.mrf.mxu1  ;;  %v6873_v7 = vadd.f32 -1.0, %v9262_v8  ;;  %v1289_v44 = vmul.f32 1.442695, %v11044_v54  ;;  %6937 = vmatprep.mubr.msk.f32.mxu1 %vm598_vm2, %v10643_v23  ;;  %v1509_v38 = vsel %vm1194_vm11, %v10994_v35, %v1446_v30  ;;  %8024 = vmatprep.subr.mxu0 %v10110_v1  ;;  %vm1199_vm0 = vcmp.gt.f32.partialorder %v11044_v54, 0.0 }
 0x15f   : > { %v998_v11 = vpop.f32.mrf.mxu0  ;;  %v1572_v4 = vmul.f32 1.050701, %v1509_v38  ;;  %8025 = vmatpush3.msra.mxu0 %v2472_v53 }
 0x160   : > { %v7984_v40 = vpop.f32.mrf.mxu1  ;;  %9269 = vpow2.f32 %v1289_v44  ;;  %v11058_v47 = vadd.f32 %v10742_v51, %v998_v11  ;;  %v1447_v10 = vmul.f32 1.6732632, %v6873_v7  ;;  %8436 = vmatprep.subr.mxu0 %v10110_v1  ;;  %v11095_v7 = vadd.f32 %v10742_v51, %v10750_v3 }
 0x161   : > { %v9264_v63 = vpop.eup %9263  ;;  %v7891_v23 = vpop.f32.mrf.mxu0  ;;  %1826 = vmatmul.mubr.f32.gmra.mxu1 %v1572_v4 }
 0x162   : > { %v11064_v35 = vpop.f32.mrf.mxu1  ;;  %v6874_v33 = vadd.f32 -1.0, %v9264_v63  ;;  %v1291_v59 = vmul.f32 1.442695, %v11058_v47  ;;  %6938 = vmatprep.mubr.msk.f32.mxu1 %vm598_vm2, %v10662_v29  ;;  %v1510_v6 = vsel %vm1195_vm12, %v11004_v32, %v1447_v10  ;;  %v3330_v29 = vld [vmem:[%s14589_s7 + $0x70] sm:$0xff]  ;;  %v9971_v23 = vld [vmem:[%s10285_s29 + $0xc8] sm:$0xff]  ;;  %vm1200_vm3 = vcmp.gt.f32.partialorder %v11058_v47, 0.0 }
 0x163   : > { %v1003_v43 = vpop.f32.mrf.mxu0  ;;  %v1573_v12 = vmul.f32 1.050701, %v1510_v6  ;;  %8218 = vmatpush3.msra.mxu1 %v3330_v29  ;;  %v1301_v53 = vmul.f32 1.442695, %v11095_v7  ;;  %vm1205_vm8 = vcmp.gt.f32.partialorder %v11095_v7, 0.0 }
 0x164   : > { %v7987_v56 = vpop.f32.mrf.mxu1  ;;  %9271 = vpow2.f32 %v1291_v59  ;;  %v11079_v20 = vadd.f32 %v10742_v51, %v1003_v43  ;;  %v1448_v17 = vmul.f32 1.6732632, %v6874_v33  ;;  %8219 = vmatprep.subr.mxu1 %v10110_v1  ;;  %v11111_v43 = vadd.f32 %v10742_v51, %v10756_v15 }
 0x165   : > { %v9266_v32 = vpop.eup %9265  ;;  %v7894_v57 = vpop.f32.mrf.mxu0  ;;  %1831 = vmatmul.mubr.f32.gmra.mxu1 %v1573_v12 }
 0x166   : > { %v11086_v52 = vpop.f32.mrf.mxu1  ;;  %v6875_v30 = vadd.f32 -1.0, %v9266_v32  ;;  %v1293_v8 = vmul.f32 1.442695, %v11079_v20  ;;  %6939 = vmatprep.mubr.msk.f32.mxu1 %vm598_vm2, %v10674_v31  ;;  %v1511_v48 = vsel %vm1196_vm13, %v11014_v2, %v1448_v17  ;;  %vm1201_vm4 = vcmp.gt.f32.partialorder %v11079_v20, 0.0 }
 0x167   : > { %v1008_v44 = vpop.f32.mrf.mxu0  ;;  %v1574_v38 = vmul.f32 1.050701, %v1511_v48  ;;  %v11124_v48 = vadd.f32 %v10742_v51, %v10765_v27  ;;  %vm1206_vm9 = vcmp.gt.f32.partialorder %v11111_v43, 0.0 }
 0x168   : > { %v7990_v11 = vpop.f32.mrf.mxu1  ;;  %v1449_v4 = vmul.f32 1.6732632, %v6875_v30  ;;  %9273 = vpow2.f32 %v1293_v8  ;;  %v11099_v40 = vadd.f32 %v10742_v51, %v1008_v44  ;;  %v9972_v30 = vld [vmem:[%s10285_s29 + $0xd0] sm:$0xff]  ;;  %v1303_v8 = vmul.f32 1.442695, %v11111_v43 }
 0x169   : > { %v9268_v31 = vpop.eup %9267  ;;  %v7897_v2 = vpop.f32.mrf.mxu0  ;;  %1836 = vmatmul.mubr.f32.gmra.mxu1 %v1574_v38  ;;  %9275 = vpow2.f32 %v1299_v18  ;;  %v9973_v11 = vld [vmem:[%s10285_s29 + $0xd8] sm:$0xff]  ;;  %v1305_v27 = vmul.f32 1.442695, %v11124_v48  ;;  %vm1207_vm10 = vcmp.gt.f32.partialorder %v11124_v48, 0.0 }
 0x16a   : > { %v11102_v10 = vpop.f32.mrf.mxu1  ;;  %v1512_v3 = vsel %vm1197_vm14, %v11024_v25, %v1449_v4  ;;  %v6876_v13 = vadd.f32 -1.0, %v9268_v31  ;;  %v1295_v63 = vmul.f32 1.442695, %v11099_v40  ;;  %6940 = vmatprep.mubr.msk.f32.mxu1 %vm598_vm2, %v9971_v23  ;;  %v11132_v4 = vadd.f32 %v10742_v51, %v10772_v39  ;;  %v9974_v23 = vld [vmem:[%s10285_s29 + $0xe0] sm:$0xff] }
 0x16b   : > { %v1575_v33 = vmul.f32 1.050701, %v1512_v3  ;;  %v1013_v59 = vpop.f32.mrf.mxu0  ;;  %v3329_v3 = vld [vmem:[%s14589_s7 + $0x68] sm:$0xff]  ;;  %v11146_v39 = vld [vmem:[%s14607_s2] ss:$0 sm:$0xff]  ;;  %vm1202_vm5 = vcmp.gt.f32.partialorder %v11099_v40, 0.0 }
 0x16c   : > { %v7993_v6 = vpop.f32.mrf.mxu1  ;;  %v1450_v12 = vmul.f32 1.6732632, %v6876_v13  ;;  %9277 = vpow2.f32 %v1295_v63  ;;  %v11114_v25 = vadd.f32 %v10742_v51, %v1013_v59  ;;  %8220 = vmatpush3.msra.mxu1 %v3329_v3  ;;  %v1307_v51 = vmul.f32 1.442695, %v11132_v4  ;;  %v9978_v3 = vld [vmem:[%s10285_s29 + $0xf8] sm:$0xff] }
 0x16d   : > { %v9270_v56 = vpop.eup %9269  ;;  %v7900_v17 = vpop.f32.mrf.mxu0  ;;  %1841 = vmatmul.mubr.f32.gmra.mxu1 %v1575_v33  ;;  %9279 = vpow2.f32 %v1301_v53  ;;  %v11150_v53 = vadd.f32 %v11146_v39, %v10784_v58  ;;  %8221 = vmatprep.subr.mxu1 %v10110_v1  ;;  %vm1208_vm11 = vcmp.gt.f32.partialorder %v11132_v4, 0.0 }
 0x16e   : > { %v1513_v29 = vsel %vm1198_vm15, %v11034_v28, %v1450_v12  ;;  %v6877_v32 = vadd.f32 -1.0, %v9270_v56  ;;  %v1297_v57 = vmul.f32 1.442695, %v11114_v25  ;;  %6941 = vmatprep.mubr.msk.f32.mxu1 %vm598_vm2, %v9972_v30  ;;  %v9976_v17 = vld [vmem:[%s10285_s29 + $0xe8] sm:$0xff]  ;;  %v11160_v30 = vadd.f32 %v11146_v39, %v10799_v26 }
 0x16f   : > { %v1576_v15 = vmul.f32 1.050701, %v1513_v29  ;;  %v1309_v58 = vmul.f32 1.442695, %v11150_v53  ;;  %v11169_v26 = vadd.f32 %v11146_v39, %v10814_v16  ;;  %vm1203_vm7 = vcmp.gt.f32.partialorder %v11114_v25, 0.0 }
 0x170   : > { %v1451_v18 = vmul.f32 1.6732632, %v6877_v32  ;;  %9281 = vpow2.f32 %v1297_v57  ;;  %v11179_v16 = vadd.f32 %v11146_v39, %v10825_v14  ;;  %vm1209_vm12 = vcmp.gt.f32.partialorder %v11150_v53, 0.0 }
 0x171   : > { %v9272_v44 = vpop.eup %9271  ;;  %1846 = vmatmul.mubr.f32.gmra.mxu1 %v1576_v15  ;;  %9283 = vpow2.f32 %v1303_v8  ;;  %vm1210_vm13 = vcmp.gt.f32.partialorder %v11160_v30, 0.0  ;;  %vm1211_vm14 = vcmp.gt.f32.partialorder %v11169_v26, 0.0 }
 0x172   : > { %v1514_v28 = vsel %vm1199_vm0, %v11044_v54, %v1451_v18  ;;  %v6878_v38 = vadd.f32 -1.0, %v9272_v44  ;;  %6942 = vmatprep.mubr.msk.f32.mxu1 %vm598_vm2, %v9973_v11  ;;  %9285 = vpow2.f32 %v1305_v27  ;;  %v9977_v44 = vld [vmem:[%s10285_s29 + $0xf0] sm:$0xff]  ;;  %vm1212_vm15 = vcmp.gt.f32.partialorder %v11179_v16, 0.0 }
 0x173   : > { %v1577_v31 = vmul.f32 1.050701, %v1514_v28  ;;  %9287 = vpow2.f32 %v1307_v51  ;;  %v1313_v51 = vmul.f32 1.442695, %v11169_v26 }
 0x174   : > { %v1452_v2 = vmul.f32 1.6732632, %v6878_v38  ;;  %9289 = vpow2.f32 %v1309_v58  ;;  %v9980_v58 = vld [vmem:[%s10285_s29 + $0x108] sm:$0xff] }
 0x175   : > { %v9274_v13 = vpop.eup %9273  ;;  %1851 = vmatmul.mubr.f32.gmra.mxu1 %v1577_v31  ;;  %v1311_v31 = vmul.f32 1.442695, %v11160_v30 }
 0x176   : > { %v1515_v54 = vsel %vm1200_vm3, %v11058_v47, %v1452_v2  ;;  %v6879_v63 = vadd.f32 -1.0, %v9274_v13  ;;  %6943 = vmatprep.mubr.msk.f32.mxu1 %vm598_vm2, %v9974_v23  ;;  %v9276_v47 = vpop.eup %9275 }
 0x177   : > { %v1578_v33 = vmul.f32 1.050701, %v1515_v54  ;;  %v6882_v57 = vadd.f32 -1.0, %v9276_v47  ;;  %9291 = vpow2.f32 %v1311_v31  ;;  %v9979_v47 = vld [vmem:[%s10285_s29 + $0x100] sm:$0xff] }
 0x178   : > { %v1453_v59 = vmul.f32 1.6732632, %v6879_v63  ;;  %9293 = vpow2.f32 %v1313_v51  ;;  %v11232_v51 = vadd.f32 %v11146_v39, %v10887_v9 }
 0x179   : > { %v9278_v6 = vpop.eup %9277  ;;  %1856 = vmatmul.mubr.f32.gmra.mxu1 %v1578_v33  ;;  %v1456_v11 = vmul.f32 1.6732632, %v6882_v57 }
 0x17a   : > { %v1516_v12 = vsel %vm1201_vm4, %v11079_v20, %v1453_v59  ;;  %v6880_v56 = vadd.f32 -1.0, %v9278_v6  ;;  %6944 = vmatprep.mubr.msk.f32.mxu1 %vm598_vm2, %v9976_v17  ;;  %v9280_v32 = vpop.eup %9279  ;;  %v11193_v17 = vadd.f32 %v11146_v39, %v10839_v41  ;;  %v9981_v41 = vld [vmem:[%s10285_s29 + $0x110] sm:$0xff] }
 0x17b   : > { %v1579_v29 = vmul.f32 1.050701, %v1516_v12  ;;  %v6883_v28 = vadd.f32 -1.0, %v9280_v32  ;;  %v1519_v63 = vsel %vm1204_vm6, %v11076_v0, %v1456_v11  ;;  %v1315_v0 = vmul.f32 1.442695, %v11179_v16  ;;  %v3327_v11 = vld [vmem:[%s14589_s7 + $0x58] sm:$0xff] }
 0x17c   : > { %v1454_v15 = vmul.f32 1.6732632, %v6880_v56  ;;  %v1582_v14 = vmul.f32 1.050701, %v1519_v63  ;;  %v9983_v63 = vld [vmem:[%s10285_s29 + $0x120] sm:$0xff]  ;;  %vm1213_vm0 = vcmp.gt.f32.partialorder %v11193_v17, 0.0 }
 0x17d   : > { %v9282_v8 = vpop.eup %9281  ;;  %1861 = vmatmul.mubr.f32.gmra.mxu1 %v1579_v29  ;;  %v1457_v13 = vmul.f32 1.6732632, %v6883_v28  ;;  %9295 = vpow2.f32 %v1315_v0  ;;  %vm1217_vm6 = vcmp.gt.f32.partialorder %v11232_v51, 0.0 }
 0x17e   : > { %v1517_v20 = vsel %vm1202_vm5, %v11099_v40, %v1454_v15  ;;  %v6881_v18 = vadd.f32 -1.0, %v9282_v8  ;;  %6945 = vmatprep.mubr.msk.f32.mxu1 %vm598_vm2, %v9977_v44  ;;  %v9284_v2 = vpop.eup %9283  ;;  %v1317_v8 = vmul.f32 1.442695, %v11193_v17 }
 0x17f   : > { %v1580_v38 = vmul.f32 1.050701, %v1517_v20  ;;  %v6884_v23 = vadd.f32 -1.0, %v9284_v2  ;;  %v9286_v33 = vpop.eup %9285  ;;  %v1520_v59 = vsel %vm1205_vm8, %v11095_v7, %v1457_v13  ;;  %v11202_v20 = vadd.f32 %v11146_v39, %v10849_v60 }
 0x180   : > { %v1455_v27 = vmul.f32 1.6732632, %v6881_v18  ;;  %v9288_v6 = vpop.eup %9287  ;;  %v6885_v56 = vadd.f32 -1.0, %v9286_v33  ;;  %v1583_v7 = vmul.f32 1.050701, %v1520_v59  ;;  %9297 = vpow2.f32 %v1317_v8 }
 0x181   : > { %1866 = vmatmul.mubr.f32.gmra.mxu1 %v1580_v38  ;;  %v1458_v12 = vmul.f32 1.6732632, %v6884_v23  ;;  %v6886_v29 = vadd.f32 -1.0, %v9288_v6  ;;  %v9290_v32 = vpop.eup %9289  ;;  %v1319_v38 = vmul.f32 1.442695, %v11202_v20  ;;  %v11212_v60 = vadd.f32 %v11146_v39, %v10863_v22 }
 0x182   : > { %v1518_v40 = vsel %vm1203_vm7, %v11114_v25, %v1455_v27  ;;  %6946 = vmatprep.mubr.msk.f32.mxu1 %vm598_vm2, %v9978_v3  ;;  %v3328_v25 = vld [vmem:[%s14589_s7 + $0x60] sm:$0xff]  ;;  %v1459_v15 = vmul.f32 1.6732632, %v6885_v56  ;;  %v6887_v28 = vadd.f32 -1.0, %v9290_v32  ;;  %v9982_v27 = vld [vmem:[%s10285_s29 + $0x118] sm:$0xff]  ;;  %v11225_v13 = vadd.f32 %v11146_v39, %v10873_v46 }
 0x183   : > { %v1581_v54 = vmul.f32 1.050701, %v1518_v40  ;;  %8222 = vmatpush3.msra.mxu1 %v3328_v25  ;;  %v1521_v57 = vsel %vm1206_vm9, %v11111_v43, %v1458_v12  ;;  %v1460_v44 = vmul.f32 1.6732632, %v6886_v29  ;;  %9299 = vpow2.f32 %v1319_v38 }
 0x184   : > { %8223 = vmatprep.subr.mxu1 %v10110_v1  ;;  %v1584_v18 = vmul.f32 1.050701, %v1521_v57  ;;  %v1522_v43 = vsel %vm1207_vm10, %v11124_v48, %v1459_v15  ;;  %v9292_v31 = vpop.eup %9291  ;;  %v1461_v40 = vmul.f32 1.6732632, %v6887_v28  ;;  %v1321_v3 = vmul.f32 1.442695, %v11212_v60 }
 0x185   : > { %1871 = vmatmul.mubr.f32.gmra.mxu1 %v1581_v54  ;;  %v1585_v2 = vmul.f32 1.050701, %v1522_v43  ;;  %v1523_v48 = vsel %vm1208_vm11, %v11132_v4, %v1460_v44  ;;  %v6888_v22 = vadd.f32 -1.0, %v9292_v31  ;;  %v9294_v54 = vpop.eup %9293  ;;  %v1323_v46 = vmul.f32 1.442695, %v11225_v13  ;;  %v3326_v15 = vld [vmem:[%s14589_s7 + $0x50] sm:$0xff] }
 0x186   : > { %6947 = vmatprep.mubr.msk.f32.mxu1 %vm598_vm2, %v9979_v47  ;;  %8224 = vmatpush3.msra.mxu1 %v3327_v11  ;;  %v1586_v4 = vmul.f32 1.050701, %v1523_v48  ;;  %v1524_v23 = vsel %vm1209_vm12, %v11150_v53, %v1461_v40  ;;  %v6889_v47 = vadd.f32 -1.0, %v9294_v54  ;;  %9301 = vpow2.f32 %v1321_v3  ;;  %v9987_v11 = vld [vmem:[%s10285_s29 + $0x140] sm:$0xff] }
 0x187   : > { %8225 = vmatprep.subr.mxu1 %v10110_v1  ;;  %v1462_v33 = vmul.f32 1.6732632, %v6888_v22  ;;  %v1587_v59 = vmul.f32 1.050701, %v1524_v23  ;;  %v1325_v53 = vmul.f32 1.442695, %v11232_v51  ;;  %9303 = vpow2.f32 %v1323_v46 }
 0x188   : > { %v1463_v6 = vmul.f32 1.6732632, %v6889_v47  ;;  %v11242_v12 = vadd.f32 %v11146_v39, %v10897_v37  ;;  %v11252_v37 = vadd.f32 %v11146_v39, %v10911_v55  ;;  %8226 = vmatpush3.msra.mxu1 %v3326_v15  ;;  %v11262_v44 = vadd.f32 %v11146_v39, %v10921_v21  ;;  %v9988_v22 = vld [vmem:[%s10285_s29 + $0x148] sm:$0xff] }
 0x189   : > { %1876 = vmatmul.mubr.f32.gmra.mxu1 %v1582_v14  ;;  %v9984_v14 = vld [vmem:[%s10285_s29 + $0x128] sm:$0xff]  ;;  %v1525_v9 = vsel %vm1210_vm13, %v11160_v30, %v1462_v33  ;;  %9305 = vpow2.f32 %v1325_v53  ;;  %8227 = vmatprep.subr.mxu1 %v10110_v1  ;;  %v11272_v21 = vadd.f32 %v11146_v39, %v10935_v45  ;;  %vm1214_vm3 = vcmp.gt.f32.partialorder %v11202_v20, 0.0  ;;  %v9990_v53 = vld [vmem:[%s10285_s29 + $0x158] sm:$0xff] }
 0x18a   : > { %6948 = vmatprep.mubr.msk.f32.mxu1 %vm598_vm2, %v9980_v58  ;;  %v9296_v25 = vpop.eup %9295  ;;  %v9985_v58 = vld [vmem:[%s10285_s29 + $0x130] sm:$0xff]  ;;  %v1526_v30 = vsel %vm1211_vm14, %v11169_v26, %v1463_v6  ;;  %v1327_v57 = vmul.f32 1.442695, %v11242_v12  ;;  %v1329_v43 = vmul.f32 1.442695, %v11252_v37  ;;  %v11282_v23 = vadd.f32 %v11146_v39, %v10945_v5 }
 0x18b   : > { %v6890_v0 = vadd.f32 -1.0, %v9296_v25  ;;  %v1331_v31 = vmul.f32 1.442695, %v11262_v44  ;;  %v1333_v54 = vmul.f32 1.442695, %v11272_v21  ;;  %vm1215_vm4 = vcmp.gt.f32.partialorder %v11212_v60, 0.0 }
 0x18c   : > { %9307 = vpow2.f32 %v1327_v57  ;;  %v9989_v25 = vld [vmem:[%s10285_s29 + $0x150] sm:$0xff]  ;;  %v11289_v46 = vadd.f32 %v11146_v39, %v10959_v34  ;;  %v1335_v5 = vmul.f32 1.442695, %v11282_v23  ;;  %vm1216_vm5 = vcmp.gt.f32.partialorder %v11225_v13, 0.0 }
 0x18d   : > { %1881 = vmatmul.mubr.f32.gmra.mxu1 %v1583_v7  ;;  %v9298_v56 = vpop.eup %9297  ;;  %v1588_v7 = vmul.f32 1.050701, %v1525_v9  ;;  %v1464_v29 = vmul.f32 1.6732632, %v6890_v0  ;;  %9309 = vpow2.f32 %v1329_v43  ;;  %vm1218_vm7 = vcmp.gt.f32.partialorder %v11242_v12, 0.0 }
 0x18e   : > { %6949 = vmatprep.mubr.msk.f32.mxu1 %vm598_vm2, %v9981_v41  ;;  %v6891_v32 = vadd.f32 -1.0, %v9298_v56  ;;  %v9986_v41 = vld [vmem:[%s10285_s29 + $0x138] sm:$0xff]  ;;  %9311 = vpow2.f32 %v1331_v31  ;;  %v1337_v9 = vmul.f32 1.442695, %v11289_v46  ;;  %vm1219_vm8 = vcmp.gt.f32.partialorder %v11252_v37, 0.0 }
 0x18f   : > { %v1527_v26 = vsel %vm1212_vm15, %v11179_v16, %v1464_v29  ;;  %9313 = vpow2.f32 %v1333_v54  ;;  %v9991_v29 = vld [vmem:[%s10285_s29 + $0x160] sm:$0xff]  ;;  %vm1220_vm9 = vcmp.gt.f32.partialorder %v11262_v44, 0.0  ;;  %v11342_v54 = vadd.f32 %v11146_v39, %v11017_v50 }
 0x190   : > { %v9300_v8 = vpop.eup %9299  ;;  %v1465_v55 = vmul.f32 1.6732632, %v6891_v32  ;;  %v1590_v16 = vmul.f32 1.050701, %v1527_v26  ;;  %9315 = vpow2.f32 %v1335_v5  ;;  %vm1221_vm10 = vcmp.gt.f32.partialorder %v11272_v21, 0.0 }
 0x191   : > { %1886 = vmatmul.mubr.f32.gmra.mxu1 %v1584_v18  ;;  %v1589_v18 = vmul.f32 1.050701, %v1526_v30  ;;  %v6892_v28 = vadd.f32 -1.0, %v9300_v8  ;;  %9317 = vpow2.f32 %v1337_v9  ;;  %vm1222_vm11 = vcmp.gt.f32.partialorder %v11282_v23, 0.0 }
 0x192   : > { %6950 = vmatprep.mubr.msk.f32.mxu1 %vm598_vm2, %v9982_v27  ;;  %v1528_v27 = vsel %vm1213_vm0, %v11193_v17, %v1465_v55  ;;  %vm1223_vm12 = vcmp.gt.f32.partialorder %v11289_v46, 0.0 }
 0x193   : > { %v9302_v38 = vpop.eup %9301  ;;  %v1591_v3 = vmul.f32 1.050701, %v1528_v27 }
 0x194   : > { %v6893_v48 = vadd.f32 -1.0, %v9302_v38  ;;  %v9304_v40 = vpop.eup %9303 }
 0x195   : > { %1891 = vmatmul.mubr.f32.gmra.mxu1 %v1585_v2  ;;  %v1466_v2 = vmul.f32 1.6732632, %v6892_v28  ;;  %v6894_v17 = vadd.f32 -1.0, %v9304_v40  ;;  %v9994_v40 = vld [vmem:[%s10285_s29 + $0x178] sm:$0xff] }
 0x196   : > { %6951 = vmatprep.mubr.msk.f32.mxu1 %vm598_vm2, %v9983_v63  ;;  %v9306_v63 = vpop.eup %9305 }
 0x197   : > { %v1529_v45 = vsel %vm1214_vm3, %v11202_v20, %v1466_v2  ;;  %v6895_v47 = vadd.f32 -1.0, %v9306_v63  ;;  %vm1228_vm3 = vcmp.gt.f32.partialorder %v11342_v54, 0.0 }
 0x198   : > { %v1592_v33 = vmul.f32 1.050701, %v1529_v45  ;;  %v3324_v45 = vld [vmem:[%s14589_s7 + $0x40] sm:$0xff] }
 0x199   : > { %1896 = vmatmul.mubr.f32.gmra.mxu1 %v1586_v4  ;;  %v1467_v4 = vmul.f32 1.6732632, %v6893_v48  ;;  %v9308_v0 = vpop.eup %9307 }
 0x19a   : > { %6952 = vmatprep.mubr.msk.f32.mxu1 %vm598_vm2, %v9984_v14  ;;  %v1468_v14 = vmul.f32 1.6732632, %v6894_v17  ;;  %v6896_v56 = vadd.f32 -1.0, %v9308_v0  ;;  %v9995_v17 = vld [vmem:[%s10285_s29 + $0x180] sm:$0xff]  ;;  %v9996_v0 = vld [vmem:[%s10285_s29 + $0x188] sm:$0xff] }
 0x19b   : > { %v1530_v20 = vsel %vm1215_vm4, %v11212_v60, %v1467_v4  ;;  %v1469_v60 = vmul.f32 1.6732632, %v6895_v47  ;;  %v11359_v47 = vld [vmem:[%s14608_s4] ss:$0 sm:$0xff] }
 0x19c   : > { %v1593_v34 = vmul.f32 1.050701, %v1530_v20  ;;  %v1531_v6 = vsel %vm1216_vm5, %v11225_v13, %v1468_v14  ;;  %v1470_v13 = vmul.f32 1.6732632, %v6896_v56 }
 0x19d   : > { %1901 = vmatmul.mubr.f32.gmra.mxu1 %v1587_v59  ;;  %v3325_v59 = vld [vmem:[%s14589_s7 + $0x48] sm:$0xff]  ;;  %v1594_v30 = vmul.f32 1.050701, %v1531_v6  ;;  %v1532_v32 = vsel %vm1217_vm6, %v11232_v51, %v1469_v60 }
 0x19e   : > { %6953 = vmatprep.mubr.msk.f32.mxu1 %vm598_vm2, %v9985_v58  ;;  %8228 = vmatpush3.msra.mxu1 %v3325_v59  ;;  %v11305_v58 = vadd.f32 %v11146_v39, %v10969_v49  ;;  %v11315_v49 = vadd.f32 %v11146_v39, %v10987_v19  ;;  %v1595_v51 = vmul.f32 1.050701, %v1532_v32  ;;  %v1533_v28 = vsel %vm1218_vm7, %v11242_v12, %v1470_v13  ;;  %v9997_v32 = vld [vmem:[%s10285_s29 + $0x190] sm:$0xff] }
 0x19f   : > { %8229 = vmatprep.subr.mxu1 %v10110_v1 }
 0x1a0   : > { %v1339_v8 = vmul.f32 1.442695, %v11305_v58  ;;  %v1341_v19 = vmul.f32 1.442695, %v11315_v49  ;;  %8230 = vmatpush3.msra.mxu1 %v3324_v45  ;;  %vm1224_vm13 = vcmp.gt.f32.partialorder %v11305_v58, 0.0  ;;  %vm1225_vm14 = vcmp.gt.f32.partialorder %v11315_v49, 0.0 }
 0x1a1   : > { %1906 = vmatmul.mubr.f32.gmra.mxu1 %v1588_v7  ;;  %v9310_v7 = vpop.eup %9309  ;;  %8231 = vmatprep.subr.mxu1 %v10110_v1 }
 0x1a2   : > { %6954 = vmatprep.mubr.msk.f32.mxu1 %vm598_vm2, %v9986_v41  ;;  %v9312_v57 = vpop.eup %9311  ;;  %v6897_v15 = vadd.f32 -1.0, %v9310_v7  ;;  %v11320_v41 = vadd.f32 %v11146_v39, %v10997_v42  ;;  %9319 = vpow2.f32 %v1339_v8  ;;  %v11330_v42 = vadd.f32 %v11146_v39, %v11007_v62 }
 0x1a3   : > { %v6898_v26 = vadd.f32 -1.0, %v9312_v57  ;;  %v9314_v55 = vpop.eup %9313  ;;  %9321 = vpow2.f32 %v1341_v19 }
 0x1a4   : > { %v1471_v43 = vmul.f32 1.6732632, %v6897_v15  ;;  %v1343_v38 = vmul.f32 1.442695, %v11320_v41  ;;  %v6899_v12 = vadd.f32 -1.0, %v9314_v55  ;;  %v9316_v2 = vpop.eup %9315  ;;  %vm1226_vm15 = vcmp.gt.f32.partialorder %v11320_v41, 0.0 }
 0x1a5   : > { %1911 = vmatmul.mubr.f32.gmra.mxu1 %v1589_v18  ;;  %v9992_v18 = vld [vmem:[%s10285_s29 + $0x168] sm:$0xff]  ;;  %v1472_v31 = vmul.f32 1.6732632, %v6898_v26  ;;  %v1345_v48 = vmul.f32 1.442695, %v11330_v42  ;;  %v6900_v63 = vadd.f32 -1.0, %v9316_v2 }
 0x1a6   : > { %6955 = vmatprep.mubr.msk.f32.mxu1 %vm598_vm2, %v9987_v11  ;;  %v9993_v11 = vld [vmem:[%s10285_s29 + $0x170] sm:$0xff]  ;;  %v1534_v27 = vsel %vm1219_vm8, %v11252_v37, %v1471_v43  ;;  %9323 = vpow2.f32 %v1343_v38  ;;  %v9318_v37 = vpop.eup %9317  ;;  %v9998_v43 = vld [vmem:[%s10285_s29 + $0x198] sm:$0xff]  ;;  %vm1227_vm0 = vcmp.gt.f32.partialorder %v11330_v42, 0.0 }
 0x1a7   : > { %v1597_v62 = vmul.f32 1.050701, %v1534_v27  ;;  %9325 = vpow2.f32 %v1345_v48  ;;  %v6901_v50 = vadd.f32 -1.0, %v9318_v37  ;;  %v1474_v20 = vmul.f32 1.6732632, %v6900_v63  ;;  %v3323_v48 = vld [vmem:[%s14589_s7 + $0x38] sm:$0xff] }
 0x1a8   : > { %8232 = vmatpush3.msra.mxu1 %v3323_v48  ;;  %v11414_v37 = vadd.f32 %v11146_v39, %v11086_v52 }
 0x1a9   : > { %1916 = vmatmul.mubr.f32.gmra.mxu1 %v1590_v16  ;;  %v1596_v16 = vmul.f32 1.050701, %v1533_v28  ;;  %v1537_v9 = vsel %vm1222_vm11, %v11282_v23, %v1474_v20  ;;  %8233 = vmatprep.subr.mxu1 %v10110_v1  ;;  %v10000_v20 = vld [vmem:[%s10285_s29 + $0x1a8] sm:$0xff] }
 0x1aa   : > { %6956 = vmatprep.mubr.msk.f32.mxu1 %vm598_vm2, %v9988_v22  ;;  %v1535_v22 = vsel %vm1220_vm9, %v11262_v44, %v1472_v31  ;;  %v1600_v57 = vmul.f32 1.050701, %v1537_v9 }
 0x1ab   : > { %v1598_v4 = vmul.f32 1.050701, %v1535_v22 }
 0x1ad   : > { %1921 = vmatmul.mubr.f32.gmra.mxu1 %v1591_v3  ;;  %v1473_v3 = vmul.f32 1.6732632, %v6899_v12 }
 0x1ae   : > { %6957 = vmatprep.mubr.msk.f32.mxu1 %vm598_vm2, %v9989_v25  ;;  %v1347_v25 = vmul.f32 1.442695, %v11342_v54 }
 0x1af   : > { %v1536_v44 = vsel %vm1221_vm10, %v11272_v21, %v1473_v3  ;;  %v9320_v14 = vpop.eup %9319 }
 0x1b0   : > { %v1599_v21 = vmul.f32 1.050701, %v1536_v44  ;;  %9327 = vpow2.f32 %v1347_v25  ;;  %v6902_v6 = vadd.f32 -1.0, %v9320_v14  ;;  %v9322_v7 = vpop.eup %9321 }
 0x1b1   : > { %1926 = vmatmul.mubr.f32.gmra.mxu1 %v1592_v33  ;;  %v11354_v33 = vadd.f32 %v11146_v39, %v11027_v36  ;;  %v1475_v36 = vmul.f32 1.6732632, %v6901_v50 }
 0x1b2   : > { %6958 = vmatprep.mubr.msk.f32.mxu1 %vm598_vm2, %v9990_v53  ;;  %v1476_v8 = vmul.f32 1.6732632, %v6902_v6 }
 0x1b3   : > { %v1349_v53 = vmul.f32 1.442695, %v11354_v33  ;;  %v1538_v23 = vsel %vm1223_vm12, %v11289_v46, %v1475_v36  ;;  %vm1229_vm5 = vcmp.gt.f32.partialorder %v11354_v33, 0.0 }
 0x1b4   : > { %v1601_v38 = vmul.f32 1.050701, %v1538_v23 }
 0x1b5   : > { %1931 = vmatmul.mubr.f32.gmra.mxu1 %v1593_v34  ;;  %v11371_v34 = vadd.f32 %v11146_v39, %v11037_v24  ;;  %v9324_v24 = vpop.eup %9323 }
 0x1b6   : > { %6959 = vmatprep.mubr.msk.f32.mxu1 %vm598_vm2, %v9991_v29  ;;  %v6904_v28 = vadd.f32 -1.0, %v9324_v24  ;;  %v9326_v19 = vpop.eup %9325 }
 0x1b7   : > { %v1351_v13 = vmul.f32 1.442695, %v11371_v34  ;;  %vm1230_vm7 = vcmp.gt.f32.partialorder %v11371_v34, 0.0 }
 0x1b9   : > { %1936 = vmatmul.mubr.f32.gmra.mxu1 %v1594_v30 }
 0x1ba   : > { %6960 = vmatprep.mubr.msk.f32.mxu1 %vm598_vm2, %v9992_v18  ;;  %v6903_v18 = vadd.f32 -1.0, %v9322_v7 }
 0x1bc   : > { %v1477_v31 = vmul.f32 1.6732632, %v6903_v18 }
 0x1bd   : > { %1941 = vmatmul.mubr.f32.gmra.mxu1 %v1595_v51  ;;  %v11385_v51 = vadd.f32 %v11146_v39, %v11047_v61  ;;  %v11396_v61 = vadd.f32 %v11146_v39, %v11064_v35  ;;  %v9328_v45 = vpop.eup %9327 }
 0x1be   : > { %6961 = vmatprep.mubr.msk.f32.mxu1 %vm598_vm2, %v9993_v11 }
 0x1bf   : > { %v1353_v12 = vmul.f32 1.442695, %v11385_v51  ;;  %v1355_v3 = vmul.f32 1.442695, %v11396_v61  ;;  %vm1231_vm10 = vcmp.gt.f32.partialorder %v11385_v51, 0.0  ;;  %vm1232_vm11 = vcmp.gt.f32.partialorder %v11396_v61, 0.0 }
 0x1c1   : > { %1946 = vmatmul.mubr.f32.gmra.mxu1 %v1596_v16  ;;  %v1539_v16 = vsel %vm1224_vm13, %v11305_v58, %v1476_v8  ;;  %v9999_v58 = vld [vmem:[%s10285_s29 + $0x1a0] sm:$0xff]  ;;  %vm1233_vm13 = vcmp.gt.f32.partialorder %v11414_v37, 0.0 }
 0x1c2   : > { %6962 = vmatprep.mubr.msk.f32.mxu1 %vm598_vm2, %v9994_v40  ;;  %v1478_v40 = vmul.f32 1.6732632, %v6904_v28  ;;  %v1602_v22 = vmul.f32 1.050701, %v1539_v16 }
 0x1c4   : > { %v1541_v50 = vsel %vm1226_vm15, %v11320_v41, %v1478_v40  ;;  %v11431_v41 = vadd.f32 %v11146_v39, %v11102_v10 }
 0x1c5   : > { %1951 = vmatmul.mubr.f32.gmra.mxu1 %v1597_v62  ;;  %v6905_v62 = vadd.f32 -1.0, %v9326_v19  ;;  %v1604_v9 = vmul.f32 1.050701, %v1541_v50 }
 0x1c6   : > { %6963 = vmatprep.mubr.msk.f32.mxu1 %vm598_vm2, %v9995_v17 }
 0x1c7   : > { %v1479_v25 = vmul.f32 1.6732632, %v6905_v62  ;;  %v3322_v62 = vld [vmem:[%s14589_s7 + $0x30] sm:$0xff] }
 0x1c8   : > { %8234 = vmatpush3.msra.mxu1 %v3322_v62 }
 0x1c9   : > { %v1717_v5 = vpop.f32.mrf.mxu1  ;;  %1956 = vmatmul.mubr.f32.gmra.mxu1 %v1598_v4  ;;  %v1540_v4 = vsel %vm1225_vm14, %v11315_v49, %v1477_v31  ;;  %v6906_v49 = vadd.f32 -1.0, %v9328_v45  ;;  %8235 = vmatprep.subr.mxu1 %v10110_v1 }
 0x1ca   : > { %v11364_v59 = vadd.f32 %v11359_v47, %v1717_v5  ;;  %6964 = vmatprep.mubr.msk.f32.mxu1 %vm598_vm2, %v9996_v0  ;;  %v1603_v5 = vmul.f32 1.050701, %v1540_v4 }
 0x1cb   : > { %v1719_v60 = vpop.f32.mrf.mxu1  ;;  %v1480_v39 = vmul.f32 1.6732632, %v6906_v49 }
 0x1cc   : > { %v2094_v56 = vmul.f32 1.442695, %v11364_v59  ;;  %vm2031_vm4 = vcmp.gt.f32.partialorder %v11364_v59, 0.0 }
 0x1cd   : > { %v1722_v29 = vpop.f32.mrf.mxu1  ;;  %1961 = vmatmul.mubr.f32.gmra.mxu1 %v1599_v21  ;;  %v1357_v21 = vmul.f32 1.442695, %v11414_v37 }
 0x1ce   : > { %9329 = vpow2.f32 %v2094_v56  ;;  %v11377_v30 = vadd.f32 %v11359_v47, %v1722_v29  ;;  %6965 = vmatprep.mubr.msk.f32.mxu1 %vm598_vm2, %v9997_v32  ;;  %v1542_v56 = vsel %vm1227_vm0, %v11330_v42, %v1479_v25  ;;  %v10001_v32 = vld [vmem:[%s10285_s29 + $0x1b0] sm:$0xff]  ;;  %vm1234_vm0 = vcmp.gt.f32.partialorder %v11431_v41, 0.0 }
 0x1cf   : > { %9331 = vpow2.f32 %v1349_v53  ;;  %v1724_v15 = vpop.f32.mrf.mxu1 }
 0x1d0   : > { %v2096_v26 = vmul.f32 1.442695, %v11377_v30  ;;  %vm2032_vm6 = vcmp.gt.f32.partialorder %v11377_v30, 0.0 }
 0x1d1   : > { %v1727_v55 = vpop.f32.mrf.mxu1  ;;  %1966 = vmatmul.mubr.f32.gmra.mxu1 %v1600_v57 }
 0x1d2   : > { %9333 = vpow2.f32 %v2096_v26  ;;  %v11390_v46 = vadd.f32 %v11359_v47, %v1727_v55  ;;  %6966 = vmatprep.mubr.msk.f32.mxu1 %vm598_vm2, %v9998_v43  ;;  %v1605_v55 = vmul.f32 1.050701, %v1542_v56  ;;  %v10002_v43 = vld [vmem:[%s10285_s29 + $0x1b8] sm:$0xff] }
 0x1d3   : > { %9335 = vpow2.f32 %v1351_v13  ;;  %v1729_v11 = vpop.f32.mrf.mxu1  ;;  %v1359_v13 = vmul.f32 1.442695, %v11431_v41 }
 0x1d4   : > { %v2098_v27 = vmul.f32 1.442695, %v11390_v46  ;;  %vm2033_vm8 = vcmp.gt.f32.partialorder %v11390_v46, 0.0 }
 0x1d5   : > { %v1732_v2 = vpop.f32.mrf.mxu1  ;;  %1971 = vmatmul.mubr.f32.gmra.mxu1 %v1601_v38 }
 0x1d6   : > { %9337 = vpow2.f32 %v2098_v27  ;;  %v11406_v35 = vadd.f32 %v11359_v47, %v1732_v2  ;;  %6967 = vmatprep.mubr.msk.f32.mxu1 %vm598_vm2, %v9999_v58 }
 0x1d7   : > { %v1734_v63 = vpop.f32.mrf.mxu1  ;;  %9339 = vpow2.f32 %v1353_v12 }
 0x1d8   : > { %v2100_v17 = vmul.f32 1.442695, %v11406_v35  ;;  %vm2034_vm9 = vcmp.gt.f32.partialorder %v11406_v35, 0.0 }
 0x1d9   : > { %v1737_v44 = vpop.f32.mrf.mxu1  ;;  %1976 = vmatmul.mubr.f32.gmra.mxu1 %v1602_v22  ;;  %v10003_v22 = vld [vmem:[%s10285_s29 + $0x1c0] sm:$0xff] }
 0x1da   : > { %9341 = vpow2.f32 %v2100_v17  ;;  %v11424_v52 = vadd.f32 %v11359_v47, %v1737_v44  ;;  %6968 = vmatprep.mubr.msk.f32.mxu1 %vm598_vm2, %v10000_v20 }
 0x1db   : > { %v9330_v14 = vpop.eup %9329  ;;  %9343 = vpow2.f32 %v1355_v3  ;;  %v1739_v0 = vpop.f32.mrf.mxu1 }
 0x1dc   : > { %v9332_v36 = vpop.eup %9331  ;;  %v6978_v53 = vadd.f32 -1.0, %v9330_v14  ;;  %v2102_v60 = vmul.f32 1.442695, %v11424_v52  ;;  %vm2035_vm12 = vcmp.gt.f32.partialorder %v11424_v52, 0.0 }
 0x1dd   : > { %v1742_v6 = vpop.f32.mrf.mxu1  ;;  %1981 = vmatmul.mubr.f32.gmra.mxu1 %v1603_v5  ;;  %v6907_v24 = vadd.f32 -1.0, %v9332_v36 }
 0x1de   : > { %v2283_v7 = vmul.f32 1.6732632, %v6978_v53  ;;  %9345 = vpow2.f32 %v2102_v60  ;;  %v11439_v29 = vadd.f32 %v11359_v47, %v1742_v6  ;;  %6969 = vmatprep.mubr.msk.f32.mxu1 %vm598_vm2, %v10001_v32 }
 0x1df   : > { %v9334_v10 = vpop.eup %9333  ;;  %9347 = vpow2.f32 %v1357_v21  ;;  %v1744_v57 = vpop.f32.mrf.mxu1  ;;  %v1481_v11 = vmul.f32 1.6732632, %v6907_v24  ;;  %v10004_v21 = vld [vmem:[%s10285_s29 + $0x1c8] sm:$0xff] }
 0x1e0   : > { %v9336_v23 = vpop.eup %9335  ;;  %v2346_v42 = vsel %vm2031_vm4, %v11364_v59, %v2283_v7  ;;  %v6979_v15 = vadd.f32 -1.0, %v9334_v10  ;;  %v2104_v8 = vmul.f32 1.442695, %v11439_v29  ;;  %v1543_v59 = vsel %vm1228_vm3, %v11342_v54, %v1480_v39  ;;  %v10005_v57 = vld [vmem:[%s10285_s29 + $0x1d0] sm:$0xff] }
 0x1e1   : > { %v2409_v18 = vmul.f32 1.050701, %v2346_v42  ;;  %v1747_v26 = vpop.f32.mrf.mxu1  ;;  %1986 = vmatmul.mubr.f32.gmra.mxu1 %v1604_v9  ;;  %v6908_v16 = vadd.f32 -1.0, %v9336_v23  ;;  %v1606_v63 = vmul.f32 1.050701, %v1543_v59  ;;  %v1544_v45 = vsel %vm1229_vm5, %v11354_v33, %v1481_v11 }
 0x1e2   : > { %9349 = vpow2.f32 %v2104_v8  ;;  %v11449_v28 = vadd.f32 %v11359_v47, %v1747_v26  ;;  %6970 = vmatprep.mubr.msk.f32.mxu1 %vm598_vm2, %v10002_v43  ;;  %v2284_v19 = vmul.f32 1.6732632, %v6979_v15  ;;  %v1607_v53 = vmul.f32 1.050701, %v1544_v45 }
 0x1e3   : > { %v9338_v38 = vpop.eup %9337  ;;  %v1749_v31 = vpop.f32.mrf.mxu1  ;;  %8027 = vmatmul.mubr.f32.vlgmr.msra.gmra.mxu0 %v2409_v18  ;;  %9351 = vpow2.f32 %v1359_v13  ;;  %v1482_v4 = vmul.f32 1.6732632, %v6908_v16  ;;  %v10006_v16 = vld [vmem:[%s10285_s29 + $0x1d8] sm:$0xff]  ;;  %vm2036_vm14 = vcmp.gt.f32.partialorder %v11439_v29, 0.0 }
 0x1e4   : > { %v6980_v12 = vadd.f32 -1.0, %v9338_v38  ;;  %v2106_v27 = vmul.f32 1.442695, %v11449_v28  ;;  %8029 = vmatprep.mubr.msk.f32.mxu0 %vm10111_vm1, %v10110_v1  ;;  %v2347_v2 = vsel %vm2032_vm6, %v11377_v30, %v2284_v19  ;;  %v9340_v48 = vpop.eup %9339  ;;  %vm2037_vm15 = vcmp.gt.f32.partialorder %v11449_v28, 0.0 }
 0x1e5   : > { %v1752_v40 = vpop.f32.mrf.mxu1  ;;  %1991 = vmatmul.mubr.f32.gmra.mxu1 %v1605_v55  ;;  %v2410_v54 = vmul.f32 1.050701, %v2347_v2  ;;  %v6909_v50 = vadd.f32 -1.0, %v9340_v48  ;;  %v1545_v60 = vsel %vm1230_vm7, %v11371_v34, %v1482_v4 }
 0x1e6   : > { %9353 = vpow2.f32 %v2106_v27  ;;  %v11466_v58 = vadd.f32 %v11359_v47, %v1752_v40  ;;  %6971 = vmatprep.mubr.msk.f32.mxu1 %vm598_vm2, %v10003_v22  ;;  %v2285_v3 = vmul.f32 1.6732632, %v6980_v12  ;;  %v1608_v42 = vmul.f32 1.050701, %v1545_v60 }
 0x1e7   : > { %v9342_v30 = vpop.eup %9341  ;;  %v1754_v17 = vpop.f32.mrf.mxu1  ;;  %8030 = vmatmul.mubr.f32.gmra.mxu0 %v2410_v54  ;;  %v1483_v56 = vmul.f32 1.6732632, %v6909_v50 }
 0x1e8   : > { %v9344_v44 = vpop.eup %9343  ;;  %v6981_v25 = vadd.f32 -1.0, %v9342_v30  ;;  %v2108_v20 = vmul.f32 1.442695, %v11466_v58  ;;  %8032 = vmatprep.mubr.msk.f32.mxu0 %vm10111_vm1, %v10110_v1  ;;  %v2348_v14 = vsel %vm2033_vm8, %v11390_v46, %v2285_v3  ;;  %vm2038_vm3 = vcmp.gt.f32.partialorder %v11466_v58, 0.0 }
 0x1e9   : > { %v1757_v5 = vpop.f32.mrf.mxu1  ;;  %1996 = vmatmul.mubr.f32.gmra.mxu1 %v1606_v63  ;;  %v2411_v33 = vmul.f32 1.050701, %v2348_v14  ;;  %v6910_v9 = vadd.f32 -1.0, %v9344_v44  ;;  %v1546_v18 = vsel %vm1231_vm10, %v11385_v51, %v1483_v56  ;;  %v10007_v63 = vld [vmem:[%s10285_s29 + $0x1e0] sm:$0xff] }
 0x1ea   : > { %9355 = vpow2.f32 %v2108_v20  ;;  %v11480_v49 = vadd.f32 %v11359_v47, %v1757_v5  ;;  %6972 = vmatprep.mubr.msk.f32.mxu1 %vm598_vm2, %v10004_v21  ;;  %v2286_v0 = vmul.f32 1.6732632, %v6981_v25  ;;  %v1609_v12 = vmul.f32 1.050701, %v1546_v18  ;;  %v10008_v21 = vld [vmem:[%s10285_s29 + $0x1e8] sm:$0xff] }
 0x1eb   : > { %v9346_v36 = vpop.eup %9345  ;;  %v1759_v46 = vpop.f32.mrf.mxu1  ;;  %8033 = vmatmul.mubr.f32.gmra.mxu0 %v2411_v33  ;;  %v1484_v15 = vmul.f32 1.6732632, %v6910_v9 }
 0x1ec   : > { %v9348_v6 = vpop.eup %9347  ;;  %v6982_v7 = vadd.f32 -1.0, %v9346_v36  ;;  %v2110_v32 = vmul.f32 1.442695, %v11480_v49  ;;  %8035 = vmatprep.mubr.msk.f32.mxu0 %vm10111_vm1, %v10110_v1  ;;  %v2349_v10 = vsel %vm2034_vm9, %v11406_v35, %v2286_v0  ;;  %vm2039_vm4 = vcmp.gt.f32.partialorder %v11480_v49, 0.0 }
 0x1ed   : > { %v1762_v39 = vpop.f32.mrf.mxu1  ;;  %2001 = vmatmul.mubr.f32.gmra.mxu1 %v1607_v53  ;;  %v2412_v34 = vmul.f32 1.050701, %v2349_v10  ;;  %v6911_v8 = vadd.f32 -1.0, %v9348_v6  ;;  %v10009_v10 = vld [vmem:[%s10285_s29 + $0x1f0] sm:$0xff] }
 0x1ee   : > { %9357 = vpow2.f32 %v2110_v32  ;;  %v11495_v24 = vadd.f32 %v11359_v47, %v1762_v39  ;;  %6973 = vmatprep.mubr.msk.f32.mxu1 %vm598_vm2, %v10005_v57  ;;  %v2287_v23 = vmul.f32 1.6732632, %v6982_v7 }
 0x1ef   : > { %v9350_v13 = vpop.eup %9349  ;;  %v1764_v35 = vpop.f32.mrf.mxu1  ;;  %8036 = vmatmul.mubr.f32.gmra.mxu0 %v2412_v34  ;;  %v1485_v27 = vmul.f32 1.6732632, %v6911_v8 }
 0x1f0   : > { %v6983_v26 = vadd.f32 -1.0, %v9350_v13  ;;  %v2112_v55 = vmul.f32 1.442695, %v11495_v24  ;;  %8038 = vmatprep.mubr.msk.f32.mxu0 %vm10111_vm1, %v10110_v1  ;;  %v2350_v43 = vsel %vm2035_vm12, %v11424_v52, %v2287_v23  ;;  %v9352_v19 = vpop.eup %9351  ;;  %v1547_v52 = vsel %vm1232_vm11, %v11396_v61, %v1484_v15  ;;  %v3321_v61 = vld [vmem:[%s14589_s7 + $0x28] sm:$0xff] }
 0x1f1   : > { %v1767_v38 = vpop.f32.mrf.mxu1  ;;  %2006 = vmatmul.mubr.f32.gmra.mxu1 %v1608_v42  ;;  %v2413_v59 = vmul.f32 1.050701, %v2350_v43  ;;  %v6912_v48 = vadd.f32 -1.0, %v9352_v19  ;;  %v1610_v17 = vmul.f32 1.050701, %v1547_v52 }
 0x1f2   : > { %9359 = vpow2.f32 %v2112_v55  ;;  %v11509_v11 = vadd.f32 %v11359_v47, %v1767_v38  ;;  %6974 = vmatprep.mubr.msk.f32.mxu1 %vm598_vm2, %v10006_v16  ;;  %v2288_v51 = vmul.f32 1.6732632, %v6983_v26  ;;  %8236 = vmatpush3.msra.mxu1 %v3321_v61 }
 0x1f3   : > { %v9354_v31 = vpop.eup %9353  ;;  %v1769_v2 = vpop.f32.mrf.mxu1  ;;  %8039 = vmatmul.mubr.f32.gmra.mxu0 %v2413_v59  ;;  %8237 = vmatprep.subr.mxu1 %v10110_v1  ;;  %v1486_v50 = vmul.f32 1.6732632, %v6912_v48  ;;  %v3320_v59 = vld [vmem:[%s14589_s7 + $0x20] sm:$0xff] }
 0x1f4   : > { %v6984_v40 = vadd.f32 -1.0, %v9354_v31  ;;  %v2114_v54 = vmul.f32 1.442695, %v11509_v11  ;;  %8041 = vmatprep.mubr.msk.f32.mxu0 %vm10111_vm1, %v10110_v1  ;;  %v2351_v62 = vsel %vm2036_vm14, %v11439_v29, %v2288_v51  ;;  %v1548_v29 = vsel %vm1233_vm13, %v11414_v37, %v1485_v27  ;;  %8238 = vmatpush3.msra.mxu1 %v3320_v59 }
 0x1f5   : > { %v1772_v22 = vpop.f32.mrf.mxu1  ;;  %2011 = vmatmul.mubr.f32.gmra.mxu1 %v1609_v12  ;;  %v2414_v3 = vmul.f32 1.050701, %v2351_v62  ;;  %v1611_v53 = vmul.f32 1.050701, %v1548_v29  ;;  %vm2041_vm5 = vcmp.gt.f32.partialorder %v11509_v11, 0.0  ;;  %8239 = vmatprep.subr.mxu1 %v10110_v1 }
 0x1f6   : > { %9361 = vpow2.f32 %v2114_v54  ;;  %v11525_v30 = vadd.f32 %v11359_v47, %v1772_v22  ;;  %6975 = vmatprep.mubr.msk.f32.mxu1 %vm598_vm2, %v10007_v63  ;;  %v2289_v45 = vmul.f32 1.6732632, %v6984_v40 }
 0x1f7   : > { %v9356_v4 = vpop.eup %9355  ;;  %v1774_v44 = vpop.f32.mrf.mxu1  ;;  %8042 = vmatmul.mubr.f32.gmra.mxu0 %v2414_v3 }
 0x1f8   : > { %v6985_v25 = vadd.f32 -1.0, %v9356_v4  ;;  %v2116_v20 = vmul.f32 1.442695, %v11525_v30  ;;  %8044 = vmatprep.mubr.msk.f32.mxu0 %vm10111_vm1, %v10110_v1  ;;  %v2352_v14 = vsel %vm2037_vm15, %v11449_v28, %v2289_v45  ;;  %v1549_v28 = vsel %vm1234_vm0, %v11431_v41, %v1486_v50 }
 0x1f9   : > { %v1777_v5 = vpop.f32.mrf.mxu1  ;;  %2016 = vmatmul.mubr.f32.gmra.mxu1 %v1610_v17  ;;  %v2415_v37 = vmul.f32 1.050701, %v2352_v14  ;;  %v1612_v34 = vmul.f32 1.050701, %v1549_v28  ;;  %vm2042_vm6 = vcmp.gt.f32.partialorder %v11525_v30, 0.0 }
 0x1fa   : > { %9363 = vpow2.f32 %v2116_v20  ;;  %v11540_v33 = vadd.f32 %v11359_v47, %v1777_v5  ;;  %6976 = vmatprep.mubr.msk.f32.mxu1 %vm598_vm2, %v10008_v21  ;;  %v2290_v0 = vmul.f32 1.6732632, %v6985_v25 }
 0x1fb   : > { %v9358_v36 = vpop.eup %9357  ;;  %v1779_v60 = vpop.f32.mrf.mxu1  ;;  %8045 = vmatmul.mubr.f32.gmra.mxu0 %v2415_v37 }
 0x1fc   : > { %v6986_v9 = vadd.f32 -1.0, %v9358_v36  ;;  %v2118_v46 = vmul.f32 1.442695, %v11540_v33  ;;  %8047 = vmatprep.mubr.msk.f32.mxu0 %vm10111_vm1, %v10110_v1  ;;  %v2353_v6 = vsel %vm2038_vm3, %v11466_v58, %v2290_v0  ;;  %vm2043_vm7 = vcmp.gt.f32.partialorder %v11540_v33, 0.0 }
 0x1fd   : > { %v1782_v56 = vpop.f32.mrf.mxu1  ;;  %2021 = vmatmul.mubr.f32.gmra.mxu1 %v1611_v53  ;;  %v2416_v7 = vmul.f32 1.050701, %v2353_v6 }
 0x1fe   : > { %9365 = vpow2.f32 %v2118_v46  ;;  %v11551_v32 = vadd.f32 %v11359_v47, %v1782_v56  ;;  %6977 = vmatprep.mubr.msk.f32.mxu1 %vm598_vm2, %v10009_v10  ;;  %v2291_v39 = vmul.f32 1.6732632, %v6986_v9  ;;  %vm2040_vm2 = vcmp.gt.f32.partialorder %v11495_v24, 0.0  ;;  %v3319_v9 = vld [vmem:[%s14589_s7 + $0x18] sm:$0xff] }
 0x1ff   : > { %v9360_v41 = vpop.eup %9359  ;;  %v1784_v57 = vpop.f32.mrf.mxu1  ;;  %8048 = vmatmul.mubr.f32.gmra.mxu0 %v2416_v7  ;;  %8240 = vmatpush3.msra.mxu1 %v3319_v9 }
 0x200   : > { %v6987_v23 = vadd.f32 -1.0, %v9360_v41  ;;  %v2120_v58 = vmul.f32 1.442695, %v11551_v32  ;;  %8050 = vmatprep.mubr.msk.f32.mxu0 %vm10111_vm1, %v10110_v1  ;;  %v2354_v13 = vsel %vm2039_vm4, %v11480_v49, %v2291_v39  ;;  %vm2044_vm8 = vcmp.gt.f32.partialorder %v11551_v32, 0.0  ;;  %8241 = vmatprep.subr.mxu1 %v10110_v1 }
 0x201   : > { %v1787_v42 = vpop.f32.mrf.mxu1  ;;  %2026 = vmatmul.mubr.f32.gmra.mxu1 %v1612_v34  ;;  %v2417_v15 = vmul.f32 1.050701, %v2354_v13 }
 0x202   : > { %9367 = vpow2.f32 %v2120_v58  ;;  %v11561_v8 = vadd.f32 %v11359_v47, %v1787_v42  ;;  %v2292_v35 = vmul.f32 1.6732632, %v6987_v23  ;;  %8247 = vmatprep.mubr.msk.f32.mxu1 %vm10111_vm1, %v10110_v1 }
 0x203   : > { %v9362_v18 = vpop.eup %9361  ;;  %v1789_v26 = vpop.f32.mrf.mxu1  ;;  %8051 = vmatmul.mubr.f32.gmra.mxu0 %v2417_v15 }
 0x204   : > { %v6988_v55 = vadd.f32 -1.0, %v9362_v18  ;;  %v2122_v43 = vmul.f32 1.442695, %v11561_v8  ;;  %8053 = vmatprep.mubr.msk.f32.mxu0 %vm10111_vm1, %v10110_v1  ;;  %v2355_v49 = vsel %vm2040_vm2, %v11495_v24, %v2292_v35  ;;  %vm2045_vm9 = vcmp.gt.f32.partialorder %v11561_v8, 0.0 }
 0x205   : > { %v1792_v19 = vpop.f32.mrf.mxu1  ;;  %v2418_v38 = vmul.f32 1.050701, %v2355_v49 }
 0x206   : > { %9369 = vpow2.f32 %v2122_v43  ;;  %v11574_v16 = vadd.f32 %v11359_v47, %v1792_v19  ;;  %v2293_v51 = vmul.f32 1.6732632, %v6988_v55 }
 0x207   : > { %v9364_v31 = vpop.eup %9363  ;;  %v1794_v12 = vpop.f32.mrf.mxu1  ;;  %8054 = vmatmul.mubr.f32.gmra.mxu0 %v2418_v38 }
 0x208   : > { %v6989_v24 = vadd.f32 -1.0, %v9364_v31  ;;  %v2124_v52 = vmul.f32 1.442695, %v11574_v16  ;;  %8056 = vmatprep.mubr.msk.f32.mxu0 %vm10111_vm1, %v10110_v1  ;;  %v2356_v27 = vsel %vm2041_vm5, %v11509_v11, %v2293_v51  ;;  %vm2046_vm10 = vcmp.gt.f32.partialorder %v11574_v16, 0.0 }
 0x209   : > { %v1797_v2 = vpop.f32.mrf.mxu1  ;;  %v2419_v48 = vmul.f32 1.050701, %v2356_v27 }
 0x20a   : > { %9371 = vpow2.f32 %v2124_v52  ;;  %v11583_v40 = vadd.f32 %v11359_v47, %v1797_v2  ;;  %v2294_v54 = vmul.f32 1.6732632, %v6989_v24 }
 0x20b   : > { %v9366_v62 = vpop.eup %9365  ;;  %v1799_v22 = vpop.f32.mrf.mxu1  ;;  %8057 = vmatmul.mubr.f32.gmra.mxu0 %v2419_v48 }
 0x20c   : > { %v6990_v3 = vadd.f32 -1.0, %v9366_v62  ;;  %v2126_v61 = vmul.f32 1.442695, %v11583_v40  ;;  %8059 = vmatprep.mubr.msk.f32.mxu0 %vm10111_vm1, %v10110_v1  ;;  %v2357_v11 = vsel %vm2042_vm6, %v11525_v30, %v2294_v54  ;;  %vm2047_vm11 = vcmp.gt.f32.partialorder %v11583_v40, 0.0  ;;  %v3318_v62 = vld [vmem:[%s14589_s7 + $0x10] sm:$0xff] }
 0x20d   : > { %v1802_v63 = vpop.f32.mrf.mxu1  ;;  %v2420_v45 = vmul.f32 1.050701, %v2357_v11  ;;  %8242 = vmatpush3.msra.mxu1 %v3318_v62 }
 0x20e   : > { %9373 = vpow2.f32 %v2126_v61  ;;  %v11591_v4 = vadd.f32 %v11359_v47, %v1802_v63  ;;  %v2295_v17 = vmul.f32 1.6732632, %v6990_v3  ;;  %8243 = vmatprep.subr.mxu1 %v10110_v1 }
 0x20f   : > { %v9368_v29 = vpop.eup %9367  ;;  %v1804_v44 = vpop.f32.mrf.mxu1  ;;  %8060 = vmatmul.mubr.f32.gmra.mxu0 %v2420_v45 }
 0x210   : > { %v6991_v50 = vadd.f32 -1.0, %v9368_v29  ;;  %v2128_v25 = vmul.f32 1.442695, %v11591_v4  ;;  %8062 = vmatprep.mubr.msk.f32.mxu0 %vm10111_vm1, %v10110_v1  ;;  %v2358_v30 = vsel %vm2043_vm7, %v11540_v33, %v2295_v17  ;;  %vm2048_vm12 = vcmp.gt.f32.partialorder %v11591_v4, 0.0 }
 0x211   : > { %v1807_v20 = vpop.f32.mrf.mxu1  ;;  %v2421_v14 = vmul.f32 1.050701, %v2358_v30 }
 0x212   : > { %9375 = vpow2.f32 %v2128_v25  ;;  %v11599_v5 = vadd.f32 %v11359_v47, %v1807_v20  ;;  %v2296_v37 = vmul.f32 1.6732632, %v6991_v50 }
 0x213   : > { %v9370_v21 = vpop.eup %9369  ;;  %v1809_v0 = vpop.f32.mrf.mxu1  ;;  %8063 = vmatmul.mubr.f32.gmra.mxu0 %v2421_v14 }
 0x214   : > { %v6992_v36 = vadd.f32 -1.0, %v9370_v21  ;;  %v2130_v53 = vmul.f32 1.442695, %v11599_v5  ;;  %8065 = vmatprep.mubr.msk.f32.mxu0 %vm10111_vm1, %v10110_v1  ;;  %v2359_v33 = vsel %vm2044_vm8, %v11551_v32, %v2296_v37  ;;  %vm2049_vm13 = vcmp.gt.f32.partialorder %v11599_v5, 0.0 }
 0x215   : > { %v1812_v60 = vpop.f32.mrf.mxu1  ;;  %v2422_v28 = vmul.f32 1.050701, %v2359_v33 }
 0x216   : > { %9377 = vpow2.f32 %v2130_v53  ;;  %v11610_v46 = vadd.f32 %v11359_v47, %v1812_v60  ;;  %v2297_v6 = vmul.f32 1.6732632, %v6992_v36 }
 0x217   : > { %v9372_v56 = vpop.eup %9371  ;;  %v1814_v7 = vpop.f32.mrf.mxu1  ;;  %8066 = vmatmul.mubr.f32.gmra.mxu0 %v2422_v28 }
 0x218   : > { %v6993_v32 = vadd.f32 -1.0, %v9372_v56  ;;  %v2132_v10 = vmul.f32 1.442695, %v11610_v46  ;;  %8068 = vmatprep.mubr.msk.f32.mxu0 %vm10111_vm1, %v10110_v1  ;;  %v2360_v39 = vsel %vm2045_vm9, %v11561_v8, %v2297_v6  ;;  %vm2050_vm14 = vcmp.gt.f32.partialorder %v11610_v46, 0.0  ;;  %v4175_v56 = vld [vmem:[%s14591_s9 + $0x78] sm:$0xff] }
 0x219   : > { %v1817_v41 = vpop.f32.mrf.mxu1  ;;  %v2423_v34 = vmul.f32 1.050701, %v2360_v39  ;;  %8437 = vmatpush3.msra.mxu0 %v4175_v56 }
 0x21a   : > { %9379 = vpow2.f32 %v2132_v10  ;;  %v11619_v57 = vadd.f32 %v11359_v47, %v1817_v41  ;;  %v2298_v23 = vmul.f32 1.6732632, %v6993_v32  ;;  %8438 = vmatprep.subr.mxu0 %v10110_v1 }
 0x21b   : > { %v9374_v58 = vpop.eup %9373  ;;  %v1819_v13 = vpop.f32.mrf.mxu1  ;;  %8069 = vmatmul.mubr.f32.gmra.mxu0 %v2423_v34 }
 0x21c   : > { %v6994_v42 = vadd.f32 -1.0, %v9374_v58  ;;  %v2134_v15 = vmul.f32 1.442695, %v11619_v57  ;;  %8071 = vmatprep.mubr.msk.f32.mxu0 %vm10111_vm1, %v10110_v1  ;;  %v2361_v8 = vsel %vm2046_vm10, %v11574_v16, %v2298_v23  ;;  %vm2051_vm15 = vcmp.gt.f32.partialorder %v11619_v57, 0.0  ;;  %v3317_v13 = vld [vmem:[%s14589_s7 + $0x8] sm:$0xff] }
 0x21d   : > { %v1822_v35 = vpop.f32.mrf.mxu1  ;;  %v2424_v18 = vmul.f32 1.050701, %v2361_v8  ;;  %8244 = vmatpush3.msra.mxu1 %v3317_v13 }
 0x21e   : > { %9381 = vpow2.f32 %v2134_v15  ;;  %v11627_v26 = vadd.f32 %v11359_v47, %v1822_v35  ;;  %v2299_v55 = vmul.f32 1.6732632, %v6994_v42  ;;  %8245 = vmatprep.subr.mxu1 %v10110_v1 }
 0x21f   : > { %v9376_v43 = vpop.eup %9375  ;;  %v1824_v49 = vpop.f32.mrf.mxu1  ;;  %8072 = vmatmul.mubr.f32.gmra.mxu0 %v2424_v18 }
 0x220   : > { %v6995_v19 = vadd.f32 -1.0, %v9376_v43  ;;  %v2136_v38 = vmul.f32 1.442695, %v11627_v26  ;;  %8074 = vmatprep.mubr.msk.f32.mxu0 %vm10111_vm1, %v10110_v1  ;;  %v2362_v59 = vsel %vm2047_vm11, %v11583_v40, %v2299_v55  ;;  %vm2052_vm0 = vcmp.gt.f32.partialorder %v11627_v26, 0.0 }
 0x221   : > { %v1827_v16 = vpop.f32.mrf.mxu1  ;;  %v2425_v51 = vmul.f32 1.050701, %v2362_v59 }
 0x222   : > { %9383 = vpow2.f32 %v2136_v38  ;;  %v11635_v31 = vadd.f32 %v11359_v47, %v1827_v16  ;;  %v2300_v12 = vmul.f32 1.6732632, %v6995_v19 }
 0x223   : > { %v9378_v24 = vpop.eup %9377  ;;  %v1829_v52 = vpop.f32.mrf.mxu1  ;;  %8075 = vmatmul.mubr.f32.gmra.mxu0 %v2425_v51 }
 0x224   : > { %v6996_v27 = vadd.f32 -1.0, %v9378_v24  ;;  %v2138_v2 = vmul.f32 1.442695, %v11635_v31  ;;  %8077 = vmatprep.mubr.msk.f32.mxu0 %vm10111_vm1, %v10110_v1  ;;  %v2363_v48 = vsel %vm2048_vm12, %v11591_v4, %v2300_v12  ;;  %vm2053_vm3 = vcmp.gt.f32.partialorder %v11635_v31, 0.0  ;;  %v3316_v24 = vld [vmem:[%s14589_s7] sm:$0xff] }
 0x225   : > { %v1832_v40 = vpop.f32.mrf.mxu1  ;;  %v2426_v54 = vmul.f32 1.050701, %v2363_v48  ;;  %8246 = vmatpush3.msra.mxu1 %v3316_v24 }
 0x226   : > { %9385 = vpow2.f32 %v2138_v2  ;;  %v11646_v22 = vadd.f32 %v11359_v47, %v1832_v40  ;;  %v2301_v3 = vmul.f32 1.6732632, %v6996_v27  ;;  %8657 = vmatprep.subr.mxu1 %v10110_v1 }
 0x227   : > { %v9380_v61 = vpop.eup %9379  ;;  %v1834_v11 = vpop.f32.mrf.mxu1  ;;  %8078 = vmatmul.mubr.f32.gmra.mxu0 %v2426_v54 }
 0x228   : > { %v6997_v63 = vadd.f32 -1.0, %v9380_v61  ;;  %v2140_v45 = vmul.f32 1.442695, %v11646_v22  ;;  %8080 = vmatprep.mubr.msk.f32.mxu0 %vm10111_vm1, %v10110_v1  ;;  %v2364_v4 = vsel %vm2049_vm13, %v11599_v5, %v2301_v3  ;;  %vm2054_vm4 = vcmp.gt.f32.partialorder %v11646_v22, 0.0 }
 0x229   : > { %v1837_v17 = vpop.f32.mrf.mxu1  ;;  %v2427_v29 = vmul.f32 1.050701, %v2364_v4 }
 0x22a   : > { %9387 = vpow2.f32 %v2140_v45  ;;  %v11655_v44 = vadd.f32 %v11359_v47, %v1837_v17  ;;  %v2302_v50 = vmul.f32 1.6732632, %v6997_v63 }
 0x22b   : > { %v9382_v25 = vpop.eup %9381  ;;  %v1839_v30 = vpop.f32.mrf.mxu1  ;;  %8081 = vmatmul.mubr.f32.gmra.mxu0 %v2427_v29 }
 0x22c   : > { %v6998_v20 = vadd.f32 -1.0, %v9382_v25  ;;  %v2142_v14 = vmul.f32 1.442695, %v11655_v44  ;;  %8083 = vmatprep.mubr.msk.f32.mxu0 %vm10111_vm1, %v10110_v1  ;;  %v2365_v5 = vsel %vm2050_vm14, %v11610_v46, %v2302_v50  ;;  %vm2055_vm2 = vcmp.gt.f32.partialorder %v11655_v44, 0.0  ;;  %v4174_v25 = vld [vmem:[%s14591_s9 + $0x70] sm:$0xff] }
 0x22d   : > { %v1842_v37 = vpop.f32.mrf.mxu1  ;;  %v2428_v21 = vmul.f32 1.050701, %v2365_v5  ;;  %8439 = vmatpush3.msra.mxu0 %v4174_v25 }
 0x22e   : > { %9389 = vpow2.f32 %v2142_v14  ;;  %v11663_v0 = vadd.f32 %v11359_v47, %v1842_v37  ;;  %v2303_v36 = vmul.f32 1.6732632, %v6998_v20  ;;  %v11728_v14 = vld [vmem:[%s14608_s4] ss:$0 sm:$0xff]  ;;  %8440 = vmatprep.subr.mxu0 %v10110_v1 }
 0x22f   : > { %v9384_v53 = vpop.eup %9383  ;;  %v1844_v33 = vpop.f32.mrf.mxu1  ;;  %8084 = vmatmul.mubr.f32.gmra.mxu0 %v2428_v21 }
 0x230   : > { %v6999_v60 = vadd.f32 -1.0, %v9384_v53  ;;  %v2144_v28 = vmul.f32 1.442695, %v11663_v0  ;;  %8086 = vmatprep.mubr.msk.f32.mxu0 %vm10111_vm1, %v10110_v1  ;;  %v2366_v9 = vsel %vm2051_vm15, %v11619_v57, %v2303_v36  ;;  %vm2056_vm5 = vcmp.gt.f32.partialorder %v11663_v0, 0.0 }
 0x231   : > { %v1847_v46 = vpop.f32.mrf.mxu1  ;;  %v2429_v6 = vmul.f32 1.050701, %v2366_v9 }
 0x232   : > { %9391 = vpow2.f32 %v2144_v28  ;;  %v11674_v7 = vadd.f32 %v11359_v47, %v1847_v46  ;;  %v2304_v32 = vmul.f32 1.6732632, %v6999_v60 }
 0x233   : > { %v9386_v10 = vpop.eup %9385  ;;  %v1849_v39 = vpop.f32.mrf.mxu1  ;;  %8087 = vmatmul.mubr.f32.gmra.mxu0 %v2429_v6 }
 0x234   : > { %v7000_v41 = vadd.f32 -1.0, %v9386_v10  ;;  %v2146_v34 = vmul.f32 1.442695, %v11674_v7  ;;  %8089 = vmatprep.mubr.msk.f32.mxu0 %vm10111_vm1, %v10110_v1  ;;  %v2367_v57 = vsel %vm2052_vm0, %v11627_v26, %v2304_v32  ;;  %vm2057_vm6 = vcmp.gt.f32.partialorder %v11674_v7, 0.0 }
 0x235   : > { %v1852_v23 = vpop.f32.mrf.mxu1  ;;  %v2430_v58 = vmul.f32 1.050701, %v2367_v57 }
 0x236   : > { %9393 = vpow2.f32 %v2146_v34  ;;  %v11686_v42 = vadd.f32 %v11359_v47, %v1852_v23  ;;  %v2305_v15 = vmul.f32 1.6732632, %v7000_v41 }
 0x237   : > { %v9388_v8 = vpop.eup %9387  ;;  %v1854_v35 = vpop.f32.mrf.mxu1  ;;  %8090 = vmatmul.mubr.f32.gmra.mxu0 %v2430_v58 }
 0x238   : > { %v7001_v18 = vadd.f32 -1.0, %v9388_v8  ;;  %v2148_v26 = vmul.f32 1.442695, %v11686_v42  ;;  %8092 = vmatprep.mubr.msk.f32.mxu0 %vm10111_vm1, %v10110_v1  ;;  %v2368_v55 = vsel %vm2053_vm3, %v11635_v31, %v2305_v15  ;;  %vm2058_vm7 = vcmp.gt.f32.partialorder %v11686_v42, 0.0 }
 0x239   : > { %v1857_v43 = vpop.f32.mrf.mxu1  ;;  %v2431_v49 = vmul.f32 1.050701, %v2368_v55 }
 0x23a   : > { %9395 = vpow2.f32 %v2148_v26  ;;  %v11695_v19 = vadd.f32 %v11359_v47, %v1857_v43  ;;  %v2306_v38 = vmul.f32 1.6732632, %v7001_v18 }
 0x23b   : > { %v9390_v59 = vpop.eup %9389  ;;  %v1859_v16 = vpop.f32.mrf.mxu1  ;;  %8093 = vmatmul.mubr.f32.gmra.mxu0 %v2431_v49 }
 0x23c   : > { %v7002_v51 = vadd.f32 -1.0, %v9390_v59  ;;  %v2150_v12 = vmul.f32 1.442695, %v11695_v19  ;;  %8095 = vmatprep.mubr.msk.f32.mxu0 %vm10111_vm1, %v10110_v1  ;;  %v2369_v31 = vsel %vm2054_vm4, %v11646_v22, %v2306_v38  ;;  %vm2059_vm8 = vcmp.gt.f32.partialorder %v11695_v19, 0.0 }
 0x23d   : > { %v1862_v52 = vpop.f32.mrf.mxu1  ;;  %v2432_v27 = vmul.f32 1.050701, %v2369_v31 }
 0x23e   : > { %v2307_v2 = vmul.f32 1.6732632, %v7002_v51  ;;  %9397 = vpow2.f32 %v2150_v12  ;;  %v11706_v48 = vadd.f32 %v11359_v47, %v1862_v52  ;;  %v4173_v12 = vld [vmem:[%s14591_s9 + $0x68] sm:$0xff] }
 0x23f   : > { %v9392_v40 = vpop.eup %9391  ;;  %v1864_v54 = vpop.f32.mrf.mxu1  ;;  %8096 = vmatmul.mubr.f32.gmra.mxu0 %v2432_v27 }
 0x240   : > { %v2370_v62 = vsel %vm2055_vm2, %v11655_v44, %v2307_v2  ;;  %v7003_v22 = vadd.f32 -1.0, %v9392_v40  ;;  %v2152_v3 = vmul.f32 1.442695, %v11706_v48  ;;  %8098 = vmatprep.mubr.msk.f32.mxu0 %vm10111_vm1, %v10110_v1  ;;  %vm2060_vm9 = vcmp.gt.f32.partialorder %v11706_v48, 0.0  ;;  %8441 = vmatpush3.msra.mxu0 %v4173_v12 }
 0x241   : > { %v2433_v61 = vmul.f32 1.050701, %v2370_v62  ;;  %v1867_v11 = vpop.f32.mrf.mxu1  ;;  %8442 = vmatprep.subr.mxu0 %v10110_v1 }
 0x242   : > { %v2308_v63 = vmul.f32 1.6732632, %v7003_v22  ;;  %9399 = vpow2.f32 %v2152_v3  ;;  %v11715_v45 = vadd.f32 %v11359_v47, %v1867_v11 }
 0x243   : > { %v9394_v4 = vpop.eup %9393  ;;  %v1869_v17 = vpop.f32.mrf.mxu1  ;;  %8099 = vmatmul.mubr.f32.gmra.mxu0 %v2433_v61 }
 0x244   : > { %v2371_v29 = vsel %vm2056_vm5, %v11663_v0, %v2308_v63  ;;  %v7004_v44 = vadd.f32 -1.0, %v9394_v4  ;;  %v2154_v50 = vmul.f32 1.442695, %v11715_v45  ;;  %8101 = vmatprep.mubr.msk.f32.mxu0 %vm10111_vm1, %v10110_v1  ;;  %vm2061_vm10 = vcmp.gt.f32.partialorder %v11715_v45, 0.0 }
 0x245   : > { %v2434_v30 = vmul.f32 1.050701, %v2371_v29  ;;  %v1872_v47 = vpop.f32.mrf.mxu1 }
 0x246   : > { %v2309_v20 = vmul.f32 1.6732632, %v7004_v44  ;;  %9401 = vpow2.f32 %v2154_v50  ;;  %v11731_v5 = vadd.f32 %v11728_v14, %v1872_v47 }
 0x247   : > { %v9396_v37 = vpop.eup %9395  ;;  %v1874_v21 = vpop.f32.mrf.mxu1  ;;  %8102 = vmatmul.mubr.f32.gmra.mxu0 %v2434_v30 }
 0x248   : > { %v2372_v0 = vsel %vm2057_vm6, %v11674_v7, %v2309_v20  ;;  %v7005_v36 = vadd.f32 -1.0, %v9396_v37  ;;  %v2156_v53 = vmul.f32 1.442695, %v11731_v5  ;;  %8104 = vmatprep.mubr.msk.f32.mxu0 %vm10111_vm1, %v10110_v1  ;;  %vm2062_vm11 = vcmp.gt.f32.partialorder %v11731_v5, 0.0 }
 0x249   : > { %v2435_v33 = vmul.f32 1.050701, %v2372_v0  ;;  %v1877_v60 = vpop.f32.mrf.mxu1 }
 0x24a   : > { %v2310_v28 = vmul.f32 1.6732632, %v7005_v36  ;;  %9403 = vpow2.f32 %v2156_v53  ;;  %v11740_v9 = vadd.f32 %v11728_v14, %v1877_v60  ;;  %v4172_v53 = vld [vmem:[%s14591_s9 + $0x60] sm:$0xff] }
 0x24b   : > { %v9398_v46 = vpop.eup %9397  ;;  %v1879_v6 = vpop.f32.mrf.mxu1  ;;  %8105 = vmatmul.mubr.f32.gmra.mxu0 %v2435_v33 }
 0x24c   : > { %v2373_v56 = vsel %vm2058_vm7, %v11686_v42, %v2310_v28  ;;  %v7006_v7 = vadd.f32 -1.0, %v9398_v46  ;;  %v2158_v32 = vmul.f32 1.442695, %v11740_v9  ;;  %8107 = vmatprep.mubr.msk.f32.mxu0 %vm10111_vm1, %v10110_v1  ;;  %vm2063_vm12 = vcmp.gt.f32.partialorder %v11740_v9, 0.0  ;;  %8443 = vmatpush3.msra.mxu0 %v4172_v53 }
 0x24d   : > { %v2436_v10 = vmul.f32 1.050701, %v2373_v56  ;;  %v1882_v39 = vpop.f32.mrf.mxu1  ;;  %8444 = vmatprep.subr.mxu0 %v10110_v1 }
 0x24e   : > { %v2311_v41 = vmul.f32 1.6732632, %v7006_v7  ;;  %9405 = vpow2.f32 %v2158_v32  ;;  %v11748_v34 = vadd.f32 %v11728_v14, %v1882_v39 }
 0x24f   : > { %v9400_v57 = vpop.eup %9399  ;;  %v1884_v23 = vpop.f32.mrf.mxu1  ;;  %8108 = vmatmul.mubr.f32.gmra.mxu0 %v2436_v10 }
 0x250   : > { %v2374_v58 = vsel %vm2059_vm8, %v11695_v19, %v2311_v41  ;;  %v7007_v13 = vadd.f32 -1.0, %v9400_v57  ;;  %v2160_v42 = vmul.f32 1.442695, %v11748_v34  ;;  %8110 = vmatprep.mubr.msk.f32.mxu0 %vm10111_vm1, %v10110_v1  ;;  %vm2064_vm13 = vcmp.gt.f32.partialorder %v11748_v34, 0.0 }
 0x251   : > { %v2437_v15 = vmul.f32 1.050701, %v2374_v58  ;;  %v1887_v8 = vpop.f32.mrf.mxu1 }
 0x252   : > { %v2312_v35 = vmul.f32 1.6732632, %v7007_v13  ;;  %9407 = vpow2.f32 %v2160_v42  ;;  %v11756_v18 = vadd.f32 %v11728_v14, %v1887_v8 }
 0x253   : > { %v9402_v26 = vpop.eup %9401  ;;  %v1889_v55 = vpop.f32.mrf.mxu1  ;;  %8111 = vmatmul.mubr.f32.gmra.mxu0 %v2437_v15 }
 0x254   : > { %v2375_v43 = vsel %vm2060_vm9, %v11706_v48, %v2312_v35  ;;  %v7008_v49 = vadd.f32 -1.0, %v9402_v26  ;;  %v2162_v19 = vmul.f32 1.442695, %v11756_v18  ;;  %8113 = vmatprep.mubr.msk.f32.mxu0 %vm10111_vm1, %v10110_v1  ;;  %vm2065_vm14 = vcmp.gt.f32.partialorder %v11756_v18, 0.0 }
 0x255   : > { %v2438_v38 = vmul.f32 1.050701, %v2375_v43  ;;  %v1892_v59 = vpop.f32.mrf.mxu1 }
 0x256   : > { %v2313_v16 = vmul.f32 1.6732632, %v7008_v49  ;;  %9409 = vpow2.f32 %v2162_v19  ;;  %v11764_v51 = vadd.f32 %v11728_v14, %v1892_v59 }
 0x257   : > { %v9404_v31 = vpop.eup %9403  ;;  %v1894_v24 = vpop.f32.mrf.mxu1  ;;  %8114 = vmatmul.mubr.f32.gmra.mxu0 %v2438_v38  ;;  %v4171_v38 = vld [vmem:[%s14591_s9 + $0x58] sm:$0xff] }
 0x258   : > { %v2376_v52 = vsel %vm2061_vm10, %v11715_v45, %v2313_v16  ;;  %v7009_v27 = vadd.f32 -1.0, %v9404_v31  ;;  %v2164_v2 = vmul.f32 1.442695, %v11764_v51  ;;  %8116 = vmatprep.mubr.msk.f32.mxu0 %vm10111_vm1, %v10110_v1  ;;  %vm2066_vm15 = vcmp.gt.f32.partialorder %v11764_v51, 0.0  ;;  %8445 = vmatpush3.msra.mxu0 %v4171_v38 }
 0x259   : > { %v2439_v48 = vmul.f32 1.050701, %v2376_v52  ;;  %v1897_v40 = vpop.f32.mrf.mxu1  ;;  %8446 = vmatprep.subr.mxu0 %v10110_v1 }
 0x25a   : > { %v2314_v54 = vmul.f32 1.6732632, %v7009_v27  ;;  %9411 = vpow2.f32 %v2164_v2  ;;  %v11776_v62 = vadd.f32 %v11728_v14, %v1897_v40 }
 0x25b   : > { %v9406_v22 = vpop.eup %9405  ;;  %v1899_v3 = vpop.f32.mrf.mxu1  ;;  %8117 = vmatmul.mubr.f32.gmra.mxu0 %v2439_v48 }
 0x25c   : > { %v2377_v61 = vsel %vm2062_vm11, %v11731_v5, %v2314_v54  ;;  %v7010_v11 = vadd.f32 -1.0, %v9406_v22  ;;  %v2166_v63 = vmul.f32 1.442695, %v11776_v62  ;;  %8119 = vmatprep.mubr.msk.f32.mxu0 %vm10111_vm1, %v10110_v1  ;;  %vm2067_vm0 = vcmp.gt.f32.partialorder %v11776_v62, 0.0 }
 0x25d   : > { %v2440_v45 = vmul.f32 1.050701, %v2377_v61  ;;  %v1902_v4 = vpop.f32.mrf.mxu1 }
 0x25e   : > { %v2315_v17 = vmul.f32 1.6732632, %v7010_v11  ;;  %9413 = vpow2.f32 %v2166_v63  ;;  %v11784_v29 = vadd.f32 %v11728_v14, %v1902_v4 }
 0x25f   : > { %v9408_v44 = vpop.eup %9407  ;;  %v1904_v50 = vpop.f32.mrf.mxu1  ;;  %8120 = vmatmul.mubr.f32.gmra.mxu0 %v2440_v45 }
 0x260   : > { %v2378_v25 = vsel %vm2063_vm12, %v11740_v9, %v2315_v17  ;;  %v7011_v30 = vadd.f32 -1.0, %v9408_v44  ;;  %v2168_v47 = vmul.f32 1.442695, %v11784_v29  ;;  %8122 = vmatprep.mubr.msk.f32.mxu0 %vm10111_vm1, %v10110_v1  ;;  %vm2068_vm3 = vcmp.gt.f32.partialorder %v11784_v29, 0.0 }
 0x261   : > { %v2441_v20 = vmul.f32 1.050701, %v2378_v25  ;;  %v1907_v5 = vpop.f32.mrf.mxu1 }
 0x262   : > { %v2316_v37 = vmul.f32 1.6732632, %v7011_v30  ;;  %9415 = vpow2.f32 %v2168_v47  ;;  %v11792_v21 = vadd.f32 %v11728_v14, %v1907_v5 }
 0x263   : > { %v9410_v0 = vpop.eup %9409  ;;  %v1909_v36 = vpop.f32.mrf.mxu1  ;;  %8123 = vmatmul.mubr.f32.gmra.mxu0 %v2441_v20 }
 0x264   : > { %v2379_v33 = vsel %vm2064_vm13, %v11748_v34, %v2316_v37  ;;  %v7012_v60 = vadd.f32 -1.0, %v9410_v0  ;;  %v2170_v28 = vmul.f32 1.442695, %v11792_v21  ;;  %8125 = vmatprep.mubr.msk.f32.mxu0 %vm10111_vm1, %v10110_v1  ;;  %vm2069_vm4 = vcmp.gt.f32.partialorder %v11792_v21, 0.0 }
 0x265   : > { %v2442_v9 = vmul.f32 1.050701, %v2379_v33  ;;  %v1912_v46 = vpop.f32.mrf.mxu1 }
 0x266   : > { %v2317_v6 = vmul.f32 1.6732632, %v7012_v60  ;;  %9417 = vpow2.f32 %v2170_v28  ;;  %v11804_v56 = vadd.f32 %v11728_v14, %v1912_v46  ;;  %v4170_v28 = vld [vmem:[%s14591_s9 + $0x50] sm:$0xff] }
 0x267   : > { %v9412_v7 = vpop.eup %9411  ;;  %v1914_v32 = vpop.f32.mrf.mxu1  ;;  %8126 = vmatmul.mubr.f32.gmra.mxu0 %v2442_v9 }
 0x268   : > { %v2380_v10 = vsel %vm2065_vm14, %v11756_v18, %v2317_v6  ;;  %v7013_v39 = vadd.f32 -1.0, %v9412_v7  ;;  %v2172_v41 = vmul.f32 1.442695, %v11804_v56  ;;  %8128 = vmatprep.mubr.msk.f32.mxu0 %vm10111_vm1, %v10110_v1  ;;  %vm2070_vm2 = vcmp.gt.f32.partialorder %v11804_v56, 0.0  ;;  %8447 = vmatpush3.msra.mxu0 %v4170_v28 }
 0x269   : > { %v2443_v34 = vmul.f32 1.050701, %v2380_v10  ;;  %v1917_v57 = vpop.f32.mrf.mxu1  ;;  %8448 = vmatprep.subr.mxu0 %v10110_v1 }
 0x26a   : > { %v2318_v23 = vmul.f32 1.6732632, %v7013_v39  ;;  %9419 = vpow2.f32 %v2172_v41  ;;  %v11812_v58 = vadd.f32 %v11728_v14, %v1917_v57 }
 0x26b   : > { %v9414_v13 = vpop.eup %9413  ;;  %v1919_v42 = vpop.f32.mrf.mxu1  ;;  %8129 = vmatmul.mubr.f32.gmra.mxu0 %v2443_v34 }
 0x26c   : > { %v2381_v15 = vsel %vm2066_vm15, %v11764_v51, %v2318_v23  ;;  %v7014_v8 = vadd.f32 -1.0, %v9414_v13  ;;  %v2174_v35 = vmul.f32 1.442695, %v11812_v58  ;;  %8131 = vmatprep.mubr.msk.f32.mxu0 %vm10111_vm1, %v10110_v1  ;;  %vm2071_vm5 = vcmp.gt.f32.partialorder %v11812_v58, 0.0 }
 0x26d   : > { %v2444_v18 = vmul.f32 1.050701, %v2381_v15  ;;  %v1922_v26 = vpop.f32.mrf.mxu1 }
 0x26e   : > { %v2319_v55 = vmul.f32 1.6732632, %v7014_v8  ;;  %9421 = vpow2.f32 %v2174_v35  ;;  %v11820_v43 = vadd.f32 %v11728_v14, %v1922_v26 }
 0x26f   : > { %v9416_v49 = vpop.eup %9415  ;;  %v1924_v19 = vpop.f32.mrf.mxu1  ;;  %8132 = vmatmul.mubr.f32.gmra.mxu0 %v2444_v18 }
 0x270   : > { %v2382_v59 = vsel %vm2067_vm0, %v11776_v62, %v2319_v55  ;;  %v7015_v16 = vadd.f32 -1.0, %v9416_v49  ;;  %v2176_v51 = vmul.f32 1.442695, %v11820_v43  ;;  %8134 = vmatprep.mubr.msk.f32.mxu0 %vm10111_vm1, %v10110_v1  ;;  %vm2072_vm6 = vcmp.gt.f32.partialorder %v11820_v43, 0.0 }
 0x271   : > { %v2445_v12 = vmul.f32 1.050701, %v2382_v59  ;;  %v1927_v31 = vpop.f32.mrf.mxu1 }
 0x272   : > { %v2320_v24 = vmul.f32 1.6732632, %v7015_v16  ;;  %9423 = vpow2.f32 %v2176_v51  ;;  %v11832_v52 = vadd.f32 %v11728_v14, %v1927_v31 }
 0x273   : > { %v9418_v27 = vpop.eup %9417  ;;  %v1929_v2 = vpop.f32.mrf.mxu1  ;;  %8135 = vmatmul.mubr.f32.gmra.mxu0 %v2445_v12 }
 0x274   : > { %v2383_v48 = vsel %vm2068_vm3, %v11784_v29, %v2320_v24  ;;  %v7016_v40 = vadd.f32 -1.0, %v9418_v27  ;;  %v2178_v54 = vmul.f32 1.442695, %v11832_v52  ;;  %8137 = vmatprep.mubr.msk.f32.mxu0 %vm10111_vm1, %v10110_v1  ;;  %vm2073_vm7 = vcmp.gt.f32.partialorder %v11832_v52, 0.0 }
 0x275   : > { %v2446_v62 = vmul.f32 1.050701, %v2383_v48  ;;  %v1932_v22 = vpop.f32.mrf.mxu1 }
 0x276   : > { %v2321_v3 = vmul.f32 1.6732632, %v7016_v40  ;;  %9425 = vpow2.f32 %v2178_v54  ;;  %v11840_v61 = vadd.f32 %v11728_v14, %v1932_v22  ;;  %v4169_v54 = vld [vmem:[%s14591_s9 + $0x48] sm:$0xff] }
 0x277   : > { %v9420_v11 = vpop.eup %9419  ;;  %v1934_v63 = vpop.f32.mrf.mxu1  ;;  %8138 = vmatmul.mubr.f32.gmra.mxu0 %v2446_v62 }
 0x278   : > { %v2384_v45 = vsel %vm2069_vm4, %v11792_v21, %v2321_v3  ;;  %v7017_v4 = vadd.f32 -1.0, %v9420_v11  ;;  %v2180_v17 = vmul.f32 1.442695, %v11840_v61  ;;  %8140 = vmatprep.mubr.msk.f32.mxu0 %vm10111_vm1, %v10110_v1  ;;  %vm2074_vm8 = vcmp.gt.f32.partialorder %v11840_v61, 0.0  ;;  %8449 = vmatpush3.msra.mxu0 %v4169_v54 }
 0x279   : > { %v2447_v29 = vmul.f32 1.050701, %v2384_v45  ;;  %v1937_v44 = vpop.f32.mrf.mxu1  ;;  %8450 = vmatprep.subr.mxu0 %v10110_v1 }
 0x27a   : > { %v2322_v50 = vmul.f32 1.6732632, %v7017_v4  ;;  %9427 = vpow2.f32 %v2180_v17  ;;  %v11848_v25 = vadd.f32 %v11728_v14, %v1937_v44 }
 0x27b   : > { %v9422_v30 = vpop.eup %9421  ;;  %v1939_v47 = vpop.f32.mrf.mxu1  ;;  %8141 = vmatmul.mubr.f32.gmra.mxu0 %v2447_v29 }
 0x27c   : > { %v2385_v20 = vsel %vm2070_vm2, %v11804_v56, %v2322_v50  ;;  %v7018_v5 = vadd.f32 -1.0, %v9422_v30  ;;  %v2182_v37 = vmul.f32 1.442695, %v11848_v25  ;;  %8143 = vmatprep.mubr.msk.f32.mxu0 %vm10111_vm1, %v10110_v1  ;;  %vm2075_vm9 = vcmp.gt.f32.partialorder %v11848_v25, 0.0 }
 0x27d   : > { %v2448_v21 = vmul.f32 1.050701, %v2385_v20  ;;  %v1942_v0 = vpop.f32.mrf.mxu1 }
 0x27e   : > { %v2323_v36 = vmul.f32 1.6732632, %v7018_v5  ;;  %9429 = vpow2.f32 %v2182_v37  ;;  %v11856_v53 = vadd.f32 %v11728_v14, %v1942_v0 }
 0x27f   : > { %v9424_v33 = vpop.eup %9423  ;;  %v1944_v60 = vpop.f32.mrf.mxu1  ;;  %8144 = vmatmul.mubr.f32.gmra.mxu0 %v2448_v21 }
 0x280   : > { %v2386_v9 = vsel %vm2071_vm5, %v11812_v58, %v2323_v36  ;;  %v7019_v46 = vadd.f32 -1.0, %v9424_v33  ;;  %v2184_v6 = vmul.f32 1.442695, %v11856_v53  ;;  %8146 = vmatprep.mubr.msk.f32.mxu0 %vm10111_vm1, %v10110_v1  ;;  %vm2076_vm10 = vcmp.gt.f32.partialorder %v11856_v53, 0.0 }
 0x281   : > { %v2449_v56 = vmul.f32 1.050701, %v2386_v9  ;;  %v1947_v7 = vpop.f32.mrf.mxu1 }
 0x282   : > { %v2324_v32 = vmul.f32 1.6732632, %v7019_v46  ;;  %9431 = vpow2.f32 %v2184_v6  ;;  %v11868_v10 = vadd.f32 %v11728_v14, %v1947_v7 }
 0x283   : > { %v9426_v39 = vpop.eup %9425  ;;  %v1949_v41 = vpop.f32.mrf.mxu1  ;;  %8147 = vmatmul.mubr.f32.gmra.mxu0 %v2449_v56 }
 0x284   : > { %v2387_v34 = vsel %vm2072_vm6, %v11820_v43, %v2324_v32  ;;  %v7020_v57 = vadd.f32 -1.0, %v9426_v39  ;;  %v2186_v23 = vmul.f32 1.442695, %v11868_v10  ;;  %8149 = vmatprep.mubr.msk.f32.mxu0 %vm10111_vm1, %v10110_v1  ;;  %vm2077_vm11 = vcmp.gt.f32.partialorder %v11868_v10, 0.0 }
 0x285   : > { %v2450_v58 = vmul.f32 1.050701, %v2387_v34  ;;  %v1952_v13 = vpop.f32.mrf.mxu1 }
 0x286   : > { %v2325_v42 = vmul.f32 1.6732632, %v7020_v57  ;;  %9433 = vpow2.f32 %v2186_v23  ;;  %v11876_v15 = vadd.f32 %v11728_v14, %v1952_v13  ;;  %v4168_v23 = vld [vmem:[%s14591_s9 + $0x40] sm:$0xff] }
 0x287   : > { %v9428_v8 = vpop.eup %9427  ;;  %v1954_v35 = vpop.f32.mrf.mxu1  ;;  %8150 = vmatmul.mubr.f32.gmra.mxu0 %v2450_v58 }
 0x288   : > { %v2388_v18 = vsel %vm2073_vm7, %v11832_v52, %v2325_v42  ;;  %v7021_v26 = vadd.f32 -1.0, %v9428_v8  ;;  %v2188_v55 = vmul.f32 1.442695, %v11876_v15  ;;  %8152 = vmatprep.mubr.msk.f32.mxu0 %vm10111_vm1, %v10110_v1  ;;  %vm2078_vm12 = vcmp.gt.f32.partialorder %v11876_v15, 0.0  ;;  %8451 = vmatpush3.msra.mxu0 %v4168_v23 }
 0x289   : > { %v2451_v43 = vmul.f32 1.050701, %v2388_v18  ;;  %v1957_v49 = vpop.f32.mrf.mxu1  ;;  %8452 = vmatprep.subr.mxu0 %v10110_v1 }
 0x28a   : > { %v2326_v19 = vmul.f32 1.6732632, %v7021_v26  ;;  %9435 = vpow2.f32 %v2188_v55  ;;  %v11884_v38 = vadd.f32 %v11728_v14, %v1957_v49  ;;  %v11945_v26 = vld [vmem:[%s14588_s6] ss:$0 sm:$0xff] }
 0x28b   : > { %v9430_v59 = vpop.eup %9429  ;;  %v1959_v16 = vpop.f32.mrf.mxu1  ;;  %8153 = vmatmul.mubr.f32.gmra.mxu0 %v2451_v43 }
 0x28c   : > { %v2389_v51 = vsel %vm2074_vm8, %v11840_v61, %v2326_v19  ;;  %v7022_v12 = vadd.f32 -1.0, %v9430_v59  ;;  %v2190_v31 = vmul.f32 1.442695, %v11884_v38  ;;  %8155 = vmatprep.mubr.msk.f32.mxu0 %vm10111_vm1, %v10110_v1  ;;  %vm2079_vm13 = vcmp.gt.f32.partialorder %v11884_v38, 0.0 }
 0x28d   : > { %v2452_v24 = vmul.f32 1.050701, %v2389_v51  ;;  %v1962_v52 = vpop.f32.mrf.mxu1 }
 0x28e   : > { %v2327_v27 = vmul.f32 1.6732632, %v7022_v12  ;;  %9437 = vpow2.f32 %v2190_v31  ;;  %v11892_v2 = vadd.f32 %v11728_v14, %v1962_v52 }
 0x28f   : > { %v9432_v48 = vpop.eup %9431  ;;  %v1964_v40 = vpop.f32.mrf.mxu1  ;;  %8156 = vmatmul.mubr.f32.gmra.mxu0 %v2452_v24 }
 0x290   : > { %v2390_v62 = vsel %vm2075_vm9, %v11848_v25, %v2327_v27  ;;  %v7023_v22 = vadd.f32 -1.0, %v9432_v48  ;;  %v2192_v3 = vmul.f32 1.442695, %v11892_v2  ;;  %8158 = vmatprep.mubr.msk.f32.mxu0 %vm10111_vm1, %v10110_v1  ;;  %vm2080_vm14 = vcmp.gt.f32.partialorder %v11892_v2, 0.0 }
 0x291   : > { %v2453_v61 = vmul.f32 1.050701, %v2390_v62  ;;  %v1967_v11 = vpop.f32.mrf.mxu1 }
 0x292   : > { %v2328_v63 = vmul.f32 1.6732632, %v7023_v22  ;;  %9439 = vpow2.f32 %v2192_v3  ;;  %v11904_v45 = vadd.f32 %v11728_v14, %v1967_v11 }
 0x293   : > { %v9434_v4 = vpop.eup %9433  ;;  %v1969_v17 = vpop.f32.mrf.mxu1  ;;  %8159 = vmatmul.mubr.f32.gmra.mxu0 %v2453_v61 }
 0x294   : > { %v2391_v29 = vsel %vm2076_vm10, %v11856_v53, %v2328_v63  ;;  %v7024_v44 = vadd.f32 -1.0, %v9434_v4  ;;  %v2194_v50 = vmul.f32 1.442695, %v11904_v45  ;;  %8161 = vmatprep.mubr.msk.f32.mxu0 %vm10111_vm1, %v10110_v1  ;;  %vm2081_vm15 = vcmp.gt.f32.partialorder %v11904_v45, 0.0 }
 0x295   : > { %v2454_v25 = vmul.f32 1.050701, %v2391_v29  ;;  %v1972_v30 = vpop.f32.mrf.mxu1 }
 0x296   : > { %v2329_v47 = vmul.f32 1.6732632, %v7024_v44  ;;  %9441 = vpow2.f32 %v2194_v50  ;;  %v11912_v20 = vadd.f32 %v11728_v14, %v1972_v30 }
 0x297   : > { %v9436_v5 = vpop.eup %9435  ;;  %v1974_v37 = vpop.f32.mrf.mxu1  ;;  %8162 = vmatmul.mubr.f32.gmra.mxu0 %v2454_v25 }
 0x298   : > { %v2392_v21 = vsel %vm2077_vm11, %v11868_v10, %v2329_v47  ;;  %v7025_v0 = vadd.f32 -1.0, %v9436_v5  ;;  %v2196_v36 = vmul.f32 1.442695, %v11912_v20  ;;  %8164 = vmatprep.mubr.msk.f32.mxu0 %vm10111_vm1, %v10110_v1  ;;  %vm2082_vm0 = vcmp.gt.f32.partialorder %v11912_v20, 0.0 }
 0x299   : > { %v2455_v53 = vmul.f32 1.050701, %v2392_v21  ;;  %v1977_v33 = vpop.f32.mrf.mxu1 }
 0x29a   : > { %v2330_v60 = vmul.f32 1.6732632, %v7025_v0  ;;  %9443 = vpow2.f32 %v2196_v36  ;;  %v11920_v28 = vadd.f32 %v11728_v14, %v1977_v33 }
 0x29b   : > { %v9438_v9 = vpop.eup %9437  ;;  %v1979_v46 = vpop.f32.mrf.mxu1  ;;  %8165 = vmatmul.mubr.f32.gmra.mxu0 %v2455_v53 }
 0x29c   : > { %v2393_v6 = vsel %vm2078_vm12, %v11876_v15, %v2330_v60  ;;  %v7026_v56 = vadd.f32 -1.0, %v9438_v9  ;;  %v2198_v7 = vmul.f32 1.442695, %v11920_v28  ;;  %8167 = vmatprep.mubr.msk.f32.mxu0 %vm10111_vm1, %v10110_v1  ;;  %vm2083_vm3 = vcmp.gt.f32.partialorder %v11920_v28, 0.0  ;;  %v4167_v46 = vld [vmem:[%s14591_s9 + $0x38] sm:$0xff] }
 0x29d   : > { %v2456_v32 = vmul.f32 1.050701, %v2393_v6  ;;  %v1982_v10 = vpop.f32.mrf.mxu1  ;;  %8453 = vmatpush3.msra.mxu0 %v4167_v46 }
 0x29e   : > { %v2331_v39 = vmul.f32 1.6732632, %v7026_v56  ;;  %9445 = vpow2.f32 %v2198_v7  ;;  %v11928_v41 = vadd.f32 %v11728_v14, %v1982_v10  ;;  %8454 = vmatprep.subr.mxu0 %v10110_v1 }
 0x29f   : > { %v9440_v34 = vpop.eup %9439  ;;  %v1984_v57 = vpop.f32.mrf.mxu1  ;;  %8168 = vmatmul.mubr.f32.gmra.mxu0 %v2456_v32 }
 0x2a0   : > { %v2394_v58 = vsel %vm2079_vm13, %v11884_v38, %v2331_v39  ;;  %v7027_v13 = vadd.f32 -1.0, %v9440_v34  ;;  %v2200_v42 = vmul.f32 1.442695, %v11928_v41  ;;  %8170 = vmatprep.mubr.msk.f32.mxu0 %vm10111_vm1, %v10110_v1  ;;  %vm2084_vm4 = vcmp.gt.f32.partialorder %v11928_v41, 0.0 }
 0x2a1   : > { %v2457_v15 = vmul.f32 1.050701, %v2394_v58  ;;  %v1987_v8 = vpop.f32.mrf.mxu1 }
 0x2a2   : > { %v2332_v35 = vmul.f32 1.6732632, %v7027_v13  ;;  %9447 = vpow2.f32 %v2200_v42  ;;  %v11940_v18 = vadd.f32 %v11728_v14, %v1987_v8 }
 0x2a3   : > { %v9442_v55 = vpop.eup %9441  ;;  %v1989_v43 = vpop.f32.mrf.mxu1  ;;  %8171 = vmatmul.mubr.f32.gmra.mxu0 %v2457_v15 }
 0x2a4   : > { %v2561_v49 = vpop.f32.mrf.mxu0  ;;  %v2395_v19 = vsel %vm2080_vm14, %v11892_v2, %v2332_v35  ;;  %v7028_v38 = vadd.f32 -1.0, %v9442_v55  ;;  %v2202_v59 = vmul.f32 1.442695, %v11940_v18  ;;  %8173 = vmatprep.mubr.msk.f32.mxu0 %vm10111_vm1, %v10110_v1  ;;  %vm2085_vm2 = vcmp.gt.f32.partialorder %v11940_v18, 0.0 }
 0x2a5   : > { %v2458_v16 = vmul.f32 1.050701, %v2395_v19  ;;  %v11953_v51 = vadd.f32 %v11945_v26, %v2561_v49  ;;  %v1992_v12 = vpop.f32.mrf.mxu1 }
 0x2a6   : > { %v8028_v31 = vpop.f32.mrf.mxu0  ;;  %v2333_v24 = vmul.f32 1.6732632, %v7028_v38  ;;  %9449 = vpow2.f32 %v2202_v59  ;;  %v11956_v52 = vadd.f32 %v11728_v14, %v1992_v12 }
 0x2a7   : > { %v9444_v27 = vpop.eup %9443  ;;  %v2938_v2 = vmul.f32 1.442695, %v11953_v51  ;;  %v1994_v48 = vpop.f32.mrf.mxu1  ;;  %8174 = vmatmul.mubr.f32.gmra.mxu0 %v2458_v16  ;;  %vm2875_vm5 = vcmp.gt.f32.partialorder %v11953_v51, 0.0 }
 0x2a8   : > { %v2566_v40 = vpop.f32.mrf.mxu0  ;;  %v2396_v54 = vsel %vm2081_vm15, %v11904_v45, %v2333_v24  ;;  %v7029_v62 = vadd.f32 -1.0, %v9444_v27  ;;  %v2204_v22 = vmul.f32 1.442695, %v11956_v52  ;;  %8176 = vmatprep.mubr.msk.f32.mxu0 %vm10111_vm1, %v10110_v1  ;;  %vm2086_vm6 = vcmp.gt.f32.partialorder %v11956_v52, 0.0 }
 0x2a9   : > { %v2459_v3 = vmul.f32 1.050701, %v2396_v54  ;;  %9451 = vpow2.f32 %v2938_v2  ;;  %v11965_v61 = vadd.f32 %v11945_v26, %v2566_v40  ;;  %v1997_v11 = vpop.f32.mrf.mxu1 }
 0x2aa   : > { %v8031_v63 = vpop.f32.mrf.mxu0  ;;  %v2334_v4 = vmul.f32 1.6732632, %v7029_v62  ;;  %9453 = vpow2.f32 %v2204_v22  ;;  %v11968_v17 = vadd.f32 %v11728_v14, %v1997_v11 }
 0x2ab   : > { %v9446_v29 = vpop.eup %9445  ;;  %v2940_v45 = vmul.f32 1.442695, %v11965_v61  ;;  %v1999_v44 = vpop.f32.mrf.mxu1  ;;  %8177 = vmatmul.mubr.f32.gmra.mxu0 %v2459_v3  ;;  %vm2876_vm7 = vcmp.gt.f32.partialorder %v11965_v61, 0.0 }
 0x2ac   : > { %v2571_v50 = vpop.f32.mrf.mxu0  ;;  %v2397_v25 = vsel %vm2082_vm0, %v11912_v20, %v2334_v4  ;;  %v7030_v30 = vadd.f32 -1.0, %v9446_v29  ;;  %v2206_v47 = vmul.f32 1.442695, %v11968_v17  ;;  %8179 = vmatprep.mubr.msk.f32.mxu0 %vm10111_vm1, %v10110_v1  ;;  %vm2087_vm8 = vcmp.gt.f32.partialorder %v11968_v17, 0.0 }
 0x2ad   : > { %v2460_v5 = vmul.f32 1.050701, %v2397_v25  ;;  %9455 = vpow2.f32 %v2940_v45  ;;  %v11977_v37 = vadd.f32 %v11945_v26, %v2571_v50  ;;  %v2002_v21 = vpop.f32.mrf.mxu1 }
 0x2ae   : > { %v8034_v0 = vpop.f32.mrf.mxu0  ;;  %v2335_v36 = vmul.f32 1.6732632, %v7030_v30  ;;  %9457 = vpow2.f32 %v2206_v47  ;;  %v11980_v53 = vadd.f32 %v11728_v14, %v2002_v21 }
 0x2af   : > { %v9448_v33 = vpop.eup %9447  ;;  %v2942_v20 = vmul.f32 1.442695, %v11977_v37  ;;  %v2004_v60 = vpop.f32.mrf.mxu1  ;;  %8180 = vmatmul.mubr.f32.gmra.mxu0 %v2460_v5  ;;  %vm2877_vm9 = vcmp.gt.f32.partialorder %v11977_v37, 0.0 }
 0x2b0   : > { %v2576_v9 = vpop.f32.mrf.mxu0  ;;  %v2398_v6 = vsel %vm2083_vm3, %v11920_v28, %v2335_v36  ;;  %v7031_v56 = vadd.f32 -1.0, %v9448_v33  ;;  %v2208_v7 = vmul.f32 1.442695, %v11980_v53  ;;  %8182 = vmatprep.mubr.msk.f32.mxu0 %vm10111_vm1, %v10110_v1  ;;  %vm2088_vm10 = vcmp.gt.f32.partialorder %v11980_v53, 0.0 }
 0x2b1   : > { %v2461_v32 = vmul.f32 1.050701, %v2398_v6  ;;  %9459 = vpow2.f32 %v2942_v20  ;;  %v11992_v10 = vadd.f32 %v11945_v26, %v2576_v9  ;;  %v2007_v39 = vpop.f32.mrf.mxu1 }
 0x2b2   : > { %v8037_v34 = vpop.f32.mrf.mxu0  ;;  %v2336_v57 = vmul.f32 1.6732632, %v7031_v56  ;;  %9461 = vpow2.f32 %v2208_v7  ;;  %v11996_v28 = vadd.f32 %v11728_v14, %v2007_v39 }
 0x2b3   : > { %v9450_v23 = vpop.eup %9449  ;;  %v2944_v58 = vmul.f32 1.442695, %v11992_v10  ;;  %v2009_v13 = vpop.f32.mrf.mxu1  ;;  %8183 = vmatmul.mubr.f32.gmra.mxu0 %v2461_v32  ;;  %v4166_v34 = vld [vmem:[%s14591_s9 + $0x30] sm:$0xff]  ;;  %vm2878_vm11 = vcmp.gt.f32.partialorder %v11992_v10, 0.0 }
 0x2b4   : > { %v2581_v42 = vpop.f32.mrf.mxu0  ;;  %v2399_v15 = vsel %vm2084_vm4, %v11928_v41, %v2336_v57  ;;  %v7032_v8 = vadd.f32 -1.0, %v9450_v23  ;;  %v2210_v35 = vmul.f32 1.442695, %v11996_v28  ;;  %8185 = vmatprep.mubr.msk.f32.mxu0 %vm10111_vm1, %v10110_v1  ;;  %8455 = vmatpush3.msra.mxu0 %v4166_v34  ;;  %vm2089_vm12 = vcmp.gt.f32.partialorder %v11996_v28, 0.0 }
 0x2b5   : > { %v2462_v55 = vmul.f32 1.050701, %v2399_v15  ;;  %9463 = vpow2.f32 %v2944_v58  ;;  %v12005_v43 = vadd.f32 %v11945_v26, %v2581_v42  ;;  %v2012_v49 = vpop.f32.mrf.mxu1  ;;  %8456 = vmatprep.subr.mxu0 %v10110_v1 }
 0x2b6   : > { %v8040_v19 = vpop.f32.mrf.mxu0  ;;  %v9452_v38 = vpop.eup %9451  ;;  %v2337_v59 = vmul.f32 1.6732632, %v7032_v8  ;;  %9465 = vpow2.f32 %v2210_v35  ;;  %v12008_v16 = vadd.f32 %v11728_v14, %v2012_v49 }
 0x2b7   : > { %v9454_v41 = vpop.eup %9453  ;;  %v7042_v12 = vadd.f32 -1.0, %v9452_v38  ;;  %v2946_v31 = vmul.f32 1.442695, %v12005_v43  ;;  %v2014_v24 = vpop.f32.mrf.mxu1  ;;  %8186 = vmatmul.mubr.f32.gmra.mxu0 %v2462_v55  ;;  %vm2879_vm13 = vcmp.gt.f32.partialorder %v12005_v43, 0.0 }
 0x2b8   : > { %v2586_v27 = vpop.f32.mrf.mxu0  ;;  %v2400_v2 = vsel %vm2085_vm2, %v11940_v18, %v2337_v59  ;;  %v7033_v48 = vadd.f32 -1.0, %v9454_v41  ;;  %v2212_v40 = vmul.f32 1.442695, %v12008_v16  ;;  %8188 = vmatprep.mubr.msk.f32.mxu0 %vm10111_vm1, %v10110_v1  ;;  %vm2090_vm14 = vcmp.gt.f32.partialorder %v12008_v16, 0.0 }
 0x2b9   : > { %v2463_v54 = vmul.f32 1.050701, %v2400_v2  ;;  %v3127_v62 = vmul.f32 1.6732632, %v7042_v12  ;;  %9467 = vpow2.f32 %v2946_v31  ;;  %v12017_v22 = vadd.f32 %v11945_v26, %v2586_v27  ;;  %v2017_v3 = vpop.f32.mrf.mxu1 }
 0x2ba   : > { %v8043_v11 = vpop.f32.mrf.mxu0  ;;  %v9456_v63 = vpop.eup %9455  ;;  %v2338_v4 = vmul.f32 1.6732632, %v7033_v48  ;;  %9469 = vpow2.f32 %v2212_v40  ;;  %v12021_v18 = vadd.f32 %v11728_v14, %v2017_v3 }
 0x2bb   : > { %v9458_v29 = vpop.eup %9457  ;;  %v3190_v45 = vsel %vm2875_vm5, %v11953_v51, %v3127_v62  ;;  %v7043_v44 = vadd.f32 -1.0, %v9456_v63  ;;  %v2948_v50 = vmul.f32 1.442695, %v12017_v22  ;;  %v2019_v25 = vpop.f32.mrf.mxu1  ;;  %8189 = vmatmul.mubr.f32.gmra.mxu0 %v2463_v54  ;;  %vm2880_vm15 = vcmp.gt.f32.partialorder %v12017_v22, 0.0 }
 0x2bc   : > { %v2591_v30 = vpop.f32.mrf.mxu0  ;;  %v3253_v47 = vmul.f32 1.050701, %v3190_v45  ;;  %v2401_v5 = vsel %vm2086_vm6, %v11956_v52, %v2338_v4  ;;  %v7034_v21 = vadd.f32 -1.0, %v9458_v29  ;;  %8191 = vmatprep.mubr.msk.f32.mxu0 %vm10111_vm1, %v10110_v1  ;;  %v2214_v51 = vmul.f32 1.442695, %v12021_v18 }
 0x2bd   : > { %v2464_v0 = vmul.f32 1.050701, %v2401_v5  ;;  %v3128_v36 = vmul.f32 1.6732632, %v7043_v44  ;;  %9471 = vpow2.f32 %v2948_v50  ;;  %v2022_v33 = vpop.f32.mrf.mxu1  ;;  %v12032_v46 = vadd.f32 %v11945_v26, %v2591_v30 }
 0x2be   : > { %v8046_v20 = vpop.f32.mrf.mxu0  ;;  %v9460_v60 = vpop.eup %9459  ;;  %v2339_v9 = vmul.f32 1.6732632, %v7034_v21  ;;  %v12035_v52 = vadd.f32 %v11728_v14, %v2022_v33  ;;  %8248 = vmatmul.mubr.f32.vlgmr.msra.gmra.mxu1 %v3253_v47  ;;  %9473 = vpow2.f32 %v2214_v51  ;;  %vm2091_vm0 = vcmp.gt.f32.partialorder %v12021_v18, 0.0 }
 0x2bf   : > { %v9462_v6 = vpop.eup %9461  ;;  %v3191_v56 = vsel %vm2876_vm7, %v11965_v61, %v3128_v36  ;;  %v7044_v7 = vadd.f32 -1.0, %v9460_v60  ;;  %v2024_v32 = vpop.f32.mrf.mxu1  ;;  %8192 = vmatmul.mubr.f32.gmra.mxu0 %v2464_v0  ;;  %8250 = vmatprep.mubr.msk.f32.mxu1 %vm10111_vm1, %v10110_v1  ;;  %v2950_v42 = vmul.f32 1.442695, %v12032_v46  ;;  %vm2881_vm3 = vcmp.gt.f32.partialorder %v12032_v46, 0.0 }
 0x2c0   : > { %v2596_v39 = vpop.f32.mrf.mxu0  ;;  %v3254_v57 = vmul.f32 1.050701, %v3191_v56  ;;  %v2402_v23 = vsel %vm2087_vm8, %v11968_v17, %v2339_v9  ;;  %v7035_v58 = vadd.f32 -1.0, %v9462_v6  ;;  %8194 = vmatprep.mubr.msk.f32.mxu0 %vm10111_vm1, %v10110_v1  ;;  %v2216_v49 = vmul.f32 1.442695, %v12035_v52 }
 0x2c1   : > { %v2465_v61 = vmul.f32 1.050701, %v2402_v23  ;;  %v3129_v13 = vmul.f32 1.6732632, %v7044_v7  ;;  %v12049_v15 = vadd.f32 %v11945_v26, %v2596_v39  ;;  %v2027_v8 = vpop.f32.mrf.mxu1  ;;  %9475 = vpow2.f32 %v2950_v42  ;;  %v4165_v23 = vld [vmem:[%s14591_s9 + $0x28] sm:$0xff] }
 0x2c2   : > { %v8049_v35 = vpop.f32.mrf.mxu0  ;;  %v9464_v55 = vpop.eup %9463  ;;  %v2340_v17 = vmul.f32 1.6732632, %v7035_v58  ;;  %v12055_v19 = vadd.f32 %v11728_v14, %v2027_v8  ;;  %8251 = vmatmul.mubr.f32.gmra.mxu1 %v3254_v57  ;;  %9477 = vpow2.f32 %v2216_v49  ;;  %8457 = vmatpush3.msra.mxu0 %v4165_v23  ;;  %vm2092_vm4 = vcmp.gt.f32.partialorder %v12035_v52, 0.0 }
 0x2c3   : > { %v9466_v38 = vpop.eup %9465  ;;  %v3192_v59 = vsel %vm2877_vm9, %v11977_v37, %v3129_v13  ;;  %v7045_v41 = vadd.f32 -1.0, %v9464_v55  ;;  %v2029_v12 = vpop.f32.mrf.mxu1  ;;  %8195 = vmatmul.mubr.f32.gmra.mxu0 %v2465_v61  ;;  %8253 = vmatprep.mubr.msk.f32.mxu1 %vm10111_vm1, %v10110_v1  ;;  %v2952_v48 = vmul.f32 1.442695, %v12049_v15  ;;  %vm2882_vm2 = vcmp.gt.f32.partialorder %v12049_v15, 0.0 }
 0x2c4   : > { %v2601_v31 = vpop.f32.mrf.mxu0  ;;  %v3255_v24 = vmul.f32 1.050701, %v3192_v59  ;;  %v2403_v27 = vsel %vm2088_vm10, %v11980_v53, %v2340_v17  ;;  %v7036_v2 = vadd.f32 -1.0, %v9466_v38  ;;  %8197 = vmatprep.mubr.msk.f32.mxu0 %vm10111_vm1, %v10110_v1  ;;  %v2218_v11 = vmul.f32 1.442695, %v12055_v19  ;;  %8458 = vmatprep.subr.mxu0 %v10110_v1 }
 0x2c5   : > { %v2466_v14 = vmul.f32 1.050701, %v2403_v27  ;;  %v3130_v37 = vmul.f32 1.6732632, %v7045_v41  ;;  %v12066_v40 = vadd.f32 %v11945_v26, %v2601_v31  ;;  %9479 = vpow2.f32 %v2952_v48 }
 0x2c6   : > { %v8052_v54 = vpop.f32.mrf.mxu0  ;;  %v9468_v62 = vpop.eup %9467  ;;  %v2341_v3 = vmul.f32 1.6732632, %v7036_v2  ;;  %8254 = vmatmul.mubr.f32.gmra.mxu1 %v3255_v24  ;;  %9481 = vpow2.f32 %v2218_v11  ;;  %vm2093_vm5 = vcmp.gt.f32.partialorder %v12055_v19, 0.0 }
 0x2c7   : > { %v9470_v53 = vpop.eup %9469  ;;  %v3193_v63 = vsel %vm2878_vm11, %v11992_v10, %v3130_v37  ;;  %v7046_v4 = vadd.f32 -1.0, %v9468_v62  ;;  %8198 = vmatmul.mubr.f32.gmra.mxu0 %v2466_v14  ;;  %8256 = vmatprep.mubr.msk.f32.mxu1 %vm10111_vm1, %v10110_v1  ;;  %v2954_v10 = vmul.f32 1.442695, %v12066_v40  ;;  %vm2883_vm6 = vcmp.gt.f32.partialorder %v12066_v40, 0.0 }
 0x2c8   : > { %v2606_v29 = vpop.f32.mrf.mxu0  ;;  %v3256_v45 = vmul.f32 1.050701, %v3193_v63  ;;  %v2404_v44 = vsel %vm2089_vm12, %v11996_v28, %v2341_v3  ;;  %v7037_v50 = vadd.f32 -1.0, %v9470_v53  ;;  %8200 = vmatprep.mubr.msk.f32.mxu0 %vm10111_vm1, %v10110_v1 }
 0x2c9   : > { %v2467_v25 = vmul.f32 1.050701, %v2404_v44  ;;  %v3131_v30 = vmul.f32 1.6732632, %v7046_v4  ;;  %v12079_v47 = vadd.f32 %v11945_v26, %v2606_v29  ;;  %9483 = vpow2.f32 %v2954_v10 }
 0x2ca   : > { %v8055_v5 = vpop.f32.mrf.mxu0  ;;  %v9472_v21 = vpop.eup %9471  ;;  %v2342_v0 = vmul.f32 1.6732632, %v7037_v50  ;;  %8257 = vmatmul.mubr.f32.gmra.mxu1 %v3256_v45 }
 0x2cb   : > { %v3194_v28 = vsel %vm2879_vm13, %v12005_v43, %v3131_v30  ;;  %v7047_v36 = vadd.f32 -1.0, %v9472_v21  ;;  %8201 = vmatmul.mubr.f32.gmra.mxu0 %v2467_v25  ;;  %8259 = vmatprep.mubr.msk.f32.mxu1 %vm10111_vm1, %v10110_v1  ;;  %v9474_v33 = vpop.eup %9473  ;;  %v2956_v9 = vmul.f32 1.442695, %v12079_v47  ;;  %vm2884_vm7 = vcmp.gt.f32.partialorder %v12079_v47, 0.0 }
 0x2cc   : > { %v2611_v51 = vpop.f32.mrf.mxu0  ;;  %v3257_v20 = vmul.f32 1.050701, %v3194_v28  ;;  %v2405_v60 = vsel %vm2090_vm14, %v12008_v16, %v2342_v0  ;;  %8203 = vmatprep.mubr.msk.f32.mxu0 %vm10111_vm1, %v10110_v1  ;;  %v7038_v7 = vadd.f32 -1.0, %v9474_v33 }
 0x2cd   : > { %v12089_v6 = vadd.f32 %v11945_v26, %v2611_v51  ;;  %v2468_v43 = vmul.f32 1.050701, %v2405_v60  ;;  %v3132_v56 = vmul.f32 1.6732632, %v7047_v36  ;;  %9485 = vpow2.f32 %v2956_v9 }
 0x2ce   : > { %v8058_v32 = vpop.f32.mrf.mxu0  ;;  %8260 = vmatmul.mubr.f32.gmra.mxu1 %v3257_v20  ;;  %v2343_v34 = vmul.f32 1.6732632, %v7038_v7  ;;  %v9476_v58 = vpop.eup %9475 }
 0x2cf   : > { %v2958_v39 = vmul.f32 1.442695, %v12089_v6  ;;  %v3195_v16 = vsel %vm2880_vm15, %v12017_v22, %v3132_v56  ;;  %8204 = vmatmul.mubr.f32.gmra.mxu0 %v2468_v43  ;;  %8262 = vmatprep.mubr.msk.f32.mxu1 %vm10111_vm1, %v10110_v1  ;;  %v9478_v22 = vpop.eup %9477  ;;  %v7048_v8 = vadd.f32 -1.0, %v9476_v58  ;;  %vm2885_vm8 = vcmp.gt.f32.partialorder %v12089_v6, 0.0 }
 0x2d0   : > { %v2616_v57 = vpop.f32.mrf.mxu0  ;;  %v3258_v61 = vmul.f32 1.050701, %v3195_v16  ;;  %8206 = vmatprep.mubr.msk.f32.mxu0 %vm10111_vm1, %v10110_v1  ;;  %v2406_v42 = vsel %vm2091_vm0, %v12021_v18, %v2343_v34  ;;  %v7039_v17 = vadd.f32 -1.0, %v9478_v22 }
 0x2d1   : > { %9487 = vpow2.f32 %v2958_v39  ;;  %v12103_v13 = vadd.f32 %v11945_v26, %v2616_v57  ;;  %v2469_v55 = vmul.f32 1.050701, %v2406_v42  ;;  %v3133_v38 = vmul.f32 1.6732632, %v7048_v8 }
 0x2d2   : > { %v8061_v35 = vpop.f32.mrf.mxu0  ;;  %8263 = vmatmul.mubr.f32.gmra.mxu1 %v3258_v61  ;;  %v9480_v41 = vpop.eup %9479  ;;  %v2344_v12 = vmul.f32 1.6732632, %v7039_v17 }
 0x2d3   : > { %v2960_v49 = vmul.f32 1.442695, %v12103_v13  ;;  %8265 = vmatprep.mubr.msk.f32.mxu1 %vm10111_vm1, %v10110_v1  ;;  %8207 = vmatmul.mubr.f32.gmra.mxu0 %v2469_v55  ;;  %v9482_v31 = vpop.eup %9481  ;;  %v3196_v24 = vsel %vm2881_vm3, %v12032_v46, %v3133_v38  ;;  %v7049_v27 = vadd.f32 -1.0, %v9480_v41  ;;  %vm2886_vm9 = vcmp.gt.f32.partialorder %v12103_v13, 0.0 }
 0x2d4   : > { %v2621_v59 = vpop.f32.mrf.mxu0  ;;  %8209 = vmatprep.mubr.msk.f32.mxu0 %vm10111_vm1, %v10110_v1  ;;  %v3259_v14 = vmul.f32 1.050701, %v3196_v24  ;;  %v2407_v37 = vsel %vm2092_vm4, %v12035_v52, %v2344_v12  ;;  %v7040_v48 = vadd.f32 -1.0, %v9482_v31 }
 0x2d5   : > { %9489 = vpow2.f32 %v2960_v49  ;;  %v12114_v18 = vadd.f32 %v11945_v26, %v2621_v59  ;;  %v2470_v54 = vmul.f32 1.050701, %v2407_v37  ;;  %v3134_v62 = vmul.f32 1.6732632, %v7049_v27 }
 0x2d6   : > { %v8064_v2 = vpop.f32.mrf.mxu0  ;;  %v9484_v53 = vpop.eup %9483  ;;  %v2345_v46 = vmul.f32 1.6732632, %v7040_v48  ;;  %8266 = vmatmul.mubr.f32.gmra.mxu1 %v3259_v14 }
 0x2d7   : > { %v2962_v3 = vmul.f32 1.442695, %v12114_v18  ;;  %v3197_v4 = vsel %vm2882_vm2, %v12049_v15, %v3134_v62  ;;  %v7050_v29 = vadd.f32 -1.0, %v9484_v53  ;;  %8210 = vmatmul.mubr.f32.gmra.mxu0 %v2470_v54  ;;  %8268 = vmatprep.mubr.msk.f32.mxu1 %vm10111_vm1, %v10110_v1  ;;  %vm2887_vm10 = vcmp.gt.f32.partialorder %v12114_v18, 0.0 }
 0x2d8   : > { %v2626_v11 = vpop.f32.mrf.mxu0  ;;  %v3260_v45 = vmul.f32 1.050701, %v3197_v4  ;;  %v2408_v44 = vsel %vm2093_vm5, %v12055_v19, %v2345_v46  ;;  %8212 = vmatprep.mubr.msk.f32.mxu0 %vm10111_vm1, %v10110_v1 }
 0x2d9   : > { %v12124_v63 = vadd.f32 %v11945_v26, %v2626_v11  ;;  %9491 = vpow2.f32 %v2962_v3  ;;  %v2471_v30 = vmul.f32 1.050701, %v2408_v44  ;;  %v3135_v15 = vmul.f32 1.6732632, %v7050_v29  ;;  %v4163_v11 = vld [vmem:[%s14591_s9 + $0x18] sm:$0xff] }
 0x2da   : > { %v8067_v52 = vpop.f32.mrf.mxu0  ;;  %v9486_v25 = vpop.eup %9485  ;;  %8269 = vmatmul.mubr.f32.gmra.mxu1 %v3260_v45 }
 0x2db   : > { %v2964_v50 = vmul.f32 1.442695, %v12124_v63  ;;  %v7051_v5 = vadd.f32 -1.0, %v9486_v25  ;;  %v3198_v19 = vsel %vm2883_vm6, %v12066_v40, %v3135_v15  ;;  %8213 = vmatmul.mubr.f32.gmra.mxu0 %v2471_v30  ;;  %8271 = vmatprep.mubr.msk.f32.mxu1 %vm10111_vm1, %v10110_v1  ;;  %v4164_v40 = vld [vmem:[%s14591_s9 + $0x20] sm:$0xff]  ;;  %vm2888_vm11 = vcmp.gt.f32.partialorder %v12124_v63, 0.0 }
 0x2dc   : > { %v2631_v10 = vpop.f32.mrf.mxu0  ;;  %v3261_v36 = vmul.f32 1.050701, %v3198_v19  ;;  %8468 = vmatprep.mubr.msk.f32.mxu0 %vm10111_vm1, %v10110_v1  ;;  %8459 = vmatpush3.msra.mxu0 %v4164_v40 }
 0x2dd   : > { %9493 = vpow2.f32 %v2964_v50  ;;  %v12136_v21 = vadd.f32 %v11945_v26, %v2631_v10  ;;  %v3136_v51 = vmul.f32 1.6732632, %v7051_v5  ;;  %8460 = vmatprep.subr.mxu0 %v10110_v1 }
 0x2de   : > { %v9488_v0 = vpop.eup %9487  ;;  %v8070_v28 = vpop.f32.mrf.mxu0  ;;  %8272 = vmatmul.mubr.f32.gmra.mxu1 %v3261_v36  ;;  %8461 = vmatpush3.msra.mxu0 %v4163_v11 }
 0x2df   : > { %v7052_v33 = vadd.f32 -1.0, %v9488_v0  ;;  %v2966_v20 = vmul.f32 1.442695, %v12136_v21  ;;  %v3199_v9 = vsel %vm2884_vm7, %v12079_v47, %v3136_v51  ;;  %8274 = vmatprep.mubr.msk.f32.mxu1 %vm10111_vm1, %v10110_v1  ;;  %8462 = vmatprep.subr.mxu0 %v10110_v1  ;;  %vm2889_vm12 = vcmp.gt.f32.partialorder %v12136_v21, 0.0 }
 0x2e0   : > { %v2636_v60 = vpop.f32.mrf.mxu0  ;;  %v3262_v32 = vmul.f32 1.050701, %v3199_v9 }
 0x2e1   : > { %v3137_v43 = vmul.f32 1.6732632, %v7052_v33  ;;  %v12150_v56 = vadd.f32 %v11945_v26, %v2636_v60  ;;  %9495 = vpow2.f32 %v2966_v20 }
 0x2e2   : > { %v9490_v7 = vpop.eup %9489  ;;  %v8073_v39 = vpop.f32.mrf.mxu0  ;;  %8275 = vmatmul.mubr.f32.gmra.mxu1 %v3262_v32 }
 0x2e3   : > { %v3200_v16 = vsel %vm2885_vm8, %v12089_v6, %v3137_v43  ;;  %v7053_v47 = vadd.f32 -1.0, %v9490_v7  ;;  %v2968_v34 = vmul.f32 1.442695, %v12150_v56  ;;  %8277 = vmatprep.mubr.msk.f32.mxu1 %vm10111_vm1, %v10110_v1  ;;  %vm2890_vm13 = vcmp.gt.f32.partialorder %v12150_v56, 0.0 }
 0x2e4   : > { %v2641_v57 = vpop.f32.mrf.mxu0  ;;  %v3263_v23 = vmul.f32 1.050701, %v3200_v16 }
 0x2e5   : > { %v3138_v58 = vmul.f32 1.6732632, %v7053_v47  ;;  %9497 = vpow2.f32 %v2968_v34  ;;  %v12159_v61 = vadd.f32 %v11945_v26, %v2641_v57 }
 0x2e6   : > { %v8076_v22 = vpop.f32.mrf.mxu0  ;;  %v9492_v42 = vpop.eup %9491  ;;  %8278 = vmatmul.mubr.f32.gmra.mxu1 %v3263_v23 }
 0x2e7   : > { %v3201_v6 = vsel %vm2886_vm9, %v12103_v13, %v3138_v58  ;;  %v2970_v8 = vmul.f32 1.442695, %v12159_v61  ;;  %v7054_v35 = vadd.f32 -1.0, %v9492_v42  ;;  %8280 = vmatprep.mubr.msk.f32.mxu1 %vm10111_vm1, %v10110_v1  ;;  %vm2891_vm14 = vcmp.gt.f32.partialorder %v12159_v61, 0.0 }
 0x2e8   : > { %v2646_v55 = vpop.f32.mrf.mxu0  ;;  %v3264_v17 = vmul.f32 1.050701, %v3201_v6 }
 0x2e9   : > { %9499 = vpow2.f32 %v2970_v8  ;;  %v12167_v49 = vadd.f32 %v11945_v26, %v2646_v55  ;;  %v3139_v59 = vmul.f32 1.6732632, %v7054_v35 }
 0x2ea   : > { %v9494_v38 = vpop.eup %9493  ;;  %v8079_v41 = vpop.f32.mrf.mxu0  ;;  %8281 = vmatmul.mubr.f32.gmra.mxu1 %v3264_v17 }
 0x2eb   : > { %v7055_v12 = vadd.f32 -1.0, %v9494_v38  ;;  %v2972_v13 = vmul.f32 1.442695, %v12167_v49  ;;  %v3202_v31 = vsel %vm2887_vm10, %v12114_v18, %v3139_v59  ;;  %8283 = vmatprep.mubr.msk.f32.mxu1 %vm10111_vm1, %v10110_v1  ;;  %vm2892_vm15 = vcmp.gt.f32.partialorder %v12167_v49, 0.0 }
 0x2ec   : > { %v2651_v24 = vpop.f32.mrf.mxu0  ;;  %v3265_v27 = vmul.f32 1.050701, %v3202_v31 }
 0x2ed   : > { %v3140_v2 = vmul.f32 1.6732632, %v7055_v12  ;;  %9501 = vpow2.f32 %v2972_v13  ;;  %v12175_v14 = vadd.f32 %v11945_v26, %v2651_v24 }
 0x2ee   : > { %v8082_v37 = vpop.f32.mrf.mxu0  ;;  %v9496_v48 = vpop.eup %9495  ;;  %8284 = vmatmul.mubr.f32.gmra.mxu1 %v3265_v27 }
 0x2ef   : > { %v3203_v54 = vsel %vm2888_vm11, %v12124_v63, %v3140_v2  ;;  %v2974_v62 = vmul.f32 1.442695, %v12175_v14  ;;  %v7056_v18 = vadd.f32 -1.0, %v9496_v48  ;;  %8286 = vmatprep.mubr.msk.f32.mxu1 %vm10111_vm1, %v10110_v1  ;;  %vm2893_vm0 = vcmp.gt.f32.partialorder %v12175_v14, 0.0 }
 0x2f0   : > { %v2656_v3 = vpop.f32.mrf.mxu0  ;;  %v3266_v53 = vmul.f32 1.050701, %v3203_v54 }
 0x2f1   : > { %9503 = vpow2.f32 %v2974_v62  ;;  %v12186_v46 = vadd.f32 %v11945_v26, %v2656_v3  ;;  %v3141_v29 = vmul.f32 1.6732632, %v7056_v18 }
 0x2f2   : > { %v9498_v4 = vpop.eup %9497  ;;  %v8085_v63 = vpop.f32.mrf.mxu0  ;;  %8287 = vmatmul.mubr.f32.gmra.mxu1 %v3266_v53 }
 0x2f3   : > { %v7057_v52 = vadd.f32 -1.0, %v9498_v4  ;;  %v2976_v45 = vmul.f32 1.442695, %v12186_v46  ;;  %v3204_v44 = vsel %vm2889_vm12, %v12136_v21, %v3141_v29  ;;  %8289 = vmatprep.mubr.msk.f32.mxu1 %vm10111_vm1, %v10110_v1  ;;  %vm2894_vm3 = vcmp.gt.f32.partialorder %v12186_v46, 0.0  ;;  %v5019_v4 = vld [vmem:[%s14593_s11 + $0x78] sm:$0xff] }
 0x2f4   : > { %v2661_v50 = vpop.f32.mrf.mxu0  ;;  %v3267_v25 = vmul.f32 1.050701, %v3204_v44  ;;  %8658 = vmatpush3.msra.mxu1 %v5019_v4 }
 0x2f5   : > { %v3142_v30 = vmul.f32 1.6732632, %v7057_v52  ;;  %9505 = vpow2.f32 %v2976_v45  ;;  %v12195_v15 = vadd.f32 %v11945_v26, %v2661_v50  ;;  %8659 = vmatprep.subr.mxu1 %v10110_v1 }
 0x2f6   : > { %v9500_v10 = vpop.eup %9499  ;;  %v8088_v5 = vpop.f32.mrf.mxu0  ;;  %8290 = vmatmul.mubr.f32.gmra.mxu1 %v3267_v25 }
 0x2f7   : > { %v3205_v0 = vsel %vm2890_vm13, %v12150_v56, %v3142_v30  ;;  %v7058_v19 = vadd.f32 -1.0, %v9500_v10  ;;  %v2978_v21 = vmul.f32 1.442695, %v12195_v15  ;;  %8292 = vmatprep.mubr.msk.f32.mxu1 %vm10111_vm1, %v10110_v1  ;;  %vm2895_vm4 = vcmp.gt.f32.partialorder %v12195_v15, 0.0  ;;  %v4161_v10 = vld [vmem:[%s14591_s9 + $0x8] sm:$0xff] }
 0x2f8   : > { %v2666_v28 = vpop.f32.mrf.mxu0  ;;  %v3268_v36 = vmul.f32 1.050701, %v3205_v0 }
 0x2f9   : > { %v3143_v51 = vmul.f32 1.6732632, %v7058_v19  ;;  %9507 = vpow2.f32 %v2978_v21  ;;  %v12203_v33 = vadd.f32 %v11945_v26, %v2666_v28 }
 0x2fa   : > { %v9502_v20 = vpop.eup %9501  ;;  %v8091_v60 = vpop.f32.mrf.mxu0  ;;  %8293 = vmatmul.mubr.f32.gmra.mxu1 %v3268_v36 }
 0x2fb   : > { %v3206_v40 = vsel %vm2891_vm14, %v12159_v61, %v3143_v51  ;;  %v7059_v9 = vadd.f32 -1.0, %v9502_v20  ;;  %v2980_v43 = vmul.f32 1.442695, %v12203_v33  ;;  %8295 = vmatprep.mubr.msk.f32.mxu1 %vm10111_vm1, %v10110_v1  ;;  %v4162_v61 = vld [vmem:[%s14591_s9 + $0x10] sm:$0xff]  ;;  %vm2896_vm2 = vcmp.gt.f32.partialorder %v12203_v33, 0.0 }
 0x2fc   : > { %v2671_v56 = vpop.f32.mrf.mxu0  ;;  %v3269_v7 = vmul.f32 1.050701, %v3206_v40  ;;  %8463 = vmatpush3.msra.mxu0 %v4162_v61 }
 0x2fd   : > { %v3144_v32 = vmul.f32 1.6732632, %v7059_v9  ;;  %9509 = vpow2.f32 %v2980_v43  ;;  %v12211_v39 = vadd.f32 %v11945_v26, %v2671_v56  ;;  %8464 = vmatprep.subr.mxu0 %v10110_v1 }
 0x2fe   : > { %v9504_v16 = vpop.eup %9503  ;;  %v8094_v47 = vpop.f32.mrf.mxu0  ;;  %8296 = vmatmul.mubr.f32.gmra.mxu1 %v3269_v7  ;;  %8465 = vmatpush3.msra.mxu0 %v4161_v10 }
 0x2ff   : > { %v3207_v34 = vsel %vm2892_vm15, %v12167_v49, %v3144_v32  ;;  %v7060_v57 = vadd.f32 -1.0, %v9504_v16  ;;  %v2982_v23 = vmul.f32 1.442695, %v12211_v39  ;;  %8298 = vmatprep.mubr.msk.f32.mxu1 %vm10111_vm1, %v10110_v1  ;;  %vm2897_vm5 = vcmp.gt.f32.partialorder %v12211_v39, 0.0  ;;  %8466 = vmatprep.subr.mxu0 %v10110_v1 }
 0x300   : > { %v2676_v58 = vpop.f32.mrf.mxu0  ;;  %v3270_v22 = vmul.f32 1.050701, %v3207_v34 }
 0x301   : > { %v3145_v42 = vmul.f32 1.6732632, %v7060_v57  ;;  %9511 = vpow2.f32 %v2982_v23  ;;  %v12222_v6 = vadd.f32 %v11945_v26, %v2676_v58  ;;  %v4160_v23 = vld [vmem:[%s14591_s9] sm:$0xff] }
 0x302   : > { %v9506_v8 = vpop.eup %9505  ;;  %v8097_v35 = vpop.f32.mrf.mxu0  ;;  %8299 = vmatmul.mubr.f32.gmra.mxu1 %v3270_v22  ;;  %8467 = vmatpush3.msra.mxu0 %v4160_v23 }
 0x303   : > { %v3208_v55 = vsel %vm2893_vm0, %v12175_v14, %v3145_v42  ;;  %v7061_v17 = vadd.f32 -1.0, %v9506_v8  ;;  %v2984_v49 = vmul.f32 1.442695, %v12222_v6  ;;  %8301 = vmatprep.mubr.msk.f32.mxu1 %vm10111_vm1, %v10110_v1  ;;  %vm2898_vm6 = vcmp.gt.f32.partialorder %v12222_v6, 0.0  ;;  %8878 = vmatprep.subr.mxu0 %v10110_v1 }
 0x304   : > { %v2681_v38 = vpop.f32.mrf.mxu0  ;;  %v3271_v59 = vmul.f32 1.050701, %v3208_v55 }
 0x305   : > { %v3146_v41 = vmul.f32 1.6732632, %v7061_v17  ;;  %9513 = vpow2.f32 %v2984_v49  ;;  %v12231_v12 = vadd.f32 %v11945_v26, %v2681_v38 }
 0x306   : > { %v9508_v13 = vpop.eup %9507  ;;  %v8100_v31 = vpop.f32.mrf.mxu0  ;;  %8302 = vmatmul.mubr.f32.gmra.mxu1 %v3271_v59 }
 0x307   : > { %v3209_v24 = vsel %vm2894_vm3, %v12186_v46, %v3146_v41  ;;  %v7062_v27 = vadd.f32 -1.0, %v9508_v13  ;;  %v2986_v2 = vmul.f32 1.442695, %v12231_v12  ;;  %8304 = vmatprep.mubr.msk.f32.mxu1 %vm10111_vm1, %v10110_v1  ;;  %vm2899_vm7 = vcmp.gt.f32.partialorder %v12231_v12, 0.0  ;;  %v5018_v13 = vld [vmem:[%s14593_s11 + $0x70] sm:$0xff] }
 0x308   : > { %v2686_v14 = vpop.f32.mrf.mxu0  ;;  %v3272_v37 = vmul.f32 1.050701, %v3209_v24  ;;  %8660 = vmatpush3.msra.mxu1 %v5018_v13 }
 0x309   : > { %v3147_v48 = vmul.f32 1.6732632, %v7062_v27  ;;  %9515 = vpow2.f32 %v2986_v2  ;;  %v12239_v54 = vadd.f32 %v11945_v26, %v2686_v14  ;;  %8661 = vmatprep.subr.mxu1 %v10110_v1 }
 0x30a   : > { %v9510_v62 = vpop.eup %9509  ;;  %v8103_v18 = vpop.f32.mrf.mxu0  ;;  %8305 = vmatmul.mubr.f32.gmra.mxu1 %v3272_v37 }
 0x30b   : > { %v3210_v3 = vsel %vm2895_vm4, %v12195_v15, %v3147_v48  ;;  %v7063_v11 = vadd.f32 -1.0, %v9510_v62  ;;  %v2988_v53 = vmul.f32 1.442695, %v12239_v54  ;;  %8307 = vmatprep.mubr.msk.f32.mxu1 %vm10111_vm1, %v10110_v1  ;;  %vm2900_vm8 = vcmp.gt.f32.partialorder %v12239_v54, 0.0 }
 0x30c   : > { %v2691_v46 = vpop.f32.mrf.mxu0  ;;  %v3273_v29 = vmul.f32 1.050701, %v3210_v3 }
 0x30d   : > { %v3148_v63 = vmul.f32 1.6732632, %v7063_v11  ;;  %9517 = vpow2.f32 %v2988_v53  ;;  %v12250_v52 = vadd.f32 %v11945_v26, %v2691_v46 }
 0x30e   : > { %v9512_v45 = vpop.eup %9511  ;;  %v8106_v44 = vpop.f32.mrf.mxu0  ;;  %8308 = vmatmul.mubr.f32.gmra.mxu1 %v3273_v29 }
 0x30f   : > { %v3211_v50 = vsel %vm2896_vm2, %v12203_v33, %v3148_v63  ;;  %v7064_v25 = vadd.f32 -1.0, %v9512_v45  ;;  %v2990_v30 = vmul.f32 1.442695, %v12250_v52  ;;  %8310 = vmatprep.mubr.msk.f32.mxu1 %vm10111_vm1, %v10110_v1  ;;  %vm2901_vm9 = vcmp.gt.f32.partialorder %v12250_v52, 0.0 }
 0x310   : > { %v2696_v15 = vpop.f32.mrf.mxu0  ;;  %v3274_v5 = vmul.f32 1.050701, %v3211_v50 }
 0x311   : > { %v3149_v0 = vmul.f32 1.6732632, %v7064_v25  ;;  %9519 = vpow2.f32 %v2990_v30  ;;  %v12262_v19 = vadd.f32 %v11945_v26, %v2696_v15 }
 0x312   : > { %v9514_v21 = vpop.eup %9513  ;;  %v8109_v28 = vpop.f32.mrf.mxu0  ;;  %8311 = vmatmul.mubr.f32.gmra.mxu1 %v3274_v5 }
 0x313   : > { %v3212_v36 = vsel %vm2897_vm5, %v12211_v39, %v3149_v0  ;;  %v7065_v51 = vadd.f32 -1.0, %v9514_v21  ;;  %v2992_v33 = vmul.f32 1.442695, %v12262_v19  ;;  %8313 = vmatprep.mubr.msk.f32.mxu1 %vm10111_vm1, %v10110_v1  ;;  %vm2902_vm10 = vcmp.gt.f32.partialorder %v12262_v19, 0.0 }
 0x314   : > { %v2701_v20 = vpop.f32.mrf.mxu0  ;;  %v3275_v60 = vmul.f32 1.050701, %v3212_v36 }
 0x315   : > { %v3150_v40 = vmul.f32 1.6732632, %v7065_v51  ;;  %9521 = vpow2.f32 %v2992_v33  ;;  %v12271_v9 = vadd.f32 %v11945_v26, %v2701_v20  ;;  %v12281_v26 = vld [vmem:[%s14588_s6] ss:$0 sm:$0xff] }
 0x316   : > { %v9516_v43 = vpop.eup %9515  ;;  %v8112_v56 = vpop.f32.mrf.mxu0  ;;  %8314 = vmatmul.mubr.f32.gmra.mxu1 %v3275_v60 }
 0x317   : > { %v3213_v7 = vsel %vm2898_vm6, %v12222_v6, %v3150_v40  ;;  %v7066_v32 = vadd.f32 -1.0, %v9516_v43  ;;  %v2994_v39 = vmul.f32 1.442695, %v12271_v9  ;;  %8316 = vmatprep.mubr.msk.f32.mxu1 %vm10111_vm1, %v10110_v1  ;;  %vm2903_vm11 = vcmp.gt.f32.partialorder %v12271_v9, 0.0 }
 0x318   : > { %v2706_v16 = vpop.f32.mrf.mxu0  ;;  %v3276_v47 = vmul.f32 1.050701, %v3213_v7 }
 0x319   : > { %v3151_v34 = vmul.f32 1.6732632, %v7066_v32  ;;  %9523 = vpow2.f32 %v2994_v39  ;;  %v12284_v57 = vadd.f32 %v12281_v26, %v2706_v16  ;;  %v5017_v16 = vld [vmem:[%s14593_s11 + $0x68] sm:$0xff] }
 0x31a   : > { %v9518_v58 = vpop.eup %9517  ;;  %v8115_v61 = vpop.f32.mrf.mxu0  ;;  %8317 = vmatmul.mubr.f32.gmra.mxu1 %v3276_v47 }
 0x31b   : > { %v3214_v22 = vsel %vm2899_vm7, %v12231_v12, %v3151_v34  ;;  %v7067_v42 = vadd.f32 -1.0, %v9518_v58  ;;  %v2996_v6 = vmul.f32 1.442695, %v12284_v57  ;;  %8319 = vmatprep.mubr.msk.f32.mxu1 %vm10111_vm1, %v10110_v1  ;;  %vm2904_vm12 = vcmp.gt.f32.partialorder %v12284_v57, 0.0  ;;  %8662 = vmatpush3.msra.mxu1 %v5017_v16 }
 0x31c   : > { %v2711_v8 = vpop.f32.mrf.mxu0  ;;  %v3277_v35 = vmul.f32 1.050701, %v3214_v22  ;;  %8663 = vmatprep.subr.mxu1 %v10110_v1 }
 0x31d   : > { %v3152_v55 = vmul.f32 1.6732632, %v7067_v42  ;;  %9525 = vpow2.f32 %v2996_v6  ;;  %v12296_v17 = vadd.f32 %v12281_v26, %v2711_v8 }
 0x31e   : > { %v9520_v49 = vpop.eup %9519  ;;  %v8118_v38 = vpop.f32.mrf.mxu0  ;;  %8320 = vmatmul.mubr.f32.gmra.mxu1 %v3277_v35 }
 0x31f   : > { %v3215_v59 = vsel %vm2900_vm8, %v12239_v54, %v3152_v55  ;;  %v7068_v41 = vadd.f32 -1.0, %v9520_v49  ;;  %v2998_v12 = vmul.f32 1.442695, %v12296_v17  ;;  %8322 = vmatprep.mubr.msk.f32.mxu1 %vm10111_vm1, %v10110_v1  ;;  %vm2905_vm13 = vcmp.gt.f32.partialorder %v12296_v17, 0.0 }
 0x320   : > { %v2716_v31 = vpop.f32.mrf.mxu0  ;;  %v3278_v24 = vmul.f32 1.050701, %v3215_v59 }
 0x321   : > { %v3153_v27 = vmul.f32 1.6732632, %v7068_v41  ;;  %9527 = vpow2.f32 %v2998_v12  ;;  %v12307_v2 = vadd.f32 %v12281_v26, %v2716_v31 }
 0x322   : > { %v9522_v14 = vpop.eup %9521  ;;  %v8121_v37 = vpop.f32.mrf.mxu0  ;;  %8323 = vmatmul.mubr.f32.gmra.mxu1 %v3278_v24 }
 0x323   : > { %v3216_v48 = vsel %vm2901_vm9, %v12250_v52, %v3153_v27  ;;  %v7069_v54 = vadd.f32 -1.0, %v9522_v14  ;;  %v3000_v62 = vmul.f32 1.442695, %v12307_v2  ;;  %8325 = vmatprep.mubr.msk.f32.mxu1 %vm10111_vm1, %v10110_v1  ;;  %vm2906_vm14 = vcmp.gt.f32.partialorder %v12307_v2, 0.0 }
 0x324   : > { %v2721_v18 = vpop.f32.mrf.mxu0  ;;  %v3279_v3 = vmul.f32 1.050701, %v3216_v48 }
 0x325   : > { %v3154_v11 = vmul.f32 1.6732632, %v7069_v54  ;;  %9529 = vpow2.f32 %v3000_v62  ;;  %v12316_v53 = vadd.f32 %v12281_v26, %v2721_v18 }
 0x326   : > { %v9524_v46 = vpop.eup %9523  ;;  %v8124_v4 = vpop.f32.mrf.mxu0  ;;  %8326 = vmatmul.mubr.f32.gmra.mxu1 %v3279_v3 }
 0x327   : > { %v3217_v29 = vsel %vm2902_vm10, %v12262_v19, %v3154_v11  ;;  %v7070_v63 = vadd.f32 -1.0, %v9524_v46  ;;  %v3002_v52 = vmul.f32 1.442695, %v12316_v53  ;;  %8328 = vmatprep.mubr.msk.f32.mxu1 %vm10111_vm1, %v10110_v1  ;;  %vm2907_vm15 = vcmp.gt.f32.partialorder %v12316_v53, 0.0 }
 0x328   : > { %v2726_v45 = vpop.f32.mrf.mxu0  ;;  %v3280_v44 = vmul.f32 1.050701, %v3217_v29  ;;  %v5016_v29 = vld [vmem:[%s14593_s11 + $0x60] sm:$0xff] }
 0x329   : > { %v3155_v50 = vmul.f32 1.6732632, %v7070_v63  ;;  %9531 = vpow2.f32 %v3002_v52  ;;  %v12324_v25 = vadd.f32 %v12281_v26, %v2726_v45  ;;  %8664 = vmatpush3.msra.mxu1 %v5016_v29 }
 0x32a   : > { %v9526_v30 = vpop.eup %9525  ;;  %v8127_v15 = vpop.f32.mrf.mxu0  ;;  %8329 = vmatmul.mubr.f32.gmra.mxu1 %v3280_v44  ;;  %8665 = vmatprep.subr.mxu1 %v10110_v1 }
 0x32b   : > { %v3218_v10 = vsel %vm2903_vm11, %v12271_v9, %v3155_v50  ;;  %v7071_v5 = vadd.f32 -1.0, %v9526_v30  ;;  %v3004_v0 = vmul.f32 1.442695, %v12324_v25  ;;  %8331 = vmatprep.mubr.msk.f32.mxu1 %vm10111_vm1, %v10110_v1  ;;  %vm2908_vm0 = vcmp.gt.f32.partialorder %v12324_v25, 0.0 }
 0x32c   : > { %v2731_v19 = vpop.f32.mrf.mxu0  ;;  %v3281_v21 = vmul.f32 1.050701, %v3218_v10 }
 0x32d   : > { %v3156_v28 = vmul.f32 1.6732632, %v7071_v5  ;;  %9533 = vpow2.f32 %v3004_v0  ;;  %v12332_v36 = vadd.f32 %v12281_v26, %v2731_v19 }
 0x32e   : > { %v9528_v51 = vpop.eup %9527  ;;  %v8130_v33 = vpop.f32.mrf.mxu0  ;;  %8332 = vmatmul.mubr.f32.gmra.mxu1 %v3281_v21 }
 0x32f   : > { %v3219_v20 = vsel %vm2904_vm12, %v12284_v57, %v3156_v28  ;;  %v7072_v60 = vadd.f32 -1.0, %v9528_v51  ;;  %v3006_v40 = vmul.f32 1.442695, %v12332_v36  ;;  %8334 = vmatprep.mubr.msk.f32.mxu1 %vm10111_vm1, %v10110_v1  ;;  %vm2909_vm3 = vcmp.gt.f32.partialorder %v12332_v36, 0.0 }
 0x330   : > { %v2736_v9 = vpop.f32.mrf.mxu0  ;;  %v3282_v43 = vmul.f32 1.050701, %v3219_v20 }
 0x331   : > { %v3157_v56 = vmul.f32 1.6732632, %v7072_v60  ;;  %9535 = vpow2.f32 %v3006_v40  ;;  %v12340_v7 = vadd.f32 %v12281_v26, %v2736_v9 }
 0x332   : > { %v9530_v32 = vpop.eup %9529  ;;  %v8133_v39 = vpop.f32.mrf.mxu0  ;;  %8335 = vmatmul.mubr.f32.gmra.mxu1 %v3282_v43 }
 0x333   : > { %v3220_v47 = vsel %vm2905_vm13, %v12296_v17, %v3157_v56  ;;  %v7073_v34 = vadd.f32 -1.0, %v9530_v32  ;;  %v3008_v57 = vmul.f32 1.442695, %v12340_v7  ;;  %8337 = vmatprep.mubr.msk.f32.mxu1 %vm10111_vm1, %v10110_v1  ;;  %vm2910_vm4 = vcmp.gt.f32.partialorder %v12340_v7, 0.0 }
 0x334   : > { %v2741_v23 = vpop.f32.mrf.mxu0  ;;  %v3283_v58 = vmul.f32 1.050701, %v3220_v47  ;;  %v5015_v47 = vld [vmem:[%s14593_s11 + $0x58] sm:$0xff] }
 0x335   : > { %v3158_v61 = vmul.f32 1.6732632, %v7073_v34  ;;  %9537 = vpow2.f32 %v3008_v57  ;;  %v12352_v22 = vadd.f32 %v12281_v26, %v2741_v23  ;;  %8666 = vmatpush3.msra.mxu1 %v5015_v47 }
 0x336   : > { %v9532_v42 = vpop.eup %9531  ;;  %v8136_v6 = vpop.f32.mrf.mxu0  ;;  %8338 = vmatmul.mubr.f32.gmra.mxu1 %v3283_v58  ;;  %8667 = vmatprep.subr.mxu1 %v10110_v1 }
 0x337   : > { %v3221_v8 = vsel %vm2906_vm14, %v12307_v2, %v3158_v61  ;;  %v7074_v35 = vadd.f32 -1.0, %v9532_v42  ;;  %v3010_v55 = vmul.f32 1.442695, %v12352_v22  ;;  %8340 = vmatprep.mubr.msk.f32.mxu1 %vm10111_vm1, %v10110_v1  ;;  %vm2911_vm2 = vcmp.gt.f32.partialorder %v12352_v22, 0.0 }
 0x338   : > { %v2746_v17 = vpop.f32.mrf.mxu0  ;;  %v3284_v49 = vmul.f32 1.050701, %v3221_v8 }
 0x339   : > { %v3159_v38 = vmul.f32 1.6732632, %v7074_v35  ;;  %9539 = vpow2.f32 %v3010_v55  ;;  %v12360_v59 = vadd.f32 %v12281_v26, %v2746_v17 }
 0x33a   : > { %v9534_v41 = vpop.eup %9533  ;;  %v8139_v12 = vpop.f32.mrf.mxu0  ;;  %8341 = vmatmul.mubr.f32.gmra.mxu1 %v3284_v49 }
 0x33b   : > { %v3222_v13 = vsel %vm2907_vm15, %v12316_v53, %v3159_v38  ;;  %v7075_v31 = vadd.f32 -1.0, %v9534_v41  ;;  %v3012_v24 = vmul.f32 1.442695, %v12360_v59  ;;  %8343 = vmatprep.mubr.msk.f32.mxu1 %vm10111_vm1, %v10110_v1  ;;  %vm2912_vm5 = vcmp.gt.f32.partialorder %v12360_v59, 0.0 }
 0x33c   : > { %v2751_v27 = vpop.f32.mrf.mxu0  ;;  %v3285_v2 = vmul.f32 1.050701, %v3222_v13 }
 0x33d   : > { %v3160_v14 = vmul.f32 1.6732632, %v7075_v31  ;;  %9541 = vpow2.f32 %v3012_v24  ;;  %v12368_v37 = vadd.f32 %v12281_v26, %v2751_v27 }
 0x33e   : > { %v9536_v48 = vpop.eup %9535  ;;  %v8142_v54 = vpop.f32.mrf.mxu0  ;;  %8344 = vmatmul.mubr.f32.gmra.mxu1 %v3285_v2 }
 0x33f   : > { %v3223_v62 = vsel %vm2908_vm0, %v12324_v25, %v3160_v14  ;;  %v7076_v18 = vadd.f32 -1.0, %v9536_v48  ;;  %v3014_v3 = vmul.f32 1.442695, %v12368_v37  ;;  %8346 = vmatprep.mubr.msk.f32.mxu1 %vm10111_vm1, %v10110_v1  ;;  %vm2913_vm6 = vcmp.gt.f32.partialorder %v12368_v37, 0.0 }
 0x340   : > { %v2756_v11 = vpop.f32.mrf.mxu0  ;;  %v3286_v53 = vmul.f32 1.050701, %v3223_v62 }
 0x341   : > { %v3161_v46 = vmul.f32 1.6732632, %v7076_v18  ;;  %9543 = vpow2.f32 %v3014_v3  ;;  %v12376_v4 = vadd.f32 %v12281_v26, %v2756_v11 }
 0x342   : > { %v9538_v63 = vpop.eup %9537  ;;  %v8145_v52 = vpop.f32.mrf.mxu0  ;;  %8347 = vmatmul.mubr.f32.gmra.mxu1 %v3286_v53 }
 0x343   : > { %v3224_v45 = vsel %vm2909_vm3, %v12332_v36, %v3161_v46  ;;  %v7077_v44 = vadd.f32 -1.0, %v9538_v63  ;;  %v3016_v50 = vmul.f32 1.442695, %v12376_v4  ;;  %8349 = vmatprep.mubr.msk.f32.mxu1 %vm10111_vm1, %v10110_v1  ;;  %vm2914_vm7 = vcmp.gt.f32.partialorder %v12376_v4, 0.0 }
 0x344   : > { %v2761_v25 = vpop.f32.mrf.mxu0  ;;  %v3287_v30 = vmul.f32 1.050701, %v3224_v45  ;;  %v5014_v45 = vld [vmem:[%s14593_s11 + $0x50] sm:$0xff] }
 0x345   : > { %v3162_v15 = vmul.f32 1.6732632, %v7077_v44  ;;  %9545 = vpow2.f32 %v3016_v50  ;;  %v12388_v10 = vadd.f32 %v12281_v26, %v2761_v25  ;;  %8668 = vmatpush3.msra.mxu1 %v5014_v45 }
 0x346   : > { %v9540_v5 = vpop.eup %9539  ;;  %v8148_v0 = vpop.f32.mrf.mxu0  ;;  %8350 = vmatmul.mubr.f32.gmra.mxu1 %v3287_v30  ;;  %8669 = vmatprep.subr.mxu1 %v10110_v1 }
 0x347   : > { %v3225_v19 = vsel %vm2910_vm4, %v12340_v7, %v3162_v15  ;;  %v7078_v21 = vadd.f32 -1.0, %v9540_v5  ;;  %v3018_v28 = vmul.f32 1.442695, %v12388_v10  ;;  %8352 = vmatprep.mubr.msk.f32.mxu1 %vm10111_vm1, %v10110_v1  ;;  %vm2915_vm8 = vcmp.gt.f32.partialorder %v12388_v10, 0.0 }
 0x348   : > { %v2766_v36 = vpop.f32.mrf.mxu0  ;;  %v3288_v51 = vmul.f32 1.050701, %v3225_v19 }
 0x349   : > { %v3163_v33 = vmul.f32 1.6732632, %v7078_v21  ;;  %9547 = vpow2.f32 %v3018_v28  ;;  %v12396_v20 = vadd.f32 %v12281_v26, %v2766_v36 }
 0x34a   : > { %v9542_v60 = vpop.eup %9541  ;;  %v8151_v40 = vpop.f32.mrf.mxu0  ;;  %8353 = vmatmul.mubr.f32.gmra.mxu1 %v3288_v51 }
 0x34b   : > { %v3226_v9 = vsel %vm2911_vm2, %v12352_v22, %v3163_v33  ;;  %v7079_v43 = vadd.f32 -1.0, %v9542_v60  ;;  %v3020_v56 = vmul.f32 1.442695, %v12396_v20  ;;  %8355 = vmatprep.mubr.msk.f32.mxu1 %vm10111_vm1, %v10110_v1  ;;  %vm2916_vm9 = vcmp.gt.f32.partialorder %v12396_v20, 0.0 }
 0x34c   : > { %v2771_v7 = vpop.f32.mrf.mxu0  ;;  %v3289_v32 = vmul.f32 1.050701, %v3226_v9 }
 0x34d   : > { %v3164_v39 = vmul.f32 1.6732632, %v7079_v43  ;;  %9549 = vpow2.f32 %v3020_v56  ;;  %v12404_v16 = vadd.f32 %v12281_v26, %v2771_v7 }
 0x34e   : > { %v9544_v34 = vpop.eup %9543  ;;  %v8154_v57 = vpop.f32.mrf.mxu0  ;;  %8356 = vmatmul.mubr.f32.gmra.mxu1 %v3289_v32 }
 0x34f   : > { %v3227_v23 = vsel %vm2912_vm5, %v12360_v59, %v3164_v39  ;;  %v7080_v58 = vadd.f32 -1.0, %v9544_v34  ;;  %v3022_v61 = vmul.f32 1.442695, %v12404_v16  ;;  %8358 = vmatprep.mubr.msk.f32.mxu1 %vm10111_vm1, %v10110_v1  ;;  %vm2917_vm10 = vcmp.gt.f32.partialorder %v12404_v16, 0.0 }
 0x350   : > { %v2776_v22 = vpop.f32.mrf.mxu0  ;;  %v3290_v42 = vmul.f32 1.050701, %v3227_v23 }
 0x351   : > { %v3165_v6 = vmul.f32 1.6732632, %v7080_v58  ;;  %9551 = vpow2.f32 %v3022_v61  ;;  %v12416_v8 = vadd.f32 %v12281_v26, %v2776_v22 }
 0x352   : > { %v9546_v35 = vpop.eup %9545  ;;  %v8157_v55 = vpop.f32.mrf.mxu0  ;;  %8359 = vmatmul.mubr.f32.gmra.mxu1 %v3290_v42 }
 0x353   : > { %v3228_v17 = vsel %vm2913_vm6, %v12368_v37, %v3165_v6  ;;  %v7081_v49 = vadd.f32 -1.0, %v9546_v35  ;;  %v3024_v38 = vmul.f32 1.442695, %v12416_v8  ;;  %8361 = vmatprep.mubr.msk.f32.mxu1 %vm10111_vm1, %v10110_v1  ;;  %vm2918_vm11 = vcmp.gt.f32.partialorder %v12416_v8, 0.0 }
 0x354   : > { %v2781_v59 = vpop.f32.mrf.mxu0  ;;  %v3291_v41 = vmul.f32 1.050701, %v3228_v17  ;;  %v5013_v17 = vld [vmem:[%s14593_s11 + $0x48] sm:$0xff] }
 0x355   : > { %v3166_v12 = vmul.f32 1.6732632, %v7081_v49  ;;  %9553 = vpow2.f32 %v3024_v38  ;;  %v12424_v13 = vadd.f32 %v12281_v26, %v2781_v59  ;;  %8670 = vmatpush3.msra.mxu1 %v5013_v17 }
 0x356   : > { %v9548_v31 = vpop.eup %9547  ;;  %v8160_v24 = vpop.f32.mrf.mxu0  ;;  %8362 = vmatmul.mubr.f32.gmra.mxu1 %v3291_v41  ;;  %8671 = vmatprep.subr.mxu1 %v10110_v1 }
 0x357   : > { %v3229_v27 = vsel %vm2914_vm7, %v12376_v4, %v3166_v12  ;;  %v7082_v2 = vadd.f32 -1.0, %v9548_v31  ;;  %v3026_v14 = vmul.f32 1.442695, %v12424_v13  ;;  %8364 = vmatprep.mubr.msk.f32.mxu1 %vm10111_vm1, %v10110_v1  ;;  %vm2919_vm12 = vcmp.gt.f32.partialorder %v12424_v13, 0.0 }
 0x358   : > { %v2786_v37 = vpop.f32.mrf.mxu0  ;;  %v3292_v48 = vmul.f32 1.050701, %v3229_v27 }
 0x359   : > { %v3167_v54 = vmul.f32 1.6732632, %v7082_v2  ;;  %9555 = vpow2.f32 %v3026_v14  ;;  %v12432_v62 = vadd.f32 %v12281_v26, %v2786_v37 }
 0x35a   : > { %v9550_v18 = vpop.eup %9549  ;;  %v8163_v3 = vpop.f32.mrf.mxu0  ;;  %8365 = vmatmul.mubr.f32.gmra.mxu1 %v3292_v48 }
 0x35b   : > { %v3230_v11 = vsel %vm2915_vm8, %v12388_v10, %v3167_v54  ;;  %v7083_v53 = vadd.f32 -1.0, %v9550_v18  ;;  %v3028_v46 = vmul.f32 1.442695, %v12432_v62  ;;  %8367 = vmatprep.mubr.msk.f32.mxu1 %vm10111_vm1, %v10110_v1  ;;  %vm2920_vm13 = vcmp.gt.f32.partialorder %v12432_v62, 0.0 }
 0x35c   : > { %v2791_v4 = vpop.f32.mrf.mxu0  ;;  %v3293_v29 = vmul.f32 1.050701, %v3230_v11 }
 0x35d   : > { %v3168_v63 = vmul.f32 1.6732632, %v7083_v53  ;;  %9557 = vpow2.f32 %v3028_v46  ;;  %v12440_v52 = vadd.f32 %v12281_v26, %v2791_v4 }
 0x35e   : > { %v9552_v44 = vpop.eup %9551  ;;  %v8166_v50 = vpop.f32.mrf.mxu0  ;;  %8368 = vmatmul.mubr.f32.gmra.mxu1 %v3293_v29 }
 0x35f   : > { %v3231_v25 = vsel %vm2916_vm9, %v12396_v20, %v3168_v63  ;;  %v7084_v30 = vadd.f32 -1.0, %v9552_v44  ;;  %v3030_v15 = vmul.f32 1.442695, %v12440_v52  ;;  %8370 = vmatprep.mubr.msk.f32.mxu1 %vm10111_vm1, %v10110_v1  ;;  %vm2921_vm14 = vcmp.gt.f32.partialorder %v12440_v52, 0.0 }
 0x360   : > { %v2796_v10 = vpop.f32.mrf.mxu0  ;;  %v3294_v5 = vmul.f32 1.050701, %v3231_v25 }
 0x361   : > { %v3169_v0 = vmul.f32 1.6732632, %v7084_v30  ;;  %9559 = vpow2.f32 %v3030_v15  ;;  %v12452_v19 = vadd.f32 %v12281_v26, %v2796_v10 }
 0x362   : > { %v9554_v21 = vpop.eup %9553  ;;  %v8169_v28 = vpop.f32.mrf.mxu0  ;;  %8371 = vmatmul.mubr.f32.gmra.mxu1 %v3294_v5 }
 0x363   : > { %v3232_v36 = vsel %vm2917_vm10, %v12404_v16, %v3169_v0  ;;  %v7085_v51 = vadd.f32 -1.0, %v9554_v21  ;;  %v3032_v33 = vmul.f32 1.442695, %v12452_v19  ;;  %8373 = vmatprep.mubr.msk.f32.mxu1 %vm10111_vm1, %v10110_v1  ;;  %vm2922_vm15 = vcmp.gt.f32.partialorder %v12452_v19, 0.0 }
 0x364   : > { %v2801_v20 = vpop.f32.mrf.mxu0  ;;  %v3295_v60 = vmul.f32 1.050701, %v3232_v36 }
 0x365   : > { %v3170_v40 = vmul.f32 1.6732632, %v7085_v51  ;;  %9561 = vpow2.f32 %v3032_v33  ;;  %v12460_v9 = vadd.f32 %v12281_v26, %v2801_v20  ;;  %v5012_v51 = vld [vmem:[%s14593_s11 + $0x40] sm:$0xff] }
 0x366   : > { %v9556_v43 = vpop.eup %9555  ;;  %v8172_v56 = vpop.f32.mrf.mxu0  ;;  %8374 = vmatmul.mubr.f32.gmra.mxu1 %v3295_v60 }
 0x367   : > { %v3233_v7 = vsel %vm2918_vm11, %v12416_v8, %v3170_v40  ;;  %v7086_v32 = vadd.f32 -1.0, %v9556_v43  ;;  %v3034_v39 = vmul.f32 1.442695, %v12460_v9  ;;  %8376 = vmatprep.mubr.msk.f32.mxu1 %vm10111_vm1, %v10110_v1  ;;  %vm2923_vm0 = vcmp.gt.f32.partialorder %v12460_v9, 0.0  ;;  %8672 = vmatpush3.msra.mxu1 %v5012_v51 }
 0x368   : > { %v2806_v16 = vpop.f32.mrf.mxu0  ;;  %v3296_v47 = vmul.f32 1.050701, %v3233_v7  ;;  %8673 = vmatprep.subr.mxu1 %v10110_v1 }
 0x369   : > { %v3171_v34 = vmul.f32 1.6732632, %v7086_v32  ;;  %9563 = vpow2.f32 %v3034_v39  ;;  %v12468_v57 = vadd.f32 %v12281_v26, %v2806_v16 }
 0x36a   : > { %v9558_v23 = vpop.eup %9557  ;;  %v8175_v58 = vpop.f32.mrf.mxu0  ;;  %8377 = vmatmul.mubr.f32.gmra.mxu1 %v3296_v47 }
 0x36b   : > { %v3234_v61 = vsel %vm2919_vm12, %v12424_v13, %v3171_v34  ;;  %v7087_v22 = vadd.f32 -1.0, %v9558_v23  ;;  %v3036_v42 = vmul.f32 1.442695, %v12468_v57  ;;  %8379 = vmatprep.mubr.msk.f32.mxu1 %vm10111_vm1, %v10110_v1  ;;  %vm2924_vm3 = vcmp.gt.f32.partialorder %v12468_v57, 0.0 }
 0x36c   : > { %v2811_v6 = vpop.f32.mrf.mxu0  ;;  %v3297_v8 = vmul.f32 1.050701, %v3234_v61 }
 0x36d   : > { %v3172_v35 = vmul.f32 1.6732632, %v7087_v22  ;;  %9565 = vpow2.f32 %v3036_v42  ;;  %v12476_v55 = vadd.f32 %v12281_v26, %v2811_v6 }
 0x36e   : > { %v9560_v49 = vpop.eup %9559  ;;  %v8178_v38 = vpop.f32.mrf.mxu0  ;;  %8380 = vmatmul.mubr.f32.gmra.mxu1 %v3297_v8 }
 0x36f   : > { %v3235_v59 = vsel %vm2920_vm13, %v12432_v62, %v3172_v35  ;;  %v7088_v41 = vadd.f32 -1.0, %v9560_v49  ;;  %v3038_v12 = vmul.f32 1.442695, %v12476_v55  ;;  %8382 = vmatprep.mubr.msk.f32.mxu1 %vm10111_vm1, %v10110_v1  ;;  %vm2925_vm4 = vcmp.gt.f32.partialorder %v12476_v55, 0.0 }
 0x370   : > { %v2816_v13 = vpop.f32.mrf.mxu0  ;;  %v3298_v31 = vmul.f32 1.050701, %v3235_v59 }
 0x371   : > { %v3173_v24 = vmul.f32 1.6732632, %v7088_v41  ;;  %9567 = vpow2.f32 %v3038_v12  ;;  %v12488_v27 = vadd.f32 %v12281_v26, %v2816_v13 }
 0x372   : > { %v9562_v2 = vpop.eup %9561  ;;  %v8181_v14 = vpop.f32.mrf.mxu0  ;;  %8383 = vmatmul.mubr.f32.gmra.mxu1 %v3298_v31 }
 0x373   : > { %v3236_v37 = vsel %vm2921_vm14, %v12440_v52, %v3173_v24  ;;  %v7089_v48 = vadd.f32 -1.0, %v9562_v2  ;;  %v3040_v54 = vmul.f32 1.442695, %v12488_v27  ;;  %8385 = vmatprep.mubr.msk.f32.mxu1 %vm10111_vm1, %v10110_v1  ;;  %vm2926_vm2 = vcmp.gt.f32.partialorder %v12488_v27, 0.0 }
 0x374   : > { %v2821_v62 = vpop.f32.mrf.mxu0  ;;  %v3299_v18 = vmul.f32 1.050701, %v3236_v37 }
 0x375   : > { %v3174_v3 = vmul.f32 1.6732632, %v7089_v48  ;;  %9569 = vpow2.f32 %v3040_v54  ;;  %v12496_v11 = vadd.f32 %v12281_v26, %v2821_v62 }
 0x376   : > { %v9564_v53 = vpop.eup %9563  ;;  %v8184_v46 = vpop.f32.mrf.mxu0  ;;  %8386 = vmatmul.mubr.f32.gmra.mxu1 %v3299_v18 }
 0x377   : > { %v3237_v4 = vsel %vm2922_vm15, %v12452_v19, %v3174_v3  ;;  %v7090_v29 = vadd.f32 -1.0, %v9564_v53  ;;  %v3042_v63 = vmul.f32 1.442695, %v12496_v11  ;;  %8388 = vmatprep.mubr.msk.f32.mxu1 %vm10111_vm1, %v10110_v1  ;;  %v12514_v19 = vld [vmem:[%s14590_s8] ss:$0 sm:$0xff]  ;;  %vm2927_vm5 = vcmp.gt.f32.partialorder %v12496_v11, 0.0 }
 0x378   : > { %v2826_v52 = vpop.f32.mrf.mxu0  ;;  %v3300_v45 = vmul.f32 1.050701, %v3237_v4 }
 0x379   : > { %v3175_v44 = vmul.f32 1.6732632, %v7090_v29  ;;  %9571 = vpow2.f32 %v3042_v63  ;;  %v12504_v50 = vadd.f32 %v12281_v26, %v2826_v52 }
 0x37a   : > { %v9566_v25 = vpop.eup %9565  ;;  %v8187_v30 = vpop.f32.mrf.mxu0  ;;  %8389 = vmatmul.mubr.f32.gmra.mxu1 %v3300_v45 }
 0x37b   : > { %v3238_v15 = vsel %vm2923_vm0, %v12460_v9, %v3175_v44  ;;  %v7091_v10 = vadd.f32 -1.0, %v9566_v25  ;;  %v3044_v5 = vmul.f32 1.442695, %v12504_v50  ;;  %8391 = vmatprep.mubr.msk.f32.mxu1 %vm10111_vm1, %v10110_v1  ;;  %vm2928_vm6 = vcmp.gt.f32.partialorder %v12504_v50, 0.0 }
 0x37c   : > { %v2831_v0 = vpop.f32.mrf.mxu0  ;;  %v3301_v21 = vmul.f32 1.050701, %v3238_v15 }
 0x37d   : > { %v3176_v28 = vmul.f32 1.6732632, %v7091_v10  ;;  %9573 = vpow2.f32 %v3044_v5  ;;  %v12517_v36 = vadd.f32 %v12281_v26, %v2831_v0 }
 0x37e   : > { %v9568_v33 = vpop.eup %9567  ;;  %v8190_v20 = vpop.f32.mrf.mxu0  ;;  %8392 = vmatmul.mubr.f32.gmra.mxu1 %v3301_v21 }
 0x37f   : > { %v3239_v60 = vsel %vm2924_vm3, %v12468_v57, %v3176_v28  ;;  %v7092_v40 = vadd.f32 -1.0, %v9568_v33  ;;  %v3046_v9 = vmul.f32 1.442695, %v12517_v36  ;;  %v3405_v43 = vpop.f32.mrf.mxu1  ;;  %8394 = vmatprep.mubr.msk.f32.mxu1 %vm10111_vm1, %v10110_v1  ;;  %vm2929_vm7 = vcmp.gt.f32.partialorder %v12517_v36, 0.0 }
 0x380   : > { %v12529_v56 = vadd.f32 %v12514_v19, %v3405_v43  ;;  %v2836_v7 = vpop.f32.mrf.mxu0  ;;  %v3302_v32 = vmul.f32 1.050701, %v3239_v60 }
 0x381   : > { %v3177_v39 = vmul.f32 1.6732632, %v7092_v40  ;;  %9575 = vpow2.f32 %v3046_v9  ;;  %v12532_v16 = vadd.f32 %v12281_v26, %v2836_v7  ;;  %v8249_v47 = vpop.f32.mrf.mxu1 }
 0x382   : > { %v9570_v34 = vpop.eup %9569  ;;  %v3782_v57 = vmul.f32 1.442695, %v12529_v56  ;;  %v8193_v23 = vpop.f32.mrf.mxu0  ;;  %8395 = vmatmul.mubr.f32.gmra.mxu1 %v3302_v32  ;;  %vm3719_vm8 = vcmp.gt.f32.partialorder %v12529_v56, 0.0 }
 0x383   : > { %v3240_v58 = vsel %vm2925_vm4, %v12476_v55, %v3177_v39  ;;  %v7093_v61 = vadd.f32 -1.0, %v9570_v34  ;;  %v3048_v22 = vmul.f32 1.442695, %v12532_v16  ;;  %v3410_v42 = vpop.f32.mrf.mxu1  ;;  %8397 = vmatprep.mubr.msk.f32.mxu1 %vm10111_vm1, %v10110_v1  ;;  %vm2930_vm9 = vcmp.gt.f32.partialorder %v12532_v16, 0.0 }
 0x384   : > { %9577 = vpow2.f32 %v3782_v57  ;;  %v12541_v6 = vadd.f32 %v12514_v19, %v3410_v42  ;;  %v2841_v8 = vpop.f32.mrf.mxu0  ;;  %v3303_v35 = vmul.f32 1.050701, %v3240_v58 }
 0x385   : > { %v3178_v17 = vmul.f32 1.6732632, %v7093_v61  ;;  %9579 = vpow2.f32 %v3048_v22  ;;  %v12544_v49 = vadd.f32 %v12281_v26, %v2841_v8  ;;  %v8252_v38 = vpop.f32.mrf.mxu1 }
 0x386   : > { %v9572_v59 = vpop.eup %9571  ;;  %v3784_v55 = vmul.f32 1.442695, %v12541_v6  ;;  %v8196_v41 = vpop.f32.mrf.mxu0  ;;  %8398 = vmatmul.mubr.f32.gmra.mxu1 %v3303_v35  ;;  %vm3720_vm10 = vcmp.gt.f32.partialorder %v12541_v6, 0.0 }
 0x387   : > { %v3241_v12 = vsel %vm2926_vm2, %v12488_v27, %v3178_v17  ;;  %v7094_v13 = vadd.f32 -1.0, %v9572_v59  ;;  %v3050_v31 = vmul.f32 1.442695, %v12544_v49  ;;  %v3415_v24 = vpop.f32.mrf.mxu1  ;;  %8400 = vmatprep.mubr.msk.f32.mxu1 %vm10111_vm1, %v10110_v1  ;;  %vm2931_vm11 = vcmp.gt.f32.partialorder %v12544_v49, 0.0 }
 0x388   : > { %9581 = vpow2.f32 %v3784_v55  ;;  %v12553_v2 = vadd.f32 %v12514_v19, %v3415_v24  ;;  %v2846_v14 = vpop.f32.mrf.mxu0  ;;  %v3304_v37 = vmul.f32 1.050701, %v3241_v12 }
 0x389   : > { %v3179_v48 = vmul.f32 1.6732632, %v7094_v13  ;;  %9583 = vpow2.f32 %v3050_v31  ;;  %v12556_v54 = vadd.f32 %v12281_v26, %v2846_v14  ;;  %v8255_v62 = vpop.f32.mrf.mxu1 }
 0x38a   : > { %v9574_v18 = vpop.eup %9573  ;;  %v3786_v27 = vmul.f32 1.442695, %v12553_v2  ;;  %v8199_v3 = vpop.f32.mrf.mxu0  ;;  %8401 = vmatmul.mubr.f32.gmra.mxu1 %v3304_v37  ;;  %vm3721_vm12 = vcmp.gt.f32.partialorder %v12553_v2, 0.0 }
 0x38b   : > { %v3242_v53 = vsel %vm2927_vm5, %v12496_v11, %v3179_v48  ;;  %v7095_v46 = vadd.f32 -1.0, %v9574_v18  ;;  %v3052_v4 = vmul.f32 1.442695, %v12556_v54  ;;  %v3420_v29 = vpop.f32.mrf.mxu1  ;;  %v5011_v11 = vld [vmem:[%s14593_s11 + $0x38] sm:$0xff]  ;;  %8403 = vmatprep.mubr.msk.f32.mxu1 %vm10111_vm1, %v10110_v1  ;;  %vm2932_vm13 = vcmp.gt.f32.partialorder %v12556_v54, 0.0 }
 0x38c   : > { %9585 = vpow2.f32 %v3786_v27  ;;  %v12565_v63 = vadd.f32 %v12514_v19, %v3420_v29  ;;  %v2851_v52 = vpop.f32.mrf.mxu0  ;;  %v3305_v45 = vmul.f32 1.050701, %v3242_v53  ;;  %8674 = vmatpush3.msra.mxu1 %v5011_v11 }
 0x38d   : > { %v3180_v44 = vmul.f32 1.6732632, %v7095_v46  ;;  %9587 = vpow2.f32 %v3052_v4  ;;  %v12568_v25 = vadd.f32 %v12281_v26, %v2851_v52  ;;  %v8258_v30 = vpop.f32.mrf.mxu1  ;;  %8675 = vmatprep.subr.mxu1 %v10110_v1 }
 0x38e   : > { %v9576_v15 = vpop.eup %9575  ;;  %v3788_v10 = vmul.f32 1.442695, %v12565_v63  ;;  %v8202_v5 = vpop.f32.mrf.mxu0  ;;  %8404 = vmatmul.mubr.f32.gmra.mxu1 %v3305_v45  ;;  %vm3722_vm14 = vcmp.gt.f32.partialorder %v12565_v63, 0.0 }
 0x38f   : > { %v3243_v0 = vsel %vm2928_vm6, %v12504_v50, %v3180_v44  ;;  %v7096_v21 = vadd.f32 -1.0, %v9576_v15  ;;  %v3054_v28 = vmul.f32 1.442695, %v12568_v25  ;;  %v3425_v51 = vpop.f32.mrf.mxu1  ;;  %8406 = vmatprep.mubr.msk.f32.mxu1 %vm10111_vm1, %v10110_v1  ;;  %vm2933_vm15 = vcmp.gt.f32.partialorder %v12568_v25, 0.0 }
 0x390   : > { %9589 = vpow2.f32 %v3788_v10  ;;  %v12581_v33 = vadd.f32 %v12514_v19, %v3425_v51  ;;  %v2856_v20 = vpop.f32.mrf.mxu0  ;;  %v3306_v40 = vmul.f32 1.050701, %v3243_v0 }
 0x391   : > { %v9578_v60 = vpop.eup %9577  ;;  %v3181_v9 = vmul.f32 1.6732632, %v7096_v21  ;;  %9591 = vpow2.f32 %v3054_v28  ;;  %v12584_v43 = vadd.f32 %v12281_v26, %v2856_v20  ;;  %v8261_v50 = vpop.f32.mrf.mxu1 }
 0x392   : > { %v9580_v7 = vpop.eup %9579  ;;  %v7106_v32 = vadd.f32 -1.0, %v9578_v60  ;;  %v3790_v39 = vmul.f32 1.442695, %v12581_v33  ;;  %v8205_v47 = vpop.f32.mrf.mxu0  ;;  %8407 = vmatmul.mubr.f32.gmra.mxu1 %v3306_v40  ;;  %vm3723_vm0 = vcmp.gt.f32.partialorder %v12581_v33, 0.0 }
 0x393   : > { %v3244_v34 = vsel %vm2929_vm7, %v12517_v36, %v3181_v9  ;;  %v7097_v57 = vadd.f32 -1.0, %v9580_v7  ;;  %v3056_v23 = vmul.f32 1.442695, %v12584_v43  ;;  %v3430_v58 = vpop.f32.mrf.mxu1  ;;  %8409 = vmatprep.mubr.msk.f32.mxu1 %vm10111_vm1, %v10110_v1  ;;  %vm2934_vm3 = vcmp.gt.f32.partialorder %v12584_v43, 0.0 }
 0x394   : > { %v3971_v61 = vmul.f32 1.6732632, %v7106_v32  ;;  %9593 = vpow2.f32 %v3790_v39  ;;  %v12593_v22 = vadd.f32 %v12514_v19, %v3430_v58  ;;  %v3307_v8 = vmul.f32 1.050701, %v3244_v34  ;;  %v2861_v17 = vpop.f32.mrf.mxu0 }
 0x395   : > { %v9582_v42 = vpop.eup %9581  ;;  %v3182_v35 = vmul.f32 1.6732632, %v7097_v57  ;;  %9595 = vpow2.f32 %v3056_v23  ;;  %v8264_v38 = vpop.f32.mrf.mxu1  ;;  %v12603_v24 = vadd.f32 %v12281_v26, %v2861_v17 }
 0x396   : > { %v9584_v59 = vpop.eup %9583  ;;  %v4034_v36 = vsel %vm3719_vm8, %v12529_v56, %v3971_v61  ;;  %v7107_v55 = vadd.f32 -1.0, %v9582_v42  ;;  %v3792_v41 = vmul.f32 1.442695, %v12593_v22  ;;  %v8208_v14 = vpop.f32.mrf.mxu0  ;;  %8410 = vmatmul.mubr.f32.gmra.mxu1 %v3307_v8  ;;  %vm3724_vm4 = vcmp.gt.f32.partialorder %v12593_v22, 0.0 }
 0x397   : > { %v4097_v12 = vmul.f32 1.050701, %v4034_v36  ;;  %v3245_v13 = vsel %vm2930_vm9, %v12532_v16, %v3182_v35  ;;  %v7098_v31 = vadd.f32 -1.0, %v9584_v59  ;;  %v3058_v18 = vmul.f32 1.442695, %v12603_v24  ;;  %v3435_v27 = vpop.f32.mrf.mxu1  ;;  %8412 = vmatprep.mubr.msk.f32.mxu1 %vm10111_vm1, %v10110_v1 }
 0x398   : > { %v3972_v37 = vmul.f32 1.6732632, %v7107_v55  ;;  %9597 = vpow2.f32 %v3792_v41  ;;  %v3308_v48 = vmul.f32 1.050701, %v3245_v13  ;;  %v12610_v46 = vadd.f32 %v12514_v19, %v3435_v27  ;;  %v2866_v4 = vpop.f32.mrf.mxu0 }
 0x399   : > { %v9586_v56 = vpop.eup %9585  ;;  %v3183_v62 = vmul.f32 1.6732632, %v7098_v31  ;;  %8469 = vmatmul.mubr.f32.vlgmr.msra.gmra.mxu0 %v4097_v12  ;;  %9599 = vpow2.f32 %v3058_v18  ;;  %v8267_v44 = vpop.f32.mrf.mxu1  ;;  %v12618_v11 = vadd.f32 %v12281_v26, %v2866_v4  ;;  %vm2935_vm2 = vcmp.gt.f32.partialorder %v12603_v24, 0.0 }
 0x39a   : > { %v9588_v3 = vpop.eup %9587  ;;  %v4035_v16 = vsel %vm3720_vm10, %v12541_v6, %v3972_v37  ;;  %v7108_v53 = vadd.f32 -1.0, %v9586_v56  ;;  %8471 = vmatprep.mubr.msk.f32.mxu0 %vm10111_vm1, %v10110_v1  ;;  %v8211_v15 = vpop.f32.mrf.mxu0  ;;  %v3794_v0 = vmul.f32 1.442695, %v12610_v46  ;;  %8413 = vmatmul.mubr.f32.gmra.mxu1 %v3308_v48  ;;  %vm3725_vm5 = vcmp.gt.f32.partialorder %v12610_v46, 0.0 }
 0x39b   : > { %v4098_v29 = vmul.f32 1.050701, %v4035_v16  ;;  %v3246_v52 = vsel %vm2931_vm11, %v12544_v49, %v3183_v62  ;;  %v7099_v45 = vadd.f32 -1.0, %v9588_v3  ;;  %v3440_v21 = vpop.f32.mrf.mxu1  ;;  %v5010_v49 = vld [vmem:[%s14593_s11 + $0x30] sm:$0xff]  ;;  %v3060_v20 = vmul.f32 1.442695, %v12618_v11  ;;  %8415 = vmatprep.mubr.msk.f32.mxu1 %vm10111_vm1, %v10110_v1 }
 0x39c   : > { %v3309_v6 = vmul.f32 1.050701, %v3246_v52  ;;  %v3973_v30 = vmul.f32 1.6732632, %v7108_v53  ;;  %v2871_v60 = vpop.f32.mrf.mxu0  ;;  %9601 = vpow2.f32 %v3794_v0  ;;  %8676 = vmatpush3.msra.mxu1 %v5010_v49  ;;  %v12634_v32 = vadd.f32 %v12514_v19, %v3440_v21  ;;  %v5009_v21 = vld [vmem:[%s14593_s11 + $0x28] sm:$0xff] }
 0x39d   : > { %v9590_v10 = vpop.eup %9589  ;;  %v3184_v5 = vmul.f32 1.6732632, %v7099_v45  ;;  %8472 = vmatmul.mubr.f32.gmra.mxu0 %v4098_v29  ;;  %v8270_v7 = vpop.f32.mrf.mxu1  ;;  %9603 = vpow2.f32 %v3060_v20  ;;  %8677 = vmatprep.subr.mxu1 %v10110_v1  ;;  %vm2936_vm6 = vcmp.gt.f32.partialorder %v12618_v11, 0.0 }
 0x39e   : > { %v9592_v28 = vpop.eup %9591  ;;  %v4036_v51 = vsel %vm3721_vm12, %v12553_v2, %v3973_v30  ;;  %v7109_v26 = vadd.f32 -1.0, %v9590_v10  ;;  %8474 = vmatprep.mubr.msk.f32.mxu0 %vm10111_vm1, %v10110_v1  ;;  %v8214_v39 = vpop.f32.mrf.mxu0  ;;  %8416 = vmatmul.mubr.f32.gmra.mxu1 %v3309_v6  ;;  %v3796_v35 = vmul.f32 1.442695, %v12634_v32  ;;  %vm3726_vm7 = vcmp.gt.f32.partialorder %v12634_v32, 0.0 }
 0x39f   : > { %v4099_v40 = vmul.f32 1.050701, %v4036_v51  ;;  %v3247_v9 = vsel %vm2932_vm13, %v12556_v54, %v3184_v5  ;;  %v7100_v50 = vadd.f32 -1.0, %v9592_v28  ;;  %v10012_v54 = vld [vmem:[%s14588_s6] ss:$0 sm:$0xff]  ;;  %v3445_v58 = vpop.f32.mrf.mxu1  ;;  %8418 = vmatprep.mubr.msk.f32.mxu1 %vm10111_vm1, %v10110_v1  ;;  %8678 = vmatpush3.msra.mxu1 %v5009_v21 }
 0x3a0   : > { %v3974_v2 = vmul.f32 1.6732632, %v7109_v26  ;;  %v3310_v34 = vmul.f32 1.050701, %v3247_v9  ;;  %v12641_v23 = vadd.f32 %v10012_v54, %v2871_v60  ;;  %9605 = vpow2.f32 %v3796_v35  ;;  %8679 = vmatprep.subr.mxu1 %v10110_v1 }
 0x3a1   : > { %v9594_v47 = vpop.eup %9593  ;;  %v3185_v57 = vmul.f32 1.6732632, %v7100_v50  ;;  %8475 = vmatmul.mubr.f32.gmra.mxu0 %v4099_v40  ;;  %v8273_v36 = vpop.f32.mrf.mxu1  ;;  %v12655_v31 = vadd.f32 %v12514_v19, %v3445_v58 }
 0x3a2   : > { %v9596_v61 = vpop.eup %9595  ;;  %v4037_v42 = vsel %vm3722_vm14, %v12565_v63, %v3974_v2  ;;  %v7110_v8 = vadd.f32 -1.0, %v9594_v47  ;;  %8477 = vmatprep.mubr.msk.f32.mxu0 %vm10111_vm1, %v10110_v1  ;;  %v3062_v63 = vmul.f32 1.442695, %v12641_v23  ;;  %8419 = vmatmul.mubr.f32.gmra.mxu1 %v3310_v34  ;;  %vm2937_vm8 = vcmp.gt.f32.partialorder %v12641_v23, 0.0 }
 0x3a3   : > { %v4100_v17 = vmul.f32 1.050701, %v4037_v42  ;;  %v3248_v38 = vsel %vm2933_vm15, %v12568_v25, %v3185_v57  ;;  %v7101_v59 = vadd.f32 -1.0, %v9596_v61  ;;  %v3450_v14 = vpop.f32.mrf.mxu1  ;;  %8421 = vmatprep.mubr.msk.f32.mxu1 %vm10111_vm1, %v10110_v1  ;;  %v3798_v18 = vmul.f32 1.442695, %v12655_v31 }
 0x3a4   : > { %v3975_v55 = vmul.f32 1.6732632, %v7110_v8  ;;  %v3311_v12 = vmul.f32 1.050701, %v3248_v38  ;;  %9607 = vpow2.f32 %v3062_v63  ;;  %v12659_v56 = vadd.f32 %v12514_v19, %v3450_v14 }
 0x3a5   : > { %v9598_v41 = vpop.eup %9597  ;;  %v3186_v13 = vmul.f32 1.6732632, %v7101_v59  ;;  %8478 = vmatmul.mubr.f32.gmra.mxu0 %v4100_v17  ;;  %v8276_v27 = vpop.f32.mrf.mxu1  ;;  %9609 = vpow2.f32 %v3798_v18  ;;  %vm3727_vm9 = vcmp.gt.f32.partialorder %v12655_v31, 0.0 }
 0x3a6   : > { %v4038_v25 = vsel %vm3723_vm0, %v12581_v33, %v3975_v55  ;;  %v7111_v37 = vadd.f32 -1.0, %v9598_v41  ;;  %8480 = vmatprep.mubr.msk.f32.mxu0 %vm10111_vm1, %v10110_v1  ;;  %v9600_v3 = vpop.eup %9599  ;;  %v3800_v4 = vmul.f32 1.442695, %v12659_v56  ;;  %8422 = vmatmul.mubr.f32.gmra.mxu1 %v3311_v12  ;;  %vm3728_vm10 = vcmp.gt.f32.partialorder %v12659_v56, 0.0 }
 0x3a7   : > { %v4101_v48 = vmul.f32 1.050701, %v4038_v25  ;;  %v3249_v62 = vsel %vm2934_vm3, %v12584_v43, %v3186_v13  ;;  %v7102_v53 = vadd.f32 -1.0, %v9600_v3  ;;  %v3455_v29 = vpop.f32.mrf.mxu1  ;;  %8424 = vmatprep.mubr.msk.f32.mxu1 %vm10111_vm1, %v10110_v1 }
 0x3a8   : > { %v3976_v33 = vmul.f32 1.6732632, %v7111_v37  ;;  %v3312_v16 = vmul.f32 1.050701, %v3249_v62  ;;  %v12671_v45 = vadd.f32 %v12514_v19, %v3455_v29  ;;  %9611 = vpow2.f32 %v3800_v4 }
 0x3a9   : > { %8481 = vmatmul.mubr.f32.gmra.mxu0 %v4101_v48  ;;  %v3187_v44 = vmul.f32 1.6732632, %v7102_v53  ;;  %v8279_v6 = vpop.f32.mrf.mxu1  ;;  %v9602_v30 = vpop.eup %9601  ;;  %v5008_v53 = vld [vmem:[%s14593_s11 + $0x20] sm:$0xff] }
 0x3aa   : > { %v4039_v52 = vsel %vm3724_vm4, %v12593_v22, %v3976_v33  ;;  %8483 = vmatprep.mubr.msk.f32.mxu0 %vm10111_vm1, %v10110_v1  ;;  %v3802_v15 = vmul.f32 1.442695, %v12671_v45  ;;  %v9604_v10 = vpop.eup %9603  ;;  %v7112_v5 = vadd.f32 -1.0, %v9602_v30  ;;  %8425 = vmatmul.mubr.f32.gmra.mxu1 %v3312_v16  ;;  %vm3729_vm11 = vcmp.gt.f32.partialorder %v12671_v45, 0.0 }
 0x3ab   : > { %v4102_v43 = vmul.f32 1.050701, %v4039_v52  ;;  %v3250_v22 = vsel %vm2935_vm2, %v12603_v24, %v3187_v44  ;;  %v3460_v0 = vpop.f32.mrf.mxu1  ;;  %v7103_v28 = vadd.f32 -1.0, %v9604_v10  ;;  %8427 = vmatprep.mubr.msk.f32.mxu1 %vm10111_vm1, %v10110_v1  ;;  %8680 = vmatpush3.msra.mxu1 %v5008_v53 }
 0x3ac   : > { %v3313_v49 = vmul.f32 1.050701, %v3250_v22  ;;  %9613 = vpow2.f32 %v3802_v15  ;;  %v12684_v51 = vadd.f32 %v12514_v19, %v3460_v0  ;;  %v3977_v24 = vmul.f32 1.6732632, %v7112_v5  ;;  %8681 = vmatprep.subr.mxu1 %v10110_v1 }
 0x3ad   : > { %8484 = vmatmul.mubr.f32.gmra.mxu0 %v4102_v43  ;;  %v8282_v26 = vpop.f32.mrf.mxu1  ;;  %v3188_v20 = vmul.f32 1.6732632, %v7103_v28  ;;  %v9606_v40 = vpop.eup %9605 }
 0x3ae   : > { %8486 = vmatprep.mubr.msk.f32.mxu0 %vm10111_vm1, %v10110_v1  ;;  %v3804_v60 = vmul.f32 1.442695, %v12684_v51  ;;  %v4040_v9 = vsel %vm3725_vm5, %v12610_v46, %v3977_v24  ;;  %8428 = vmatmul.mubr.f32.gmra.mxu1 %v3313_v49  ;;  %v7113_v39 = vadd.f32 -1.0, %v9606_v40  ;;  %vm3730_vm12 = vcmp.gt.f32.partialorder %v12684_v51, 0.0 }
 0x3af   : > { %v3465_v50 = vpop.f32.mrf.mxu1  ;;  %v4103_v7 = vmul.f32 1.050701, %v4040_v9  ;;  %v3251_v2 = vsel %vm2936_vm6, %v12618_v11, %v3188_v20  ;;  %8430 = vmatprep.mubr.msk.f32.mxu1 %vm10111_vm1, %v10110_v1 }
 0x3b0   : > { %9615 = vpow2.f32 %v3804_v60  ;;  %v3314_v34 = vmul.f32 1.050701, %v3251_v2  ;;  %v12699_v57 = vadd.f32 %v12514_v19, %v3465_v50  ;;  %v3978_v58 = vmul.f32 1.6732632, %v7113_v39 }
 0x3b1   : > { %v9608_v47 = vpop.eup %9607  ;;  %v8285_v54 = vpop.f32.mrf.mxu1  ;;  %8487 = vmatmul.mubr.f32.gmra.mxu0 %v4103_v7 }
 0x3b2   : > { %v7104_v46 = vadd.f32 -1.0, %v9608_v47  ;;  %v3806_v61 = vmul.f32 1.442695, %v12699_v57  ;;  %8431 = vmatmul.mubr.f32.gmra.mxu1 %v3314_v34  ;;  %8489 = vmatprep.mubr.msk.f32.mxu0 %vm10111_vm1, %v10110_v1  ;;  %v9610_v11 = vpop.eup %9609  ;;  %v4041_v8 = vsel %vm3726_vm7, %v12634_v32, %v3978_v58  ;;  %vm3731_vm13 = vcmp.gt.f32.partialorder %v12699_v57, 0.0 }
 0x3b3   : > { %v3470_v42 = vpop.f32.mrf.mxu1  ;;  %8433 = vmatprep.mubr.msk.f32.mxu1 %vm10111_vm1, %v10110_v1  ;;  %v4104_v38 = vmul.f32 1.050701, %v4041_v8  ;;  %v7114_v59 = vadd.f32 -1.0, %v9610_v11 }
 0x3b4   : > { %v3189_v35 = vmul.f32 1.6732632, %v7104_v46  ;;  %v12707_v17 = vadd.f32 %v12514_v19, %v3470_v42  ;;  %9617 = vpow2.f32 %v3806_v61  ;;  %v5007_v42 = vld [vmem:[%s14593_s11 + $0x18] sm:$0xff] }
 0x3b5   : > { %v8288_v36 = vpop.f32.mrf.mxu1  ;;  %v9612_v55 = vpop.eup %9611  ;;  %v3979_v32 = vmul.f32 1.6732632, %v7114_v59  ;;  %8490 = vmatmul.mubr.f32.gmra.mxu0 %v4104_v38  ;;  %8682 = vmatpush3.msra.mxu1 %v5007_v42 }
 0x3b6   : > { %v3252_v63 = vsel %vm2937_vm8, %v12641_v23, %v3189_v35  ;;  %v3808_v41 = vmul.f32 1.442695, %v12707_v17  ;;  %v7115_v13 = vadd.f32 -1.0, %v9612_v55  ;;  %8492 = vmatprep.mubr.msk.f32.mxu0 %vm10111_vm1, %v10110_v1  ;;  %vm3732_vm14 = vcmp.gt.f32.partialorder %v12707_v17, 0.0  ;;  %8683 = vmatprep.subr.mxu1 %v10110_v1 }
 0x3b7   : > { %v3315_v12 = vmul.f32 1.050701, %v3252_v63  ;;  %v3475_v14 = vpop.f32.mrf.mxu1  ;;  %v4042_v48 = vsel %vm3727_vm9, %v12655_v31, %v3979_v32 }
 0x3b8   : > { %9619 = vpow2.f32 %v3808_v41  ;;  %v12716_v25 = vadd.f32 %v12514_v19, %v3475_v14  ;;  %v3980_v23 = vmul.f32 1.6732632, %v7115_v13  ;;  %v4105_v18 = vmul.f32 1.050701, %v4042_v48 }
 0x3b9   : > { %v9614_v37 = vpop.eup %9613  ;;  %8434 = vmatmul.mubr.f32.gmra.mxu1 %v3315_v12  ;;  %v8291_v62 = vpop.f32.mrf.mxu1 }
 0x3ba   : > { %v7116_v27 = vadd.f32 -1.0, %v9614_v37  ;;  %v3810_v3 = vmul.f32 1.442695, %v12716_v25  ;;  %8689 = vmatprep.mubr.msk.f32.mxu1 %vm10111_vm1, %v10110_v1  ;;  %v4043_v33 = vsel %vm3728_vm10, %v12659_v56, %v3980_v23  ;;  %8493 = vmatmul.mubr.f32.gmra.mxu0 %v4105_v18  ;;  %vm3733_vm15 = vcmp.gt.f32.partialorder %v12716_v25, 0.0 }
 0x3bb   : > { %v3480_v16 = vpop.f32.mrf.mxu1  ;;  %v4106_v31 = vmul.f32 1.050701, %v4043_v33  ;;  %8495 = vmatprep.mubr.msk.f32.mxu0 %vm10111_vm1, %v10110_v1 }
 0x3bc   : > { %v3981_v4 = vmul.f32 1.6732632, %v7116_v27  ;;  %9621 = vpow2.f32 %v3810_v3  ;;  %v12730_v29 = vadd.f32 %v12514_v19, %v3480_v16 }
 0x3bd   : > { %v9616_v52 = vpop.eup %9615  ;;  %v8294_v56 = vpop.f32.mrf.mxu1 }
 0x3be   : > { %v4044_v43 = vsel %vm3729_vm11, %v12671_v45, %v3981_v4  ;;  %v7117_v44 = vadd.f32 -1.0, %v9616_v52  ;;  %v3812_v6 = vmul.f32 1.442695, %v12730_v29  ;;  %8496 = vmatmul.mubr.f32.gmra.mxu0 %v4106_v31  ;;  %vm3734_vm0 = vcmp.gt.f32.partialorder %v12730_v29, 0.0 }
 0x3bf   : > { %v3485_v30 = vpop.f32.mrf.mxu1  ;;  %v4107_v15 = vmul.f32 1.050701, %v4044_v43  ;;  %8498 = vmatprep.mubr.msk.f32.mxu0 %vm10111_vm1, %v10110_v1 }
 0x3c0   : > { %v3982_v10 = vmul.f32 1.6732632, %v7117_v44  ;;  %9623 = vpow2.f32 %v3812_v6  ;;  %v12739_v22 = vadd.f32 %v12514_v19, %v3485_v30 }
 0x3c1   : > { %v8297_v5 = vpop.f32.mrf.mxu1  ;;  %v9618_v0 = vpop.eup %9617 }
 0x3c2   : > { %v4045_v45 = vsel %vm3730_vm12, %v12684_v51, %v3982_v10  ;;  %v3814_v21 = vmul.f32 1.442695, %v12739_v22  ;;  %v7118_v49 = vadd.f32 -1.0, %v9618_v0  ;;  %8499 = vmatmul.mubr.f32.gmra.mxu0 %v4107_v15  ;;  %vm3735_vm3 = vcmp.gt.f32.partialorder %v12739_v22, 0.0 }
 0x3c3   : > { %v3490_v28 = vpop.f32.mrf.mxu1  ;;  %v4108_v24 = vmul.f32 1.050701, %v4045_v45  ;;  %8501 = vmatprep.mubr.msk.f32.mxu0 %vm10111_vm1, %v10110_v1 }
 0x3c4   : > { %9625 = vpow2.f32 %v3814_v21  ;;  %v12747_v26 = vadd.f32 %v12514_v19, %v3490_v28  ;;  %v3983_v60 = vmul.f32 1.6732632, %v7118_v49 }
 0x3c5   : > { %v9620_v20 = vpop.eup %9619  ;;  %v8300_v40 = vpop.f32.mrf.mxu1 }
 0x3c6   : > { %v7119_v9 = vadd.f32 -1.0, %v9620_v20  ;;  %v3816_v51 = vmul.f32 1.442695, %v12747_v26  ;;  %v4046_v50 = vsel %vm3731_vm13, %v12699_v57, %v3983_v60  ;;  %8502 = vmatmul.mubr.f32.gmra.mxu0 %v4108_v24  ;;  %vm3736_vm4 = vcmp.gt.f32.partialorder %v12747_v26, 0.0 }
 0x3c7   : > { %v3495_v7 = vpop.f32.mrf.mxu1  ;;  %v4109_v2 = vmul.f32 1.050701, %v4046_v50  ;;  %8504 = vmatprep.mubr.msk.f32.mxu0 %vm10111_vm1, %v10110_v1 }
 0x3c8   : > { %v3984_v39 = vmul.f32 1.6732632, %v7119_v9  ;;  %9627 = vpow2.f32 %v3816_v51  ;;  %v12755_v47 = vadd.f32 %v12514_v19, %v3495_v7 }
 0x3c9   : > { %v9622_v34 = vpop.eup %9621  ;;  %v8303_v54 = vpop.f32.mrf.mxu1 }
 0x3ca   : > { %v4047_v58 = vsel %vm3732_vm14, %v12707_v17, %v3984_v39  ;;  %v7120_v46 = vadd.f32 -1.0, %v9622_v34  ;;  %v3818_v57 = vmul.f32 1.442695, %v12755_v47  ;;  %8505 = vmatmul.mubr.f32.gmra.mxu0 %v4109_v2  ;;  %vm3737_vm2 = vcmp.gt.f32.partialorder %v12755_v47, 0.0 }
 0x3cb   : > { %v3500_v61 = vpop.f32.mrf.mxu1  ;;  %v4110_v11 = vmul.f32 1.050701, %v4047_v58  ;;  %8507 = vmatprep.mubr.msk.f32.mxu0 %vm10111_vm1, %v10110_v1 }
 0x3cc   : > { %v3985_v8 = vmul.f32 1.6732632, %v7120_v46  ;;  %9629 = vpow2.f32 %v3818_v57  ;;  %v12766_v35 = vadd.f32 %v12514_v19, %v3500_v61 }
 0x3cd   : > { %v9624_v38 = vpop.eup %9623  ;;  %v8306_v17 = vpop.f32.mrf.mxu1 }
 0x3ce   : > { %v4048_v59 = vsel %vm3733_vm15, %v12716_v25, %v3985_v8  ;;  %v7121_v36 = vadd.f32 -1.0, %v9624_v38  ;;  %v3820_v55 = vmul.f32 1.442695, %v12766_v35  ;;  %8508 = vmatmul.mubr.f32.gmra.mxu0 %v4110_v11  ;;  %vm3738_vm5 = vcmp.gt.f32.partialorder %v12766_v35, 0.0 }
 0x3cf   : > { %v3505_v63 = vpop.f32.mrf.mxu1  ;;  %v4111_v41 = vmul.f32 1.050701, %v4048_v59  ;;  %8510 = vmatprep.mubr.msk.f32.mxu0 %vm10111_vm1, %v10110_v1 }
 0x3d0   : > { %v3986_v12 = vmul.f32 1.6732632, %v7121_v36  ;;  %9631 = vpow2.f32 %v3820_v55  ;;  %v12775_v32 = vadd.f32 %v12514_v19, %v3505_v63 }
 0x3d1   : > { %v9626_v13 = vpop.eup %9625  ;;  %v8309_v14 = vpop.f32.mrf.mxu1 }
 0x3d2   : > { %v4049_v25 = vsel %vm3734_vm0, %v12730_v29, %v3986_v12  ;;  %v7122_v37 = vadd.f32 -1.0, %v9626_v13  ;;  %v3822_v48 = vmul.f32 1.442695, %v12775_v32  ;;  %8511 = vmatmul.mubr.f32.gmra.mxu0 %v4111_v41  ;;  %vm3739_vm6 = vcmp.gt.f32.partialorder %v12775_v32, 0.0  ;;  %v5005_v13 = vld [vmem:[%s14593_s11 + $0x8] sm:$0xff] }
 0x3d3   : > { %v3510_v23 = vpop.f32.mrf.mxu1  ;;  %v4112_v62 = vmul.f32 1.050701, %v4049_v25  ;;  %8513 = vmatprep.mubr.msk.f32.mxu0 %vm10111_vm1, %v10110_v1 }
 0x3d4   : > { %v3987_v18 = vmul.f32 1.6732632, %v7122_v37  ;;  %9633 = vpow2.f32 %v3822_v48  ;;  %v12783_v27 = vadd.f32 %v12514_v19, %v3510_v23 }
 0x3d5   : > { %v9628_v3 = vpop.eup %9627  ;;  %v8312_v33 = vpop.f32.mrf.mxu1 }
 0x3d6   : > { %v4050_v16 = vsel %vm3735_vm3, %v12739_v22, %v3987_v18  ;;  %v7123_v53 = vadd.f32 -1.0, %v9628_v3  ;;  %v3824_v31 = vmul.f32 1.442695, %v12783_v27  ;;  %8514 = vmatmul.mubr.f32.gmra.mxu0 %v4112_v62  ;;  %v5006_v22 = vld [vmem:[%s14593_s11 + $0x10] sm:$0xff]  ;;  %vm3740_vm7 = vcmp.gt.f32.partialorder %v12783_v27, 0.0 }
 0x3d7   : > { %v3515_v4 = vpop.f32.mrf.mxu1  ;;  %v4113_v29 = vmul.f32 1.050701, %v4050_v16  ;;  %8516 = vmatprep.mubr.msk.f32.mxu0 %vm10111_vm1, %v10110_v1  ;;  %8684 = vmatpush3.msra.mxu1 %v5006_v22 }
 0x3d8   : > { %v3988_v52 = vmul.f32 1.6732632, %v7123_v53  ;;  %9635 = vpow2.f32 %v3824_v31  ;;  %v12791_v56 = vadd.f32 %v12514_v19, %v3515_v4  ;;  %8685 = vmatprep.subr.mxu1 %v10110_v1 }
 0x3d9   : > { %v9630_v43 = vpop.eup %9629  ;;  %v8315_v44 = vpop.f32.mrf.mxu1  ;;  %8686 = vmatpush3.msra.mxu1 %v5005_v13 }
 0x3da   : > { %v4051_v6 = vsel %vm3736_vm4, %v12747_v26, %v3988_v52  ;;  %v7124_v30 = vadd.f32 -1.0, %v9630_v43  ;;  %v3826_v15 = vmul.f32 1.442695, %v12791_v56  ;;  %8517 = vmatmul.mubr.f32.gmra.mxu0 %v4113_v29  ;;  %vm3741_vm8 = vcmp.gt.f32.partialorder %v12791_v56, 0.0  ;;  %8687 = vmatprep.subr.mxu1 %v10110_v1 }
 0x3db   : > { %v3520_v10 = vpop.f32.mrf.mxu1  ;;  %v4114_v5 = vmul.f32 1.050701, %v4051_v6  ;;  %8519 = vmatprep.mubr.msk.f32.mxu0 %vm10111_vm1, %v10110_v1 }
 0x3dc   : > { %v3989_v0 = vmul.f32 1.6732632, %v7124_v30  ;;  %9637 = vpow2.f32 %v3826_v15  ;;  %v12802_v45 = vadd.f32 %v12514_v19, %v3520_v10  ;;  %v5004_v15 = vld [vmem:[%s14593_s11] sm:$0xff] }
 0x3dd   : > { %v9632_v21 = vpop.eup %9631  ;;  %v8318_v49 = vpop.f32.mrf.mxu1  ;;  %8688 = vmatpush3.msra.mxu1 %v5004_v15 }
 0x3de   : > { %v4052_v28 = vsel %vm3737_vm2, %v12755_v47, %v3989_v0  ;;  %v7125_v24 = vadd.f32 -1.0, %v9632_v21  ;;  %v3828_v26 = vmul.f32 1.442695, %v12802_v45  ;;  %8520 = vmatmul.mubr.f32.gmra.mxu0 %v4114_v5  ;;  %vm3742_vm9 = vcmp.gt.f32.partialorder %v12802_v45, 0.0 }
 0x3df   : > { %v3525_v20 = vpop.f32.mrf.mxu1  ;;  %v4115_v60 = vmul.f32 1.050701, %v4052_v28  ;;  %8522 = vmatprep.mubr.msk.f32.mxu0 %vm10111_vm1, %v10110_v1 }
 0x3e0   : > { %v3990_v40 = vmul.f32 1.6732632, %v7125_v24  ;;  %9639 = vpow2.f32 %v3828_v26  ;;  %v12811_v9 = vadd.f32 %v12514_v19, %v3525_v20  ;;  %v5862_v26 = vld [vmem:[%s14595_s13 + $0x70] sm:$0xff] }
 0x3e1   : > { %v9634_v51 = vpop.eup %9633  ;;  %v8321_v50 = vpop.f32.mrf.mxu1 }
 0x3e2   : > { %v4053_v7 = vsel %vm3738_vm5, %v12766_v35, %v3990_v40  ;;  %v7126_v2 = vadd.f32 -1.0, %v9634_v51  ;;  %v3830_v39 = vmul.f32 1.442695, %v12811_v9  ;;  %8523 = vmatmul.mubr.f32.gmra.mxu0 %v4115_v60  ;;  %v5863_v35 = vld [vmem:[%s14595_s13 + $0x78] sm:$0xff]  ;;  %vm3743_vm10 = vcmp.gt.f32.partialorder %v12811_v9, 0.0 }
 0x3e3   : > { %v3530_v47 = vpop.f32.mrf.mxu1  ;;  %v4116_v34 = vmul.f32 1.050701, %v4053_v7  ;;  %8525 = vmatprep.mubr.msk.f32.mxu0 %vm10111_vm1, %v10110_v1  ;;  %8879 = vmatpush3.msra.mxu0 %v5863_v35 }
 0x3e4   : > { %v3991_v54 = vmul.f32 1.6732632, %v7126_v2  ;;  %9641 = vpow2.f32 %v3830_v39  ;;  %v12819_v58 = vadd.f32 %v12514_v19, %v3530_v47  ;;  %8880 = vmatprep.subr.mxu0 %v10110_v1 }
 0x3e5   : > { %v9636_v46 = vpop.eup %9635  ;;  %v8324_v57 = vpop.f32.mrf.mxu1  ;;  %8881 = vmatpush3.msra.mxu0 %v5862_v26 }
 0x3e6   : > { %v4054_v61 = vsel %vm3739_vm6, %v12775_v32, %v3991_v54  ;;  %v7127_v42 = vadd.f32 -1.0, %v9636_v46  ;;  %v3832_v11 = vmul.f32 1.442695, %v12819_v58  ;;  %8526 = vmatmul.mubr.f32.gmra.mxu0 %v4116_v34  ;;  %vm3744_vm11 = vcmp.gt.f32.partialorder %v12819_v58, 0.0  ;;  %8882 = vmatprep.subr.mxu0 %v10110_v1 }
 0x3e7   : > { %v3535_v8 = vpop.f32.mrf.mxu1  ;;  %v4117_v38 = vmul.f32 1.050701, %v4054_v61  ;;  %8528 = vmatprep.mubr.msk.f32.mxu0 %vm10111_vm1, %v10110_v1 }
 0x3e8   : > { %v3992_v17 = vmul.f32 1.6732632, %v7127_v42  ;;  %9643 = vpow2.f32 %v3832_v11  ;;  %v12830_v59 = vadd.f32 %v12514_v19, %v3535_v8 }
 0x3e9   : > { %v9638_v36 = vpop.eup %9637  ;;  %v8327_v55 = vpop.f32.mrf.mxu1 }
 0x3ea   : > { %v4055_v63 = vsel %vm3740_vm7, %v12783_v27, %v3992_v17  ;;  %v7128_v41 = vadd.f32 -1.0, %v9638_v36  ;;  %v3834_v12 = vmul.f32 1.442695, %v12830_v59  ;;  %8529 = vmatmul.mubr.f32.gmra.mxu0 %v4117_v38  ;;  %vm3745_vm12 = vcmp.gt.f32.partialorder %v12830_v59, 0.0 }
 0x3eb   : > { %v3540_v32 = vpop.f32.mrf.mxu1  ;;  %v4118_v14 = vmul.f32 1.050701, %v4055_v63  ;;  %8531 = vmatprep.mubr.msk.f32.mxu0 %vm10111_vm1, %v10110_v1 }
 0x3ec   : > { %v3993_v25 = vmul.f32 1.6732632, %v7128_v41  ;;  %9645 = vpow2.f32 %v3834_v12  ;;  %v12842_v37 = vadd.f32 %v12514_v19, %v3540_v32  ;;  %v12853_v19 = vld [vmem:[%s14590_s8] ss:$0 sm:$0xff] }
 0x3ed   : > { %v9640_v48 = vpop.eup %9639  ;;  %v8330_v23 = vpop.f32.mrf.mxu1 }
 0x3ee   : > { %v4056_v62 = vsel %vm3741_vm8, %v12791_v56, %v3993_v25  ;;  %v7129_v18 = vadd.f32 -1.0, %v9640_v48  ;;  %v3836_v27 = vmul.f32 1.442695, %v12842_v37  ;;  %8532 = vmatmul.mubr.f32.gmra.mxu0 %v4118_v14  ;;  %vm3746_vm13 = vcmp.gt.f32.partialorder %v12842_v37, 0.0 }
 0x3ef   : > { %v3545_v3 = vpop.f32.mrf.mxu1  ;;  %v4119_v33 = vmul.f32 1.050701, %v4056_v62  ;;  %8534 = vmatprep.mubr.msk.f32.mxu0 %vm10111_vm1, %v10110_v1 }
 0x3f0   : > { %v3994_v16 = vmul.f32 1.6732632, %v7129_v18  ;;  %9647 = vpow2.f32 %v3836_v27  ;;  %v12856_v53 = vadd.f32 %v12853_v19, %v3545_v3 }
 0x3f1   : > { %v9642_v31 = vpop.eup %9641  ;;  %v8333_v4 = vpop.f32.mrf.mxu1 }
 0x3f2   : > { %v4057_v29 = vsel %vm3742_vm9, %v12802_v45, %v3994_v16  ;;  %v7130_v52 = vadd.f32 -1.0, %v9642_v31  ;;  %v3838_v56 = vmul.f32 1.442695, %v12856_v53  ;;  %8535 = vmatmul.mubr.f32.gmra.mxu0 %v4119_v33  ;;  %vm3747_vm14 = vcmp.gt.f32.partialorder %v12856_v53, 0.0 }
 0x3f3   : > { %v3550_v43 = vpop.f32.mrf.mxu1  ;;  %v4120_v44 = vmul.f32 1.050701, %v4057_v29  ;;  %8537 = vmatprep.mubr.msk.f32.mxu0 %vm10111_vm1, %v10110_v1 }
 0x3f4   : > { %v3995_v6 = vmul.f32 1.6732632, %v7130_v52  ;;  %9649 = vpow2.f32 %v3838_v56  ;;  %v12864_v30 = vadd.f32 %v12853_v19, %v3550_v43  ;;  %v5861_v52 = vld [vmem:[%s14595_s13 + $0x68] sm:$0xff] }
 0x3f5   : > { %v9644_v10 = vpop.eup %9643  ;;  %v8336_v22 = vpop.f32.mrf.mxu1  ;;  %8883 = vmatpush3.msra.mxu0 %v5861_v52 }
 0x3f6   : > { %v4058_v5 = vsel %vm3743_vm10, %v12811_v9, %v3995_v6  ;;  %v7131_v0 = vadd.f32 -1.0, %v9644_v10  ;;  %v3840_v45 = vmul.f32 1.442695, %v12864_v30  ;;  %8538 = vmatmul.mubr.f32.gmra.mxu0 %v4120_v44  ;;  %vm3748_vm15 = vcmp.gt.f32.partialorder %v12864_v30, 0.0  ;;  %8884 = vmatprep.subr.mxu0 %v10110_v1 }
 0x3f7   : > { %v3555_v21 = vpop.f32.mrf.mxu1  ;;  %v4121_v49 = vmul.f32 1.050701, %v4058_v5  ;;  %8540 = vmatprep.mubr.msk.f32.mxu0 %vm10111_vm1, %v10110_v1 }
 0x3f8   : > { %v3996_v28 = vmul.f32 1.6732632, %v7131_v0  ;;  %9651 = vpow2.f32 %v3840_v45  ;;  %v12875_v24 = vadd.f32 %v12853_v19, %v3555_v21 }
 0x3f9   : > { %v9646_v20 = vpop.eup %9645  ;;  %v8339_v60 = vpop.f32.mrf.mxu1 }
 0x3fa   : > { %v4059_v40 = vsel %vm3744_vm11, %v12819_v58, %v3996_v28  ;;  %v7132_v9 = vadd.f32 -1.0, %v9646_v20  ;;  %v3842_v51 = vmul.f32 1.442695, %v12875_v24  ;;  %8541 = vmatmul.mubr.f32.gmra.mxu0 %v4121_v49  ;;  %vm3749_vm0 = vcmp.gt.f32.partialorder %v12875_v24, 0.0 }
 0x3fb   : > { %v3560_v50 = vpop.f32.mrf.mxu1  ;;  %v4122_v7 = vmul.f32 1.050701, %v4059_v40  ;;  %8543 = vmatprep.mubr.msk.f32.mxu0 %vm10111_vm1, %v10110_v1 }
 0x3fc   : > { %v3997_v2 = vmul.f32 1.6732632, %v7132_v9  ;;  %9653 = vpow2.f32 %v3842_v51  ;;  %v12887_v39 = vadd.f32 %v12853_v19, %v3560_v50 }
 0x3fd   : > { %v9648_v47 = vpop.eup %9647  ;;  %v8342_v34 = vpop.f32.mrf.mxu1 }
 0x3fe   : > { %v4060_v54 = vsel %vm3745_vm12, %v12830_v59, %v3997_v2  ;;  %v7133_v58 = vadd.f32 -1.0, %v9648_v47  ;;  %v3844_v46 = vmul.f32 1.442695, %v12887_v39  ;;  %8544 = vmatmul.mubr.f32.gmra.mxu0 %v4122_v7  ;;  %vm3750_vm3 = vcmp.gt.f32.partialorder %v12887_v39, 0.0 }
 0x3ff   : > { %v3565_v57 = vpop.f32.mrf.mxu1  ;;  %v4123_v61 = vmul.f32 1.050701, %v4060_v54  ;;  %8546 = vmatprep.mubr.msk.f32.mxu0 %vm10111_vm1, %v10110_v1 }
 0x400   : > { %v3998_v42 = vmul.f32 1.6732632, %v7133_v58  ;;  %9655 = vpow2.f32 %v3844_v46  ;;  %v12895_v11 = vadd.f32 %v12853_v19, %v3565_v57 }
 0x401   : > { %v9650_v8 = vpop.eup %9649  ;;  %v8345_v35 = vpop.f32.mrf.mxu1 }
 0x402   : > { %v4061_v38 = vsel %vm3746_vm13, %v12842_v37, %v3998_v42  ;;  %v7134_v17 = vadd.f32 -1.0, %v9650_v8  ;;  %v3846_v59 = vmul.f32 1.442695, %v12895_v11  ;;  %8547 = vmatmul.mubr.f32.gmra.mxu0 %v4123_v61  ;;  %vm3751_vm4 = vcmp.gt.f32.partialorder %v12895_v11, 0.0 }
 0x403   : > { %v3570_v36 = vpop.f32.mrf.mxu1  ;;  %v4124_v55 = vmul.f32 1.050701, %v4061_v38  ;;  %8549 = vmatprep.mubr.msk.f32.mxu0 %vm10111_vm1, %v10110_v1  ;;  %v5860_v38 = vld [vmem:[%s14595_s13 + $0x60] sm:$0xff] }
 0x404   : > { %v3999_v63 = vmul.f32 1.6732632, %v7134_v17  ;;  %9657 = vpow2.f32 %v3846_v59  ;;  %v12903_v41 = vadd.f32 %v12853_v19, %v3570_v36  ;;  %8885 = vmatpush3.msra.mxu0 %v5860_v38 }
 0x405   : > { %v9652_v12 = vpop.eup %9651  ;;  %v8348_v32 = vpop.f32.mrf.mxu1  ;;  %8886 = vmatprep.subr.mxu0 %v10110_v1 }
 0x406   : > { %v4062_v13 = vsel %vm3747_vm14, %v12856_v53, %v3999_v63  ;;  %v7135_v14 = vadd.f32 -1.0, %v9652_v12  ;;  %v3848_v25 = vmul.f32 1.442695, %v12903_v41  ;;  %8550 = vmatmul.mubr.f32.gmra.mxu0 %v4124_v55  ;;  %vm3752_vm2 = vcmp.gt.f32.partialorder %v12903_v41, 0.0 }
 0x407   : > { %v3575_v37 = vpop.f32.mrf.mxu1  ;;  %v4125_v48 = vmul.f32 1.050701, %v4062_v13  ;;  %8552 = vmatprep.mubr.msk.f32.mxu0 %vm10111_vm1, %v10110_v1 }
 0x408   : > { %v4000_v23 = vmul.f32 1.6732632, %v7135_v14  ;;  %9659 = vpow2.f32 %v3848_v25  ;;  %v12911_v62 = vadd.f32 %v12853_v19, %v3575_v37 }
 0x409   : > { %v9654_v18 = vpop.eup %9653  ;;  %v8351_v27 = vpop.f32.mrf.mxu1 }
 0x40a   : > { %v4063_v3 = vsel %vm3748_vm15, %v12864_v30, %v4000_v23  ;;  %v7136_v33 = vadd.f32 -1.0, %v9654_v18  ;;  %v3850_v16 = vmul.f32 1.442695, %v12911_v62  ;;  %8553 = vmatmul.mubr.f32.gmra.mxu0 %v4125_v48  ;;  %vm3753_vm5 = vcmp.gt.f32.partialorder %v12911_v62, 0.0 }
 0x40b   : > { %v3580_v53 = vpop.f32.mrf.mxu1  ;;  %v4126_v31 = vmul.f32 1.050701, %v4063_v3  ;;  %8555 = vmatprep.mubr.msk.f32.mxu0 %vm10111_vm1, %v10110_v1 }
 0x40c   : > { %v4001_v4 = vmul.f32 1.6732632, %v7136_v33  ;;  %9661 = vpow2.f32 %v3850_v16  ;;  %v12919_v29 = vadd.f32 %v12853_v19, %v3580_v53 }
 0x40d   : > { %v9656_v56 = vpop.eup %9655  ;;  %v8354_v43 = vpop.f32.mrf.mxu1 }
 0x40e   : > { %v4064_v44 = vsel %vm3749_vm0, %v12875_v24, %v4001_v4  ;;  %v7137_v6 = vadd.f32 -1.0, %v9656_v56  ;;  %v3852_v30 = vmul.f32 1.442695, %v12919_v29  ;;  %8556 = vmatmul.mubr.f32.gmra.mxu0 %v4126_v31  ;;  %vm3754_vm6 = vcmp.gt.f32.partialorder %v12919_v29, 0.0 }
 0x40f   : > { %v3585_v15 = vpop.f32.mrf.mxu1  ;;  %v4127_v10 = vmul.f32 1.050701, %v4064_v44  ;;  %8558 = vmatprep.mubr.msk.f32.mxu0 %vm10111_vm1, %v10110_v1 }
 0x410   : > { %v4002_v22 = vmul.f32 1.6732632, %v7137_v6  ;;  %9663 = vpow2.f32 %v3852_v30  ;;  %v12931_v5 = vadd.f32 %v12853_v19, %v3585_v15  ;;  %v5859_v30 = vld [vmem:[%s14595_s13 + $0x58] sm:$0xff] }
 0x411   : > { %v9658_v0 = vpop.eup %9657  ;;  %v8357_v45 = vpop.f32.mrf.mxu1  ;;  %8887 = vmatpush3.msra.mxu0 %v5859_v30 }
 0x412   : > { %v4065_v21 = vsel %vm3750_vm3, %v12887_v39, %v4002_v22  ;;  %v7138_v49 = vadd.f32 -1.0, %v9658_v0  ;;  %v3854_v28 = vmul.f32 1.442695, %v12931_v5  ;;  %8559 = vmatmul.mubr.f32.gmra.mxu0 %v4127_v10  ;;  %vm3755_vm7 = vcmp.gt.f32.partialorder %v12931_v5, 0.0  ;;  %8888 = vmatprep.subr.mxu0 %v10110_v1 }
 0x413   : > { %v3590_v24 = vpop.f32.mrf.mxu1  ;;  %v4128_v26 = vmul.f32 1.050701, %v4065_v21  ;;  %8561 = vmatprep.mubr.msk.f32.mxu0 %vm10111_vm1, %v10110_v1 }
 0x414   : > { %v4003_v20 = vmul.f32 1.6732632, %v7138_v49  ;;  %9665 = vpow2.f32 %v3854_v28  ;;  %v12939_v60 = vadd.f32 %v12853_v19, %v3590_v24 }
 0x415   : > { %v9660_v40 = vpop.eup %9659  ;;  %v8360_v9 = vpop.f32.mrf.mxu1 }
 0x416   : > { %v4066_v51 = vsel %vm3751_vm4, %v12895_v11, %v4003_v20  ;;  %v7139_v50 = vadd.f32 -1.0, %v9660_v40  ;;  %v3856_v7 = vmul.f32 1.442695, %v12939_v60  ;;  %8562 = vmatmul.mubr.f32.gmra.mxu0 %v4128_v26  ;;  %vm3756_vm8 = vcmp.gt.f32.partialorder %v12939_v60, 0.0 }
 0x417   : > { %v3595_v2 = vpop.f32.mrf.mxu1  ;;  %v4129_v39 = vmul.f32 1.050701, %v4066_v51  ;;  %8564 = vmatprep.mubr.msk.f32.mxu0 %vm10111_vm1, %v10110_v1 }
 0x418   : > { %v4004_v47 = vmul.f32 1.6732632, %v7139_v50  ;;  %9667 = vpow2.f32 %v3856_v7  ;;  %v12947_v34 = vadd.f32 %v12853_v19, %v3595_v2 }
 0x419   : > { %v9662_v54 = vpop.eup %9661  ;;  %v8363_v58 = vpop.f32.mrf.mxu1 }
 0x41a   : > { %v4067_v46 = vsel %vm3752_vm2, %v12903_v41, %v4004_v47  ;;  %v7140_v57 = vadd.f32 -1.0, %v9662_v54  ;;  %v3858_v61 = vmul.f32 1.442695, %v12947_v34  ;;  %8565 = vmatmul.mubr.f32.gmra.mxu0 %v4129_v39  ;;  %vm3757_vm9 = vcmp.gt.f32.partialorder %v12947_v34, 0.0 }
 0x41b   : > { %v3600_v42 = vpop.f32.mrf.mxu1  ;;  %v4130_v11 = vmul.f32 1.050701, %v4067_v46  ;;  %8567 = vmatprep.mubr.msk.f32.mxu0 %vm10111_vm1, %v10110_v1 }
 0x41c   : > { %v4005_v8 = vmul.f32 1.6732632, %v7140_v57  ;;  %9669 = vpow2.f32 %v3858_v61  ;;  %v12955_v35 = vadd.f32 %v12853_v19, %v3600_v42 }
 0x41d   : > { %v9664_v17 = vpop.eup %9663  ;;  %v8366_v59 = vpop.f32.mrf.mxu1 }
 0x41e   : > { %v4068_v36 = vsel %vm3753_vm5, %v12911_v62, %v4005_v8  ;;  %v7141_v55 = vadd.f32 -1.0, %v9664_v17  ;;  %v3860_v63 = vmul.f32 1.442695, %v12955_v35  ;;  %8568 = vmatmul.mubr.f32.gmra.mxu0 %v4130_v11  ;;  %vm3758_vm10 = vcmp.gt.f32.partialorder %v12955_v35, 0.0 }
 0x41f   : > { %v3605_v41 = vpop.f32.mrf.mxu1  ;;  %v4131_v12 = vmul.f32 1.050701, %v4068_v36  ;;  %8570 = vmatprep.mubr.msk.f32.mxu0 %vm10111_vm1, %v10110_v1  ;;  %v5858_v36 = vld [vmem:[%s14595_s13 + $0x50] sm:$0xff] }
 0x420   : > { %v4006_v32 = vmul.f32 1.6732632, %v7141_v55  ;;  %9671 = vpow2.f32 %v3860_v63  ;;  %v12967_v13 = vadd.f32 %v12853_v19, %v3605_v41  ;;  %8889 = vmatpush3.msra.mxu0 %v5858_v36 }
 0x421   : > { %v9666_v14 = vpop.eup %9665  ;;  %v8369_v25 = vpop.f32.mrf.mxu1  ;;  %8890 = vmatprep.subr.mxu0 %v10110_v1 }
 0x422   : > { %v4069_v37 = vsel %vm3754_vm6, %v12919_v29, %v4006_v32  ;;  %v7142_v48 = vadd.f32 -1.0, %v9666_v14  ;;  %v3862_v23 = vmul.f32 1.442695, %v12967_v13  ;;  %8571 = vmatmul.mubr.f32.gmra.mxu0 %v4131_v12  ;;  %vm3759_vm11 = vcmp.gt.f32.partialorder %v12967_v13, 0.0 }
 0x423   : > { %v3610_v62 = vpop.f32.mrf.mxu1  ;;  %v4132_v18 = vmul.f32 1.050701, %v4069_v37  ;;  %8573 = vmatprep.mubr.msk.f32.mxu0 %vm10111_vm1, %v10110_v1 }
 0x424   : > { %v4007_v27 = vmul.f32 1.6732632, %v7142_v48  ;;  %9673 = vpow2.f32 %v3862_v23  ;;  %v12975_v3 = vadd.f32 %v12853_v19, %v3610_v62 }
 0x425   : > { %v9668_v33 = vpop.eup %9667  ;;  %v8372_v16 = vpop.f32.mrf.mxu1 }
 0x426   : > { %v4070_v53 = vsel %vm3755_vm7, %v12931_v5, %v4007_v27  ;;  %v7143_v31 = vadd.f32 -1.0, %v9668_v33  ;;  %v3864_v4 = vmul.f32 1.442695, %v12975_v3  ;;  %8574 = vmatmul.mubr.f32.gmra.mxu0 %v4132_v18  ;;  %vm3760_vm12 = vcmp.gt.f32.partialorder %v12975_v3, 0.0 }
 0x427   : > { %v3615_v29 = vpop.f32.mrf.mxu1  ;;  %v4133_v52 = vmul.f32 1.050701, %v4070_v53  ;;  %8576 = vmatprep.mubr.msk.f32.mxu0 %vm10111_vm1, %v10110_v1 }
 0x428   : > { %v4008_v56 = vmul.f32 1.6732632, %v7143_v31  ;;  %9675 = vpow2.f32 %v3864_v4  ;;  %v12983_v43 = vadd.f32 %v12853_v19, %v3615_v29 }
 0x429   : > { %v9670_v44 = vpop.eup %9669  ;;  %v8375_v6 = vpop.f32.mrf.mxu1 }
 0x42a   : > { %v4071_v15 = vsel %vm3756_vm8, %v12939_v60, %v4008_v56  ;;  %v7144_v10 = vadd.f32 -1.0, %v9670_v44  ;;  %v3866_v22 = vmul.f32 1.442695, %v12983_v43  ;;  %8577 = vmatmul.mubr.f32.gmra.mxu0 %v4133_v52  ;;  %vm3761_vm13 = vcmp.gt.f32.partialorder %v12983_v43, 0.0 }
 0x42b   : > { %v3620_v5 = vpop.f32.mrf.mxu1  ;;  %v4134_v0 = vmul.f32 1.050701, %v4071_v15  ;;  %8579 = vmatprep.mubr.msk.f32.mxu0 %vm10111_vm1, %v10110_v1 }
 0x42c   : > { %v4009_v45 = vmul.f32 1.6732632, %v7144_v10  ;;  %9677 = vpow2.f32 %v3866_v22  ;;  %v12995_v21 = vadd.f32 %v12853_v19, %v3620_v5 }
 0x42d   : > { %v9672_v49 = vpop.eup %9671  ;;  %v8378_v28 = vpop.f32.mrf.mxu1 }
 0x42e   : > { %v4072_v24 = vsel %vm3757_vm9, %v12947_v34, %v4009_v45  ;;  %v7145_v26 = vadd.f32 -1.0, %v9672_v49  ;;  %v3868_v20 = vmul.f32 1.442695, %v12995_v21  ;;  %8580 = vmatmul.mubr.f32.gmra.mxu0 %v4134_v0  ;;  %vm3762_vm14 = vcmp.gt.f32.partialorder %v12995_v21, 0.0 }
 0x42f   : > { %v3625_v60 = vpop.f32.mrf.mxu1  ;;  %v4135_v40 = vmul.f32 1.050701, %v4072_v24  ;;  %8582 = vmatprep.mubr.msk.f32.mxu0 %vm10111_vm1, %v10110_v1  ;;  %v5857_v24 = vld [vmem:[%s14595_s13 + $0x48] sm:$0xff] }
 0x430   : > { %v4010_v9 = vmul.f32 1.6732632, %v7145_v26  ;;  %9679 = vpow2.f32 %v3868_v20  ;;  %v13003_v51 = vadd.f32 %v12853_v19, %v3625_v60  ;;  %8891 = vmatpush3.msra.mxu0 %v5857_v24 }
 0x431   : > { %v9674_v50 = vpop.eup %9673  ;;  %v8381_v7 = vpop.f32.mrf.mxu1  ;;  %8892 = vmatprep.subr.mxu0 %v10110_v1 }
 0x432   : > { %v4073_v2 = vsel %vm3758_vm10, %v12955_v35, %v4010_v9  ;;  %v7146_v39 = vadd.f32 -1.0, %v9674_v50  ;;  %v3870_v47 = vmul.f32 1.442695, %v13003_v51  ;;  %8583 = vmatmul.mubr.f32.gmra.mxu0 %v4135_v40  ;;  %vm3763_vm15 = vcmp.gt.f32.partialorder %v13003_v51, 0.0 }
 0x433   : > { %v3630_v34 = vpop.f32.mrf.mxu1  ;;  %v4136_v54 = vmul.f32 1.050701, %v4073_v2  ;;  %8585 = vmatprep.mubr.msk.f32.mxu0 %vm10111_vm1, %v10110_v1 }
 0x434   : > { %v4011_v58 = vmul.f32 1.6732632, %v7146_v39  ;;  %9681 = vpow2.f32 %v3870_v47  ;;  %v13011_v46 = vadd.f32 %v12853_v19, %v3630_v34 }
 0x435   : > { %v9676_v57 = vpop.eup %9675  ;;  %v8384_v61 = vpop.f32.mrf.mxu1 }
 0x436   : > { %v4074_v42 = vsel %vm3759_vm11, %v12967_v13, %v4011_v58  ;;  %v7147_v11 = vadd.f32 -1.0, %v9676_v57  ;;  %v3872_v8 = vmul.f32 1.442695, %v13011_v46  ;;  %8586 = vmatmul.mubr.f32.gmra.mxu0 %v4136_v54  ;;  %vm3764_vm0 = vcmp.gt.f32.partialorder %v13011_v46, 0.0 }
 0x437   : > { %v3635_v35 = vpop.f32.mrf.mxu1  ;;  %v4137_v38 = vmul.f32 1.050701, %v4074_v42  ;;  %8588 = vmatprep.mubr.msk.f32.mxu0 %vm10111_vm1, %v10110_v1 }
 0x438   : > { %v4012_v17 = vmul.f32 1.6732632, %v7147_v11  ;;  %9683 = vpow2.f32 %v3872_v8  ;;  %v13019_v59 = vadd.f32 %v12853_v19, %v3635_v35 }
 0x439   : > { %v9678_v55 = vpop.eup %9677  ;;  %v8387_v63 = vpop.f32.mrf.mxu1 }
 0x43a   : > { %v4075_v41 = vsel %vm3760_vm12, %v12975_v3, %v4012_v17  ;;  %v7148_v12 = vadd.f32 -1.0, %v9678_v55  ;;  %v3874_v32 = vmul.f32 1.442695, %v13019_v59  ;;  %8589 = vmatmul.mubr.f32.gmra.mxu0 %v4137_v38  ;;  %vm3765_vm3 = vcmp.gt.f32.partialorder %v13019_v59, 0.0 }
 0x43b   : > { %v3640_v13 = vpop.f32.mrf.mxu1  ;;  %v4138_v14 = vmul.f32 1.050701, %v4075_v41  ;;  %8591 = vmatprep.mubr.msk.f32.mxu0 %vm10111_vm1, %v10110_v1 }
 0x43c   : > { %v4013_v25 = vmul.f32 1.6732632, %v7148_v12  ;;  %9685 = vpow2.f32 %v3874_v32  ;;  %v13031_v37 = vadd.f32 %v12853_v19, %v3640_v13  ;;  %v13091_v32 = vld [vmem:[%s14592_s10] ss:$0 sm:$0xff] }
 0x43d   : > { %v9680_v48 = vpop.eup %9679  ;;  %v8390_v23 = vpop.f32.mrf.mxu1 }
 0x43e   : > { %v4076_v62 = vsel %vm3761_vm13, %v12983_v43, %v4013_v25  ;;  %v7149_v18 = vadd.f32 -1.0, %v9680_v48  ;;  %v3876_v27 = vmul.f32 1.442695, %v13031_v37  ;;  %8592 = vmatmul.mubr.f32.gmra.mxu0 %v4138_v14  ;;  %vm3766_vm4 = vcmp.gt.f32.partialorder %v13031_v37, 0.0 }
 0x43f   : > { %v3645_v3 = vpop.f32.mrf.mxu1  ;;  %v4139_v33 = vmul.f32 1.050701, %v4076_v62  ;;  %8594 = vmatprep.mubr.msk.f32.mxu0 %vm10111_vm1, %v10110_v1 }
 0x440   : > { %v4014_v16 = vmul.f32 1.6732632, %v7149_v18  ;;  %9687 = vpow2.f32 %v3876_v27  ;;  %v13039_v53 = vadd.f32 %v12853_v19, %v3645_v3  ;;  %v5856_v3 = vld [vmem:[%s14595_s13 + $0x40] sm:$0xff] }
 0x441   : > { %v9682_v31 = vpop.eup %9681  ;;  %v8393_v4 = vpop.f32.mrf.mxu1  ;;  %8893 = vmatpush3.msra.mxu0 %v5856_v3 }
 0x442   : > { %v4077_v29 = vsel %vm3762_vm14, %v12995_v21, %v4014_v16  ;;  %v7150_v52 = vadd.f32 -1.0, %v9682_v31  ;;  %v3878_v56 = vmul.f32 1.442695, %v13039_v53  ;;  %8595 = vmatmul.mubr.f32.gmra.mxu0 %v4139_v33  ;;  %vm3767_vm2 = vcmp.gt.f32.partialorder %v13039_v53, 0.0  ;;  %8894 = vmatprep.subr.mxu0 %v10110_v1 }
 0x443   : > { %v3650_v43 = vpop.f32.mrf.mxu1  ;;  %v4140_v44 = vmul.f32 1.050701, %v4077_v29  ;;  %8597 = vmatprep.mubr.msk.f32.mxu0 %vm10111_vm1, %v10110_v1 }
 0x444   : > { %v4015_v6 = vmul.f32 1.6732632, %v7150_v52  ;;  %9689 = vpow2.f32 %v3878_v56  ;;  %v13047_v30 = vadd.f32 %v12853_v19, %v3650_v43 }
 0x445   : > { %v9684_v15 = vpop.eup %9683  ;;  %v8396_v10 = vpop.f32.mrf.mxu1 }
 0x446   : > { %v4078_v22 = vsel %vm3763_vm15, %v13003_v51, %v4015_v6  ;;  %v7151_v5 = vadd.f32 -1.0, %v9684_v15  ;;  %v3880_v0 = vmul.f32 1.442695, %v13047_v30  ;;  %8598 = vmatmul.mubr.f32.gmra.mxu0 %v4140_v44  ;;  %vm3768_vm5 = vcmp.gt.f32.partialorder %v13047_v30, 0.0 }
 0x447   : > { %v3655_v45 = vpop.f32.mrf.mxu1  ;;  %v4141_v21 = vmul.f32 1.050701, %v4078_v22  ;;  %8600 = vmatprep.mubr.msk.f32.mxu0 %vm10111_vm1, %v10110_v1 }
 0x448   : > { %v4016_v49 = vmul.f32 1.6732632, %v7151_v5  ;;  %9691 = vpow2.f32 %v3880_v0  ;;  %v13055_v28 = vadd.f32 %v12853_v19, %v3655_v45 }
 0x449   : > { %v9686_v26 = vpop.eup %9685  ;;  %v8399_v20 = vpop.f32.mrf.mxu1 }
 0x44a   : > { %v4079_v60 = vsel %vm3764_vm0, %v13011_v46, %v4016_v49  ;;  %v7152_v40 = vadd.f32 -1.0, %v9686_v26  ;;  %v3882_v9 = vmul.f32 1.442695, %v13055_v28  ;;  %8601 = vmatmul.mubr.f32.gmra.mxu0 %v4141_v21  ;;  %vm3769_vm6 = vcmp.gt.f32.partialorder %v13055_v28, 0.0 }
 0x44b   : > { %v3660_v51 = vpop.f32.mrf.mxu1  ;;  %v4142_v50 = vmul.f32 1.050701, %v4079_v60  ;;  %8603 = vmatprep.mubr.msk.f32.mxu0 %vm10111_vm1, %v10110_v1 }
 0x44c   : > { %v4017_v7 = vmul.f32 1.6732632, %v7152_v40  ;;  %9693 = vpow2.f32 %v3882_v9  ;;  %v13067_v2 = vadd.f32 %v12853_v19, %v3660_v51 }
 0x44d   : > { %v9688_v39 = vpop.eup %9687  ;;  %v8402_v47 = vpop.f32.mrf.mxu1 }
 0x44e   : > { %v4080_v34 = vsel %vm3765_vm3, %v13019_v59, %v4017_v7  ;;  %v7153_v54 = vadd.f32 -1.0, %v9688_v39  ;;  %v3884_v58 = vmul.f32 1.442695, %v13067_v2  ;;  %8604 = vmatmul.mubr.f32.gmra.mxu0 %v4142_v50  ;;  %vm3770_vm7 = vcmp.gt.f32.partialorder %v13067_v2, 0.0 }
 0x44f   : > { %v3665_v46 = vpop.f32.mrf.mxu1  ;;  %v4143_v57 = vmul.f32 1.050701, %v4080_v34  ;;  %8606 = vmatprep.mubr.msk.f32.mxu0 %vm10111_vm1, %v10110_v1 }
 0x450   : > { %v4018_v61 = vmul.f32 1.6732632, %v7153_v54  ;;  %9695 = vpow2.f32 %v3884_v58  ;;  %v13075_v42 = vadd.f32 %v12853_v19, %v3665_v46 }
 0x451   : > { %v9690_v11 = vpop.eup %9689  ;;  %v8405_v8 = vpop.f32.mrf.mxu1 }
 0x452   : > { %v4081_v35 = vsel %vm3766_vm4, %v13031_v37, %v4018_v61  ;;  %v7154_v38 = vadd.f32 -1.0, %v9690_v11  ;;  %v3886_v17 = vmul.f32 1.442695, %v13075_v42  ;;  %8607 = vmatmul.mubr.f32.gmra.mxu0 %v4143_v57  ;;  %vm3771_vm8 = vcmp.gt.f32.partialorder %v13075_v42, 0.0 }
 0x453   : > { %v3670_v59 = vpop.f32.mrf.mxu1  ;;  %v4144_v36 = vmul.f32 1.050701, %v4081_v35  ;;  %8609 = vmatprep.mubr.msk.f32.mxu0 %vm10111_vm1, %v10110_v1 }
 0x454   : > { %v4019_v55 = vmul.f32 1.6732632, %v7154_v38  ;;  %9697 = vpow2.f32 %v3886_v17  ;;  %v13083_v63 = vadd.f32 %v12853_v19, %v3670_v59 }
 0x455   : > { %v9692_v41 = vpop.eup %9691  ;;  %v8408_v12 = vpop.f32.mrf.mxu1 }
 0x456   : > { %v4082_v13 = vsel %vm3767_vm2, %v13039_v53, %v4019_v55  ;;  %v7155_v14 = vadd.f32 -1.0, %v9692_v41  ;;  %v3888_v25 = vmul.f32 1.442695, %v13083_v63  ;;  %8610 = vmatmul.mubr.f32.gmra.mxu0 %v4144_v36  ;;  %vm3772_vm9 = vcmp.gt.f32.partialorder %v13083_v63, 0.0 }
 0x457   : > { %v4145_v37 = vmul.f32 1.050701, %v4082_v13  ;;  %v3675_v48 = vpop.f32.mrf.mxu1  ;;  %8612 = vmatprep.mubr.msk.f32.mxu0 %vm10111_vm1, %v10110_v1 }
 0x458   : > { %v4020_v62 = vmul.f32 1.6732632, %v7155_v14  ;;  %9699 = vpow2.f32 %v3888_v25  ;;  %v13096_v18 = vadd.f32 %v12853_v19, %v3675_v48 }
 0x459   : > { %v4249_v23 = vpop.f32.mrf.mxu0  ;;  %v9694_v33 = vpop.eup %9693 }
 0x45a   : > { %v13099_v27 = vadd.f32 %v13091_v32, %v4249_v23  ;;  %v8411_v16 = vpop.f32.mrf.mxu1  ;;  %v4083_v31 = vsel %vm3768_vm5, %v13047_v30, %v4020_v62  ;;  %v7156_v4 = vadd.f32 -1.0, %v9694_v33  ;;  %v3890_v29 = vmul.f32 1.442695, %v13096_v18  ;;  %8613 = vmatmul.mubr.f32.gmra.mxu0 %v4145_v37 }
 0x45b   : > { %v8470_v53 = vpop.f32.mrf.mxu0  ;;  %v4146_v52 = vmul.f32 1.050701, %v4083_v31  ;;  %8615 = vmatprep.mubr.msk.f32.mxu0 %vm10111_vm1, %v10110_v1  ;;  %vm3773_vm10 = vcmp.gt.f32.partialorder %v13096_v18, 0.0 }
 0x45c   : > { %v4626_v56 = vmul.f32 1.442695, %v13099_v27  ;;  %v3680_v43 = vpop.f32.mrf.mxu1  ;;  %v4021_v6 = vmul.f32 1.6732632, %v7156_v4  ;;  %9701 = vpow2.f32 %v3890_v29  ;;  %vm4563_vm11 = vcmp.gt.f32.partialorder %v13099_v27, 0.0 }
 0x45d   : > { %v4254_v44 = vpop.f32.mrf.mxu0  ;;  %v13112_v15 = vadd.f32 %v12853_v19, %v3680_v43  ;;  %v9696_v30 = vpop.eup %9695 }
 0x45e   : > { %v13115_v10 = vadd.f32 %v13091_v32, %v4254_v44  ;;  %9703 = vpow2.f32 %v4626_v56  ;;  %v8414_v22 = vpop.f32.mrf.mxu1  ;;  %v4084_v0 = vsel %vm3769_vm6, %v13055_v28, %v4021_v6  ;;  %v7157_v45 = vadd.f32 -1.0, %v9696_v30  ;;  %8616 = vmatmul.mubr.f32.gmra.mxu0 %v4146_v52 }
 0x45f   : > { %v8473_v5 = vpop.f32.mrf.mxu0  ;;  %v3892_v21 = vmul.f32 1.442695, %v13112_v15  ;;  %v4147_v49 = vmul.f32 1.050701, %v4084_v0  ;;  %8618 = vmatprep.mubr.msk.f32.mxu0 %vm10111_vm1, %v10110_v1  ;;  %vm3774_vm12 = vcmp.gt.f32.partialorder %v13112_v15, 0.0 }
 0x460   : > { %v4628_v24 = vmul.f32 1.442695, %v13115_v10  ;;  %v3685_v26 = vpop.f32.mrf.mxu1  ;;  %v4022_v60 = vmul.f32 1.6732632, %v7157_v45  ;;  %vm4564_vm13 = vcmp.gt.f32.partialorder %v13115_v10, 0.0 }
 0x461   : > { %v4259_v20 = vpop.f32.mrf.mxu0  ;;  %9705 = vpow2.f32 %v3892_v21  ;;  %v13124_v40 = vadd.f32 %v12853_v19, %v3685_v26  ;;  %v9698_v51 = vpop.eup %9697 }
 0x462   : > { %v13127_v9 = vadd.f32 %v13091_v32, %v4259_v20  ;;  %9707 = vpow2.f32 %v4628_v24  ;;  %v8417_v28 = vpop.f32.mrf.mxu1  ;;  %v4085_v7 = vsel %vm3770_vm7, %v13067_v2, %v4022_v60  ;;  %v7158_v39 = vadd.f32 -1.0, %v9698_v51  ;;  %8619 = vmatmul.mubr.f32.gmra.mxu0 %v4147_v49 }
 0x463   : > { %v8476_v50 = vpop.f32.mrf.mxu0  ;;  %v3894_v47 = vmul.f32 1.442695, %v13124_v40  ;;  %v4148_v34 = vmul.f32 1.050701, %v4085_v7  ;;  %8621 = vmatprep.mubr.msk.f32.mxu0 %vm10111_vm1, %v10110_v1  ;;  %vm3775_vm14 = vcmp.gt.f32.partialorder %v13124_v40, 0.0 }
 0x464   : > { %v4630_v54 = vmul.f32 1.442695, %v13127_v9  ;;  %v3690_v58 = vpop.f32.mrf.mxu1  ;;  %v4023_v57 = vmul.f32 1.6732632, %v7158_v39  ;;  %vm4565_vm15 = vcmp.gt.f32.partialorder %v13127_v9, 0.0 }
 0x465   : > { %v4264_v46 = vpop.f32.mrf.mxu0  ;;  %9709 = vpow2.f32 %v3894_v47  ;;  %v13136_v61 = vadd.f32 %v12853_v19, %v3690_v58  ;;  %v9700_v8 = vpop.eup %9699 }
 0x466   : > { %v13139_v11 = vadd.f32 %v13091_v32, %v4264_v46  ;;  %9711 = vpow2.f32 %v4630_v54  ;;  %v8420_v2 = vpop.f32.mrf.mxu1  ;;  %v4086_v38 = vsel %vm3771_vm8, %v13075_v42, %v4023_v57  ;;  %v7159_v17 = vadd.f32 -1.0, %v9700_v8  ;;  %8622 = vmatmul.mubr.f32.gmra.mxu0 %v4148_v34  ;;  %v5855_v42 = vld [vmem:[%s14595_s13 + $0x38] sm:$0xff] }
 0x467   : > { %v8479_v35 = vpop.f32.mrf.mxu0  ;;  %v3896_v59 = vmul.f32 1.442695, %v13136_v61  ;;  %v4149_v36 = vmul.f32 1.050701, %v4086_v38  ;;  %8624 = vmatprep.mubr.msk.f32.mxu0 %vm10111_vm1, %v10110_v1  ;;  %8895 = vmatpush3.msra.mxu0 %v5855_v42  ;;  %vm3776_vm0 = vcmp.gt.f32.partialorder %v13136_v61, 0.0 }
 0x468   : > { %v4632_v55 = vmul.f32 1.442695, %v13139_v11  ;;  %v3695_v41 = vpop.f32.mrf.mxu1  ;;  %v4024_v13 = vmul.f32 1.6732632, %v7159_v17  ;;  %8896 = vmatprep.subr.mxu0 %v10110_v1  ;;  %vm4566_vm3 = vcmp.gt.f32.partialorder %v13139_v11, 0.0 }
 0x469   : > { %v4269_v12 = vpop.f32.mrf.mxu0  ;;  %9713 = vpow2.f32 %v3896_v59  ;;  %v13148_v14 = vadd.f32 %v12853_v19, %v3695_v41  ;;  %v9702_v37 = vpop.eup %9701 }
 0x46a   : > { %v13151_v25 = vadd.f32 %v13091_v32, %v4269_v12  ;;  %9715 = vpow2.f32 %v4632_v55  ;;  %v8423_v48 = vpop.f32.mrf.mxu1  ;;  %v4087_v3 = vsel %vm3772_vm9, %v13083_v63, %v4024_v13  ;;  %v7160_v33 = vadd.f32 -1.0, %v9702_v37  ;;  %8625 = vmatmul.mubr.f32.gmra.mxu0 %v4149_v36 }
 0x46b   : > { %v8482_v23 = vpop.f32.mrf.mxu0  ;;  %v9704_v62 = vpop.eup %9703  ;;  %v3898_v16 = vmul.f32 1.442695, %v13148_v14  ;;  %v4150_v53 = vmul.f32 1.050701, %v4087_v3  ;;  %8627 = vmatprep.mubr.msk.f32.mxu0 %vm10111_vm1, %v10110_v1  ;;  %vm3777_vm4 = vcmp.gt.f32.partialorder %v13148_v14, 0.0 }
 0x46c   : > { %v7170_v31 = vadd.f32 -1.0, %v9704_v62  ;;  %v4634_v4 = vmul.f32 1.442695, %v13151_v25  ;;  %v3700_v29 = vpop.f32.mrf.mxu1  ;;  %v4025_v56 = vmul.f32 1.6732632, %v7160_v33  ;;  %vm4567_vm2 = vcmp.gt.f32.partialorder %v13151_v25, 0.0 }
 0x46d   : > { %v4274_v52 = vpop.f32.mrf.mxu0  ;;  %9717 = vpow2.f32 %v3898_v16  ;;  %v13164_v43 = vadd.f32 %v12853_v19, %v3700_v29 }
 0x46e   : > { %v13167_v44 = vadd.f32 %v13091_v32, %v4274_v52  ;;  %v9706_v63 = vpop.eup %9705  ;;  %v4815_v6 = vmul.f32 1.6732632, %v7170_v31  ;;  %9719 = vpow2.f32 %v4634_v4  ;;  %v8426_v30 = vpop.f32.mrf.mxu1  ;;  %v4088_v0 = vsel %vm3773_vm10, %v13096_v18, %v4025_v56  ;;  %8628 = vmatmul.mubr.f32.gmra.mxu0 %v4150_v53 }
 0x46f   : > { %v8485_v22 = vpop.f32.mrf.mxu0  ;;  %v9708_v5 = vpop.eup %9707  ;;  %v7161_v45 = vadd.f32 -1.0, %v9706_v63  ;;  %v3900_v21 = vmul.f32 1.442695, %v13164_v43  ;;  %v4151_v49 = vmul.f32 1.050701, %v4088_v0  ;;  %8630 = vmatprep.mubr.msk.f32.mxu0 %vm10111_vm1, %v10110_v1  ;;  %vm3778_vm5 = vcmp.gt.f32.partialorder %v13164_v43, 0.0 }
 0x470   : > { %v4878_v24 = vsel %vm4563_vm11, %v13099_v27, %v4815_v6  ;;  %v7171_v26 = vadd.f32 -1.0, %v9708_v5  ;;  %v3705_v20 = vpop.f32.mrf.mxu1  ;;  %v4636_v28 = vmul.f32 1.442695, %v13167_v44  ;;  %vm4568_vm6 = vcmp.gt.f32.partialorder %v13167_v44, 0.0 }
 0x471   : > { %v4941_v60 = vmul.f32 1.050701, %v4878_v24  ;;  %v4026_v51 = vmul.f32 1.6732632, %v7161_v45  ;;  %9721 = vpow2.f32 %v3900_v21  ;;  %v13179_v7 = vadd.f32 %v12853_v19, %v3705_v20  ;;  %v4279_v54 = vpop.f32.mrf.mxu0 }
 0x472   : > { %v9710_v50 = vpop.eup %9709  ;;  %v4816_v18 = vmul.f32 1.6732632, %v7171_v26  ;;  %v8429_v39 = vpop.f32.mrf.mxu1  ;;  %9723 = vpow2.f32 %v4636_v28  ;;  %8631 = vmatmul.mubr.f32.gmra.mxu0 %v4151_v49 }
 0x473   : > { %v9712_v27 = vpop.eup %9711  ;;  %v4089_v47 = vsel %vm3774_vm12, %v13112_v15, %v4026_v51  ;;  %v7162_v34 = vadd.f32 -1.0, %v9710_v50  ;;  %8690 = vmatmul.mubr.f32.vlgmr.msra.gmra.mxu1 %v4941_v60  ;;  %v3902_v38 = vmul.f32 1.442695, %v13179_v7  ;;  %v13190_v15 = vadd.f32 %v13091_v32, %v4279_v54  ;;  %v8488_v17 = vpop.f32.mrf.mxu0  ;;  %8633 = vmatprep.mubr.msk.f32.mxu0 %vm10111_vm1, %v10110_v1 }
 0x474   : > { %v4152_v58 = vmul.f32 1.050701, %v4089_v47  ;;  %v4879_v46 = vsel %vm4564_vm13, %v13115_v10, %v4816_v18  ;;  %v7172_v57 = vadd.f32 -1.0, %v9712_v27  ;;  %v3710_v8 = vpop.f32.mrf.mxu1  ;;  %8692 = vmatprep.mubr.msk.f32.mxu1 %vm10111_vm1, %v10110_v1  ;;  %vm3779_vm7 = vcmp.gt.f32.partialorder %v13179_v7, 0.0 }
 0x475   : > { %v4942_v2 = vmul.f32 1.050701, %v4879_v46  ;;  %v4027_v35 = vmul.f32 1.6732632, %v7162_v34  ;;  %v13194_v10 = vadd.f32 %v12853_v19, %v3710_v8  ;;  %9725 = vpow2.f32 %v3902_v38  ;;  %v4284_v19 = vpop.f32.mrf.mxu0 }
 0x476   : > { %v9714_v59 = vpop.eup %9713  ;;  %v4817_v36 = vmul.f32 1.6732632, %v7172_v57  ;;  %v8432_v55 = vpop.f32.mrf.mxu1  ;;  %v4638_v23 = vmul.f32 1.442695, %v13190_v15  ;;  %v13205_v33 = vadd.f32 %v13091_v32, %v4284_v19  ;;  %8634 = vmatmul.mubr.f32.gmra.mxu0 %v4152_v58  ;;  %vm4569_vm8 = vcmp.gt.f32.partialorder %v13190_v15, 0.0 }
 0x477   : > { %v9716_v41 = vpop.eup %9715  ;;  %v4090_v12 = vsel %vm3775_vm14, %v13124_v40, %v4027_v35  ;;  %v7163_v13 = vadd.f32 -1.0, %v9714_v59  ;;  %8693 = vmatmul.mubr.f32.gmra.mxu1 %v4942_v2  ;;  %v5854_v40 = vld [vmem:[%s14595_s13 + $0x30] sm:$0xff]  ;;  %v3904_v53 = vmul.f32 1.442695, %v13194_v10  ;;  %v8491_v4 = vpop.f32.mrf.mxu0  ;;  %8636 = vmatprep.mubr.msk.f32.mxu0 %vm10111_vm1, %v10110_v1  ;;  %vm3780_vm9 = vcmp.gt.f32.partialorder %v13194_v10, 0.0 }
 0x478   : > { %v4153_v42 = vmul.f32 1.050701, %v4090_v12  ;;  %v4880_v37 = vsel %vm4565_vm15, %v13127_v9, %v4817_v36  ;;  %v7173_v48 = vadd.f32 -1.0, %v9716_v41  ;;  %8695 = vmatprep.mubr.msk.f32.mxu1 %vm10111_vm1, %v10110_v1  ;;  %9727 = vpow2.f32 %v4638_v23  ;;  %8897 = vmatpush3.msra.mxu0 %v5854_v40  ;;  %v5853_v23 = vld [vmem:[%s14595_s13 + $0x28] sm:$0xff] }
 0x479   : > { %v4943_v62 = vmul.f32 1.050701, %v4880_v37  ;;  %v4028_v3 = vmul.f32 1.6732632, %v7163_v13  ;;  %v3715_v31 = vpop.f32.mrf.mxu1  ;;  %v4640_v63 = vmul.f32 1.442695, %v13205_v33  ;;  %8898 = vmatprep.subr.mxu0 %v10110_v1  ;;  %9729 = vpow2.f32 %v3904_v53 }
 0x47a   : > { %v9718_v16 = vpop.eup %9717  ;;  %v4818_v9 = vmul.f32 1.6732632, %v7173_v48  ;;  %v4289_v49 = vpop.f32.mrf.mxu0  ;;  %8637 = vmatmul.mubr.f32.gmra.mxu0 %v4153_v42  ;;  %vm4570_vm10 = vcmp.gt.f32.partialorder %v13205_v33, 0.0 }
 0x47b   : > { %v9720_v29 = vpop.eup %9719  ;;  %v4091_v52 = vsel %vm3776_vm0, %v13136_v61, %v4028_v3  ;;  %v7164_v56 = vadd.f32 -1.0, %v9718_v16  ;;  %8696 = vmatmul.mubr.f32.gmra.mxu1 %v4943_v62  ;;  %v8435_v5 = vpop.f32.mrf.mxu1  ;;  %9731 = vpow2.f32 %v4640_v63  ;;  %v10014_v61 = vld [vmem:[%s14590_s8] ss:$0 sm:$0xff]  ;;  %v13228_v26 = vadd.f32 %v13091_v32, %v4289_v49  ;;  %8639 = vmatprep.mubr.msk.f32.mxu0 %vm10111_vm1, %v10110_v1 }
 0x47c   : > { %v4154_v6 = vmul.f32 1.050701, %v4091_v52  ;;  %v4881_v30 = vsel %vm4566_vm3, %v13139_v11, %v4818_v9  ;;  %v7174_v22 = vadd.f32 -1.0, %v9720_v29  ;;  %8698 = vmatprep.mubr.msk.f32.mxu1 %vm10111_vm1, %v10110_v1  ;;  %v13224_v21 = vadd.f32 %v10014_v61, %v3715_v31  ;;  %v8494_v28 = vpop.f32.mrf.mxu0  ;;  %8899 = vmatpush3.msra.mxu0 %v5853_v23 }
 0x47d   : > { %v4944_v0 = vmul.f32 1.050701, %v4881_v30  ;;  %v4029_v45 = vmul.f32 1.6732632, %v7164_v56  ;;  %v4642_v27 = vmul.f32 1.442695, %v13228_v26  ;;  %8900 = vmatprep.subr.mxu0 %v10110_v1 }
 0x47e   : > { %v9722_v24 = vpop.eup %9721  ;;  %v4819_v11 = vmul.f32 1.6732632, %v7174_v22  ;;  %v3906_v51 = vmul.f32 1.442695, %v13224_v21  ;;  %8640 = vmatmul.mubr.f32.gmra.mxu0 %v4154_v6  ;;  %vm3781_vm11 = vcmp.gt.f32.partialorder %v13224_v21, 0.0  ;;  %vm4571_vm12 = vcmp.gt.f32.partialorder %v13228_v26, 0.0 }
 0x47f   : > { %v4092_v20 = vsel %vm3777_vm4, %v13148_v14, %v4029_v45  ;;  %v7165_v60 = vadd.f32 -1.0, %v9722_v24  ;;  %8699 = vmatmul.mubr.f32.gmra.mxu1 %v4944_v0  ;;  %v9724_v50 = vpop.eup %9723  ;;  %v4294_v14 = vpop.f32.mrf.mxu0  ;;  %8642 = vmatprep.mubr.msk.f32.mxu0 %vm10111_vm1, %v10110_v1 }
 0x480   : > { %v4155_v18 = vmul.f32 1.050701, %v4092_v20  ;;  %v4882_v39 = vsel %vm4567_vm2, %v13151_v25, %v4819_v11  ;;  %8701 = vmatprep.mubr.msk.f32.mxu1 %vm10111_vm1, %v10110_v1  ;;  %v7175_v54 = vadd.f32 -1.0, %v9724_v50  ;;  %9733 = vpow2.f32 %v3906_v51 }
 0x481   : > { %v4945_v47 = vmul.f32 1.050701, %v4882_v39  ;;  %v4030_v34 = vmul.f32 1.6732632, %v7165_v60  ;;  %9735 = vpow2.f32 %v4642_v27  ;;  %v13241_v58 = vadd.f32 %v13091_v32, %v4294_v14  ;;  %v8497_v57 = vpop.f32.mrf.mxu0 }
 0x482   : > { %v4820_v46 = vmul.f32 1.6732632, %v7175_v54  ;;  %v9726_v8 = vpop.eup %9725  ;;  %8643 = vmatmul.mubr.f32.gmra.mxu0 %v4155_v18 }
 0x483   : > { %v4093_v25 = vsel %vm3778_vm5, %v13164_v43, %v4030_v34  ;;  %8702 = vmatmul.mubr.f32.gmra.mxu1 %v4945_v47  ;;  %v4644_v2 = vmul.f32 1.442695, %v13241_v58  ;;  %v7166_v17 = vadd.f32 -1.0, %v9726_v8  ;;  %v4299_v59 = vpop.f32.mrf.mxu0  ;;  %8645 = vmatprep.mubr.msk.f32.mxu0 %vm10111_vm1, %v10110_v1  ;;  %vm4572_vm13 = vcmp.gt.f32.partialorder %v13241_v58, 0.0 }
 0x484   : > { %8704 = vmatprep.mubr.msk.f32.mxu1 %vm10111_vm1, %v10110_v1  ;;  %v4156_v35 = vmul.f32 1.050701, %v4093_v25  ;;  %v4883_v38 = vsel %vm4568_vm6, %v13167_v44, %v4820_v46  ;;  %v13252_v43 = vadd.f32 %v13091_v32, %v4299_v59 }
 0x485   : > { %v4946_v36 = vmul.f32 1.050701, %v4883_v38  ;;  %9737 = vpow2.f32 %v4644_v2  ;;  %v9728_v55 = vpop.eup %9727  ;;  %v4031_v41 = vmul.f32 1.6732632, %v7166_v17  ;;  %v8500_v12 = vpop.f32.mrf.mxu0 }
 0x486   : > { %v7176_v13 = vadd.f32 -1.0, %v9728_v55  ;;  %v4646_v42 = vmul.f32 1.442695, %v13252_v43  ;;  %v9730_v44 = vpop.eup %9729  ;;  %8646 = vmatmul.mubr.f32.gmra.mxu0 %v4156_v35  ;;  %v5852_v35 = vld [vmem:[%s14595_s13 + $0x20] sm:$0xff]  ;;  %vm4573_vm14 = vcmp.gt.f32.partialorder %v13252_v43, 0.0 }
 0x487   : > { %8705 = vmatmul.mubr.f32.gmra.mxu1 %v4946_v36  ;;  %v4094_v37 = vsel %vm3779_vm7, %v13179_v7, %v4031_v41  ;;  %v4304_v48 = vpop.f32.mrf.mxu0  ;;  %v7167_v40 = vadd.f32 -1.0, %v9730_v44  ;;  %8648 = vmatprep.mubr.msk.f32.mxu0 %vm10111_vm1, %v10110_v1 }
 0x488   : > { %8707 = vmatprep.mubr.msk.f32.mxu1 %vm10111_vm1, %v10110_v1  ;;  %v9732_v19 = vpop.eup %9731  ;;  %v4157_v62 = vmul.f32 1.050701, %v4094_v37  ;;  %v4821_v3 = vmul.f32 1.6732632, %v7176_v13  ;;  %9739 = vpow2.f32 %v4646_v42  ;;  %v13268_v16 = vadd.f32 %v13091_v32, %v4304_v48  ;;  %8901 = vmatpush3.msra.mxu0 %v5852_v35 }
 0x489   : > { %v7177_v7 = vadd.f32 -1.0, %v9732_v19  ;;  %v8503_v9 = vpop.f32.mrf.mxu0  ;;  %v4032_v31 = vmul.f32 1.6732632, %v7167_v40  ;;  %8902 = vmatprep.subr.mxu0 %v10110_v1 }
 0x48a   : > { %v4884_v53 = vsel %vm4569_vm8, %v13190_v15, %v4821_v3  ;;  %8649 = vmatmul.mubr.f32.gmra.mxu0 %v4157_v62  ;;  %v4648_v6 = vmul.f32 1.442695, %v13268_v16  ;;  %vm4574_vm15 = vcmp.gt.f32.partialorder %v13268_v16, 0.0 }
 0x48b   : > { %v4947_v4 = vmul.f32 1.050701, %v4884_v53  ;;  %v4822_v29 = vmul.f32 1.6732632, %v7177_v7  ;;  %v4309_v52 = vpop.f32.mrf.mxu0  ;;  %v4095_v63 = vsel %vm3780_vm9, %v13194_v10, %v4032_v31  ;;  %8651 = vmatprep.mubr.msk.f32.mxu0 %vm10111_vm1, %v10110_v1 }
 0x48c   : > { %v13277_v30 = vadd.f32 %v13091_v32, %v4309_v52  ;;  %v4158_v22 = vmul.f32 1.050701, %v4095_v63  ;;  %9741 = vpow2.f32 %v4648_v6 }
 0x48d   : > { %v9734_v56 = vpop.eup %9733  ;;  %v4885_v5 = vsel %vm4570_vm10, %v13205_v33, %v4822_v29  ;;  %v8506_v45 = vpop.f32.mrf.mxu0  ;;  %8708 = vmatmul.mubr.f32.gmra.mxu1 %v4947_v4 }
 0x48e   : > { %v9736_v15 = vpop.eup %9735  ;;  %v7168_v0 = vadd.f32 -1.0, %v9734_v56  ;;  %v4948_v61 = vmul.f32 1.050701, %v4885_v5  ;;  %8710 = vmatprep.mubr.msk.f32.mxu1 %vm10111_vm1, %v10110_v1  ;;  %v4650_v24 = vmul.f32 1.442695, %v13277_v30  ;;  %8652 = vmatmul.mubr.f32.gmra.mxu0 %v4158_v22  ;;  %vm4575_vm0 = vcmp.gt.f32.partialorder %v13277_v30, 0.0 }
 0x48f   : > { %v7178_v49 = vadd.f32 -1.0, %v9736_v15  ;;  %v4314_v11 = vpop.f32.mrf.mxu0  ;;  %8654 = vmatprep.mubr.msk.f32.mxu0 %vm10111_vm1, %v10110_v1  ;;  %v5851_v45 = vld [vmem:[%s14595_s13 + $0x18] sm:$0xff] }
 0x490   : > { %v4033_v10 = vmul.f32 1.6732632, %v7168_v0  ;;  %v13287_v60 = vadd.f32 %v13091_v32, %v4314_v11  ;;  %9743 = vpow2.f32 %v4650_v24  ;;  %8903 = vmatpush3.msra.mxu0 %v5851_v45 }
 0x491   : > { %v4823_v20 = vmul.f32 1.6732632, %v7178_v49  ;;  %v8509_v28 = vpop.f32.mrf.mxu0  ;;  %8711 = vmatmul.mubr.f32.gmra.mxu1 %v4948_v61  ;;  %8904 = vmatprep.subr.mxu0 %v10110_v1 }
 0x492   : > { %v9738_v33 = vpop.eup %9737  ;;  %v4096_v51 = vsel %vm3781_vm11, %v13224_v21, %v4033_v10  ;;  %8713 = vmatprep.mubr.msk.f32.mxu1 %vm10111_vm1, %v10110_v1  ;;  %v4652_v47 = vmul.f32 1.442695, %v13287_v60  ;;  %vm4576_vm3 = vcmp.gt.f32.partialorder %v13287_v60, 0.0 }
 0x493   : > { %v4159_v50 = vmul.f32 1.050701, %v4096_v51  ;;  %v4886_v18 = vsel %vm4571_vm12, %v13228_v26, %v4823_v20  ;;  %v7179_v39 = vadd.f32 -1.0, %v9738_v33  ;;  %v4319_v34 = vpop.f32.mrf.mxu0 }
 0x494   : > { %v4949_v27 = vmul.f32 1.050701, %v4886_v18  ;;  %v13298_v14 = vadd.f32 %v13091_v32, %v4319_v34  ;;  %9745 = vpow2.f32 %v4652_v47 }
 0x495   : > { %v4824_v54 = vmul.f32 1.6732632, %v7179_v39  ;;  %8655 = vmatmul.mubr.f32.gmra.mxu0 %v4159_v50  ;;  %v9740_v21 = vpop.eup %9739  ;;  %v8512_v25 = vpop.f32.mrf.mxu0 }
 0x496   : > { %8714 = vmatmul.mubr.f32.gmra.mxu1 %v4949_v27  ;;  %8910 = vmatprep.mubr.msk.f32.mxu0 %vm10111_vm1, %v10110_v1  ;;  %v7180_v46 = vadd.f32 -1.0, %v9740_v21  ;;  %v4654_v57 = vmul.f32 1.442695, %v13298_v14  ;;  %vm4577_vm4 = vcmp.gt.f32.partialorder %v13298_v14, 0.0 }
 0x497   : > { %v4887_v26 = vsel %vm4572_vm13, %v13241_v58, %v4824_v54  ;;  %8716 = vmatprep.mubr.msk.f32.mxu1 %vm10111_vm1, %v10110_v1  ;;  %v4324_v2 = vpop.f32.mrf.mxu0 }
 0x498   : > { %v4950_v8 = vmul.f32 1.050701, %v4887_v26  ;;  %v4825_v38 = vmul.f32 1.6732632, %v7180_v46  ;;  %9747 = vpow2.f32 %v4654_v57  ;;  %v13311_v17 = vadd.f32 %v13091_v32, %v4324_v2 }
 0x499   : > { %v8515_v58 = vpop.f32.mrf.mxu0  ;;  %v9742_v55 = vpop.eup %9741 }
 0x49a   : > { %8717 = vmatmul.mubr.f32.gmra.mxu1 %v4950_v8  ;;  %v4888_v59 = vsel %vm4573_vm14, %v13252_v43, %v4825_v38  ;;  %v4656_v36 = vmul.f32 1.442695, %v13311_v17  ;;  %v7181_v13 = vadd.f32 -1.0, %v9742_v55  ;;  %vm4578_vm2 = vcmp.gt.f32.partialorder %v13311_v17, 0.0 }
 0x49b   : > { %8719 = vmatprep.mubr.msk.f32.mxu1 %vm10111_vm1, %v10110_v1  ;;  %v4951_v41 = vmul.f32 1.050701, %v4888_v59  ;;  %v4329_v12 = vpop.f32.mrf.mxu0 }
 0x49c   : > { %9749 = vpow2.f32 %v4656_v36  ;;  %v13320_v42 = vadd.f32 %v13091_v32, %v4329_v12  ;;  %v4826_v48 = vmul.f32 1.6732632, %v7181_v13 }
 0x49d   : > { %v8518_v44 = vpop.f32.mrf.mxu0  ;;  %v9744_v37 = vpop.eup %9743 }
 0x49e   : > { %8720 = vmatmul.mubr.f32.gmra.mxu1 %v4951_v41  ;;  %v4658_v23 = vmul.f32 1.442695, %v13320_v42  ;;  %v7182_v43 = vadd.f32 -1.0, %v9744_v37  ;;  %v4889_v62 = vsel %vm4574_vm15, %v13268_v16, %v4826_v48  ;;  %vm4579_vm5 = vcmp.gt.f32.partialorder %v13320_v42, 0.0  ;;  %v5850_v37 = vld [vmem:[%s14595_s13 + $0x10] sm:$0xff] }
 0x49f   : > { %8722 = vmatprep.mubr.msk.f32.mxu1 %vm10111_vm1, %v10110_v1  ;;  %v4334_v19 = vpop.f32.mrf.mxu0  ;;  %v4952_v40 = vmul.f32 1.050701, %v4889_v62  ;;  %8905 = vmatpush3.msra.mxu0 %v5850_v37 }
 0x4a0   : > { %9751 = vpow2.f32 %v4658_v23  ;;  %v13328_v3 = vadd.f32 %v13091_v32, %v4334_v19  ;;  %v4827_v7 = vmul.f32 1.6732632, %v7182_v43  ;;  %8906 = vmatprep.subr.mxu0 %v10110_v1 }
 0x4a1   : > { %v8521_v9 = vpop.f32.mrf.mxu0  ;;  %v9746_v53 = vpop.eup %9745 }
 0x4a2   : > { %v4660_v31 = vmul.f32 1.442695, %v13328_v3  ;;  %v4890_v4 = vsel %vm4575_vm0, %v13277_v30, %v4827_v7  ;;  %v7183_v29 = vadd.f32 -1.0, %v9746_v53  ;;  %8723 = vmatmul.mubr.f32.gmra.mxu1 %v4952_v40  ;;  %vm4580_vm6 = vcmp.gt.f32.partialorder %v13328_v3, 0.0 }
 0x4a3   : > { %v4339_v52 = vpop.f32.mrf.mxu0  ;;  %v4953_v56 = vmul.f32 1.050701, %v4890_v4  ;;  %8725 = vmatprep.mubr.msk.f32.mxu1 %vm10111_vm1, %v10110_v1 }
 0x4a4   : > { %9753 = vpow2.f32 %v4660_v31  ;;  %v13334_v16 = vadd.f32 %v13091_v32, %v4339_v52  ;;  %v4828_v6 = vmul.f32 1.6732632, %v7183_v29 }
 0x4a5   : > { %v9748_v63 = vpop.eup %9747  ;;  %v8524_v15 = vpop.f32.mrf.mxu0 }
 0x4a6   : > { %v7184_v22 = vadd.f32 -1.0, %v9748_v63  ;;  %v4662_v5 = vmul.f32 1.442695, %v13334_v16  ;;  %v4891_v30 = vsel %vm4576_vm3, %v13287_v60, %v4828_v6  ;;  %8726 = vmatmul.mubr.f32.gmra.mxu1 %v4953_v56  ;;  %vm4581_vm7 = vcmp.gt.f32.partialorder %v13334_v16, 0.0 }
 0x4a7   : > { %v4344_v0 = vpop.f32.mrf.mxu0  ;;  %v4954_v61 = vmul.f32 1.050701, %v4891_v30  ;;  %8728 = vmatprep.mubr.msk.f32.mxu1 %vm10111_vm1, %v10110_v1 }
 0x4a8   : > { %v4829_v49 = vmul.f32 1.6732632, %v7184_v22  ;;  %9755 = vpow2.f32 %v4662_v5  ;;  %v13345_v10 = vadd.f32 %v13091_v32, %v4344_v0 }
 0x4a9   : > { %v9750_v24 = vpop.eup %9749  ;;  %v8527_v11 = vpop.f32.mrf.mxu0 }
 0x4aa   : > { %v4892_v20 = vsel %vm4577_vm4, %v13298_v14, %v4829_v49  ;;  %v7185_v60 = vadd.f32 -1.0, %v9750_v24  ;;  %v4664_v33 = vmul.f32 1.442695, %v13345_v10  ;;  %8729 = vmatmul.mubr.f32.gmra.mxu1 %v4954_v61  ;;  %vm4582_vm8 = vcmp.gt.f32.partialorder %v13345_v10, 0.0 }
 0x4ab   : > { %v4955_v51 = vmul.f32 1.050701, %v4892_v20  ;;  %v4349_v28 = vpop.f32.mrf.mxu0  ;;  %8731 = vmatprep.mubr.msk.f32.mxu1 %vm10111_vm1, %v10110_v1 }
 0x4ac   : > { %v4830_v50 = vmul.f32 1.6732632, %v7185_v60  ;;  %9757 = vpow2.f32 %v4664_v33  ;;  %v13354_v18 = vadd.f32 %v13091_v32, %v4349_v28 }
 0x4ad   : > { %v9752_v39 = vpop.eup %9751  ;;  %v8530_v27 = vpop.f32.mrf.mxu0 }
 0x4ae   : > { %v4893_v47 = vsel %vm4578_vm2, %v13311_v17, %v4830_v50  ;;  %v7186_v34 = vadd.f32 -1.0, %v9752_v39  ;;  %v4666_v54 = vmul.f32 1.442695, %v13354_v18  ;;  %8732 = vmatmul.mubr.f32.gmra.mxu1 %v4955_v51  ;;  %vm4583_vm9 = vcmp.gt.f32.partialorder %v13354_v18, 0.0  ;;  %v5849_v39 = vld [vmem:[%s14595_s13 + $0x8] sm:$0xff] }
 0x4af   : > { %v4956_v14 = vmul.f32 1.050701, %v4893_v47  ;;  %v4354_v21 = vpop.f32.mrf.mxu0  ;;  %8734 = vmatprep.mubr.msk.f32.mxu1 %vm10111_vm1, %v10110_v1  ;;  %8907 = vmatpush3.msra.mxu0 %v5849_v39 }
 0x4b0   : > { %v4831_v25 = vmul.f32 1.6732632, %v7186_v34  ;;  %9759 = vpow2.f32 %v4666_v54  ;;  %v13362_v26 = vadd.f32 %v13091_v32, %v4354_v21  ;;  %8908 = vmatprep.subr.mxu0 %v10110_v1 }
 0x4b1   : > { %v9754_v46 = vpop.eup %9753  ;;  %v8533_v57 = vpop.f32.mrf.mxu0 }
 0x4b2   : > { %v4894_v8 = vsel %vm4579_vm5, %v13320_v42, %v4831_v25  ;;  %v7187_v2 = vadd.f32 -1.0, %v9754_v46  ;;  %v4668_v35 = vmul.f32 1.442695, %v13362_v26  ;;  %8735 = vmatmul.mubr.f32.gmra.mxu1 %v4956_v14  ;;  %vm4584_vm10 = vcmp.gt.f32.partialorder %v13362_v26, 0.0  ;;  %v13428_v57 = vld [vmem:[%s14592_s10] ss:$0 sm:$0xff] }
 0x4b3   : > { %v4957_v38 = vmul.f32 1.050701, %v4894_v8  ;;  %v4359_v17 = vpop.f32.mrf.mxu0  ;;  %8737 = vmatprep.mubr.msk.f32.mxu1 %vm10111_vm1, %v10110_v1 }
 0x4b4   : > { %v4832_v58 = vmul.f32 1.6732632, %v7187_v2  ;;  %9761 = vpow2.f32 %v4668_v35  ;;  %v13370_v59 = vadd.f32 %v13091_v32, %v4359_v17 }
 0x4b5   : > { %v9756_v36 = vpop.eup %9755  ;;  %v8536_v55 = vpop.f32.mrf.mxu0 }
 0x4b6   : > { %v4895_v41 = vsel %vm4580_vm6, %v13328_v3, %v4832_v58  ;;  %v7188_v12 = vadd.f32 -1.0, %v9756_v36  ;;  %v4670_v13 = vmul.f32 1.442695, %v13370_v59  ;;  %8738 = vmatmul.mubr.f32.gmra.mxu1 %v4957_v38  ;;  %vm4585_vm11 = vcmp.gt.f32.partialorder %v13370_v59, 0.0  ;;  %v5848_v55 = vld [vmem:[%s14595_s13] sm:$0xff] }
 0x4b7   : > { %v4958_v42 = vmul.f32 1.050701, %v4895_v41  ;;  %v4364_v44 = vpop.f32.mrf.mxu0  ;;  %8740 = vmatprep.mubr.msk.f32.mxu1 %vm10111_vm1, %v10110_v1  ;;  %8909 = vmatpush3.msra.mxu0 %v5848_v55 }
 0x4b8   : > { %v4833_v48 = vmul.f32 1.6732632, %v7188_v12  ;;  %9763 = vpow2.f32 %v4670_v13  ;;  %v13381_v23 = vadd.f32 %v13091_v32, %v4364_v44 }
 0x4b9   : > { %v9758_v43 = vpop.eup %9757  ;;  %v8539_v19 = vpop.f32.mrf.mxu0 }
 0x4ba   : > { %v4896_v62 = vsel %vm4581_vm7, %v13334_v16, %v4833_v48  ;;  %v7189_v3 = vadd.f32 -1.0, %v9758_v43  ;;  %v4672_v40 = vmul.f32 1.442695, %v13381_v23  ;;  %8741 = vmatmul.mubr.f32.gmra.mxu1 %v4958_v42  ;;  %vm4586_vm12 = vcmp.gt.f32.partialorder %v13381_v23, 0.0 }
 0x4bb   : > { %v4959_v7 = vmul.f32 1.050701, %v4896_v62  ;;  %v4369_v9 = vpop.f32.mrf.mxu0  ;;  %8743 = vmatprep.mubr.msk.f32.mxu1 %vm10111_vm1, %v10110_v1 }
 0x4bc   : > { %v4834_v53 = vmul.f32 1.6732632, %v7189_v3  ;;  %9765 = vpow2.f32 %v4672_v40  ;;  %v13390_v31 = vadd.f32 %v13091_v32, %v4369_v9 }
 0x4bd   : > { %v9760_v4 = vpop.eup %9759  ;;  %v8542_v29 = vpop.f32.mrf.mxu0 }
 0x4be   : > { %v4897_v52 = vsel %vm4582_vm8, %v13345_v10, %v4834_v53  ;;  %v7190_v56 = vadd.f32 -1.0, %v9760_v4  ;;  %v4674_v16 = vmul.f32 1.442695, %v13390_v31  ;;  %8744 = vmatmul.mubr.f32.gmra.mxu1 %v4959_v7  ;;  %vm4587_vm13 = vcmp.gt.f32.partialorder %v13390_v31, 0.0 }
 0x4bf   : > { %v4960_v63 = vmul.f32 1.050701, %v4897_v52  ;;  %v4374_v6 = vpop.f32.mrf.mxu0  ;;  %8746 = vmatprep.mubr.msk.f32.mxu1 %vm10111_vm1, %v10110_v1 }
 0x4c0   : > { %v4835_v15 = vmul.f32 1.6732632, %v7190_v56  ;;  %9767 = vpow2.f32 %v4674_v16  ;;  %v13398_v22 = vadd.f32 %v13091_v32, %v4374_v6 }
 0x4c1   : > { %v9762_v5 = vpop.eup %9761  ;;  %v8545_v30 = vpop.f32.mrf.mxu0 }
 0x4c2   : > { %v4898_v0 = vsel %vm4583_vm9, %v13354_v18, %v4835_v15  ;;  %v7191_v45 = vadd.f32 -1.0, %v9762_v5  ;;  %v4676_v61 = vmul.f32 1.442695, %v13398_v22  ;;  %8747 = vmatmul.mubr.f32.gmra.mxu1 %v4960_v63  ;;  %vm4588_vm14 = vcmp.gt.f32.partialorder %v13398_v22, 0.0 }
 0x4c3   : > { %v4961_v49 = vmul.f32 1.050701, %v4898_v0  ;;  %v4379_v10 = vpop.f32.mrf.mxu0  ;;  %8749 = vmatprep.mubr.msk.f32.mxu1 %vm10111_vm1, %v10110_v1 }
 0x4c4   : > { %v4836_v24 = vmul.f32 1.6732632, %v7191_v45  ;;  %9769 = vpow2.f32 %v4676_v61  ;;  %v13406_v11 = vadd.f32 %v13091_v32, %v4379_v10 }
 0x4c5   : > { %v9764_v20 = vpop.eup %9763  ;;  %v8548_v60 = vpop.f32.mrf.mxu0 }
 0x4c6   : > { %v4899_v33 = vsel %vm4584_vm10, %v13362_v26, %v4836_v24  ;;  %v7192_v51 = vadd.f32 -1.0, %v9764_v20  ;;  %v4678_v28 = vmul.f32 1.442695, %v13406_v11  ;;  %8750 = vmatmul.mubr.f32.gmra.mxu1 %v4961_v49  ;;  %vm4589_vm15 = vcmp.gt.f32.partialorder %v13406_v11, 0.0 }
 0x4c7   : > { %v4962_v50 = vmul.f32 1.050701, %v4899_v33  ;;  %v4384_v18 = vpop.f32.mrf.mxu0  ;;  %8752 = vmatprep.mubr.msk.f32.mxu1 %vm10111_vm1, %v10110_v1 }
 0x4c8   : > { %v4837_v27 = vmul.f32 1.6732632, %v7192_v51  ;;  %9771 = vpow2.f32 %v4678_v28  ;;  %v13417_v47 = vadd.f32 %v13091_v32, %v4384_v18 }
 0x4c9   : > { %v9766_v34 = vpop.eup %9765  ;;  %v8551_v54 = vpop.f32.mrf.mxu0 }
 0x4ca   : > { %v4900_v14 = vsel %vm4585_vm11, %v13370_v59, %v4837_v27  ;;  %v7193_v21 = vadd.f32 -1.0, %v9766_v34  ;;  %v4680_v25 = vmul.f32 1.442695, %v13417_v47  ;;  %8753 = vmatmul.mubr.f32.gmra.mxu1 %v4962_v50  ;;  %vm4590_vm0 = vcmp.gt.f32.partialorder %v13417_v47, 0.0 }
 0x4cb   : > { %v4963_v26 = vmul.f32 1.050701, %v4900_v14  ;;  %v4389_v46 = vpop.f32.mrf.mxu0  ;;  %8755 = vmatprep.mubr.msk.f32.mxu1 %vm10111_vm1, %v10110_v1 }
 0x4cc   : > { %v4838_v32 = vmul.f32 1.6732632, %v7193_v21  ;;  %9773 = vpow2.f32 %v4680_v25  ;;  %v13431_v8 = vadd.f32 %v13428_v57, %v4389_v46 }
 0x4cd   : > { %v9768_v2 = vpop.eup %9767  ;;  %v8554_v35 = vpop.f32.mrf.mxu0 }
 0x4ce   : > { %v4901_v38 = vsel %vm4586_vm12, %v13381_v23, %v4838_v32  ;;  %v7194_v17 = vadd.f32 -1.0, %v9768_v2  ;;  %v4682_v58 = vmul.f32 1.442695, %v13431_v8  ;;  %8756 = vmatmul.mubr.f32.gmra.mxu1 %v4963_v26  ;;  %vm4591_vm3 = vcmp.gt.f32.partialorder %v13431_v8, 0.0 }
 0x4cf   : > { %v4964_v59 = vmul.f32 1.050701, %v4901_v38  ;;  %v4394_v36 = vpop.f32.mrf.mxu0  ;;  %8758 = vmatprep.mubr.msk.f32.mxu1 %vm10111_vm1, %v10110_v1 }
 0x4d0   : > { %v4839_v41 = vmul.f32 1.6732632, %v7194_v17  ;;  %9775 = vpow2.f32 %v4682_v58  ;;  %v13442_v12 = vadd.f32 %v13428_v57, %v4394_v36 }
 0x4d1   : > { %v9770_v13 = vpop.eup %9769  ;;  %v8557_v42 = vpop.f32.mrf.mxu0 }
 0x4d2   : > { %v4902_v44 = vsel %vm4587_vm13, %v13390_v31, %v4839_v41  ;;  %v7195_v37 = vadd.f32 -1.0, %v9770_v13  ;;  %v4684_v48 = vmul.f32 1.442695, %v13442_v12  ;;  %8759 = vmatmul.mubr.f32.gmra.mxu1 %v4964_v59  ;;  %vm4592_vm4 = vcmp.gt.f32.partialorder %v13442_v12, 0.0 }
 0x4d3   : > { %v4965_v23 = vmul.f32 1.050701, %v4902_v44  ;;  %v4399_v43 = vpop.f32.mrf.mxu0  ;;  %8761 = vmatprep.mubr.msk.f32.mxu1 %vm10111_vm1, %v10110_v1 }
 0x4d4   : > { %v4840_v19 = vmul.f32 1.6732632, %v7195_v37  ;;  %9777 = vpow2.f32 %v4684_v48  ;;  %v13450_v62 = vadd.f32 %v13428_v57, %v4399_v43 }
 0x4d5   : > { %v9772_v3 = vpop.eup %9771  ;;  %v8560_v40 = vpop.f32.mrf.mxu0 }
 0x4d6   : > { %v4903_v7 = vsel %vm4588_vm14, %v13398_v22, %v4840_v19  ;;  %v7196_v9 = vadd.f32 -1.0, %v9772_v3  ;;  %v4686_v53 = vmul.f32 1.442695, %v13450_v62  ;;  %8762 = vmatmul.mubr.f32.gmra.mxu1 %v4965_v23  ;;  %vm4593_vm2 = vcmp.gt.f32.partialorder %v13450_v62, 0.0 }
 0x4d7   : > { %v4966_v31 = vmul.f32 1.050701, %v4903_v7  ;;  %v4404_v4 = vpop.f32.mrf.mxu0  ;;  %8764 = vmatprep.mubr.msk.f32.mxu1 %vm10111_vm1, %v10110_v1 }
 0x4d8   : > { %v4841_v29 = vmul.f32 1.6732632, %v7196_v9  ;;  %9779 = vpow2.f32 %v4686_v53  ;;  %v13458_v52 = vadd.f32 %v13428_v57, %v4404_v4 }
 0x4d9   : > { %v9774_v56 = vpop.eup %9773  ;;  %v8563_v16 = vpop.f32.mrf.mxu0 }
 0x4da   : > { %v4904_v63 = vsel %vm4589_vm15, %v13406_v11, %v4841_v29  ;;  %v7197_v6 = vadd.f32 -1.0, %v9774_v56  ;;  %v4688_v15 = vmul.f32 1.442695, %v13458_v52  ;;  %8765 = vmatmul.mubr.f32.gmra.mxu1 %v4966_v31  ;;  %vm4594_vm5 = vcmp.gt.f32.partialorder %v13458_v52, 0.0 }
 0x4db   : > { %v4967_v22 = vmul.f32 1.050701, %v4904_v63  ;;  %v4409_v5 = vpop.f32.mrf.mxu0  ;;  %8767 = vmatprep.mubr.msk.f32.mxu1 %vm10111_vm1, %v10110_v1 }
 0x4dc   : > { %v4842_v30 = vmul.f32 1.6732632, %v7197_v6  ;;  %9781 = vpow2.f32 %v4688_v15  ;;  %v13466_v0 = vadd.f32 %v13428_v57, %v4409_v5 }
 0x4dd   : > { %v9776_v45 = vpop.eup %9775  ;;  %v8566_v61 = vpop.f32.mrf.mxu0 }
 0x4de   : > { %v4905_v49 = vsel %vm4590_vm0, %v13417_v47, %v4842_v30  ;;  %v7198_v10 = vadd.f32 -1.0, %v9776_v45  ;;  %v4690_v24 = vmul.f32 1.442695, %v13466_v0  ;;  %8768 = vmatmul.mubr.f32.gmra.mxu1 %v4967_v22  ;;  %vm4595_vm6 = vcmp.gt.f32.partialorder %v13466_v0, 0.0 }
 0x4df   : > { %v4968_v11 = vmul.f32 1.050701, %v4905_v49  ;;  %v4414_v20 = vpop.f32.mrf.mxu0  ;;  %8770 = vmatprep.mubr.msk.f32.mxu1 %vm10111_vm1, %v10110_v1 }
 0x4e0   : > { %v4843_v60 = vmul.f32 1.6732632, %v7198_v10  ;;  %9783 = vpow2.f32 %v4690_v24  ;;  %v13474_v33 = vadd.f32 %v13428_v57, %v4414_v20 }
 0x4e1   : > { %v9778_v51 = vpop.eup %9777  ;;  %v8569_v28 = vpop.f32.mrf.mxu0 }
 0x4e2   : > { %v4906_v50 = vsel %vm4591_vm3, %v13431_v8, %v4843_v60  ;;  %v7199_v18 = vadd.f32 -1.0, %v9778_v51  ;;  %v4692_v39 = vmul.f32 1.442695, %v13474_v33  ;;  %8771 = vmatmul.mubr.f32.gmra.mxu1 %v4968_v11  ;;  %vm4596_vm7 = vcmp.gt.f32.partialorder %v13474_v33, 0.0 }
 0x4e3   : > { %v4969_v27 = vmul.f32 1.050701, %v4906_v50  ;;  %v4419_v47 = vpop.f32.mrf.mxu0  ;;  %8773 = vmatprep.mubr.msk.f32.mxu1 %vm10111_vm1, %v10110_v1 }
 0x4e4   : > { %v4844_v34 = vmul.f32 1.6732632, %v7199_v18  ;;  %9785 = vpow2.f32 %v4692_v39  ;;  %v13482_v54 = vadd.f32 %v13428_v57, %v4419_v47 }
 0x4e5   : > { %v9780_v14 = vpop.eup %9779  ;;  %v8572_v21 = vpop.f32.mrf.mxu0 }
 0x4e6   : > { %v4907_v25 = vsel %vm4592_vm4, %v13442_v12, %v4844_v34  ;;  %v7200_v26 = vadd.f32 -1.0, %v9780_v14  ;;  %v4694_v46 = vmul.f32 1.442695, %v13482_v54  ;;  %8774 = vmatmul.mubr.f32.gmra.mxu1 %v4969_v27  ;;  %vm4597_vm8 = vcmp.gt.f32.partialorder %v13482_v54, 0.0 }
 0x4e7   : > { %v4970_v32 = vmul.f32 1.050701, %v4907_v25  ;;  %v4424_v8 = vpop.f32.mrf.mxu0  ;;  %8776 = vmatprep.mubr.msk.f32.mxu1 %vm10111_vm1, %v10110_v1 }
 0x4e8   : > { %v4845_v2 = vmul.f32 1.6732632, %v7200_v26  ;;  %9787 = vpow2.f32 %v4694_v46  ;;  %v13490_v35 = vadd.f32 %v13428_v57, %v4424_v8 }
 0x4e9   : > { %v9782_v38 = vpop.eup %9781  ;;  %v8575_v17 = vpop.f32.mrf.mxu0 }
 0x4ea   : > { %v4908_v58 = vsel %vm4593_vm2, %v13450_v62, %v4845_v2  ;;  %v7201_v59 = vadd.f32 -1.0, %v9782_v38  ;;  %v4696_v36 = vmul.f32 1.442695, %v13490_v35  ;;  %8777 = vmatmul.mubr.f32.gmra.mxu1 %v4970_v32  ;;  %vm4598_vm9 = vcmp.gt.f32.partialorder %v13490_v35, 0.0 }
 0x4eb   : > { %v4971_v55 = vmul.f32 1.050701, %v4908_v58  ;;  %v4429_v41 = vpop.f32.mrf.mxu0  ;;  %8779 = vmatprep.mubr.msk.f32.mxu1 %vm10111_vm1, %v10110_v1 }
 0x4ec   : > { %v4846_v12 = vmul.f32 1.6732632, %v7201_v59  ;;  %9789 = vpow2.f32 %v4696_v36  ;;  %v13498_v13 = vadd.f32 %v13428_v57, %v4429_v41 }
 0x4ed   : > { %v9784_v42 = vpop.eup %9783  ;;  %v8578_v44 = vpop.f32.mrf.mxu0 }
 0x4ee   : > { %v4909_v37 = vsel %vm4594_vm5, %v13458_v52, %v4846_v12  ;;  %v7202_v48 = vadd.f32 -1.0, %v9784_v42  ;;  %v4698_v23 = vmul.f32 1.442695, %v13498_v13  ;;  %8780 = vmatmul.mubr.f32.gmra.mxu1 %v4971_v55  ;;  %vm4599_vm10 = vcmp.gt.f32.partialorder %v13498_v13, 0.0 }
 0x4ef   : > { %v4972_v43 = vmul.f32 1.050701, %v4909_v37  ;;  %v4434_v19 = vpop.f32.mrf.mxu0  ;;  %8782 = vmatprep.mubr.msk.f32.mxu1 %vm10111_vm1, %v10110_v1 }
 0x4f0   : > { %v4847_v62 = vmul.f32 1.6732632, %v7202_v48  ;;  %9791 = vpow2.f32 %v4698_v23  ;;  %v13506_v3 = vadd.f32 %v13428_v57, %v4434_v19 }
 0x4f1   : > { %v9786_v40 = vpop.eup %9785  ;;  %v8581_v7 = vpop.f32.mrf.mxu0 }
 0x4f2   : > { %v4910_v9 = vsel %vm4595_vm6, %v13466_v0, %v4847_v62  ;;  %v7203_v53 = vadd.f32 -1.0, %v9786_v40  ;;  %v4700_v31 = vmul.f32 1.442695, %v13506_v3  ;;  %8783 = vmatmul.mubr.f32.gmra.mxu1 %v4972_v43  ;;  %vm4600_vm11 = vcmp.gt.f32.partialorder %v13506_v3, 0.0 }
 0x4f3   : > { %v4973_v4 = vmul.f32 1.050701, %v4910_v9  ;;  %v4439_v29 = vpop.f32.mrf.mxu0  ;;  %8785 = vmatprep.mubr.msk.f32.mxu1 %vm10111_vm1, %v10110_v1 }
 0x4f4   : > { %v4848_v52 = vmul.f32 1.6732632, %v7203_v53  ;;  %9793 = vpow2.f32 %v4700_v31  ;;  %v13514_v56 = vadd.f32 %v13428_v57, %v4439_v29 }
 0x4f5   : > { %v9788_v16 = vpop.eup %9787  ;;  %v8584_v63 = vpop.f32.mrf.mxu0 }
 0x4f6   : > { %v4911_v6 = vsel %vm4596_vm7, %v13474_v33, %v4848_v52  ;;  %v7204_v15 = vadd.f32 -1.0, %v9788_v16  ;;  %v4702_v22 = vmul.f32 1.442695, %v13514_v56  ;;  %8786 = vmatmul.mubr.f32.gmra.mxu1 %v4973_v4  ;;  %vm4601_vm12 = vcmp.gt.f32.partialorder %v13514_v56, 0.0 }
 0x4f7   : > { %v4974_v5 = vmul.f32 1.050701, %v4911_v6  ;;  %v4444_v30 = vpop.f32.mrf.mxu0  ;;  %8788 = vmatprep.mubr.msk.f32.mxu1 %vm10111_vm1, %v10110_v1 }
 0x4f8   : > { %v4849_v0 = vmul.f32 1.6732632, %v7204_v15  ;;  %9795 = vpow2.f32 %v4702_v22  ;;  %v13522_v45 = vadd.f32 %v13428_v57, %v4444_v30 }
 0x4f9   : > { %v9790_v61 = vpop.eup %9789  ;;  %v8587_v49 = vpop.f32.mrf.mxu0 }
 0x4fa   : > { %v4912_v10 = vsel %vm4597_vm8, %v13482_v54, %v4849_v0  ;;  %v7205_v24 = vadd.f32 -1.0, %v9790_v61  ;;  %v4704_v11 = vmul.f32 1.442695, %v13522_v45  ;;  %8789 = vmatmul.mubr.f32.gmra.mxu1 %v4974_v5  ;;  %vm4602_vm13 = vcmp.gt.f32.partialorder %v13522_v45, 0.0 }
 0x4fb   : > { %v4975_v20 = vmul.f32 1.050701, %v4912_v10  ;;  %v4449_v60 = vpop.f32.mrf.mxu0  ;;  %8791 = vmatprep.mubr.msk.f32.mxu1 %vm10111_vm1, %v10110_v1 }
 0x4fc   : > { %v4850_v33 = vmul.f32 1.6732632, %v7205_v24  ;;  %9797 = vpow2.f32 %v4704_v11  ;;  %v13530_v51 = vadd.f32 %v13428_v57, %v4449_v60 }
 0x4fd   : > { %v9792_v28 = vpop.eup %9791  ;;  %v8590_v50 = vpop.f32.mrf.mxu0 }
 0x4fe   : > { %v4913_v18 = vsel %vm4598_vm9, %v13490_v35, %v4850_v33  ;;  %v7206_v39 = vadd.f32 -1.0, %v9792_v28  ;;  %v4706_v27 = vmul.f32 1.442695, %v13530_v51  ;;  %8792 = vmatmul.mubr.f32.gmra.mxu1 %v4975_v20  ;;  %vm4603_vm14 = vcmp.gt.f32.partialorder %v13530_v51, 0.0 }
 0x4ff   : > { %v4976_v47 = vmul.f32 1.050701, %v4913_v18  ;;  %v4454_v34 = vpop.f32.mrf.mxu0  ;;  %8794 = vmatprep.mubr.msk.f32.mxu1 %vm10111_vm1, %v10110_v1 }
 0x500   : > { %v4851_v54 = vmul.f32 1.6732632, %v7206_v39  ;;  %9799 = vpow2.f32 %v4706_v27  ;;  %v13538_v14 = vadd.f32 %v13428_v57, %v4454_v34 }
 0x501   : > { %v9794_v21 = vpop.eup %9793  ;;  %v8593_v25 = vpop.f32.mrf.mxu0 }
 0x502   : > { %v4914_v26 = vsel %vm4599_vm10, %v13498_v13, %v4851_v54  ;;  %v7207_v46 = vadd.f32 -1.0, %v9794_v21  ;;  %v4708_v32 = vmul.f32 1.442695, %v13538_v14  ;;  %8795 = vmatmul.mubr.f32.gmra.mxu1 %v4976_v47  ;;  %vm4604_vm15 = vcmp.gt.f32.partialorder %v13538_v14, 0.0 }
 0x503   : > { %v4977_v8 = vmul.f32 1.050701, %v4914_v26  ;;  %v4459_v2 = vpop.f32.mrf.mxu0  ;;  %8797 = vmatprep.mubr.msk.f32.mxu1 %vm10111_vm1, %v10110_v1 }
 0x504   : > { %v4852_v35 = vmul.f32 1.6732632, %v7207_v46  ;;  %9801 = vpow2.f32 %v4708_v32  ;;  %v13546_v38 = vadd.f32 %v13428_v57, %v4459_v2 }
 0x505   : > { %v9796_v17 = vpop.eup %9795  ;;  %v8596_v58 = vpop.f32.mrf.mxu0 }
 0x506   : > { %v4915_v59 = vsel %vm4600_vm11, %v13506_v3, %v4852_v35  ;;  %v7208_v36 = vadd.f32 -1.0, %v9796_v17  ;;  %v4710_v55 = vmul.f32 1.442695, %v13546_v38  ;;  %8798 = vmatmul.mubr.f32.gmra.mxu1 %v4977_v8  ;;  %vm4605_vm0 = vcmp.gt.f32.partialorder %v13546_v38, 0.0 }
 0x507   : > { %v4978_v41 = vmul.f32 1.050701, %v4915_v59  ;;  %v4464_v12 = vpop.f32.mrf.mxu0  ;;  %8800 = vmatprep.mubr.msk.f32.mxu1 %vm10111_vm1, %v10110_v1 }
 0x508   : > { %v4853_v13 = vmul.f32 1.6732632, %v7208_v36  ;;  %9803 = vpow2.f32 %v4710_v55  ;;  %v13554_v42 = vadd.f32 %v13428_v57, %v4464_v12 }
 0x509   : > { %v9798_v44 = vpop.eup %9797  ;;  %v8599_v37 = vpop.f32.mrf.mxu0 }
 0x50a   : > { %v4916_v48 = vsel %vm4601_vm12, %v13514_v56, %v4853_v13  ;;  %v7209_v23 = vadd.f32 -1.0, %v9798_v44  ;;  %v4712_v43 = vmul.f32 1.442695, %v13554_v42  ;;  %8801 = vmatmul.mubr.f32.gmra.mxu1 %v4978_v41  ;;  %vm4606_vm3 = vcmp.gt.f32.partialorder %v13554_v42, 0.0 }
 0x50b   : > { %v4979_v19 = vmul.f32 1.050701, %v4916_v48  ;;  %v4469_v62 = vpop.f32.mrf.mxu0  ;;  %8803 = vmatprep.mubr.msk.f32.mxu1 %vm10111_vm1, %v10110_v1 }
 0x50c   : > { %v4854_v3 = vmul.f32 1.6732632, %v7209_v23  ;;  %9805 = vpow2.f32 %v4712_v43  ;;  %v13562_v40 = vadd.f32 %v13428_v57, %v4469_v62 }
 0x50d   : > { %v9800_v7 = vpop.eup %9799  ;;  %v8602_v9 = vpop.f32.mrf.mxu0 }
 0x50e   : > { %v4917_v53 = vsel %vm4602_vm13, %v13522_v45, %v4854_v3  ;;  %v7210_v31 = vadd.f32 -1.0, %v9800_v7  ;;  %v4714_v4 = vmul.f32 1.442695, %v13562_v40  ;;  %8804 = vmatmul.mubr.f32.gmra.mxu1 %v4979_v19  ;;  %vm4607_vm4 = vcmp.gt.f32.partialorder %v13562_v40, 0.0 }
 0x50f   : > { %v4980_v29 = vmul.f32 1.050701, %v4917_v53  ;;  %v4474_v52 = vpop.f32.mrf.mxu0  ;;  %8806 = vmatprep.mubr.msk.f32.mxu1 %vm10111_vm1, %v10110_v1 }
 0x510   : > { %v4855_v56 = vmul.f32 1.6732632, %v7210_v31  ;;  %9807 = vpow2.f32 %v4714_v4  ;;  %v13570_v16 = vadd.f32 %v13428_v57, %v4474_v52 }
 0x511   : > { %v9802_v63 = vpop.eup %9801  ;;  %v8605_v6 = vpop.f32.mrf.mxu0 }
 0x512   : > { %v4918_v15 = vsel %vm4603_vm14, %v13530_v51, %v4855_v56  ;;  %v7211_v22 = vadd.f32 -1.0, %v9802_v63  ;;  %v4716_v5 = vmul.f32 1.442695, %v13570_v16  ;;  %8807 = vmatmul.mubr.f32.gmra.mxu1 %v4980_v29  ;;  %vm4608_vm2 = vcmp.gt.f32.partialorder %v13570_v16, 0.0 }
 0x513   : > { %v4981_v30 = vmul.f32 1.050701, %v4918_v15  ;;  %v4479_v0 = vpop.f32.mrf.mxu0  ;;  %8809 = vmatprep.mubr.msk.f32.mxu1 %vm10111_vm1, %v10110_v1 }
 0x514   : > { %v4856_v45 = vmul.f32 1.6732632, %v7211_v22  ;;  %9809 = vpow2.f32 %v4716_v5  ;;  %v13578_v61 = vadd.f32 %v13428_v57, %v4479_v0 }
 0x515   : > { %v9804_v49 = vpop.eup %9803  ;;  %v8608_v10 = vpop.f32.mrf.mxu0 }
 0x516   : > { %v4919_v24 = vsel %vm4604_vm15, %v13538_v14, %v4856_v45  ;;  %v7212_v11 = vadd.f32 -1.0, %v9804_v49  ;;  %v4718_v20 = vmul.f32 1.442695, %v13578_v61  ;;  %8810 = vmatmul.mubr.f32.gmra.mxu1 %v4981_v30  ;;  %vm4609_vm5 = vcmp.gt.f32.partialorder %v13578_v61, 0.0  ;;  %v13641_v10 = vld [vmem:[%s14594_s12] ss:$0 sm:$0xff] }
 0x517   : > { %v4982_v60 = vmul.f32 1.050701, %v4919_v24  ;;  %v4484_v33 = vpop.f32.mrf.mxu0  ;;  %8812 = vmatprep.mubr.msk.f32.mxu1 %vm10111_vm1, %v10110_v1 }
 0x518   : > { %v4857_v51 = vmul.f32 1.6732632, %v7212_v11  ;;  %9811 = vpow2.f32 %v4718_v20  ;;  %v13586_v28 = vadd.f32 %v13428_v57, %v4484_v33 }
 0x519   : > { %v9806_v50 = vpop.eup %9805  ;;  %v8611_v18 = vpop.f32.mrf.mxu0 }
 0x51a   : > { %v4920_v39 = vsel %vm4605_vm0, %v13546_v38, %v4857_v51  ;;  %v7213_v27 = vadd.f32 -1.0, %v9806_v50  ;;  %v4720_v47 = vmul.f32 1.442695, %v13586_v28  ;;  %8813 = vmatmul.mubr.f32.gmra.mxu1 %v4982_v60  ;;  %vm4610_vm6 = vcmp.gt.f32.partialorder %v13586_v28, 0.0 }
 0x51b   : > { %v4983_v34 = vmul.f32 1.050701, %v4920_v39  ;;  %v4489_v54 = vpop.f32.mrf.mxu0  ;;  %8815 = vmatprep.mubr.msk.f32.mxu1 %vm10111_vm1, %v10110_v1 }
 0x51c   : > { %v4858_v14 = vmul.f32 1.6732632, %v7213_v27  ;;  %9813 = vpow2.f32 %v4720_v47  ;;  %v13594_v21 = vadd.f32 %v13428_v57, %v4489_v54 }
 0x51d   : > { %v9808_v25 = vpop.eup %9807  ;;  %v8614_v26 = vpop.f32.mrf.mxu0 }
 0x51e   : > { %v4921_v46 = vsel %vm4606_vm3, %v13554_v42, %v4858_v14  ;;  %v7214_v32 = vadd.f32 -1.0, %v9808_v25  ;;  %v4722_v8 = vmul.f32 1.442695, %v13594_v21  ;;  %8816 = vmatmul.mubr.f32.gmra.mxu1 %v4983_v34  ;;  %vm4611_vm7 = vcmp.gt.f32.partialorder %v13594_v21, 0.0 }
 0x51f   : > { %v4984_v2 = vmul.f32 1.050701, %v4921_v46  ;;  %v4494_v35 = vpop.f32.mrf.mxu0  ;;  %8818 = vmatprep.mubr.msk.f32.mxu1 %vm10111_vm1, %v10110_v1 }
 0x520   : > { %v4859_v38 = vmul.f32 1.6732632, %v7214_v32  ;;  %9815 = vpow2.f32 %v4722_v8  ;;  %v13602_v17 = vadd.f32 %v13428_v57, %v4494_v35 }
 0x521   : > { %v9810_v58 = vpop.eup %9809  ;;  %v8617_v59 = vpop.f32.mrf.mxu0 }
 0x522   : > { %v4922_v36 = vsel %vm4607_vm4, %v13562_v40, %v4859_v38  ;;  %v7215_v55 = vadd.f32 -1.0, %v9810_v58  ;;  %v4724_v41 = vmul.f32 1.442695, %v13602_v17  ;;  %8819 = vmatmul.mubr.f32.gmra.mxu1 %v4984_v2  ;;  %vm4612_vm8 = vcmp.gt.f32.partialorder %v13602_v17, 0.0 }
 0x523   : > { %v4985_v12 = vmul.f32 1.050701, %v4922_v36  ;;  %v4499_v13 = vpop.f32.mrf.mxu0  ;;  %8821 = vmatprep.mubr.msk.f32.mxu1 %vm10111_vm1, %v10110_v1 }
 0x524   : > { %v4860_v42 = vmul.f32 1.6732632, %v7215_v55  ;;  %9817 = vpow2.f32 %v4724_v41  ;;  %v13610_v44 = vadd.f32 %v13428_v57, %v4499_v13 }
 0x525   : > { %v9812_v37 = vpop.eup %9811  ;;  %v8620_v48 = vpop.f32.mrf.mxu0 }
 0x526   : > { %v4923_v23 = vsel %vm4608_vm2, %v13570_v16, %v4860_v42  ;;  %v7216_v43 = vadd.f32 -1.0, %v9812_v37  ;;  %v4726_v19 = vmul.f32 1.442695, %v13610_v44  ;;  %8822 = vmatmul.mubr.f32.gmra.mxu1 %v4985_v12  ;;  %vm4613_vm9 = vcmp.gt.f32.partialorder %v13610_v44, 0.0 }
 0x527   : > { %v4986_v62 = vmul.f32 1.050701, %v4923_v23  ;;  %v4504_v3 = vpop.f32.mrf.mxu0  ;;  %8824 = vmatprep.mubr.msk.f32.mxu1 %vm10111_vm1, %v10110_v1 }
 0x528   : > { %v4861_v40 = vmul.f32 1.6732632, %v7216_v43  ;;  %9819 = vpow2.f32 %v4726_v19  ;;  %v13618_v7 = vadd.f32 %v13428_v57, %v4504_v3 }
 0x529   : > { %v9814_v9 = vpop.eup %9813  ;;  %v8623_v53 = vpop.f32.mrf.mxu0 }
 0x52a   : > { %v4924_v31 = vsel %vm4609_vm5, %v13578_v61, %v4861_v40  ;;  %v7217_v4 = vadd.f32 -1.0, %v9814_v9  ;;  %v4728_v29 = vmul.f32 1.442695, %v13618_v7  ;;  %8825 = vmatmul.mubr.f32.gmra.mxu1 %v4986_v62  ;;  %vm4614_vm10 = vcmp.gt.f32.partialorder %v13618_v7, 0.0 }
 0x52b   : > { %v4987_v52 = vmul.f32 1.050701, %v4924_v31  ;;  %v4509_v56 = vpop.f32.mrf.mxu0  ;;  %8827 = vmatprep.mubr.msk.f32.mxu1 %vm10111_vm1, %v10110_v1 }
 0x52c   : > { %v4862_v16 = vmul.f32 1.6732632, %v7217_v4  ;;  %9821 = vpow2.f32 %v4728_v29  ;;  %v13626_v63 = vadd.f32 %v13428_v57, %v4509_v56 }
 0x52d   : > { %v9816_v6 = vpop.eup %9815  ;;  %v8626_v15 = vpop.f32.mrf.mxu0 }
 0x52e   : > { %v4925_v22 = vsel %vm4610_vm6, %v13586_v28, %v4862_v16  ;;  %v7218_v5 = vadd.f32 -1.0, %v9816_v6  ;;  %v4730_v30 = vmul.f32 1.442695, %v13626_v63  ;;  %8828 = vmatmul.mubr.f32.gmra.mxu1 %v4987_v52  ;;  %vm4615_vm11 = vcmp.gt.f32.partialorder %v13626_v63, 0.0 }
 0x52f   : > { %v4988_v0 = vmul.f32 1.050701, %v4925_v22  ;;  %v4514_v45 = vpop.f32.mrf.mxu0  ;;  %8830 = vmatprep.mubr.msk.f32.mxu1 %vm10111_vm1, %v10110_v1 }
 0x530   : > { %v4863_v61 = vmul.f32 1.6732632, %v7218_v5  ;;  %9823 = vpow2.f32 %v4730_v30  ;;  %v13634_v49 = vadd.f32 %v13428_v57, %v4514_v45 }
 0x531   : > { %v9818_v24 = vpop.eup %9817  ;;  %v8629_v11 = vpop.f32.mrf.mxu0 }
 0x532   : > { %v4926_v60 = vsel %vm4611_vm7, %v13594_v21, %v4863_v61  ;;  %v7219_v33 = vadd.f32 -1.0, %v9818_v24  ;;  %v4732_v51 = vmul.f32 1.442695, %v13634_v49  ;;  %8831 = vmatmul.mubr.f32.gmra.mxu1 %v4988_v0  ;;  %vm4616_vm12 = vcmp.gt.f32.partialorder %v13634_v49, 0.0 }
 0x533   : > { %v5093_v20 = vpop.f32.mrf.mxu1  ;;  %v4989_v28 = vmul.f32 1.050701, %v4926_v60  ;;  %v4519_v50 = vpop.f32.mrf.mxu0  ;;  %8833 = vmatprep.mubr.msk.f32.mxu1 %vm10111_vm1, %v10110_v1 }
 0x534   : > { %v13647_v18 = vadd.f32 %v13641_v10, %v5093_v20  ;;  %v4864_v27 = vmul.f32 1.6732632, %v7219_v33  ;;  %9825 = vpow2.f32 %v4732_v51  ;;  %v13650_v47 = vadd.f32 %v13428_v57, %v4519_v50 }
 0x535   : > { %v8691_v39 = vpop.f32.mrf.mxu1  ;;  %v9820_v34 = vpop.eup %9819 }
 0x536   : > { %v8632_v54 = vpop.f32.mrf.mxu0  ;;  %v5470_v14 = vmul.f32 1.442695, %v13647_v18  ;;  %v4927_v25 = vsel %vm4612_vm8, %v13602_v17, %v4864_v27  ;;  %v7220_v26 = vadd.f32 -1.0, %v9820_v34  ;;  %v4734_v46 = vmul.f32 1.442695, %v13650_v47  ;;  %8834 = vmatmul.mubr.f32.gmra.mxu1 %v4989_v28 }
 0x537   : > { %v5098_v21 = vpop.f32.mrf.mxu1  ;;  %v4990_v32 = vmul.f32 1.050701, %v4927_v25  ;;  %8836 = vmatprep.mubr.msk.f32.mxu1 %vm10111_vm1, %v10110_v1  ;;  %vm5407_vm13 = vcmp.gt.f32.partialorder %v13647_v18, 0.0  ;;  %vm4617_vm14 = vcmp.gt.f32.partialorder %v13650_v47, 0.0 }
 0x538   : > { %9827 = vpow2.f32 %v5470_v14  ;;  %v4524_v8 = vpop.f32.mrf.mxu0  ;;  %v13659_v2 = vadd.f32 %v13641_v10, %v5098_v21  ;;  %v4865_v38 = vmul.f32 1.6732632, %v7220_v26 }
 0x539   : > { %v8694_v35 = vpop.f32.mrf.mxu1  ;;  %9829 = vpow2.f32 %v4734_v46  ;;  %v13662_v58 = vadd.f32 %v13428_v57, %v4524_v8  ;;  %v9822_v17 = vpop.eup %9821 }
 0x53a   : > { %v8635_v59 = vpop.f32.mrf.mxu0  ;;  %v5472_v36 = vmul.f32 1.442695, %v13659_v2  ;;  %v4928_v41 = vsel %vm4613_vm9, %v13610_v44, %v4865_v38  ;;  %v7221_v12 = vadd.f32 -1.0, %v9822_v17  ;;  %8837 = vmatmul.mubr.f32.gmra.mxu1 %v4990_v32  ;;  %vm5408_vm15 = vcmp.gt.f32.partialorder %v13659_v2, 0.0 }
 0x53b   : > { %v5103_v55 = vpop.f32.mrf.mxu1  ;;  %v4736_v13 = vmul.f32 1.442695, %v13662_v58  ;;  %v4991_v42 = vmul.f32 1.050701, %v4928_v41  ;;  %8839 = vmatprep.mubr.msk.f32.mxu1 %vm10111_vm1, %v10110_v1  ;;  %vm4618_vm0 = vcmp.gt.f32.partialorder %v13662_v58, 0.0 }
 0x53c   : > { %9831 = vpow2.f32 %v5472_v36  ;;  %v4529_v37 = vpop.f32.mrf.mxu0  ;;  %v13671_v48 = vadd.f32 %v13641_v10, %v5103_v55  ;;  %v4866_v43 = vmul.f32 1.6732632, %v7221_v12 }
 0x53d   : > { %v8697_v23 = vpop.f32.mrf.mxu1  ;;  %9833 = vpow2.f32 %v4736_v13  ;;  %v13674_v19 = vadd.f32 %v13428_v57, %v4529_v37  ;;  %v9824_v44 = vpop.eup %9823 }
 0x53e   : > { %v8638_v62 = vpop.f32.mrf.mxu0  ;;  %v5474_v3 = vmul.f32 1.442695, %v13671_v48  ;;  %v4929_v9 = vsel %vm4614_vm10, %v13618_v7, %v4866_v43  ;;  %v7222_v53 = vadd.f32 -1.0, %v9824_v44  ;;  %8840 = vmatmul.mubr.f32.gmra.mxu1 %v4991_v42  ;;  %vm5409_vm3 = vcmp.gt.f32.partialorder %v13671_v48, 0.0 }
 0x53f   : > { %v5108_v40 = vpop.f32.mrf.mxu1  ;;  %v4738_v31 = vmul.f32 1.442695, %v13674_v19  ;;  %v4992_v4 = vmul.f32 1.050701, %v4929_v9  ;;  %8842 = vmatprep.mubr.msk.f32.mxu1 %vm10111_vm1, %v10110_v1  ;;  %vm4619_vm4 = vcmp.gt.f32.partialorder %v13674_v19, 0.0 }
 0x540   : > { %9835 = vpow2.f32 %v5474_v3  ;;  %v4534_v29 = vpop.f32.mrf.mxu0  ;;  %v13683_v52 = vadd.f32 %v13641_v10, %v5108_v40  ;;  %v4867_v16 = vmul.f32 1.6732632, %v7222_v53 }
 0x541   : > { %v8700_v56 = vpop.f32.mrf.mxu1  ;;  %9837 = vpow2.f32 %v4738_v31  ;;  %v13686_v6 = vadd.f32 %v13428_v57, %v4534_v29  ;;  %v9826_v7 = vpop.eup %9825 }
 0x542   : > { %v8641_v15 = vpop.f32.mrf.mxu0  ;;  %v5476_v22 = vmul.f32 1.442695, %v13683_v52  ;;  %v4930_v30 = vsel %vm4615_vm11, %v13626_v63, %v4867_v16  ;;  %v7223_v0 = vadd.f32 -1.0, %v9826_v7  ;;  %8843 = vmatmul.mubr.f32.gmra.mxu1 %v4992_v4  ;;  %vm5410_vm2 = vcmp.gt.f32.partialorder %v13683_v52, 0.0 }
 0x543   : > { %v5113_v5 = vpop.f32.mrf.mxu1  ;;  %v4740_v45 = vmul.f32 1.442695, %v13686_v6  ;;  %v4993_v61 = vmul.f32 1.050701, %v4930_v30  ;;  %8845 = vmatprep.mubr.msk.f32.mxu1 %vm10111_vm1, %v10110_v1  ;;  %vm4620_vm5 = vcmp.gt.f32.partialorder %v13686_v6, 0.0 }
 0x544   : > { %9839 = vpow2.f32 %v5476_v22  ;;  %v4539_v24 = vpop.f32.mrf.mxu0  ;;  %v13695_v11 = vadd.f32 %v13641_v10, %v5113_v5  ;;  %v4868_v33 = vmul.f32 1.6732632, %v7223_v0 }
 0x545   : > { %v8703_v20 = vpop.f32.mrf.mxu1  ;;  %v9828_v60 = vpop.eup %9827  ;;  %9841 = vpow2.f32 %v4740_v45  ;;  %v13698_v51 = vadd.f32 %v13428_v57, %v4539_v24 }
 0x546   : > { %v9830_v63 = vpop.eup %9829  ;;  %v7234_v28 = vadd.f32 -1.0, %v9828_v60  ;;  %v8644_v50 = vpop.f32.mrf.mxu0  ;;  %v5478_v39 = vmul.f32 1.442695, %v13695_v11  ;;  %v4931_v27 = vsel %vm4616_vm12, %v13634_v49, %v4868_v33  ;;  %8846 = vmatmul.mubr.f32.gmra.mxu1 %v4993_v61  ;;  %vm5411_vm6 = vcmp.gt.f32.partialorder %v13695_v11, 0.0 }
 0x547   : > { %v7224_v34 = vadd.f32 -1.0, %v9830_v63  ;;  %v4742_v54 = vmul.f32 1.442695, %v13698_v51  ;;  %v5118_v14 = vpop.f32.mrf.mxu1  ;;  %v4994_v21 = vmul.f32 1.050701, %v4931_v27  ;;  %8848 = vmatprep.mubr.msk.f32.mxu1 %vm10111_vm1, %v10110_v1  ;;  %vm4621_vm7 = vcmp.gt.f32.partialorder %v13698_v51, 0.0 }
 0x548   : > { %v5659_v25 = vmul.f32 1.6732632, %v7234_v28  ;;  %9843 = vpow2.f32 %v5478_v39  ;;  %v4544_v26 = vpop.f32.mrf.mxu0  ;;  %v13707_v46 = vadd.f32 %v13641_v10, %v5118_v14 }
 0x549   : > { %v9832_v32 = vpop.eup %9831  ;;  %v4869_v8 = vmul.f32 1.6732632, %v7224_v34  ;;  %9845 = vpow2.f32 %v4742_v54  ;;  %v13711_v35 = vadd.f32 %v13428_v57, %v4544_v26  ;;  %v8706_v49 = vpop.f32.mrf.mxu1 }
 0x54a   : > { %v9834_v38 = vpop.eup %9833  ;;  %v5722_v17 = vsel %vm5407_vm13, %v13647_v18, %v5659_v25  ;;  %v7235_v59 = vadd.f32 -1.0, %v9832_v32  ;;  %v8647_v36 = vpop.f32.mrf.mxu0  ;;  %v5480_v55 = vmul.f32 1.442695, %v13707_v46  ;;  %8849 = vmatmul.mubr.f32.gmra.mxu1 %v4994_v21  ;;  %vm5412_vm8 = vcmp.gt.f32.partialorder %v13707_v46, 0.0 }
 0x54b   : > { %v4932_v41 = vsel %vm4617_vm14, %v13650_v47, %v4869_v8  ;;  %v5785_v12 = vmul.f32 1.050701, %v5722_v17  ;;  %v7225_v13 = vadd.f32 -1.0, %v9834_v38  ;;  %v4744_v23 = vmul.f32 1.442695, %v13711_v35  ;;  %8851 = vmatprep.mubr.msk.f32.mxu1 %vm10111_vm1, %v10110_v1 }
 0x54c   : > { %v4995_v42 = vmul.f32 1.050701, %v4932_v41  ;;  %v5660_v37 = vmul.f32 1.6732632, %v7235_v59  ;;  %9847 = vpow2.f32 %v5480_v55  ;;  %v4549_v43 = vpop.f32.mrf.mxu0  ;;  %vm4622_vm9 = vcmp.gt.f32.partialorder %v13711_v35, 0.0 }
 0x54d   : > { %v9836_v44 = vpop.eup %9835  ;;  %v4870_v62 = vmul.f32 1.6732632, %v7225_v13  ;;  %v13722_v18 = vadd.f32 %v13428_v57, %v4549_v43  ;;  %8911 = vmatmul.mubr.f32.vlgmr.msra.gmra.mxu0 %v5785_v12  ;;  %9849 = vpow2.f32 %v4744_v23  ;;  %v5123_v53 = vpop.f32.mrf.mxu1 }
 0x54e   : > { %v9838_v47 = vpop.eup %9837  ;;  %v5723_v3 = vsel %vm5408_vm15, %v13659_v2, %v5660_v37  ;;  %v7236_v40 = vadd.f32 -1.0, %v9836_v44  ;;  %v8650_v9 = vpop.f32.mrf.mxu0  ;;  %8913 = vmatprep.mubr.msk.f32.mxu0 %vm10111_vm1, %v10110_v1  ;;  %v13733_v15 = vadd.f32 %v13641_v10, %v5123_v53  ;;  %8852 = vmatmul.mubr.f32.gmra.mxu1 %v4995_v42 }
 0x54f   : > { %v4933_v31 = vsel %vm4618_vm0, %v13662_v58, %v4870_v62  ;;  %v5786_v4 = vmul.f32 1.050701, %v5723_v3  ;;  %v7226_v29 = vadd.f32 -1.0, %v9838_v47  ;;  %v4746_v7 = vmul.f32 1.442695, %v13722_v18  ;;  %v8709_v22 = vpop.f32.mrf.mxu1  ;;  %8854 = vmatprep.mubr.msk.f32.mxu1 %vm10111_vm1, %v10110_v1 }
 0x550   : > { %v4996_v56 = vmul.f32 1.050701, %v4933_v31  ;;  %v5661_v16 = vmul.f32 1.6732632, %v7236_v40  ;;  %v4554_v2 = vpop.f32.mrf.mxu0  ;;  %v5482_v63 = vmul.f32 1.442695, %v13733_v15 }
 0x551   : > { %v9840_v5 = vpop.eup %9839  ;;  %v4871_v30 = vmul.f32 1.6732632, %v7226_v29  ;;  %v13737_v0 = vadd.f32 %v13428_v57, %v4554_v2  ;;  %8914 = vmatmul.mubr.f32.gmra.mxu0 %v5786_v4  ;;  %9851 = vpow2.f32 %v4746_v7  ;;  %v5128_v20 = vpop.f32.mrf.mxu1  ;;  %vm4623_vm10 = vcmp.gt.f32.partialorder %v13722_v18, 0.0 }
 0x552   : > { %v9842_v58 = vpop.eup %9841  ;;  %v5724_v45 = vsel %vm5409_vm3, %v13671_v48, %v5661_v16  ;;  %v7237_v61 = vadd.f32 -1.0, %v9840_v5  ;;  %v8653_v24 = vpop.f32.mrf.mxu0  ;;  %8916 = vmatprep.mubr.msk.f32.mxu0 %vm10111_vm1, %v10110_v1  ;;  %v13748_v39 = vadd.f32 %v13641_v10, %v5128_v20  ;;  %8855 = vmatmul.mubr.f32.gmra.mxu1 %v4996_v56  ;;  %9853 = vpow2.f32 %v5482_v63 }
 0x553   : > { %v4934_v60 = vsel %vm4619_vm4, %v13674_v19, %v4871_v30  ;;  %v5787_v57 = vmul.f32 1.050701, %v5724_v45  ;;  %v7227_v33 = vadd.f32 -1.0, %v9842_v58  ;;  %v8712_v48 = vpop.f32.mrf.mxu1  ;;  %v4748_v54 = vmul.f32 1.442695, %v13737_v0  ;;  %8857 = vmatprep.mubr.msk.f32.mxu1 %vm10111_vm1, %v10110_v1 }
 0x554   : > { %v4997_v28 = vmul.f32 1.050701, %v4934_v60  ;;  %v5662_v50 = vmul.f32 1.6732632, %v7237_v61  ;;  %v5484_v26 = vmul.f32 1.442695, %v13748_v39 }
 0x555   : > { %v9844_v27 = vpop.eup %9843  ;;  %v4872_v34 = vmul.f32 1.6732632, %v7227_v33  ;;  %v4559_v14 = vpop.f32.mrf.mxu0  ;;  %8917 = vmatmul.mubr.f32.gmra.mxu0 %v5787_v57  ;;  %9855 = vpow2.f32 %v4748_v54  ;;  %vm5413_vm11 = vcmp.gt.f32.partialorder %v13733_v15, 0.0  ;;  %vm4624_vm12 = vcmp.gt.f32.partialorder %v13737_v0, 0.0 }
 0x556   : > { %v9846_v19 = vpop.eup %9845  ;;  %v5725_v21 = vsel %vm5410_vm2, %v13683_v52, %v5662_v50  ;;  %v7238_v25 = vadd.f32 -1.0, %v9844_v27  ;;  %v5133_v32 = vpop.f32.mrf.mxu1  ;;  %8919 = vmatprep.mubr.msk.f32.mxu0 %vm10111_vm1, %v10110_v1  ;;  %9857 = vpow2.f32 %v5484_v26  ;;  %v10016_v52 = vld [vmem:[%s14592_s10] ss:$0 sm:$0xff]  ;;  %8858 = vmatmul.mubr.f32.gmra.mxu1 %v4997_v28  ;;  %vm5414_vm13 = vcmp.gt.f32.partialorder %v13748_v39, 0.0 }
 0x557   : > { %v4935_v8 = vsel %vm4620_vm5, %v13686_v6, %v4872_v34  ;;  %v5788_v49 = vmul.f32 1.050701, %v5725_v21  ;;  %v7228_v38 = vadd.f32 -1.0, %v9846_v19  ;;  %v8656_v17 = vpop.f32.mrf.mxu0  ;;  %v13763_v55 = vadd.f32 %v10016_v52, %v4559_v14  ;;  %8860 = vmatprep.mubr.msk.f32.mxu1 %vm10111_vm1, %v10110_v1 }
 0x558   : > { %v4998_v59 = vmul.f32 1.050701, %v4935_v8  ;;  %v5663_v36 = vmul.f32 1.6732632, %v7238_v25  ;;  %v8715_v41 = vpop.f32.mrf.mxu1  ;;  %v13767_v6 = vadd.f32 %v13641_v10, %v5133_v32 }
 0x559   : > { %v9848_v12 = vpop.eup %9847  ;;  %v4873_v13 = vmul.f32 1.6732632, %v7228_v38  ;;  %8920 = vmatmul.mubr.f32.gmra.mxu0 %v5788_v49  ;;  %v4750_v23 = vmul.f32 1.442695, %v13763_v55  ;;  %vm4625_vm14 = vcmp.gt.f32.partialorder %v13763_v55, 0.0 }
 0x55a   : > { %v5726_v42 = vsel %vm5411_vm6, %v13695_v11, %v5663_v36  ;;  %v7239_v37 = vadd.f32 -1.0, %v9848_v12  ;;  %v5138_v43 = vpop.f32.mrf.mxu1  ;;  %8922 = vmatprep.mubr.msk.f32.mxu0 %vm10111_vm1, %v10110_v1  ;;  %v9850_v44 = vpop.eup %9849  ;;  %v5486_v3 = vmul.f32 1.442695, %v13767_v6  ;;  %8861 = vmatmul.mubr.f32.gmra.mxu1 %v4998_v59  ;;  %vm5415_vm15 = vcmp.gt.f32.partialorder %v13767_v6, 0.0 }
 0x55b   : > { %v4936_v62 = vsel %vm4621_vm7, %v13698_v51, %v4873_v13  ;;  %v5789_v47 = vmul.f32 1.050701, %v5726_v42  ;;  %v7229_v9 = vadd.f32 -1.0, %v9850_v44  ;;  %9859 = vpow2.f32 %v4750_v23  ;;  %8863 = vmatprep.mubr.msk.f32.mxu1 %vm10111_vm1, %v10110_v1 }
 0x55c   : > { %v4999_v40 = vmul.f32 1.050701, %v4936_v62  ;;  %v5664_v53 = vmul.f32 1.6732632, %v7239_v37  ;;  %v8718_v31 = vpop.f32.mrf.mxu1  ;;  %9861 = vpow2.f32 %v5486_v3  ;;  %v13780_v11 = vadd.f32 %v13641_v10, %v5138_v43 }
 0x55d   : > { %8923 = vmatmul.mubr.f32.gmra.mxu0 %v5789_v47  ;;  %v4874_v51 = vmul.f32 1.6732632, %v7229_v9 }
 0x55e   : > { %v5727_v4 = vsel %vm5412_vm8, %v13707_v46, %v5664_v53  ;;  %v5143_v29 = vpop.f32.mrf.mxu1  ;;  %8925 = vmatprep.mubr.msk.f32.mxu0 %vm10111_vm1, %v10110_v1  ;;  %v9852_v56 = vpop.eup %9851  ;;  %v5488_v7 = vmul.f32 1.442695, %v13780_v11  ;;  %8864 = vmatmul.mubr.f32.gmra.mxu1 %v4999_v40  ;;  %vm5416_vm0 = vcmp.gt.f32.partialorder %v13780_v11, 0.0 }
 0x55f   : > { %v5790_v16 = vmul.f32 1.050701, %v5727_v4  ;;  %v13790_v2 = vadd.f32 %v13641_v10, %v5143_v29  ;;  %v4937_v22 = vsel %vm4622_vm9, %v13711_v35, %v4874_v51  ;;  %v7230_v5 = vadd.f32 -1.0, %v9852_v56  ;;  %8866 = vmatprep.mubr.msk.f32.mxu1 %vm10111_vm1, %v10110_v1  ;;  %v9854_v45 = vpop.eup %9853 }
 0x560   : > { %v8721_v30 = vpop.f32.mrf.mxu1  ;;  %v5000_v58 = vmul.f32 1.050701, %v4937_v22  ;;  %9863 = vpow2.f32 %v5488_v7  ;;  %v7240_v24 = vadd.f32 -1.0, %v9854_v45 }
 0x561   : > { %v5490_v46 = vmul.f32 1.442695, %v13790_v2  ;;  %8926 = vmatmul.mubr.f32.gmra.mxu0 %v5790_v16  ;;  %v4875_v61 = vmul.f32 1.6732632, %v7230_v5  ;;  %vm5417_vm3 = vcmp.gt.f32.partialorder %v13790_v2, 0.0 }
 0x562   : > { %8928 = vmatprep.mubr.msk.f32.mxu0 %vm10111_vm1, %v10110_v1  ;;  %v9856_v35 = vpop.eup %9855  ;;  %v5148_v60 = vpop.f32.mrf.mxu1  ;;  %8867 = vmatmul.mubr.f32.gmra.mxu1 %v5000_v58  ;;  %v5665_v63 = vmul.f32 1.6732632, %v7240_v24 }
 0x563   : > { %9865 = vpow2.f32 %v5490_v46  ;;  %v4938_v20 = vsel %vm4623_vm10, %v13722_v18, %v4875_v61  ;;  %v9858_v57 = vpop.eup %9857  ;;  %v7231_v28 = vadd.f32 -1.0, %v9856_v35  ;;  %v13801_v50 = vadd.f32 %v13641_v10, %v5148_v60  ;;  %8869 = vmatprep.mubr.msk.f32.mxu1 %vm10111_vm1, %v10110_v1 }
 0x564   : > { %v5001_v33 = vmul.f32 1.050701, %v4938_v20  ;;  %v7241_v48 = vadd.f32 -1.0, %v9858_v57  ;;  %v8724_v27 = vpop.f32.mrf.mxu1  ;;  %v5728_v34 = vsel %vm5413_vm11, %v13733_v15, %v5665_v63 }
 0x565   : > { %v4876_v54 = vmul.f32 1.6732632, %v7231_v28  ;;  %v5492_v18 = vmul.f32 1.442695, %v13801_v50  ;;  %v5791_v14 = vmul.f32 1.050701, %v5728_v34 }
 0x566   : > { %v5666_v19 = vmul.f32 1.6732632, %v7241_v48  ;;  %v5153_v21 = vpop.f32.mrf.mxu1  ;;  %8870 = vmatmul.mubr.f32.gmra.mxu1 %v5001_v33  ;;  %vm5418_vm4 = vcmp.gt.f32.partialorder %v13801_v50, 0.0 }
 0x567   : > { %v4939_v26 = vsel %vm4624_vm12, %v13737_v0, %v4876_v54  ;;  %9867 = vpow2.f32 %v5492_v18  ;;  %v13812_v32 = vadd.f32 %v13641_v10, %v5153_v21  ;;  %8872 = vmatprep.mubr.msk.f32.mxu1 %vm10111_vm1, %v10110_v1  ;;  %8929 = vmatmul.mubr.f32.gmra.mxu0 %v5791_v14 }
 0x568   : > { %v9860_v25 = vpop.eup %9859  ;;  %v5002_v8 = vmul.f32 1.050701, %v4939_v26  ;;  %v5729_v49 = vsel %vm5414_vm13, %v13748_v39, %v5666_v19  ;;  %v8727_v17 = vpop.f32.mrf.mxu1  ;;  %8931 = vmatprep.mubr.msk.f32.mxu0 %vm10111_vm1, %v10110_v1 }
 0x569   : > { %v9862_v15 = vpop.eup %9861  ;;  %v7232_v38 = vadd.f32 -1.0, %v9860_v25  ;;  %v5792_v59 = vmul.f32 1.050701, %v5729_v49  ;;  %v5494_v0 = vmul.f32 1.442695, %v13812_v32  ;;  %vm5419_vm2 = vcmp.gt.f32.partialorder %v13812_v32, 0.0 }
 0x56a   : > { %v7242_v36 = vadd.f32 -1.0, %v9862_v15  ;;  %v5158_v41 = vpop.f32.mrf.mxu1  ;;  %8873 = vmatmul.mubr.f32.gmra.mxu1 %v5002_v8 }
 0x56b   : > { %v4877_v52 = vmul.f32 1.6732632, %v7232_v38  ;;  %9869 = vpow2.f32 %v5494_v0  ;;  %v13822_v13 = vadd.f32 %v13641_v10, %v5158_v41  ;;  %8875 = vmatprep.mubr.msk.f32.mxu1 %vm10111_vm1, %v10110_v1  ;;  %8932 = vmatmul.mubr.f32.gmra.mxu0 %v5792_v59 }
 0x56c   : > { %v5667_v12 = vmul.f32 1.6732632, %v7242_v36  ;;  %v8730_v37 = vpop.f32.mrf.mxu1  ;;  %8934 = vmatprep.mubr.msk.f32.mxu0 %vm10111_vm1, %v10110_v1 }
 0x56d   : > { %v9864_v39 = vpop.eup %9863  ;;  %v4940_v42 = vsel %vm4625_vm14, %v13763_v55, %v4877_v52  ;;  %v5496_v3 = vmul.f32 1.442695, %v13822_v13  ;;  %vm5420_vm5 = vcmp.gt.f32.partialorder %v13822_v13, 0.0 }
 0x56e   : > { %v5003_v23 = vmul.f32 1.050701, %v4940_v42  ;;  %v5730_v43 = vsel %vm5415_vm15, %v13767_v6, %v5667_v12  ;;  %v7243_v44 = vadd.f32 -1.0, %v9864_v39  ;;  %v5163_v40 = vpop.f32.mrf.mxu1 }
 0x56f   : > { %v5793_v47 = vmul.f32 1.050701, %v5730_v43  ;;  %v13833_v55 = vadd.f32 %v13641_v10, %v5163_v40  ;;  %9871 = vpow2.f32 %v5496_v3 }
 0x570   : > { %v9866_v62 = vpop.eup %9865  ;;  %v5668_v9 = vmul.f32 1.6732632, %v7243_v44  ;;  %8876 = vmatmul.mubr.f32.gmra.mxu1 %v5003_v23  ;;  %v8733_v31 = vpop.f32.mrf.mxu1 }
 0x571   : > { %v7244_v53 = vadd.f32 -1.0, %v9866_v62  ;;  %8935 = vmatmul.mubr.f32.gmra.mxu0 %v5793_v47  ;;  %v5498_v4 = vmul.f32 1.442695, %v13833_v55  ;;  %vm5421_vm6 = vcmp.gt.f32.partialorder %v13833_v55, 0.0 }
 0x572   : > { %v5731_v6 = vsel %vm5416_vm0, %v13780_v11, %v5668_v9  ;;  %8937 = vmatprep.mubr.msk.f32.mxu0 %vm10111_vm1, %v10110_v1  ;;  %v5168_v56 = vpop.f32.mrf.mxu1 }
 0x573   : > { %v5669_v51 = vmul.f32 1.6732632, %v7244_v53  ;;  %v5794_v29 = vmul.f32 1.050701, %v5731_v6  ;;  %9873 = vpow2.f32 %v5498_v4  ;;  %v13843_v7 = vadd.f32 %v13641_v10, %v5168_v56 }
 0x574   : > { %v9868_v22 = vpop.eup %9867  ;;  %v8736_v30 = vpop.f32.mrf.mxu1 }
 0x575   : > { %v5732_v16 = vsel %vm5417_vm3, %v13790_v2, %v5669_v51  ;;  %8938 = vmatmul.mubr.f32.gmra.mxu0 %v5794_v29  ;;  %v7245_v11 = vadd.f32 -1.0, %v9868_v22  ;;  %v5500_v58 = vmul.f32 1.442695, %v13843_v7  ;;  %vm5422_vm7 = vcmp.gt.f32.partialorder %v13843_v7, 0.0 }
 0x576   : > { %v5795_v5 = vmul.f32 1.050701, %v5732_v16  ;;  %8940 = vmatprep.mubr.msk.f32.mxu0 %vm10111_vm1, %v10110_v1  ;;  %v5173_v46 = vpop.f32.mrf.mxu1 }
 0x577   : > { %v5670_v45 = vmul.f32 1.6732632, %v7245_v11  ;;  %9875 = vpow2.f32 %v5500_v58  ;;  %v13849_v61 = vadd.f32 %v13641_v10, %v5173_v46 }
 0x578   : > { %v9870_v2 = vpop.eup %9869  ;;  %v8739_v24 = vpop.f32.mrf.mxu1 }
 0x579   : > { %8941 = vmatmul.mubr.f32.gmra.mxu0 %v5795_v5  ;;  %v5733_v35 = vsel %vm5418_vm4, %v13801_v50, %v5670_v45  ;;  %v7246_v20 = vadd.f32 -1.0, %v9870_v2  ;;  %v5502_v60 = vmul.f32 1.442695, %v13849_v61  ;;  %vm5423_vm8 = vcmp.gt.f32.partialorder %v13849_v61, 0.0 }
 0x57a   : > { %8943 = vmatprep.mubr.msk.f32.mxu0 %vm10111_vm1, %v10110_v1  ;;  %v5796_v57 = vmul.f32 1.050701, %v5733_v35  ;;  %v5178_v33 = vpop.f32.mrf.mxu1 }
 0x57b   : > { %v5671_v63 = vmul.f32 1.6732632, %v7246_v20  ;;  %9877 = vpow2.f32 %v5502_v60  ;;  %v13857_v28 = vadd.f32 %v13641_v10, %v5178_v33 }
 0x57c   : > { %v8742_v48 = vpop.f32.mrf.mxu1  ;;  %v9872_v27 = vpop.eup %9871 }
 0x57d   : > { %8944 = vmatmul.mubr.f32.gmra.mxu0 %v5796_v57  ;;  %v5734_v50 = vsel %vm5419_vm2, %v13812_v32, %v5671_v63  ;;  %v5504_v34 = vmul.f32 1.442695, %v13857_v28  ;;  %v7247_v18 = vadd.f32 -1.0, %v9872_v27  ;;  %vm5424_vm9 = vcmp.gt.f32.partialorder %v13857_v28, 0.0 }
 0x57e   : > { %8946 = vmatprep.mubr.msk.f32.mxu0 %vm10111_vm1, %v10110_v1  ;;  %v5797_v54 = vmul.f32 1.050701, %v5734_v50  ;;  %v5183_v14 = vpop.f32.mrf.mxu1 }
 0x57f   : > { %9879 = vpow2.f32 %v5504_v34  ;;  %v13865_v19 = vadd.f32 %v13641_v10, %v5183_v14  ;;  %v5672_v25 = vmul.f32 1.6732632, %v7247_v18 }
 0x580   : > { %v9874_v21 = vpop.eup %9873  ;;  %v8745_v26 = vpop.f32.mrf.mxu1 }
 0x581   : > { %8947 = vmatmul.mubr.f32.gmra.mxu0 %v5797_v54  ;;  %v7248_v15 = vadd.f32 -1.0, %v9874_v21  ;;  %v5506_v32 = vmul.f32 1.442695, %v13865_v19  ;;  %v5735_v8 = vsel %vm5420_vm5, %v13822_v13, %v5672_v25  ;;  %vm5425_vm10 = vcmp.gt.f32.partialorder %v13865_v19, 0.0 }
 0x582   : > { %8949 = vmatprep.mubr.msk.f32.mxu0 %vm10111_vm1, %v10110_v1  ;;  %v5188_v49 = vpop.f32.mrf.mxu1  ;;  %v5798_v38 = vmul.f32 1.050701, %v5735_v8 }
 0x583   : > { %v5673_v17 = vmul.f32 1.6732632, %v7248_v15  ;;  %9881 = vpow2.f32 %v5506_v32  ;;  %v13873_v59 = vadd.f32 %v13641_v10, %v5188_v49 }
 0x584   : > { %v9876_v36 = vpop.eup %9875  ;;  %v8748_v0 = vpop.f32.mrf.mxu1 }
 0x585   : > { %v5736_v52 = vsel %vm5421_vm6, %v13833_v55, %v5673_v17  ;;  %v7249_v41 = vadd.f32 -1.0, %v9876_v36  ;;  %v5508_v12 = vmul.f32 1.442695, %v13873_v59  ;;  %8950 = vmatmul.mubr.f32.gmra.mxu0 %v5798_v38  ;;  %vm5426_vm11 = vcmp.gt.f32.partialorder %v13873_v59, 0.0 }
 0x586   : > { %v5799_v39 = vmul.f32 1.050701, %v5736_v52  ;;  %v5193_v42 = vpop.f32.mrf.mxu1  ;;  %8952 = vmatprep.mubr.msk.f32.mxu0 %vm10111_vm1, %v10110_v1 }
 0x587   : > { %v5674_v13 = vmul.f32 1.6732632, %v7249_v41  ;;  %9883 = vpow2.f32 %v5508_v12  ;;  %v13881_v37 = vadd.f32 %v13641_v10, %v5193_v42 }
 0x588   : > { %v9878_v23 = vpop.eup %9877  ;;  %v8751_v43 = vpop.f32.mrf.mxu1 }
 0x589   : > { %v5737_v44 = vsel %vm5422_vm7, %v13843_v7, %v5674_v13  ;;  %v7250_v62 = vadd.f32 -1.0, %v9878_v23  ;;  %v5510_v47 = vmul.f32 1.442695, %v13881_v37  ;;  %8953 = vmatmul.mubr.f32.gmra.mxu0 %v5799_v39  ;;  %vm5427_vm12 = vcmp.gt.f32.partialorder %v13881_v37, 0.0 }
 0x58a   : > { %v5800_v3 = vmul.f32 1.050701, %v5737_v44  ;;  %v5198_v40 = vpop.f32.mrf.mxu1  ;;  %8955 = vmatprep.mubr.msk.f32.mxu0 %vm10111_vm1, %v10110_v1 }
 0x58b   : > { %v5675_v9 = vmul.f32 1.6732632, %v7250_v62  ;;  %9885 = vpow2.f32 %v5510_v47  ;;  %v13889_v53 = vadd.f32 %v13641_v10, %v5198_v40 }
 0x58c   : > { %v9880_v55 = vpop.eup %9879  ;;  %v8754_v31 = vpop.f32.mrf.mxu1 }
 0x58d   : > { %v5738_v6 = vsel %vm5423_vm8, %v13849_v61, %v5675_v9  ;;  %v7251_v51 = vadd.f32 -1.0, %v9880_v55  ;;  %v5512_v4 = vmul.f32 1.442695, %v13889_v53  ;;  %8956 = vmatmul.mubr.f32.gmra.mxu0 %v5800_v3  ;;  %vm5428_vm13 = vcmp.gt.f32.partialorder %v13889_v53, 0.0 }
 0x58e   : > { %v5801_v29 = vmul.f32 1.050701, %v5738_v6  ;;  %v5203_v56 = vpop.f32.mrf.mxu1  ;;  %8958 = vmatprep.mubr.msk.f32.mxu0 %vm10111_vm1, %v10110_v1 }
 0x58f   : > { %v5676_v16 = vmul.f32 1.6732632, %v7251_v51  ;;  %9887 = vpow2.f32 %v5512_v4  ;;  %v13897_v7 = vadd.f32 %v13641_v10, %v5203_v56 }
 0x590   : > { %v9882_v22 = vpop.eup %9881  ;;  %v8757_v5 = vpop.f32.mrf.mxu1 }
 0x591   : > { %v5739_v30 = vsel %vm5424_vm9, %v13857_v28, %v5676_v16  ;;  %v7252_v11 = vadd.f32 -1.0, %v9882_v22  ;;  %v5514_v58 = vmul.f32 1.442695, %v13897_v7  ;;  %8959 = vmatmul.mubr.f32.gmra.mxu0 %v5801_v29  ;;  %vm5429_vm14 = vcmp.gt.f32.partialorder %v13897_v7, 0.0 }
 0x592   : > { %v5802_v46 = vmul.f32 1.050701, %v5739_v30  ;;  %v5208_v45 = vpop.f32.mrf.mxu1  ;;  %8961 = vmatprep.mubr.msk.f32.mxu0 %vm10111_vm1, %v10110_v1 }
 0x593   : > { %v5677_v61 = vmul.f32 1.6732632, %v7252_v11  ;;  %9889 = vpow2.f32 %v5514_v58  ;;  %v13905_v2 = vadd.f32 %v13641_v10, %v5208_v45 }
 0x594   : > { %v9884_v24 = vpop.eup %9883  ;;  %v8760_v35 = vpop.f32.mrf.mxu1 }
 0x595   : > { %v5740_v20 = vsel %vm5425_vm10, %v13865_v19, %v5677_v61  ;;  %v7253_v60 = vadd.f32 -1.0, %v9884_v24  ;;  %v5516_v57 = vmul.f32 1.442695, %v13905_v2  ;;  %8962 = vmatmul.mubr.f32.gmra.mxu0 %v5802_v46  ;;  %vm5430_vm15 = vcmp.gt.f32.partialorder %v13905_v2, 0.0 }
 0x596   : > { %v5803_v33 = vmul.f32 1.050701, %v5740_v20  ;;  %v5213_v63 = vpop.f32.mrf.mxu1  ;;  %8964 = vmatprep.mubr.msk.f32.mxu0 %vm10111_vm1, %v10110_v1 }
 0x597   : > { %v5678_v28 = vmul.f32 1.6732632, %v7253_v60  ;;  %9891 = vpow2.f32 %v5516_v57  ;;  %v13913_v48 = vadd.f32 %v13641_v10, %v5213_v63 }
 0x598   : > { %v9886_v27 = vpop.eup %9885  ;;  %v8763_v50 = vpop.f32.mrf.mxu1 }
 0x599   : > { %v5741_v34 = vsel %vm5426_vm11, %v13873_v59, %v5678_v28  ;;  %v7254_v54 = vadd.f32 -1.0, %v9886_v27  ;;  %v5518_v18 = vmul.f32 1.442695, %v13913_v48  ;;  %8965 = vmatmul.mubr.f32.gmra.mxu0 %v5803_v33  ;;  %vm5431_vm0 = vcmp.gt.f32.partialorder %v13913_v48, 0.0 }
 0x59a   : > { %v5804_v14 = vmul.f32 1.050701, %v5741_v34  ;;  %v5218_v19 = vpop.f32.mrf.mxu1  ;;  %8967 = vmatprep.mubr.msk.f32.mxu0 %vm10111_vm1, %v10110_v1 }
 0x59b   : > { %v5679_v21 = vmul.f32 1.6732632, %v7254_v54  ;;  %9893 = vpow2.f32 %v5518_v18  ;;  %v13921_v25 = vadd.f32 %v13641_v10, %v5218_v19 }
 0x59c   : > { %v9888_v26 = vpop.eup %9887  ;;  %v8766_v15 = vpop.f32.mrf.mxu1 }
 0x59d   : > { %v5742_v32 = vsel %vm5427_vm12, %v13881_v37, %v5679_v21  ;;  %v7255_v8 = vadd.f32 -1.0, %v9888_v26  ;;  %v5520_v49 = vmul.f32 1.442695, %v13921_v25  ;;  %8968 = vmatmul.mubr.f32.gmra.mxu0 %v5804_v14  ;;  %vm5432_vm3 = vcmp.gt.f32.partialorder %v13921_v25, 0.0 }
 0x59e   : > { %v5805_v38 = vmul.f32 1.050701, %v5742_v32  ;;  %v5223_v17 = vpop.f32.mrf.mxu1  ;;  %8970 = vmatprep.mubr.msk.f32.mxu0 %vm10111_vm1, %v10110_v1 }
 0x59f   : > { %v5680_v59 = vmul.f32 1.6732632, %v7255_v8  ;;  %9895 = vpow2.f32 %v5520_v49  ;;  %v13929_v36 = vadd.f32 %v13641_v10, %v5223_v17 }
 0x5a0   : > { %v9890_v0 = vpop.eup %9889  ;;  %v8769_v52 = vpop.f32.mrf.mxu1 }
 0x5a1   : > { %v5743_v41 = vsel %vm5428_vm13, %v13889_v53, %v5680_v59  ;;  %v7256_v12 = vadd.f32 -1.0, %v9890_v0  ;;  %v5522_v39 = vmul.f32 1.442695, %v13929_v36  ;;  %8971 = vmatmul.mubr.f32.gmra.mxu0 %v5805_v38  ;;  %vm5433_vm4 = vcmp.gt.f32.partialorder %v13929_v36, 0.0 }
 0x5a2   : > { %v5806_v42 = vmul.f32 1.050701, %v5743_v41  ;;  %v5228_v13 = vpop.f32.mrf.mxu1  ;;  %8973 = vmatprep.mubr.msk.f32.mxu0 %vm10111_vm1, %v10110_v1 }
 0x5a3   : > { %v5681_v37 = vmul.f32 1.6732632, %v7256_v12  ;;  %9897 = vpow2.f32 %v5522_v39  ;;  %v13937_v23 = vadd.f32 %v13641_v10, %v5228_v13 }
 0x5a4   : > { %v9892_v43 = vpop.eup %9891  ;;  %v8772_v44 = vpop.f32.mrf.mxu1 }
 0x5a5   : > { %v5744_v62 = vsel %vm5429_vm14, %v13897_v7, %v5681_v37  ;;  %v7257_v47 = vadd.f32 -1.0, %v9892_v43  ;;  %v5524_v3 = vmul.f32 1.442695, %v13937_v23  ;;  %8974 = vmatmul.mubr.f32.gmra.mxu0 %v5806_v42  ;;  %vm5434_vm2 = vcmp.gt.f32.partialorder %v13937_v23, 0.0 }
 0x5a6   : > { %v5807_v40 = vmul.f32 1.050701, %v5744_v62  ;;  %v5233_v9 = vpop.f32.mrf.mxu1  ;;  %8976 = vmatprep.mubr.msk.f32.mxu0 %vm10111_vm1, %v10110_v1 }
 0x5a7   : > { %v5682_v53 = vmul.f32 1.6732632, %v7257_v47  ;;  %9899 = vpow2.f32 %v5524_v3  ;;  %v13945_v55 = vadd.f32 %v13641_v10, %v5233_v9 }
 0x5a8   : > { %v9894_v31 = vpop.eup %9893  ;;  %v8775_v6 = vpop.f32.mrf.mxu1 }
 0x5a9   : > { %v5745_v51 = vsel %vm5430_vm15, %v13905_v2, %v5682_v53  ;;  %v7258_v4 = vadd.f32 -1.0, %v9894_v31  ;;  %v5526_v29 = vmul.f32 1.442695, %v13945_v55  ;;  %8977 = vmatmul.mubr.f32.gmra.mxu0 %v5807_v40  ;;  %vm5435_vm5 = vcmp.gt.f32.partialorder %v13945_v55, 0.0 }
 0x5aa   : > { %v5808_v56 = vmul.f32 1.050701, %v5745_v51  ;;  %v5238_v16 = vpop.f32.mrf.mxu1  ;;  %8979 = vmatprep.mubr.msk.f32.mxu0 %vm10111_vm1, %v10110_v1 }
 0x5ab   : > { %v5683_v7 = vmul.f32 1.6732632, %v7258_v4  ;;  %9901 = vpow2.f32 %v5526_v29  ;;  %v13953_v22 = vadd.f32 %v13641_v10, %v5238_v16  ;;  %v13963_v10 = vld [vmem:[%s14594_s12] ss:$0 sm:$0xff] }
 0x5ac   : > { %v9896_v5 = vpop.eup %9895  ;;  %v8778_v30 = vpop.f32.mrf.mxu1 }
 0x5ad   : > { %v5746_v11 = vsel %vm5431_vm0, %v13913_v48, %v5683_v7  ;;  %v7259_v58 = vadd.f32 -1.0, %v9896_v5  ;;  %v5528_v46 = vmul.f32 1.442695, %v13953_v22  ;;  %8980 = vmatmul.mubr.f32.gmra.mxu0 %v5808_v56  ;;  %vm5436_vm6 = vcmp.gt.f32.partialorder %v13953_v22, 0.0 }
 0x5ae   : > { %v5809_v45 = vmul.f32 1.050701, %v5746_v11  ;;  %v5243_v61 = vpop.f32.mrf.mxu1  ;;  %8982 = vmatprep.mubr.msk.f32.mxu0 %vm10111_vm1, %v10110_v1 }
 0x5af   : > { %v5684_v2 = vmul.f32 1.6732632, %v7259_v58  ;;  %9903 = vpow2.f32 %v5528_v46  ;;  %v13966_v24 = vadd.f32 %v13963_v10, %v5243_v61 }
 0x5b0   : > { %v9898_v35 = vpop.eup %9897  ;;  %v8781_v20 = vpop.f32.mrf.mxu1 }
 0x5b1   : > { %v5747_v60 = vsel %vm5432_vm3, %v13921_v25, %v5684_v2  ;;  %v7260_v57 = vadd.f32 -1.0, %v9898_v35  ;;  %v5530_v33 = vmul.f32 1.442695, %v13966_v24  ;;  %8983 = vmatmul.mubr.f32.gmra.mxu0 %v5809_v45  ;;  %vm5437_vm7 = vcmp.gt.f32.partialorder %v13966_v24, 0.0 }
 0x5b2   : > { %v5810_v63 = vmul.f32 1.050701, %v5747_v60  ;;  %v5248_v28 = vpop.f32.mrf.mxu1  ;;  %8985 = vmatprep.mubr.msk.f32.mxu0 %vm10111_vm1, %v10110_v1 }
 0x5b3   : > { %v5685_v48 = vmul.f32 1.6732632, %v7260_v57  ;;  %9905 = vpow2.f32 %v5530_v33  ;;  %v13974_v27 = vadd.f32 %v13963_v10, %v5248_v28 }
 0x5b4   : > { %v9900_v50 = vpop.eup %9899  ;;  %v8784_v34 = vpop.f32.mrf.mxu1 }
 0x5b5   : > { %v5748_v54 = vsel %vm5433_vm4, %v13929_v36, %v5685_v48  ;;  %v7261_v18 = vadd.f32 -1.0, %v9900_v50  ;;  %v5532_v14 = vmul.f32 1.442695, %v13974_v27  ;;  %8986 = vmatmul.mubr.f32.gmra.mxu0 %v5810_v63  ;;  %vm5438_vm8 = vcmp.gt.f32.partialorder %v13974_v27, 0.0 }
 0x5b6   : > { %v5811_v19 = vmul.f32 1.050701, %v5748_v54  ;;  %v5253_v21 = vpop.f32.mrf.mxu1  ;;  %8988 = vmatprep.mubr.msk.f32.mxu0 %vm10111_vm1, %v10110_v1 }
 0x5b7   : > { %v5686_v25 = vmul.f32 1.6732632, %v7261_v18  ;;  %9907 = vpow2.f32 %v5532_v14  ;;  %v13982_v26 = vadd.f32 %v13963_v10, %v5253_v21 }
 0x5b8   : > { %v9902_v15 = vpop.eup %9901  ;;  %v8787_v32 = vpop.f32.mrf.mxu1 }
 0x5b9   : > { %v5749_v8 = vsel %vm5434_vm2, %v13937_v23, %v5686_v25  ;;  %v7262_v49 = vadd.f32 -1.0, %v9902_v15  ;;  %v5534_v38 = vmul.f32 1.442695, %v13982_v26  ;;  %8989 = vmatmul.mubr.f32.gmra.mxu0 %v5811_v19  ;;  %vm5439_vm9 = vcmp.gt.f32.partialorder %v13982_v26, 0.0 }
 0x5ba   : > { %v5812_v17 = vmul.f32 1.050701, %v5749_v8  ;;  %v5258_v59 = vpop.f32.mrf.mxu1  ;;  %8991 = vmatprep.mubr.msk.f32.mxu0 %vm10111_vm1, %v10110_v1 }
 0x5bb   : > { %v5687_v36 = vmul.f32 1.6732632, %v7262_v49  ;;  %9909 = vpow2.f32 %v5534_v38  ;;  %v13990_v0 = vadd.f32 %v13963_v10, %v5258_v59 }
 0x5bc   : > { %v9904_v52 = vpop.eup %9903  ;;  %v8790_v41 = vpop.f32.mrf.mxu1 }
 0x5bd   : > { %v5750_v12 = vsel %vm5435_vm5, %v13945_v55, %v5687_v36  ;;  %v7263_v39 = vadd.f32 -1.0, %v9904_v52  ;;  %v5536_v42 = vmul.f32 1.442695, %v13990_v0  ;;  %8992 = vmatmul.mubr.f32.gmra.mxu0 %v5812_v17  ;;  %vm5440_vm10 = vcmp.gt.f32.partialorder %v13990_v0, 0.0 }
 0x5be   : > { %v5813_v13 = vmul.f32 1.050701, %v5750_v12  ;;  %v5263_v37 = vpop.f32.mrf.mxu1  ;;  %8994 = vmatprep.mubr.msk.f32.mxu0 %vm10111_vm1, %v10110_v1 }
 0x5bf   : > { %v5688_v23 = vmul.f32 1.6732632, %v7263_v39  ;;  %9911 = vpow2.f32 %v5536_v42  ;;  %v13998_v43 = vadd.f32 %v13963_v10, %v5263_v37 }
 0x5c0   : > { %v9906_v44 = vpop.eup %9905  ;;  %v8793_v62 = vpop.f32.mrf.mxu1 }
 0x5c1   : > { %v5751_v47 = vsel %vm5436_vm6, %v13953_v22, %v5688_v23  ;;  %v7264_v3 = vadd.f32 -1.0, %v9906_v44  ;;  %v5538_v40 = vmul.f32 1.442695, %v13998_v43  ;;  %8995 = vmatmul.mubr.f32.gmra.mxu0 %v5813_v13  ;;  %vm5441_vm11 = vcmp.gt.f32.partialorder %v13998_v43, 0.0 }
 0x5c2   : > { %v5814_v9 = vmul.f32 1.050701, %v5751_v47  ;;  %v5268_v53 = vpop.f32.mrf.mxu1  ;;  %8997 = vmatprep.mubr.msk.f32.mxu0 %vm10111_vm1, %v10110_v1 }
 0x5c3   : > { %v5689_v55 = vmul.f32 1.6732632, %v7264_v3  ;;  %9913 = vpow2.f32 %v5538_v40  ;;  %v14006_v31 = vadd.f32 %v13963_v10, %v5268_v53 }
 0x5c4   : > { %v9908_v6 = vpop.eup %9907  ;;  %v8796_v51 = vpop.f32.mrf.mxu1 }
 0x5c5   : > { %v5752_v4 = vsel %vm5437_vm7, %v13966_v24, %v5689_v55  ;;  %v7265_v29 = vadd.f32 -1.0, %v9908_v6  ;;  %v5540_v56 = vmul.f32 1.442695, %v14006_v31  ;;  %8998 = vmatmul.mubr.f32.gmra.mxu0 %v5814_v9  ;;  %vm5442_vm12 = vcmp.gt.f32.partialorder %v14006_v31, 0.0 }
 0x5c6   : > { %v5815_v16 = vmul.f32 1.050701, %v5752_v4  ;;  %v5273_v7 = vpop.f32.mrf.mxu1  ;;  %9000 = vmatprep.mubr.msk.f32.mxu0 %vm10111_vm1, %v10110_v1 }
 0x5c7   : > { %v5690_v22 = vmul.f32 1.6732632, %v7265_v29  ;;  %9915 = vpow2.f32 %v5540_v56  ;;  %v14014_v5 = vadd.f32 %v13963_v10, %v5273_v7 }
 0x5c8   : > { %v9910_v30 = vpop.eup %9909  ;;  %v8799_v11 = vpop.f32.mrf.mxu1 }
 0x5c9   : > { %v5753_v58 = vsel %vm5438_vm8, %v13974_v27, %v5690_v22  ;;  %v7266_v46 = vadd.f32 -1.0, %v9910_v30  ;;  %v5542_v45 = vmul.f32 1.442695, %v14014_v5  ;;  %9001 = vmatmul.mubr.f32.gmra.mxu0 %v5815_v16  ;;  %vm5443_vm13 = vcmp.gt.f32.partialorder %v14014_v5, 0.0 }
 0x5ca   : > { %v5816_v61 = vmul.f32 1.050701, %v5753_v58  ;;  %v5278_v2 = vpop.f32.mrf.mxu1  ;;  %9003 = vmatprep.mubr.msk.f32.mxu0 %vm10111_vm1, %v10110_v1 }
 0x5cb   : > { %v5691_v24 = vmul.f32 1.6732632, %v7266_v46  ;;  %9917 = vpow2.f32 %v5542_v45  ;;  %v14022_v35 = vadd.f32 %v13963_v10, %v5278_v2 }
 0x5cc   : > { %v9912_v20 = vpop.eup %9911  ;;  %v8802_v60 = vpop.f32.mrf.mxu1 }
 0x5cd   : > { %v5754_v57 = vsel %vm5439_vm9, %v13982_v26, %v5691_v24  ;;  %v7267_v33 = vadd.f32 -1.0, %v9912_v20  ;;  %v5544_v63 = vmul.f32 1.442695, %v14022_v35  ;;  %9004 = vmatmul.mubr.f32.gmra.mxu0 %v5816_v61  ;;  %vm5444_vm14 = vcmp.gt.f32.partialorder %v14022_v35, 0.0 }
 0x5ce   : > { %v5817_v28 = vmul.f32 1.050701, %v5754_v57  ;;  %v5283_v48 = vpop.f32.mrf.mxu1  ;;  %9006 = vmatprep.mubr.msk.f32.mxu0 %vm10111_vm1, %v10110_v1 }
 0x5cf   : > { %v5692_v27 = vmul.f32 1.6732632, %v7267_v33  ;;  %9919 = vpow2.f32 %v5544_v63  ;;  %v14030_v50 = vadd.f32 %v13963_v10, %v5283_v48 }
 0x5d0   : > { %v9914_v34 = vpop.eup %9913  ;;  %v8805_v54 = vpop.f32.mrf.mxu1 }
 0x5d1   : > { %v5755_v18 = vsel %vm5440_vm10, %v13990_v0, %v5692_v27  ;;  %v7268_v14 = vadd.f32 -1.0, %v9914_v34  ;;  %v5546_v19 = vmul.f32 1.442695, %v14030_v50  ;;  %9007 = vmatmul.mubr.f32.gmra.mxu0 %v5817_v28  ;;  %vm5445_vm15 = vcmp.gt.f32.partialorder %v14030_v50, 0.0 }
 0x5d2   : > { %v5818_v21 = vmul.f32 1.050701, %v5755_v18  ;;  %v5288_v25 = vpop.f32.mrf.mxu1  ;;  %9009 = vmatprep.mubr.msk.f32.mxu0 %vm10111_vm1, %v10110_v1 }
 0x5d3   : > { %v5693_v26 = vmul.f32 1.6732632, %v7268_v14  ;;  %9921 = vpow2.f32 %v5546_v19  ;;  %v14038_v15 = vadd.f32 %v13963_v10, %v5288_v25 }
 0x5d4   : > { %v9916_v32 = vpop.eup %9915  ;;  %v8808_v8 = vpop.f32.mrf.mxu1 }
 0x5d5   : > { %v5756_v49 = vsel %vm5441_vm11, %v13998_v43, %v5693_v26  ;;  %v7269_v38 = vadd.f32 -1.0, %v9916_v32  ;;  %v5548_v17 = vmul.f32 1.442695, %v14038_v15  ;;  %9010 = vmatmul.mubr.f32.gmra.mxu0 %v5818_v21  ;;  %vm5446_vm0 = vcmp.gt.f32.partialorder %v14038_v15, 0.0 }
 0x5d6   : > { %v5819_v59 = vmul.f32 1.050701, %v5756_v49  ;;  %v5293_v36 = vpop.f32.mrf.mxu1  ;;  %9012 = vmatprep.mubr.msk.f32.mxu0 %vm10111_vm1, %v10110_v1 }
 0x5d7   : > { %v5694_v0 = vmul.f32 1.6732632, %v7269_v38  ;;  %9923 = vpow2.f32 %v5548_v17  ;;  %v14046_v52 = vadd.f32 %v13963_v10, %v5293_v36 }
 0x5d8   : > { %v9918_v41 = vpop.eup %9917  ;;  %v8811_v12 = vpop.f32.mrf.mxu1 }
 0x5d9   : > { %v5757_v39 = vsel %vm5442_vm12, %v14006_v31, %v5694_v0  ;;  %v7270_v42 = vadd.f32 -1.0, %v9918_v41  ;;  %v5550_v13 = vmul.f32 1.442695, %v14046_v52  ;;  %9013 = vmatmul.mubr.f32.gmra.mxu0 %v5819_v59  ;;  %vm5447_vm3 = vcmp.gt.f32.partialorder %v14046_v52, 0.0 }
 0x5da   : > { %v5820_v37 = vmul.f32 1.050701, %v5757_v39  ;;  %v5298_v23 = vpop.f32.mrf.mxu1  ;;  %9015 = vmatprep.mubr.msk.f32.mxu0 %vm10111_vm1, %v10110_v1 }
 0x5db   : > { %v5695_v43 = vmul.f32 1.6732632, %v7270_v42  ;;  %9925 = vpow2.f32 %v5550_v13  ;;  %v14054_v44 = vadd.f32 %v13963_v10, %v5298_v23 }
 0x5dc   : > { %v9920_v62 = vpop.eup %9919  ;;  %v8814_v47 = vpop.f32.mrf.mxu1 }
 0x5dd   : > { %v5758_v3 = vsel %vm5443_vm13, %v14014_v5, %v5695_v43  ;;  %v7271_v40 = vadd.f32 -1.0, %v9920_v62  ;;  %v5552_v9 = vmul.f32 1.442695, %v14054_v44  ;;  %9016 = vmatmul.mubr.f32.gmra.mxu0 %v5820_v37  ;;  %vm5448_vm4 = vcmp.gt.f32.partialorder %v14054_v44, 0.0 }
 0x5de   : > { %v5821_v53 = vmul.f32 1.050701, %v5758_v3  ;;  %v5303_v55 = vpop.f32.mrf.mxu1  ;;  %9018 = vmatprep.mubr.msk.f32.mxu0 %vm10111_vm1, %v10110_v1 }
 0x5df   : > { %v5696_v31 = vmul.f32 1.6732632, %v7271_v40  ;;  %9927 = vpow2.f32 %v5552_v9  ;;  %v14062_v6 = vadd.f32 %v13963_v10, %v5303_v55 }
 0x5e0   : > { %v9922_v51 = vpop.eup %9921  ;;  %v8817_v4 = vpop.f32.mrf.mxu1 }
 0x5e1   : > { %v5759_v29 = vsel %vm5444_vm14, %v14022_v35, %v5696_v31  ;;  %v7272_v56 = vadd.f32 -1.0, %v9922_v51  ;;  %v5554_v16 = vmul.f32 1.442695, %v14062_v6  ;;  %9019 = vmatmul.mubr.f32.gmra.mxu0 %v5821_v53  ;;  %vm5449_vm2 = vcmp.gt.f32.partialorder %v14062_v6, 0.0 }
 0x5e2   : > { %v5822_v7 = vmul.f32 1.050701, %v5759_v29  ;;  %v5308_v22 = vpop.f32.mrf.mxu1  ;;  %9021 = vmatprep.mubr.msk.f32.mxu0 %vm10111_vm1, %v10110_v1 }
 0x5e3   : > { %v5697_v5 = vmul.f32 1.6732632, %v7272_v56  ;;  %9929 = vpow2.f32 %v5554_v16  ;;  %v14070_v30 = vadd.f32 %v13963_v10, %v5308_v22 }
 0x5e4   : > { %v9924_v11 = vpop.eup %9923  ;;  %v8820_v58 = vpop.f32.mrf.mxu1 }
 0x5e5   : > { %v5760_v46 = vsel %vm5445_vm15, %v14030_v50, %v5697_v5  ;;  %v7273_v45 = vadd.f32 -1.0, %v9924_v11  ;;  %v5556_v61 = vmul.f32 1.442695, %v14070_v30  ;;  %9022 = vmatmul.mubr.f32.gmra.mxu0 %v5822_v7  ;;  %vm5450_vm5 = vcmp.gt.f32.partialorder %v14070_v30, 0.0 }
 0x5e6   : > { %v5823_v2 = vmul.f32 1.050701, %v5760_v46  ;;  %v5313_v24 = vpop.f32.mrf.mxu1  ;;  %9024 = vmatprep.mubr.msk.f32.mxu0 %vm10111_vm1, %v10110_v1 }
 0x5e7   : > { %v5698_v35 = vmul.f32 1.6732632, %v7273_v45  ;;  %9931 = vpow2.f32 %v5556_v61  ;;  %v14078_v20 = vadd.f32 %v13963_v10, %v5313_v24 }
 0x5e8   : > { %v9926_v60 = vpop.eup %9925  ;;  %v8823_v57 = vpop.f32.mrf.mxu1 }
 0x5e9   : > { %v5761_v33 = vsel %vm5446_vm0, %v14038_v15, %v5698_v35  ;;  %v7274_v63 = vadd.f32 -1.0, %v9926_v60  ;;  %v5558_v28 = vmul.f32 1.442695, %v14078_v20  ;;  %9025 = vmatmul.mubr.f32.gmra.mxu0 %v5823_v2  ;;  %vm5451_vm6 = vcmp.gt.f32.partialorder %v14078_v20, 0.0 }
 0x5ea   : > { %v5824_v48 = vmul.f32 1.050701, %v5761_v33  ;;  %v5318_v27 = vpop.f32.mrf.mxu1  ;;  %9027 = vmatprep.mubr.msk.f32.mxu0 %vm10111_vm1, %v10110_v1 }
 0x5eb   : > { %v5699_v50 = vmul.f32 1.6732632, %v7274_v63  ;;  %9933 = vpow2.f32 %v5558_v28  ;;  %v14086_v34 = vadd.f32 %v13963_v10, %v5318_v27 }
 0x5ec   : > { %v9928_v54 = vpop.eup %9927  ;;  %v8826_v18 = vpop.f32.mrf.mxu1 }
 0x5ed   : > { %v5762_v14 = vsel %vm5447_vm3, %v14046_v52, %v5699_v50  ;;  %v7275_v19 = vadd.f32 -1.0, %v9928_v54  ;;  %v5560_v21 = vmul.f32 1.442695, %v14086_v34  ;;  %9028 = vmatmul.mubr.f32.gmra.mxu0 %v5824_v48  ;;  %vm5452_vm7 = vcmp.gt.f32.partialorder %v14086_v34, 0.0 }
 0x5ee   : > { %v5825_v25 = vmul.f32 1.050701, %v5762_v14  ;;  %v5323_v26 = vpop.f32.mrf.mxu1  ;;  %9030 = vmatprep.mubr.msk.f32.mxu0 %vm10111_vm1, %v10110_v1 }
 0x5ef   : > { %v5700_v15 = vmul.f32 1.6732632, %v7275_v19  ;;  %9935 = vpow2.f32 %v5560_v21  ;;  %v14094_v32 = vadd.f32 %v13963_v10, %v5323_v26  ;;  %v14151_v26 = vld [vmem:[%s14596_s14] ss:$0 sm:$0xff] }
 0x5f0   : > { %v9930_v8 = vpop.eup %9929  ;;  %v8829_v49 = vpop.f32.mrf.mxu1 }
 0x5f1   : > { %v5763_v38 = vsel %vm5448_vm4, %v14054_v44, %v5700_v15  ;;  %v7276_v17 = vadd.f32 -1.0, %v9930_v8  ;;  %v5562_v59 = vmul.f32 1.442695, %v14094_v32  ;;  %9031 = vmatmul.mubr.f32.gmra.mxu0 %v5825_v25  ;;  %vm5453_vm8 = vcmp.gt.f32.partialorder %v14094_v32, 0.0 }
 0x5f2   : > { %v5826_v36 = vmul.f32 1.050701, %v5763_v38  ;;  %v5328_v0 = vpop.f32.mrf.mxu1  ;;  %9033 = vmatprep.mubr.msk.f32.mxu0 %vm10111_vm1, %v10110_v1 }
 0x5f3   : > { %v5701_v52 = vmul.f32 1.6732632, %v7276_v17  ;;  %9937 = vpow2.f32 %v5562_v59  ;;  %v14102_v41 = vadd.f32 %v13963_v10, %v5328_v0 }
 0x5f4   : > { %v9932_v12 = vpop.eup %9931  ;;  %v8832_v39 = vpop.f32.mrf.mxu1 }
 0x5f5   : > { %v5764_v42 = vsel %vm5449_vm2, %v14062_v6, %v5701_v52  ;;  %v7277_v13 = vadd.f32 -1.0, %v9932_v12  ;;  %v5564_v37 = vmul.f32 1.442695, %v14102_v41  ;;  %9034 = vmatmul.mubr.f32.gmra.mxu0 %v5826_v36  ;;  %vm5454_vm9 = vcmp.gt.f32.partialorder %v14102_v41, 0.0 }
 0x5f6   : > { %v5827_v23 = vmul.f32 1.050701, %v5764_v42  ;;  %v5333_v43 = vpop.f32.mrf.mxu1  ;;  %9036 = vmatprep.mubr.msk.f32.mxu0 %vm10111_vm1, %v10110_v1 }
 0x5f7   : > { %v5702_v44 = vmul.f32 1.6732632, %v7277_v13  ;;  %9939 = vpow2.f32 %v5564_v37  ;;  %v14110_v62 = vadd.f32 %v13963_v10, %v5333_v43 }
 0x5f8   : > { %v9934_v47 = vpop.eup %9933  ;;  %v8835_v3 = vpop.f32.mrf.mxu1 }
 0x5f9   : > { %v5765_v40 = vsel %vm5450_vm5, %v14070_v30, %v5702_v44  ;;  %v7278_v9 = vadd.f32 -1.0, %v9934_v47  ;;  %v5566_v53 = vmul.f32 1.442695, %v14110_v62  ;;  %9037 = vmatmul.mubr.f32.gmra.mxu0 %v5827_v23  ;;  %vm5455_vm10 = vcmp.gt.f32.partialorder %v14110_v62, 0.0 }
 0x5fa   : > { %v5828_v55 = vmul.f32 1.050701, %v5765_v40  ;;  %v5338_v31 = vpop.f32.mrf.mxu1  ;;  %9039 = vmatprep.mubr.msk.f32.mxu0 %vm10111_vm1, %v10110_v1 }
 0x5fb   : > { %v5703_v6 = vmul.f32 1.6732632, %v7278_v9  ;;  %9941 = vpow2.f32 %v5566_v53  ;;  %v14118_v51 = vadd.f32 %v13963_v10, %v5338_v31 }
 0x5fc   : > { %v9936_v4 = vpop.eup %9935  ;;  %v8838_v29 = vpop.f32.mrf.mxu1 }
 0x5fd   : > { %v5766_v56 = vsel %vm5451_vm6, %v14078_v20, %v5703_v6  ;;  %v7279_v16 = vadd.f32 -1.0, %v9936_v4  ;;  %v5568_v7 = vmul.f32 1.442695, %v14118_v51  ;;  %9040 = vmatmul.mubr.f32.gmra.mxu0 %v5828_v55  ;;  %vm5456_vm11 = vcmp.gt.f32.partialorder %v14118_v51, 0.0 }
 0x5fe   : > { %v5829_v22 = vmul.f32 1.050701, %v5766_v56  ;;  %v5343_v5 = vpop.f32.mrf.mxu1  ;;  %9042 = vmatprep.mubr.msk.f32.mxu0 %vm10111_vm1, %v10110_v1 }
 0x5ff   : > { %v5704_v30 = vmul.f32 1.6732632, %v7279_v16  ;;  %9943 = vpow2.f32 %v5568_v7  ;;  %v14126_v11 = vadd.f32 %v13963_v10, %v5343_v5 }
 0x600   : > { %v9938_v58 = vpop.eup %9937  ;;  %v8841_v46 = vpop.f32.mrf.mxu1 }
 0x601   : > { %v5767_v45 = vsel %vm5452_vm7, %v14086_v34, %v5704_v30  ;;  %v7280_v61 = vadd.f32 -1.0, %v9938_v58  ;;  %v5570_v2 = vmul.f32 1.442695, %v14126_v11  ;;  %9043 = vmatmul.mubr.f32.gmra.mxu0 %v5829_v22  ;;  %vm5457_vm12 = vcmp.gt.f32.partialorder %v14126_v11, 0.0 }
 0x602   : > { %v5830_v24 = vmul.f32 1.050701, %v5767_v45  ;;  %v5348_v35 = vpop.f32.mrf.mxu1  ;;  %9045 = vmatprep.mubr.msk.f32.mxu0 %vm10111_vm1, %v10110_v1 }
 0x603   : > { %v5705_v20 = vmul.f32 1.6732632, %v7280_v61  ;;  %9945 = vpow2.f32 %v5570_v2  ;;  %v14134_v60 = vadd.f32 %v13963_v10, %v5348_v35 }
 0x604   : > { %v9940_v57 = vpop.eup %9939  ;;  %v8844_v33 = vpop.f32.mrf.mxu1 }
 0x605   : > { %v5768_v63 = vsel %vm5453_vm8, %v14094_v32, %v5705_v20  ;;  %v7281_v28 = vadd.f32 -1.0, %v9940_v57  ;;  %v5572_v48 = vmul.f32 1.442695, %v14134_v60  ;;  %9046 = vmatmul.mubr.f32.gmra.mxu0 %v5830_v24  ;;  %vm5458_vm13 = vcmp.gt.f32.partialorder %v14134_v60, 0.0 }
 0x606   : > { %v5831_v27 = vmul.f32 1.050701, %v5768_v63  ;;  %v5353_v50 = vpop.f32.mrf.mxu1  ;;  %9048 = vmatprep.mubr.msk.f32.mxu0 %vm10111_vm1, %v10110_v1 }
 0x607   : > { %v5706_v34 = vmul.f32 1.6732632, %v7281_v28  ;;  %9947 = vpow2.f32 %v5572_v48  ;;  %v14143_v54 = vadd.f32 %v13963_v10, %v5353_v50 }
 0x608   : > { %v9942_v18 = vpop.eup %9941  ;;  %v8847_v14 = vpop.f32.mrf.mxu1 }
 0x609   : > { %v5769_v19 = vsel %vm5454_vm9, %v14102_v41, %v5706_v34  ;;  %v7282_v21 = vadd.f32 -1.0, %v9942_v18  ;;  %v5574_v25 = vmul.f32 1.442695, %v14143_v54  ;;  %9049 = vmatmul.mubr.f32.gmra.mxu0 %v5831_v27  ;;  %vm5459_vm14 = vcmp.gt.f32.partialorder %v14143_v54, 0.0 }
 0x60a   : > { %v5832_v15 = vmul.f32 1.050701, %v5769_v19  ;;  %v5358_v32 = vpop.f32.mrf.mxu1  ;;  %9051 = vmatprep.mubr.msk.f32.mxu0 %vm10111_vm1, %v10110_v1 }
 0x60b   : > { %v5707_v8 = vmul.f32 1.6732632, %v7282_v21  ;;  %9949 = vpow2.f32 %v5574_v25  ;;  %v14156_v49 = vadd.f32 %v13963_v10, %v5358_v32 }
 0x60c   : > { %v9944_v17 = vpop.eup %9943  ;;  %v8850_v59 = vpop.f32.mrf.mxu1 }
 0x60d   : > { %v5937_v38 = vpop.f32.mrf.mxu0  ;;  %v5770_v0 = vsel %vm5455_vm10, %v14110_v62, %v5707_v8  ;;  %v7283_v52 = vadd.f32 -1.0, %v9944_v17  ;;  %v5576_v41 = vmul.f32 1.442695, %v14156_v49  ;;  %9052 = vmatmul.mubr.f32.gmra.mxu0 %v5832_v15  ;;  %vm5460_vm15 = vcmp.gt.f32.partialorder %v14156_v49, 0.0 }
 0x60e   : > { %v5938_v36 = vadd.f32 %v14151_v26, %v5937_v38  ;;  %v5833_v39 = vmul.f32 1.050701, %v5770_v0  ;;  %v5363_v42 = vpop.f32.mrf.mxu1  ;;  %9054 = vmatprep.mubr.msk.f32.mxu0 %vm10111_vm1, %v10110_v1 }
 0x60f   : > { %v8912_v12 = vpop.f32.mrf.mxu0  ;;  %v5708_v13 = vmul.f32 1.6732632, %v7283_v52  ;;  %9951 = vpow2.f32 %v5576_v41  ;;  %v14168_v37 = vadd.f32 %v13963_v10, %v5363_v42 }
 0x610   : > { %6251 = vst [vmem:[%s14164_s24] sm:$0xff] %v5938_v36  ;;  %v9946_v43 = vpop.eup %9945  ;;  %v8853_v44 = vpop.f32.mrf.mxu1 }
 0x611   : > { %v5942_v23 = vpop.f32.mrf.mxu0  ;;  %v5771_v47 = vsel %vm5456_vm11, %v14118_v51, %v5708_v13  ;;  %v7284_v3 = vadd.f32 -1.0, %v9946_v43  ;;  %v5578_v40 = vmul.f32 1.442695, %v14168_v37  ;;  %9055 = vmatmul.mubr.f32.gmra.mxu0 %v5833_v39  ;;  %vm5461_vm0 = vcmp.gt.f32.partialorder %v14168_v37, 0.0 }
 0x612   : > { %v5943_v62 = vadd.f32 %v14151_v26, %v5942_v23  ;;  %v5834_v53 = vmul.f32 1.050701, %v5771_v47  ;;  %v5368_v55 = vpop.f32.mrf.mxu1  ;;  %9057 = vmatprep.mubr.msk.f32.mxu0 %vm10111_vm1, %v10110_v1 }
 0x613   : > { %v8915_v9 = vpop.f32.mrf.mxu0  ;;  %v5709_v31 = vmul.f32 1.6732632, %v7284_v3  ;;  %9953 = vpow2.f32 %v5578_v40  ;;  %v14178_v6 = vadd.f32 %v13963_v10, %v5368_v55 }
 0x614   : > { %6252 = vst [vmem:[%s14164_s24 + $0x8] sm:$0xff] %v5943_v62  ;;  %v9948_v29 = vpop.eup %9947  ;;  %v8856_v51 = vpop.f32.mrf.mxu1 }
 0x615   : > { %v5947_v4 = vpop.f32.mrf.mxu0  ;;  %v5772_v16 = vsel %vm5457_vm12, %v14126_v11, %v5709_v31  ;;  %v7285_v7 = vadd.f32 -1.0, %v9948_v29  ;;  %v5580_v22 = vmul.f32 1.442695, %v14178_v6  ;;  %9058 = vmatmul.mubr.f32.gmra.mxu0 %v5834_v53  ;;  %vm5462_vm3 = vcmp.gt.f32.partialorder %v14178_v6, 0.0 }
 0x616   : > { %v5948_v56 = vadd.f32 %v14151_v26, %v5947_v4  ;;  %v5835_v30 = vmul.f32 1.050701, %v5772_v16  ;;  %v5373_v58 = vpop.f32.mrf.mxu1  ;;  %9060 = vmatprep.mubr.msk.f32.mxu0 %vm10111_vm1, %v10110_v1 }
 0x617   : > { %v8918_v5 = vpop.f32.mrf.mxu0  ;;  %v5710_v46 = vmul.f32 1.6732632, %v7285_v7  ;;  %9955 = vpow2.f32 %v5580_v22  ;;  %v14188_v45 = vadd.f32 %v13963_v10, %v5373_v58 }
 0x618   : > { %6253 = vst [vmem:[%s14164_s24 + $0x10] sm:$0xff] %v5948_v56  ;;  %v9950_v2 = vpop.eup %9949  ;;  %v8859_v11 = vpop.f32.mrf.mxu1 }
 0x619   : > { %v5952_v61 = vpop.f32.mrf.mxu0  ;;  %v5773_v35 = vsel %vm5458_vm13, %v14134_v60, %v5710_v46  ;;  %v7286_v20 = vadd.f32 -1.0, %v9950_v2  ;;  %v5582_v57 = vmul.f32 1.442695, %v14188_v45  ;;  %9061 = vmatmul.mubr.f32.gmra.mxu0 %v5835_v30  ;;  %vm5463_vm4 = vcmp.gt.f32.partialorder %v14188_v45, 0.0 }
 0x61a   : > { %v5953_v24 = vadd.f32 %v14151_v26, %v5952_v61  ;;  %v5836_v63 = vmul.f32 1.050701, %v5773_v35  ;;  %v5378_v28 = vpop.f32.mrf.mxu1  ;;  %9063 = vmatprep.mubr.msk.f32.mxu0 %vm10111_vm1, %v10110_v1 }
 0x61b   : > { %v8921_v33 = vpop.f32.mrf.mxu0  ;;  %v5711_v48 = vmul.f32 1.6732632, %v7286_v20  ;;  %9957 = vpow2.f32 %v5582_v57  ;;  %v14198_v27 = vadd.f32 %v13963_v10, %v5378_v28 }
 0x61c   : > { %6254 = vst [vmem:[%s14164_s24 + $0x18] sm:$0xff] %v5953_v24  ;;  %v9952_v34 = vpop.eup %9951  ;;  %v8862_v60 = vpop.f32.mrf.mxu1 }
 0x61d   : > { %v5957_v50 = vpop.f32.mrf.mxu0  ;;  %v5774_v14 = vsel %vm5459_vm14, %v14143_v54, %v5711_v48  ;;  %v7287_v19 = vadd.f32 -1.0, %v9952_v34  ;;  %v5584_v21 = vmul.f32 1.442695, %v14198_v27  ;;  %9064 = vmatmul.mubr.f32.gmra.mxu0 %v5836_v63  ;;  %vm5464_vm2 = vcmp.gt.f32.partialorder %v14198_v27, 0.0 }
 0x61e   : > { %v5958_v18 = vadd.f32 %v14151_v26, %v5957_v50  ;;  %v5837_v15 = vmul.f32 1.050701, %v5774_v14  ;;  %v5383_v32 = vpop.f32.mrf.mxu1  ;;  %9066 = vmatprep.mubr.msk.f32.mxu0 %vm10111_vm1, %v10110_v1 }
 0x61f   : > { %v8924_v25 = vpop.f32.mrf.mxu0  ;;  %v5712_v8 = vmul.f32 1.6732632, %v7287_v19  ;;  %9959 = vpow2.f32 %v5584_v21  ;;  %v14208_v38 = vadd.f32 %v13963_v10, %v5383_v32 }
 0x620   : > { %6255 = vst [vmem:[%s14164_s24 + $0x20] sm:$0xff] %v5958_v18  ;;  %v9954_v59 = vpop.eup %9953  ;;  %v8865_v54 = vpop.f32.mrf.mxu1 }
 0x621   : > { %v5962_v17 = vpop.f32.mrf.mxu0  ;;  %v5775_v0 = vsel %vm5460_vm15, %v14156_v49, %v5712_v8  ;;  %v7288_v52 = vadd.f32 -1.0, %v9954_v59  ;;  %v5586_v41 = vmul.f32 1.442695, %v14208_v38  ;;  %9067 = vmatmul.mubr.f32.gmra.mxu0 %v5837_v15  ;;  %vm5465_vm5 = vcmp.gt.f32.partialorder %v14208_v38, 0.0 }
 0x622   : > { %v5963_v36 = vadd.f32 %v14151_v26, %v5962_v17  ;;  %v5838_v39 = vmul.f32 1.050701, %v5775_v0  ;;  %v5388_v42 = vpop.f32.mrf.mxu1  ;;  %9069 = vmatprep.mubr.msk.f32.mxu0 %vm10111_vm1, %v10110_v1 }
 0x623   : > { %v8927_v12 = vpop.f32.mrf.mxu0  ;;  %v5713_v13 = vmul.f32 1.6732632, %v7288_v52  ;;  %9961 = vpow2.f32 %v5586_v41  ;;  %v14218_v23 = vadd.f32 %v13963_v10, %v5388_v42 }
 0x624   : > { %6256 = vst [vmem:[%s14164_s24 + $0x28] sm:$0xff] %v5963_v36  ;;  %v9956_v43 = vpop.eup %9955  ;;  %v8868_v49 = vpop.f32.mrf.mxu1 }
 0x625   : > { %v5776_v44 = vsel %vm5461_vm0, %v14168_v37, %v5713_v13  ;;  %v7289_v62 = vadd.f32 -1.0, %v9956_v43  ;;  %v5588_v47 = vmul.f32 1.442695, %v14218_v23  ;;  %9070 = vmatmul.mubr.f32.gmra.mxu0 %v5838_v39  ;;  %vm5466_vm6 = vcmp.gt.f32.partialorder %v14218_v23, 0.0 }
 0x626   : > { %v5839_v3 = vmul.f32 1.050701, %v5776_v44  ;;  %v5393_v40 = vpop.f32.mrf.mxu1  ;;  %9072 = vmatprep.mubr.msk.f32.mxu0 %vm10111_vm1, %v10110_v1 }
 0x627   : > { %v5714_v9 = vmul.f32 1.6732632, %v7289_v62  ;;  %9963 = vpow2.f32 %v5588_v47  ;;  %v14226_v53 = vadd.f32 %v13963_v10, %v5393_v40  ;;  %v5967_v37 = vpop.f32.mrf.mxu0 }
 0x628   : > { %v9958_v55 = vpop.eup %9957  ;;  %v8871_v31 = vpop.f32.mrf.mxu1  ;;  %v5968_v16 = vadd.f32 %v14151_v26, %v5967_v37 }
 0x629   : > { %v5777_v4 = vsel %vm5462_vm3, %v14178_v6, %v5714_v9  ;;  %v7290_v29 = vadd.f32 -1.0, %v9958_v55  ;;  %v5590_v51 = vmul.f32 1.442695, %v14226_v53  ;;  %9073 = vmatmul.mubr.f32.gmra.mxu0 %v5839_v3  ;;  %v8930_v22 = vpop.f32.mrf.mxu0  ;;  %vm5467_vm7 = vcmp.gt.f32.partialorder %v14226_v53, 0.0 }
 0x62a   : > { %v5840_v56 = vmul.f32 1.050701, %v5777_v4  ;;  %v5398_v7 = vpop.f32.mrf.mxu1  ;;  %9075 = vmatprep.mubr.msk.f32.mxu0 %vm10111_vm1, %v10110_v1  ;;  %6257 = vst [vmem:[%s14164_s24 + $0x30] sm:$0xff] %v5968_v16 }
 0x62b   : > { %v5715_v5 = vmul.f32 1.6732632, %v7290_v29  ;;  %9965 = vpow2.f32 %v5590_v51  ;;  %v14235_v30 = vadd.f32 %v13963_v10, %v5398_v7  ;;  %v5972_v46 = vpop.f32.mrf.mxu0 }
 0x62c   : > { %v9960_v58 = vpop.eup %9959  ;;  %v8874_v6 = vpop.f32.mrf.mxu1  ;;  %v5973_v35 = vadd.f32 %v14151_v26, %v5972_v46 }
 0x62d   : > { %v5778_v61 = vsel %vm5463_vm4, %v14188_v45, %v5715_v5  ;;  %v7291_v2 = vadd.f32 -1.0, %v9960_v58  ;;  %v5592_v11 = vmul.f32 1.442695, %v14235_v30  ;;  %9076 = vmatmul.mubr.f32.gmra.mxu0 %v5840_v56  ;;  %v8933_v20 = vpop.f32.mrf.mxu0  ;;  %vm5468_vm8 = vcmp.gt.f32.partialorder %v14235_v30, 0.0 }
 0x62e   : > { %v5841_v24 = vmul.f32 1.050701, %v5778_v61  ;;  %9078 = vmatprep.mubr.msk.f32.mxu0 %vm10111_vm1, %v10110_v1  ;;  %6258 = vst [vmem:[%s14164_s24 + $0x38] sm:$0xff] %v5973_v35 }
 0x62f   : > { %v5716_v57 = vmul.f32 1.6732632, %v7291_v2  ;;  %9967 = vpow2.f32 %v5592_v11 }
 0x630   : > { %v5403_v33 = vpop.f32.mrf.mxu1  ;;  %v9962_v63 = vpop.eup %9961 }
 0x631   : > { %v14247_v45 = vadd.f32 %v13963_v10, %v5403_v33  ;;  %v5977_v28 = vpop.f32.mrf.mxu0  ;;  %v5779_v48 = vsel %vm5464_vm2, %v14198_v27, %v5716_v57  ;;  %v7292_v50 = vadd.f32 -1.0, %v9962_v63  ;;  %9079 = vmatmul.mubr.f32.gmra.mxu0 %v5841_v24 }
 0x632   : > { %v8877_v34 = vpop.f32.mrf.mxu1  ;;  %v5978_v60 = vadd.f32 %v14151_v26, %v5977_v28  ;;  %v5842_v18 = vmul.f32 1.050701, %v5779_v48  ;;  %9081 = vmatprep.mubr.msk.f32.mxu0 %vm10111_vm1, %v10110_v1 }
 0x633   : > { %v5594_v14 = vmul.f32 1.442695, %v14247_v45  ;;  %v8936_v19 = vpop.f32.mrf.mxu0  ;;  %v5717_v21 = vmul.f32 1.6732632, %v7292_v50  ;;  %vm5469_vm9 = vcmp.gt.f32.partialorder %v14247_v45, 0.0 }
 0x634   : > { %6259 = vst [vmem:[%s14164_s24 + $0x40] sm:$0xff] %v5978_v60  ;;  %v9964_v10 = vpop.eup %9963 }
 0x635   : > { %9969 = vpow2.f32 %v5594_v14  ;;  %v5982_v27 = vpop.f32.mrf.mxu0  ;;  %v5780_v25 = vsel %vm5465_vm5, %v14208_v38, %v5717_v21  ;;  %v7293_v15 = vadd.f32 -1.0, %v9964_v10  ;;  %9082 = vmatmul.mubr.f32.gmra.mxu0 %v5842_v18 }
 0x636   : > { %v5983_v32 = vadd.f32 %v14151_v26, %v5982_v27  ;;  %v5843_v8 = vmul.f32 1.050701, %v5780_v25  ;;  %9084 = vmatprep.mubr.msk.f32.mxu0 %vm10111_vm1, %v10110_v1 }
 0x637   : > { %v8939_v17 = vpop.f32.mrf.mxu0  ;;  %v5718_v59 = vmul.f32 1.6732632, %v7293_v15 }
 0x638   : > { %6260 = vst [vmem:[%s14164_s24 + $0x48] sm:$0xff] %v5983_v32  ;;  %v9966_v54 = vpop.eup %9965 }
 0x639   : > { %v5987_v36 = vpop.f32.mrf.mxu0  ;;  %v5781_v0 = vsel %vm5466_vm6, %v14218_v23, %v5718_v59  ;;  %v7294_v52 = vadd.f32 -1.0, %v9966_v54  ;;  %9085 = vmatmul.mubr.f32.gmra.mxu0 %v5843_v8 }
 0x63a   : > { %v5988_v38 = vadd.f32 %v14151_v26, %v5987_v36  ;;  %v5844_v41 = vmul.f32 1.050701, %v5781_v0  ;;  %9087 = vmatprep.mubr.msk.f32.mxu0 %vm10111_vm1, %v10110_v1 }
 0x63b   : > { %v8942_v12 = vpop.f32.mrf.mxu0  ;;  %v5719_v39 = vmul.f32 1.6732632, %v7294_v52 }
 0x63c   : > { %6261 = vst [vmem:[%s14164_s24 + $0x50] sm:$0xff] %v5988_v38  ;;  %v9968_v42 = vpop.eup %9967 }
 0x63d   : > { %v5992_v13 = vpop.f32.mrf.mxu0  ;;  %v5782_v43 = vsel %vm5467_vm7, %v14226_v53, %v5719_v39  ;;  %v7295_v49 = vadd.f32 -1.0, %v9968_v42  ;;  %9088 = vmatmul.mubr.f32.gmra.mxu0 %v5844_v41 }
 0x63e   : > { %v5993_v23 = vadd.f32 %v14151_v26, %v5992_v13  ;;  %v5845_v44 = vmul.f32 1.050701, %v5782_v43  ;;  %9090 = vmatprep.mubr.msk.f32.mxu0 %vm10111_vm1, %v10110_v1 }
 0x63f   : > { %v8945_v62 = vpop.f32.mrf.mxu0  ;;  %v5720_v47 = vmul.f32 1.6732632, %v7295_v49 }
 0x640   : > { %6262 = vst [vmem:[%s14164_s24 + $0x58] sm:$0xff] %v5993_v23 }
 0x641   : > { %v5997_v3 = vpop.f32.mrf.mxu0  ;;  %v5783_v9 = vsel %vm5468_vm8, %v14235_v30, %v5720_v47  ;;  %9091 = vmatmul.mubr.f32.gmra.mxu0 %v5845_v44 }
 0x642   : > { %v9970_v40 = vpop.eup %9969  ;;  %v5998_v53 = vadd.f32 %v14151_v26, %v5997_v3  ;;  %v5846_v55 = vmul.f32 1.050701, %v5783_v9  ;;  %9093 = vmatprep.mubr.msk.f32.mxu0 %vm10111_vm1, %v10110_v1 }
 0x643   : > { %v7296_v31 = vadd.f32 -1.0, %v9970_v40  ;;  %v8948_v37 = vpop.f32.mrf.mxu0 }
 0x644   : > { %6263 = vst [vmem:[%s14164_s24 + $0x60] sm:$0xff] %v5998_v53 }
 0x645   : > { %v5721_v4 = vmul.f32 1.6732632, %v7296_v31  ;;  %v6002_v29 = vpop.f32.mrf.mxu0  ;;  %9094 = vmatmul.mubr.f32.gmra.mxu0 %v5846_v55 }
 0x646   : > { %v6003_v56 = vadd.f32 %v14151_v26, %v6002_v29  ;;  %9096 = vmatprep.mubr.msk.f32.mxu0 %vm10111_vm1, %v10110_v1 }
 0x647   : > { %v5784_v51 = vsel %vm5469_vm9, %v14247_v45, %v5721_v4  ;;  %v8951_v7 = vpop.f32.mrf.mxu0 }
 0x648   : > { %v5847_v16 = vmul.f32 1.050701, %v5784_v51  ;;  %6264 = vst [vmem:[%s14164_s24 + $0x68] sm:$0xff] %v6003_v56 }
 0x649   : > { %v6007_v22 = vpop.f32.mrf.mxu0 }
 0x64a   : > { %9097 = vmatmul.mubr.f32.gmra.mxu0 %v5847_v16  ;;  %v6008_v5 = vadd.f32 %v14151_v26, %v6007_v22 }
 0x64b   : > { %v8954_v30 = vpop.f32.mrf.mxu0 }
 0x64c   : > { %6265 = vst [vmem:[%s14164_s24 + $0x70] sm:$0xff] %v6008_v5 }
 0x64d   : > { %v6012_v58 = vpop.f32.mrf.mxu0 }
 0x64e   : > { %v6013_v6 = vadd.f32 %v14151_v26, %v6012_v58 }
 0x64f   : > { %v8957_v46 = vpop.f32.mrf.mxu0 }
 0x650   : > { %6266 = vst [vmem:[%s14164_s24 + $0x78] sm:$0xff] %v6013_v6 }
 0x651   : > { %v6017_v61 = vpop.f32.mrf.mxu0 }
 0x652   : > { %v6018_v1 = vadd.f32 %v14151_v26, %v6017_v61 }
 0x653   : > { %v8960_v2 = vpop.f32.mrf.mxu0 }
 0x654   : > { %6267 = vst [vmem:[%s14164_s24 + $0x80] sm:$0xff] %v6018_v1 }
 0x655   : > { %v6022_v11 = vpop.f32.mrf.mxu0 }
 0x656   : > { %v6023_v24 = vadd.f32 %v14151_v26, %v6022_v11 }
 0x657   : > { %v8963_v35 = vpop.f32.mrf.mxu0 }
 0x658   : > { %6268 = vst [vmem:[%s14164_s24 + $0x88] sm:$0xff] %v6023_v24 }
 0x659   : > { %v6027_v20 = vpop.f32.mrf.mxu0 }
 0x65a   : > { %v6028_v57 = vadd.f32 %v14151_v26, %v6027_v20 }
 0x65b   : > { %v8966_v33 = vpop.f32.mrf.mxu0 }
 0x65c   : > { %6269 = vst [vmem:[%s14164_s24 + $0x90] sm:$0xff] %v6028_v57 }
 0x65d   : > { %v6032_v63 = vpop.f32.mrf.mxu0 }
 0x65e   : > { %v6033_v45 = vadd.f32 %v14151_v26, %v6032_v63 }
 0x65f   : > { %v8969_v28 = vpop.f32.mrf.mxu0 }
 0x660   : > { %6270 = vst [vmem:[%s14164_s24 + $0x98] sm:$0xff] %v6033_v45 }
 0x661   : > { %v6037_v48 = vpop.f32.mrf.mxu0 }
 0x662   : > { %v6038_v50 = vadd.f32 %v14151_v26, %v6037_v48 }
 0x663   : > { %v8972_v34 = vpop.f32.mrf.mxu0 }
 0x664   : > { %6271 = vst [vmem:[%s14164_s24 + $0xa0] sm:$0xff] %v6038_v50 }
 0x665   : > { %v6042_v60 = vpop.f32.mrf.mxu0 }
 0x666   : > { %v6043_v18 = vadd.f32 %v14151_v26, %v6042_v60 }
 0x667   : > { %v8975_v14 = vpop.f32.mrf.mxu0 }
 0x668   : > { %6272 = vst [vmem:[%s14164_s24 + $0xa8] sm:$0xff] %v6043_v18 }
 0x669   : > { %v6047_v19 = vpop.f32.mrf.mxu0 }
 0x66a   : > { %v6048_v21 = vadd.f32 %v14151_v26, %v6047_v19 }
 0x66b   : > { %v8978_v10 = vpop.f32.mrf.mxu0 }
 0x66c   : > { %6273 = vst [vmem:[%s14164_s24 + $0xb0] sm:$0xff] %v6048_v21 }
 0x66d   : > { %v6052_v27 = vpop.f32.mrf.mxu0 }
 0x66e   : > { %v6053_v25 = vadd.f32 %v14151_v26, %v6052_v27 }
 0x66f   : > { %v8981_v15 = vpop.f32.mrf.mxu0 }
 0x670   : > { %6274 = vst [vmem:[%s14164_s24 + $0xb8] sm:$0xff] %v6053_v25 }
 0x671   : > { %v6057_v32 = vpop.f32.mrf.mxu0 }
 0x672   : > { %v6058_v8 = vadd.f32 %v14151_v26, %v6057_v32 }
 0x673   : > { %v8984_v17 = vpop.f32.mrf.mxu0 }
 0x674   : > { %6275 = vst [vmem:[%s14164_s24 + $0xc0] sm:$0xff] %v6058_v8 }
 0x675   : > { %v6062_v59 = vpop.f32.mrf.mxu0 }
 0x676   : > { %v6063_v54 = vadd.f32 %v14151_v26, %v6062_v59 }
 0x677   : > { %v8987_v36 = vpop.f32.mrf.mxu0 }
 0x678   : > { %6276 = vst [vmem:[%s14164_s24 + $0xc8] sm:$0xff] %v6063_v54 }
 0x679   : > { %v6067_v0 = vpop.f32.mrf.mxu0 }
 0x67a   : > { %v6068_v52 = vadd.f32 %v14151_v26, %v6067_v0 }
 0x67b   : > { %v8990_v38 = vpop.f32.mrf.mxu0 }
 0x67c   : > { %6277 = vst [vmem:[%s14164_s24 + $0xd0] sm:$0xff] %v6068_v52 }
 0x67d   : > { %v6072_v41 = vpop.f32.mrf.mxu0 }
 0x67e   : > { %v6073_v12 = vadd.f32 %v14151_v26, %v6072_v41 }
 0x67f   : > { %v8993_v39 = vpop.f32.mrf.mxu0 }
 0x680   : > { %6278 = vst [vmem:[%s14164_s24 + $0xd8] sm:$0xff] %v6073_v12 }
 0x681   : > { %v6077_v42 = vpop.f32.mrf.mxu0 }
 0x682   : > { %v6078_v13 = vadd.f32 %v14151_v26, %v6077_v42 }
 0x683   : > { %v8996_v43 = vpop.f32.mrf.mxu0 }
 0x684   : > { %6279 = vst [vmem:[%s14164_s24 + $0xe0] sm:$0xff] %v6078_v13 }
 0x685   : > { %v6082_v49 = vpop.f32.mrf.mxu0 }
 0x686   : > { %v6083_v23 = vadd.f32 %v14151_v26, %v6082_v49 }
 0x687   : > { %v8999_v44 = vpop.f32.mrf.mxu0 }
 0x688   : > { %6280 = vst [vmem:[%s14164_s24 + $0xe8] sm:$0xff] %v6083_v23 }
 0x689   : > { %v6087_v62 = vpop.f32.mrf.mxu0 }
 0x68a   : > { %v6088_v47 = vadd.f32 %v14151_v26, %v6087_v62 }
 0x68b   : > { %v9002_v3 = vpop.f32.mrf.mxu0 }
 0x68c   : > { %6281 = vst [vmem:[%s14164_s24 + $0xf0] sm:$0xff] %v6088_v47 }
 0x68d   : > { %v6092_v40 = vpop.f32.mrf.mxu0 }
 0x68e   : > { %v6093_v9 = vadd.f32 %v14151_v26, %v6092_v40 }
 0x68f   : > { %v9005_v53 = vpop.f32.mrf.mxu0 }
 0x690   : > { %6282 = vst [vmem:[%s14164_s24 + $0xf8] sm:$0xff] %v6093_v9 }
 0x691   : > { %v6097_v55 = vpop.f32.mrf.mxu0 }
 0x692   : > { %v6098_v31 = vadd.f32 %v14151_v26, %v6097_v55 }
 0x693   : > { %v9008_v37 = vpop.f32.mrf.mxu0 }
 0x694   : > { %6283 = vst [vmem:[%s14164_s24 + $0x100] sm:$0xff] %v6098_v31 }
 0x695   : > { %v6102_v4 = vpop.f32.mrf.mxu0 }
 0x696   : > { %v6103_v29 = vadd.f32 %v14151_v26, %v6102_v4 }
 0x697   : > { %v9011_v51 = vpop.f32.mrf.mxu0 }
 0x698   : > { %6284 = vst [vmem:[%s14164_s24 + $0x108] sm:$0xff] %v6103_v29 }
 0x699   : > { %v6107_v56 = vpop.f32.mrf.mxu0 }
 0x69a   : > { %v6108_v16 = vadd.f32 %v14151_v26, %v6107_v56 }
 0x69b   : > { %v9014_v7 = vpop.f32.mrf.mxu0 }
 0x69c   : > { %6285 = vst [vmem:[%s14164_s24 + $0x110] sm:$0xff] %v6108_v16 }
 0x69d   : > { %v6112_v22 = vpop.f32.mrf.mxu0 }
 0x69e   : > { %v6113_v5 = vadd.f32 %v14151_v26, %v6112_v22 }
 0x69f   : > { %v9017_v30 = vpop.f32.mrf.mxu0 }
 0x6a0   : > { %6286 = vst [vmem:[%s14164_s24 + $0x118] sm:$0xff] %v6113_v5 }
 0x6a1   : > { %v6117_v58 = vpop.f32.mrf.mxu0 }
 0x6a2   : > { %v6118_v6 = vadd.f32 %v14151_v26, %v6117_v58 }
 0x6a3   : > { %v9020_v46 = vpop.f32.mrf.mxu0 }
 0x6a4   : > { %6287 = vst [vmem:[%s14164_s24 + $0x120] sm:$0xff] %v6118_v6 }
 0x6a5   : > { %v6122_v61 = vpop.f32.mrf.mxu0 }
 0x6a6   : > { %v6123_v1 = vadd.f32 %v14151_v26, %v6122_v61 }
 0x6a7   : > { %v9023_v2 = vpop.f32.mrf.mxu0 }
 0x6a8   : > { %6288 = vst [vmem:[%s14164_s24 + $0x128] sm:$0xff] %v6123_v1 }
 0x6a9   : > { %v6127_v11 = vpop.f32.mrf.mxu0 }
 0x6aa   : > { %v6128_v24 = vadd.f32 %v14151_v26, %v6127_v11 }
 0x6ab   : > { %v9026_v35 = vpop.f32.mrf.mxu0 }
 0x6ac   : > { %6289 = vst [vmem:[%s14164_s24 + $0x130] sm:$0xff] %v6128_v24 }
 0x6ad   : > { %v6132_v20 = vpop.f32.mrf.mxu0 }
 0x6ae   : > { %v6133_v57 = vadd.f32 %v14151_v26, %v6132_v20 }
 0x6af   : > { %v9029_v33 = vpop.f32.mrf.mxu0 }
 0x6b0   : > { %6290 = vst [vmem:[%s14164_s24 + $0x138] sm:$0xff] %v6133_v57 }
 0x6b1   : > { %v6137_v63 = vpop.f32.mrf.mxu0 }
 0x6b2   : > { %v6138_v45 = vadd.f32 %v14151_v26, %v6137_v63 }
 0x6b3   : > { %v9032_v28 = vpop.f32.mrf.mxu0 }
 0x6b4   : > { %6291 = vst [vmem:[%s14164_s24 + $0x140] sm:$0xff] %v6138_v45 }
 0x6b5   : > { %v6142_v48 = vpop.f32.mrf.mxu0 }
 0x6b6   : > { %v6143_v50 = vadd.f32 %v14151_v26, %v6142_v48 }
 0x6b7   : > { %v9035_v34 = vpop.f32.mrf.mxu0 }
 0x6b8   : > { %6292 = vst [vmem:[%s14164_s24 + $0x148] sm:$0xff] %v6143_v50 }
 0x6b9   : > { %v6147_v60 = vpop.f32.mrf.mxu0 }
 0x6ba   : > { %v6148_v18 = vadd.f32 %v14151_v26, %v6147_v60 }
 0x6bb   : > { %v9038_v14 = vpop.f32.mrf.mxu0 }
 0x6bc   : > { %6293 = vst [vmem:[%s14164_s24 + $0x150] sm:$0xff] %v6148_v18 }
 0x6bd   : > { %v6152_v19 = vpop.f32.mrf.mxu0 }
 0x6be   : > { %v6153_v21 = vadd.f32 %v14151_v26, %v6152_v19 }
 0x6bf   : > { %v9041_v10 = vpop.f32.mrf.mxu0 }
 0x6c0   : > { %6294 = vst [vmem:[%s14164_s24 + $0x158] sm:$0xff] %v6153_v21 }
 0x6c1   : > { %v6157_v27 = vpop.f32.mrf.mxu0 }
 0x6c2   : > { %v6158_v25 = vadd.f32 %v14151_v26, %v6157_v27 }
 0x6c3   : > { %v9044_v15 = vpop.f32.mrf.mxu0 }
 0x6c4   : > { %6295 = vst [vmem:[%s14164_s24 + $0x160] sm:$0xff] %v6158_v25 }
 0x6c5   : > { %v6162_v32 = vpop.f32.mrf.mxu0 }
 0x6c6   : > { %v6163_v8 = vadd.f32 %v14151_v26, %v6162_v32 }
 0x6c7   : > { %v9047_v17 = vpop.f32.mrf.mxu0 }
 0x6c8   : > { %6296 = vst [vmem:[%s14164_s24 + $0x168] sm:$0xff] %v6163_v8 }
 0x6c9   : > { %v6167_v59 = vpop.f32.mrf.mxu0 }
 0x6ca   : > { %v6168_v54 = vadd.f32 %v14151_v26, %v6167_v59 }
 0x6cb   : > { %v9050_v36 = vpop.f32.mrf.mxu0 }
 0x6cc   : > { %6297 = vst [vmem:[%s14164_s24 + $0x170] sm:$0xff] %v6168_v54 }
 0x6cd   : > { %v6172_v0 = vpop.f32.mrf.mxu0 }
 0x6ce   : > { %v6173_v52 = vadd.f32 %v14151_v26, %v6172_v0 }
 0x6cf   : > { %v9053_v38 = vpop.f32.mrf.mxu0 }
 0x6d0   : > { %6298 = vst [vmem:[%s14164_s24 + $0x178] sm:$0xff] %v6173_v52 }
 0x6d1   : > { %v6177_v41 = vpop.f32.mrf.mxu0 }
 0x6d2   : > { %v6178_v12 = vadd.f32 %v14151_v26, %v6177_v41 }
 0x6d3   : > { %v9056_v39 = vpop.f32.mrf.mxu0 }
 0x6d4   : > { %6299 = vst [vmem:[%s14164_s24 + $0x180] sm:$0xff] %v6178_v12 }
 0x6d5   : > { %v6182_v42 = vpop.f32.mrf.mxu0 }
 0x6d6   : > { %v6183_v13 = vadd.f32 %v14151_v26, %v6182_v42 }
 0x6d7   : > { %v9059_v43 = vpop.f32.mrf.mxu0 }
 0x6d8   : > { %6300 = vst [vmem:[%s14164_s24 + $0x188] sm:$0xff] %v6183_v13 }
 0x6d9   : > { %v6187_v49 = vpop.f32.mrf.mxu0 }
 0x6da   : > { %v6188_v23 = vadd.f32 %v14151_v26, %v6187_v49 }
 0x6db   : > { %v9062_v44 = vpop.f32.mrf.mxu0 }
 0x6dc   : > { %6301 = vst [vmem:[%s14164_s24 + $0x190] sm:$0xff] %v6188_v23 }
 0x6dd   : > { %v6192_v62 = vpop.f32.mrf.mxu0 }
 0x6de   : > { %v6193_v47 = vadd.f32 %v14151_v26, %v6192_v62 }
 0x6df   : > { %v9065_v3 = vpop.f32.mrf.mxu0 }
 0x6e0   : > { %6302 = vst [vmem:[%s14164_s24 + $0x198] sm:$0xff] %v6193_v47 }
 0x6e1   : > { %v6197_v40 = vpop.f32.mrf.mxu0 }
 0x6e2   : > { %v6198_v9 = vadd.f32 %v14151_v26, %v6197_v40 }
 0x6e3   : > { %v9068_v53 = vpop.f32.mrf.mxu0 }
 0x6e4   : > { %6303 = vst [vmem:[%s14164_s24 + $0x1a0] sm:$0xff] %v6198_v9 }
 0x6e5   : > { %v6202_v55 = vpop.f32.mrf.mxu0 }
 0x6e6   : > { %v6203_v31 = vadd.f32 %v14151_v26, %v6202_v55 }
 0x6e7   : > { %v9071_v37 = vpop.f32.mrf.mxu0 }
 0x6e8   : > { %6304 = vst [vmem:[%s14164_s24 + $0x1a8] sm:$0xff] %v6203_v31 }
 0x6e9   : > { %v6207_v4 = vpop.f32.mrf.mxu0 }
 0x6ea   : > { %v6208_v29 = vadd.f32 %v14151_v26, %v6207_v4 }
 0x6eb   : > { %v9074_v51 = vpop.f32.mrf.mxu0 }
 0x6ec   : > { %6305 = vst [vmem:[%s14164_s24 + $0x1b0] sm:$0xff] %v6208_v29 }
 0x6ed   : > { %v6212_v56 = vpop.f32.mrf.mxu0 }
 0x6ee   : > { %v6213_v16 = vadd.f32 %v14151_v26, %v6212_v56 }
 0x6ef   : > { %v9077_v7 = vpop.f32.mrf.mxu0 }
 0x6f0   : > { %6306 = vst [vmem:[%s14164_s24 + $0x1b8] sm:$0xff] %v6213_v16 }
 0x6f1   : > { %v6217_v22 = vpop.f32.mrf.mxu0 }
 0x6f2   : > { %v6218_v5 = vadd.f32 %v14151_v26, %v6217_v22 }
 0x6f3   : > { %v9080_v30 = vpop.f32.mrf.mxu0 }
 0x6f4   : > { %6307 = vst [vmem:[%s14164_s24 + $0x1c0] sm:$0xff] %v6218_v5 }
 0x6f5   : > { %v6222_v58 = vpop.f32.mrf.mxu0 }
 0x6f6   : > { %v6223_v6 = vadd.f32 %v14151_v26, %v6222_v58 }
 0x6f7   : > { %v9083_v46 = vpop.f32.mrf.mxu0 }
 0x6f8   : > { %6308 = vst [vmem:[%s14164_s24 + $0x1c8] sm:$0xff] %v6223_v6 }
 0x6f9   : > { %v6227_v61 = vpop.f32.mrf.mxu0 }
 0x6fa   : > { %v6228_v1 = vadd.f32 %v14151_v26, %v6227_v61 }
 0x6fb   : > { %v9086_v2 = vpop.f32.mrf.mxu0 }
 0x6fc   : > { %6309 = vst [vmem:[%s14164_s24 + $0x1d0] sm:$0xff] %v6228_v1 }
 0x6fd   : > { %v6232_v11 = vpop.f32.mrf.mxu0 }
 0x6fe   : > { %v6233_v24 = vadd.f32 %v14151_v26, %v6232_v11 }
 0x6ff   : > { %v9089_v35 = vpop.f32.mrf.mxu0 }
 0x700   : > { %6310 = vst [vmem:[%s14164_s24 + $0x1d8] sm:$0xff] %v6233_v24 }
 0x701   : > { %v6237_v20 = vpop.f32.mrf.mxu0 }
 0x702   : > { %v6238_v57 = vadd.f32 %v14151_v26, %v6237_v20 }
 0x703   : > { %v9092_v33 = vpop.f32.mrf.mxu0 }
 0x704   : > { %6311 = vst [vmem:[%s14164_s24 + $0x1e0] sm:$0xff] %v6238_v57 }
 0x705   : > { %v6242_v63 = vpop.f32.mrf.mxu0 }
 0x706   : > { %v6243_v45 = vadd.f32 %v14151_v26, %v6242_v63 }
 0x707   : > { %v9095_v28 = vpop.f32.mrf.mxu0 }
 0x708   : > { %6312 = vst [vmem:[%s14164_s24 + $0x1e8] sm:$0xff] %v6243_v45 }
 0x709   : > { %6320 = sbr.rel (!%p10217_p4) target bundleno = 1884 (0x75c), region = 84 }
 0x70a   : > { %v6247_v48 = vpop.f32.mrf.mxu0 }
 0x70b   : > { %v6248_v50 = vadd.f32 %v14151_v26, %v6247_v48 }
 0x70c   : > { %v9098_v34 = vpop.f32.mrf.mxu0 }
 0x70d   : > { %6313 = vst [vmem:[%s14164_s24 + $0x1f0] sm:$0xff] %v6248_v50 }
 0x70e   : > { %s14618_s27 = smov (!%p6323_p8, %s6322_s27), 63 }
 0x70f   : > { %s7298_s17 = sshll.u32 %s14618_s27, 7 }
 0x710   : > { %p7301_p9 = scmp.eq.s32.totalorder %s7298_s17, 0 }
 0x711   : > { %10018 = sdivrem.u32 (!%p7301_p9), %s14618_s27, 63 }
 0x712   : > { %6331 = sbr.rel (%p7301_p9) target bundleno = 1884 (0x75c), region = 88 }
 0x71a   : > { %s14396_s26 = spop.drf %10018 }
 0x71b   : > { %p7302_p10 = scmp.le.s32.totalorder %s14396_s26, 0 }
 0x71c   : > { %s14609_s21 = smov (!%p7302_p10), %s14390_s16  ;;  %s14610_s20 = smov (!%p7302_p10), %s14164_s24 }
 0x71d   : > { %6736 = sbr.rel (%p7302_p10) target bundleno = 1859 (0x743), region = 164  ;;  %s14405_s18 = smov (!%p7302_p10), 0  }
 0x71e   : > { %s14407_s30 = smov (!%p7302_p10), 0  }
 0x722 LB: >> { %v6520_v26 = vld [vmem:[%s10084_s20] sm:$0xff]  ;;  %v6522_v60 = vld [vmem:[%s10084_s20 + $0x8] sm:$0xff]  ;;  %v6524_v18 = vld [vmem:[%s10084_s20 + $0x10] sm:$0xff]  ;;  %s6646_s28 = sadd.s32 1, %s10088_s18  ;;  %s6514_s30 = sadd.s32 1, %s10092_s30   ;;  %s10092_s30 = sphi %s14407_s30, %s6514_s30   ;;  %s10088_s18 = sphi %s14405_s18, %s14613_s18   ;;  %s10084_s20 = sphi %s14610_s20, %s14612_s20   ;;  %s10080_s21 = sphi %s14609_s21, %s14611_s21  }
 0x723   : >> { %6521 = vst [vmem:[%s10080_s21] sm:$0xff] %v6520_v26  ;;  %6523 = vst [vmem:[%s10080_s21 + $0x8] sm:$0xff] %v6522_v60  ;;  %v6526_v14 = vld [vmem:[%s10084_s20 + $0x18] sm:$0xff]  ;;  %v6528_v19 = vld [vmem:[%s10084_s20 + $0x20] sm:$0xff]  ;;  %p6647_p11 = scmp.ge.s32.totalorder %s6646_s28, %s14396_s26  ;;  %p6513_p12 = scmp.ge.s32.totalorder %s6514_s30, %s14396_s26 }
 0x724   : >> { %6525 = vst [vmem:[%s10080_s21 + $0x10] sm:$0xff] %v6524_v18  ;;  %v6530_v21 = vld [vmem:[%s10084_s20 + $0x28] sm:$0xff]  ;;  %6527 = vst [vmem:[%s10080_s21 + $0x18] sm:$0xff] %v6526_v14  ;;  %v6532_v10 = vld [vmem:[%s10084_s20 + $0x30] sm:$0xff] }
 0x725   : >> { %6529 = vst [vmem:[%s10080_s21 + $0x20] sm:$0xff] %v6528_v19  ;;  %6531 = vst [vmem:[%s10080_s21 + $0x28] sm:$0xff] %v6530_v21  ;;  %v6534_v27 = vld [vmem:[%s10084_s20 + $0x38] sm:$0xff]  ;;  %v6536_v25 = vld [vmem:[%s10084_s20 + $0x40] sm:$0xff]  ;;  %s14620_s28 = smov (%p6647_p11, %s6646_s28), 0 }
 0x726   : >> { %6533 = vst [vmem:[%s10080_s21 + $0x30] sm:$0xff] %v6532_v10  ;;  %6535 = vst [vmem:[%s10080_s21 + $0x38] sm:$0xff] %v6534_v27  ;;  %v6538_v15 = vld [vmem:[%s10084_s20 + $0x48] sm:$0xff]  ;;  %v6540_v32 = vld [vmem:[%s10084_s20 + $0x50] sm:$0xff]  ;;  %s6649_s29 = smul.u32 504, %s14620_s28  ;;  %s14613_s18 = smov %s14620_s28 }
 0x727   : >> { %6537 = vst [vmem:[%s10080_s21 + $0x40] sm:$0xff] %v6536_v25  ;;  %v6542_v8 = vld [vmem:[%s10084_s20 + $0x58] sm:$0xff]  ;;  %6539 = vst [vmem:[%s10080_s21 + $0x48] sm:$0xff] %v6538_v15  ;;  %v6544_v17 = vld [vmem:[%s10084_s20 + $0x60] sm:$0xff] }
 0x728   : >> { %6541 = vst [vmem:[%s10080_s21 + $0x50] sm:$0xff] %v6540_v32  ;;  %6543 = vst [vmem:[%s10080_s21 + $0x58] sm:$0xff] %v6542_v8  ;;  %v6546_v59 = vld [vmem:[%s10084_s20 + $0x68] sm:$0xff]  ;;  %v6548_v54 = vld [vmem:[%s10084_s20 + $0x70] sm:$0xff]  ;;  %s14469_s23 = scalar_lea.vmem %s14164_s24, %s6649_s29 [#allocation2]   ;;  %s14472_s17 = scalar_lea.vmem %s14390_s16, %s6649_s29  }
 0x729   : >> { %6545 = vst [vmem:[%s10080_s21 + $0x60] sm:$0xff] %v6544_v17  ;;  %6547 = vst [vmem:[%s10080_s21 + $0x68] sm:$0xff] %v6546_v59  ;;  %v6550_v36 = vld [vmem:[%s10084_s20 + $0x78] sm:$0xff]  ;;  %v6552_v0 = vld [vmem:[%s10084_s20 + $0x80] sm:$0xff] }
 0x72a   : >> { %6549 = vst [vmem:[%s10080_s21 + $0x70] sm:$0xff] %v6548_v54  ;;  %v6554_v52 = vld [vmem:[%s10084_s20 + $0x88] sm:$0xff]  ;;  %6551 = vst [vmem:[%s10080_s21 + $0x78] sm:$0xff] %v6550_v36  ;;  %v6556_v38 = vld [vmem:[%s10084_s20 + $0x90] sm:$0xff] }
 0x72b   : >> { %6553 = vst [vmem:[%s10080_s21 + $0x80] sm:$0xff] %v6552_v0  ;;  %6555 = vst [vmem:[%s10080_s21 + $0x88] sm:$0xff] %v6554_v52  ;;  %v6558_v41 = vld [vmem:[%s10084_s20 + $0x98] sm:$0xff]  ;;  %v6560_v12 = vld [vmem:[%s10084_s20 + $0xa0] sm:$0xff] }
 0x72c   : >> { %6557 = vst [vmem:[%s10080_s21 + $0x90] sm:$0xff] %v6556_v38  ;;  %6559 = vst [vmem:[%s10080_s21 + $0x98] sm:$0xff] %v6558_v41  ;;  %v6562_v39 = vld [vmem:[%s10084_s20 + $0xa8] sm:$0xff]  ;;  %v6564_v42 = vld [vmem:[%s10084_s20 + $0xb0] sm:$0xff] }
 0x72d   : >> { %6561 = vst [vmem:[%s10080_s21 + $0xa0] sm:$0xff] %v6560_v12  ;;  %v6566_v13 = vld [vmem:[%s10084_s20 + $0xb8] sm:$0xff]  ;;  %6563 = vst [vmem:[%s10080_s21 + $0xa8] sm:$0xff] %v6562_v39  ;;  %v6568_v43 = vld [vmem:[%s10084_s20 + $0xc0] sm:$0xff] }
 0x72e   : >> { %6565 = vst [vmem:[%s10080_s21 + $0xb0] sm:$0xff] %v6564_v42  ;;  %6567 = vst [vmem:[%s10080_s21 + $0xb8] sm:$0xff] %v6566_v13  ;;  %v6570_v49 = vld [vmem:[%s10084_s20 + $0xc8] sm:$0xff]  ;;  %v6572_v23 = vld [vmem:[%s10084_s20 + $0xd0] sm:$0xff] }
 0x72f   : >> { %6569 = vst [vmem:[%s10080_s21 + $0xc0] sm:$0xff] %v6568_v43  ;;  %6571 = vst [vmem:[%s10080_s21 + $0xc8] sm:$0xff] %v6570_v49  ;;  %v6574_v44 = vld [vmem:[%s10084_s20 + $0xd8] sm:$0xff]  ;;  %v6576_v62 = vld [vmem:[%s10084_s20 + $0xe0] sm:$0xff] }
 0x730   : >> { %6573 = vst [vmem:[%s10080_s21 + $0xd0] sm:$0xff] %v6572_v23  ;;  %v6578_v47 = vld [vmem:[%s10084_s20 + $0xe8] sm:$0xff]  ;;  %6575 = vst [vmem:[%s10080_s21 + $0xd8] sm:$0xff] %v6574_v44  ;;  %v6580_v3 = vld [vmem:[%s10084_s20 + $0xf0] sm:$0xff] }
 0x731   : >> { %6577 = vst [vmem:[%s10080_s21 + $0xe0] sm:$0xff] %v6576_v62  ;;  %6579 = vst [vmem:[%s10080_s21 + $0xe8] sm:$0xff] %v6578_v47  ;;  %v6582_v40 = vld [vmem:[%s10084_s20 + $0xf8] sm:$0xff]  ;;  %v6584_v9 = vld [vmem:[%s10084_s20 + $0x100] sm:$0xff] }
 0x732   : >> { %6581 = vst [vmem:[%s10080_s21 + $0xf0] sm:$0xff] %v6580_v3  ;;  %6583 = vst [vmem:[%s10080_s21 + $0xf8] sm:$0xff] %v6582_v40  ;;  %v6586_v53 = vld [vmem:[%s10084_s20 + $0x108] sm:$0xff]  ;;  %v6588_v55 = vld [vmem:[%s10084_s20 + $0x110] sm:$0xff] }
 0x733   : >> { %6585 = vst [vmem:[%s10080_s21 + $0x100] sm:$0xff] %v6584_v9  ;;  %v6590_v31 = vld [vmem:[%s10084_s20 + $0x118] sm:$0xff]  ;;  %6587 = vst [vmem:[%s10080_s21 + $0x108] sm:$0xff] %v6586_v53  ;;  %v6592_v37 = vld [vmem:[%s10084_s20 + $0x120] sm:$0xff] }
 0x734   : >> { %6589 = vst [vmem:[%s10080_s21 + $0x110] sm:$0xff] %v6588_v55  ;;  %6591 = vst [vmem:[%s10080_s21 + $0x118] sm:$0xff] %v6590_v31  ;;  %v6594_v4 = vld [vmem:[%s10084_s20 + $0x128] sm:$0xff]  ;;  %v6596_v29 = vld [vmem:[%s10084_s20 + $0x130] sm:$0xff] }
 0x735   : >> { %6593 = vst [vmem:[%s10080_s21 + $0x120] sm:$0xff] %v6592_v37  ;;  %6595 = vst [vmem:[%s10080_s21 + $0x128] sm:$0xff] %v6594_v4  ;;  %v6598_v51 = vld [vmem:[%s10084_s20 + $0x138] sm:$0xff]  ;;  %v6600_v56 = vld [vmem:[%s10084_s20 + $0x140] sm:$0xff] }
 0x736   : >> { %6597 = vst [vmem:[%s10080_s21 + $0x130] sm:$0xff] %v6596_v29  ;;  %v6602_v16 = vld [vmem:[%s10084_s20 + $0x148] sm:$0xff]  ;;  %6599 = vst [vmem:[%s10080_s21 + $0x138] sm:$0xff] %v6598_v51  ;;  %v6604_v7 = vld [vmem:[%s10084_s20 + $0x150] sm:$0xff] }
 0x737   : >> { %6601 = vst [vmem:[%s10080_s21 + $0x140] sm:$0xff] %v6600_v56  ;;  %6603 = vst [vmem:[%s10080_s21 + $0x148] sm:$0xff] %v6602_v16  ;;  %v6606_v22 = vld [vmem:[%s10084_s20 + $0x158] sm:$0xff]  ;;  %v6608_v5 = vld [vmem:[%s10084_s20 + $0x160] sm:$0xff] }
 0x738   : >> { %6605 = vst [vmem:[%s10080_s21 + $0x150] sm:$0xff] %v6604_v7  ;;  %6607 = vst [vmem:[%s10080_s21 + $0x158] sm:$0xff] %v6606_v22  ;;  %v6610_v30 = vld [vmem:[%s10084_s20 + $0x168] sm:$0xff]  ;;  %v6612_v58 = vld [vmem:[%s10084_s20 + $0x170] sm:$0xff] }
 0x739   : >> { %6609 = vst [vmem:[%s10080_s21 + $0x160] sm:$0xff] %v6608_v5  ;;  %v6614_v6 = vld [vmem:[%s10084_s20 + $0x178] sm:$0xff]  ;;  %6611 = vst [vmem:[%s10080_s21 + $0x168] sm:$0xff] %v6610_v30  ;;  %v6616_v46 = vld [vmem:[%s10084_s20 + $0x180] sm:$0xff] }
 0x73a   : >> { %6613 = vst [vmem:[%s10080_s21 + $0x170] sm:$0xff] %v6612_v58  ;;  %6615 = vst [vmem:[%s10080_s21 + $0x178] sm:$0xff] %v6614_v6  ;;  %v6618_v61 = vld [vmem:[%s10084_s20 + $0x188] sm:$0xff]  ;;  %v6620_v1 = vld [vmem:[%s10084_s20 + $0x190] sm:$0xff] }
 0x73b   : >> { %6617 = vst [vmem:[%s10080_s21 + $0x180] sm:$0xff] %v6616_v46  ;;  %6619 = vst [vmem:[%s10080_s21 + $0x188] sm:$0xff] %v6618_v61  ;;  %v6622_v2 = vld [vmem:[%s10084_s20 + $0x198] sm:$0xff]  ;;  %v6624_v11 = vld [vmem:[%s10084_s20 + $0x1a0] sm:$0xff] }
 0x73c   : >> { %6621 = vst [vmem:[%s10080_s21 + $0x190] sm:$0xff] %v6620_v1  ;;  %v6626_v24 = vld [vmem:[%s10084_s20 + $0x1a8] sm:$0xff]  ;;  %6623 = vst [vmem:[%s10080_s21 + $0x198] sm:$0xff] %v6622_v2  ;;  %v6628_v35 = vld [vmem:[%s10084_s20 + $0x1b0] sm:$0xff] }
 0x73d   : >> { %6625 = vst [vmem:[%s10080_s21 + $0x1a0] sm:$0xff] %v6624_v11  ;;  %6627 = vst [vmem:[%s10080_s21 + $0x1a8] sm:$0xff] %v6626_v24  ;;  %v6630_v20 = vld [vmem:[%s10084_s20 + $0x1b8] sm:$0xff]  ;;  %v6632_v57 = vld [vmem:[%s10084_s20 + $0x1c0] sm:$0xff] }
 0x73e   : >> { %6629 = vst [vmem:[%s10080_s21 + $0x1b0] sm:$0xff] %v6628_v35  ;;  %6631 = vst [vmem:[%s10080_s21 + $0x1b8] sm:$0xff] %v6630_v20  ;;  %v6634_v33 = vld [vmem:[%s10084_s20 + $0x1c8] sm:$0xff]  ;;  %v6636_v63 = vld [vmem:[%s10084_s20 + $0x1d0] sm:$0xff]  ;;  %6516 = sbr.rel (!%p6513_p12) target bundleno = 1826 (0x722), region = 170 }
 0x73f   : >> { %6633 = vst [vmem:[%s10080_s21 + $0x1c0] sm:$0xff] %v6632_v57  ;;  %v6638_v45 = vld [vmem:[%s10084_s20 + $0x1d8] sm:$0xff]  ;;  %6635 = vst [vmem:[%s10080_s21 + $0x1c8] sm:$0xff] %v6634_v33  ;;  %v6640_v28 = vld [vmem:[%s10084_s20 + $0x1e0] sm:$0xff] }
 0x740   : >> { %6637 = vst [vmem:[%s10080_s21 + $0x1d0] sm:$0xff] %v6636_v63  ;;  %6639 = vst [vmem:[%s10080_s21 + $0x1d8] sm:$0xff] %v6638_v45  ;;  %v6642_v48 = vld [vmem:[%s10084_s20 + $0x1e8] sm:$0xff]  ;;  %v6644_v50 = vld [vmem:[%s10084_s20 + $0x1f0] sm:$0xff]  ;;  %s14612_s20 = smov %s14469_s23 }
 0x741   : >> { %6641 = vst [vmem:[%s10080_s21 + $0x1e0] sm:$0xff] %v6640_v28  ;;  %6643 = vst [vmem:[%s10080_s21 + $0x1e8] sm:$0xff] %v6642_v48 }
 0x742   : >> { %6645 = vst [vmem:[%s10080_s21 + $0x1f0] sm:$0xff] %v6644_v50  ;;  %s14611_s21 = smov %s14472_s17 }
 0x743 PF: > { %10020 = sdivrem.u32 %s14618_s27, 63 }
 0x744   : > { %s7303_s29 = smul.u32 504, %s14396_s26 }
 0x746   : > { %s6657_s0 = scalar_lea.vmem %s14164_s24, %s7303_s29 [#allocation2]   ;;  %s6659_s1 = scalar_lea.vmem %s14390_s16, %s7303_s29  }
 0x74c   : > { %s10021_s2 = spop.drf %10020 }
 0x74d   : > { %p7305_p13 = scmp.le.s32.totalorder %s10021_s2, 0 }
 0x74e   : > { %s10094_s17 = smov (!%p7305_p13), %s6659_s1   ;;  %s10098_s3 = smov (!%p7305_p13), %s6657_s0  }
 0x74f   : > { %6750 = sbr.rel (%p7305_p13) target bundleno = 1884 (0x75c), region = 175  ;;  %s10102_s23 = smov (!%p7305_p13), 0  }
 0x750   : > { %s10106_s4 = smov (!%p7305_p13), 0  }
 0x754 LB: >> { %v6669_v34 = vld [vmem:[%s10100_s3] sm:$0xff]  ;;  %s6671_s21 = sadd.s32 1, %s10104_s23  ;;  %s6663_s4 = sadd.s32 1, %s10108_s4   ;;  %s10108_s4 = sphi %s10106_s4, %s6663_s4   ;;  %s10104_s23 = sphi %s10102_s23, %s10103_s23   ;;  %s10100_s3 = sphi %s10098_s3, %s6676_s3   ;;  %s10096_s17 = sphi %s10094_s17, %s6677_s17  }
 0x755   : >> { %6670 = vst [vmem:[%s10096_s17] sm:$0xff] %v6669_v34  ;;  %p6672_p0 = scmp.ge.s32.totalorder %s6671_s21, %s10021_s2  ;;  %p6662_p1 = scmp.ge.s32.totalorder %s6663_s4, %s10021_s2 }
 0x757   : >> { %s14622_s21 = smov (%p6672_p0, %s6671_s21), 0  ;;  %6665 = sbr.rel (!%p6662_p1) target bundleno = 1876 (0x754), region = 181 }
 0x758   : >> { %s7306_s24 = sshll.u32 %s14622_s21, 3  ;;  %s10103_s23 = smov %s14622_s21  }
 0x759   : >> { %s6676_s3 = scalar_lea.vmem %s6657_s0, %s7306_s24 [#allocation2]   ;;  %s6677_s17 = scalar_lea.vmem %s6659_s1, %s7306_s24  }
 0x75c PF: > { %p22_p2 = scmp.ge.s32.totalorder %s10207_s22, 4   ;;  %s14614_s18 = smov %s10072_s19 }
 0x75d   : > { %s14615_s19 = smov %s10215_s25  ;;  %s14616_s20 = smov %s10207_s22 }
 0x75e   :  { %24 = sbr.rel (!%p22_p2) target bundleno = 8 (0x8), region = 192 }

</bundles_post_ra>
